<compile_context>
chip_gen: v5e
topology: v5e:2x2
jax: 0.10.0
libtpu: 0.0.40
codegen_flags: <defaults>
</compile_context>

<pallas_src>
import functools

import jax
import jax.numpy as jnp
from jax.experimental import pallas as pl
from jax.experimental.pallas import tpu as pltpu


def _att_encoder_kernel(frames_ref, w_ref, out_ref, *, C, F):
    """One grid step = (bb batch, tt frame) tile, flattened to M = bb*tt matmul rows.

    frames_ref : (bb, tt, C*K)   bf16 framed input, coder-major along the lane axis
    w_ref      : (C*K, 3*C*F)    bf16 block-diagonal filterbank, cols = [K_all|Q_all|V_all]
    out_ref    : (bb, tt, C*F)   bf16 attention-mixed encoder output (query-coder-major)
    """
    bb, tt, CK = frames_ref.shape
    M = bb * tt
    CF = C * F

    # ---- Encoder bank: single fused block-diagonal matmul on the MXU ----
    # NOTE (perf review): at C=4 the contraction depth is CK=64 with 75% structural
    # zeros; that is fine -- this kernel is memory/VPU bound, and splitting into C
    # per-coder (M,K)@(K,3F) matmuls would only add MXU drain overhead.  At C>=8 the
    # same formulation fills the MXU naturally (CK>=128).
    frames = frames_ref[...].reshape(M, CK)                       # leading-dim collapse: free
    enc = jnp.dot(frames, w_ref[...],
                  preferred_element_type=jnp.float32)             # (M, 3*C*F) f32

    # 128-lane aligned K/Q/V groups; per-coder F-wide static sub-slices.
    k = [enc[:, 0 * CF + c * F: 0 * CF + (c + 1) * F] for c in range(C)]
    q = [enc[:, 1 * CF + c * F: 1 * CF + (c + 1) * F] for c in range(C)]
    v = [enc[:, 2 * CF + c * F: 2 * CF + (c + 1) * F] for c in range(C)]

    # Per query coder i: softmax over key coders j via elementwise max/add chains
    # (VPU only -- no concatenate, no C-wide lane reduce) and approx reciprocal +
    # one Newton step (EUP slot, otherwise idle).  Result is written straight into
    # out_ref's lane slice so no list of output columns stays live across the i loop.
    # TODO(synk): if this stage becomes VPU/XLU bound (most likely v7x), lane-tile q_i
    # across the full 128-lane K_all group and use one segmented reduce instead of C
    # separate (M,F)->(M,1) reductions per query coder.
    for i in range(C):
        s = [jnp.sum(q[i] * k[j], axis=-1, keepdims=True) for j in range(C)]
        m = s[0]
        for j in range(1, C):
            m = jnp.maximum(m, s[j])
        e = [jnp.exp(s[j] - m) for j in range(C)]
        denom = e[0]
        for j in range(1, C):
            denom = denom + e[j]
        inv = pl.reciprocal(denom, approx=True)      # EUP slot
        inv = inv * (2.0 - denom * inv)              # one Newton step -> ~f32 accuracy

        # out_i = (sum_j softmax_ij * v_j + v_i) / 2 ; accumulator seeded with v_i.
        acc = v[i]
        for j in range(C):
            acc = acc + (e[j] * inv) * v[j]
        out_ref[:, :, i * F:(i + 1) * F] = (
            (0.5 * acc).reshape(bb, tt, F).astype(out_ref.dtype))


def _frame_bt(x, K, stride, T):
    """(B, C, time) -> (B, T, C, K) overlapping frames, gather-free when K % stride == 0.

    Produces the (b, t)-row / coder-major-column layout directly, so only the raw-size
    reshaped signal is transposed (not the 2x-overlapped frames array).
    """
    B, C, time = x.shape
    if K % stride == 0:
        r = K // stride
        n_s = time // stride
        xr = x[:, :, :n_s * stride].reshape(B, C, n_s, stride)
        xr = jnp.transpose(xr, (0, 2, 1, 3))                      # (B, n_s, C, stride)
        return jnp.concatenate([xr[:, i:i + T] for i in range(r)], axis=-1)  # (B,T,C,K)
    # TODO(synk): gather fallback for K % stride != 0; a production kernel would DMA the
    # raw signal and frame it in VMEM with pl.ds slices instead.
    idx = jnp.arange(T)[:, None] * stride + jnp.arange(K)[None, :]
    return jnp.transpose(x[:, :, idx], (0, 2, 1, 3))


def _choose_tiles(B, T, m_target):
    """Pick (bb, tt): bb*tt ~= m_target rows, tt a multiple of 8, >= 2 grid steps if possible."""
    def cdiv(a, b):
        return -(-a // b)

    tt = min(T, m_target)
    tt = max(8, ((tt + 7) // 8) * 8)
    bb = max(1, min(B, m_target // tt))
    # Keep >= 2 grid steps so both v7x TensorCores (and the v5e/v6e pipeline) have work.
    while cdiv(B, bb) * cdiv(T, tt) < 2 and bb > 1:
        bb = max(1, bb // 2)
    while cdiv(B, bb) * cdiv(T, tt) < 2 and tt > 64:
        tt = max(64, ((tt // 2 + 7) // 8) * 8)
    return bb, tt


def att_encoder_pallas(x, weights, stride, *, m_target=2048,
                       out_dtype=jnp.bfloat16, vmem_limit_bytes=None):
    """x: (B, C, time), weights: (C, n_feats_out, K). Returns (B, C, F, T) (PyTorch layout).

    m_target rows per grid step: ~2048 amortizes the per-step pipeline overhead and keeps
    peak VMEM (~8 MiB at 2048 rows) well under the default scoped limits on every
    generation (v5e 16 MiB, v6e/v7x 32 MiB; v7x has only 64 MiB physical, so keep
    m_target <= ~2048 there).  If you raise m_target past ~4-5K rows, pass
    vmem_limit_bytes explicitly (v5e's default scoped VMEM is the smallest).
    """
    B, C, time = x.shape
    Cw, nfeat, K = weights.shape
    assert Cw == C and nfeat % 3 == 0
    F = nfeat // 3
    T = (time - K) // stride + 1
    CK, CF = C * K, C * F

    # ---- host-side packing: layout plumbing only, done in bf16 to halve HBM traffic ----
    xb = x.astype(jnp.bfloat16)                                   # cast BEFORE framing
    frames = _frame_bt(xb, K, stride, T).reshape(B, T, CK)        # (B, T, C*K) bf16
    # TODO(synk): framing could move fully in-kernel (DMA the raw signal + pl.ds strided
    # slices) to drop the remaining frames write/read pass over HBM.

    w_t = jnp.transpose(weights, (0, 2, 1))                       # (C, K, 3F)
    eye = jnp.eye(C, dtype=weights.dtype)

    def blockdiag(w):                                             # (C, K, F) -> (C*K, C*F)
        return (eye[:, None, :, None] * w[:, :, None, :]).reshape(CK, CF)

    w_packed = jnp.concatenate(
        [blockdiag(w_t[:, :, 0 * F:1 * F]),                       # K_all
         blockdiag(w_t[:, :, 1 * F:2 * F]),                       # Q_all
         blockdiag(w_t[:, :, 2 * F:3 * F])],                      # V_all
        axis=-1).astype(jnp.bfloat16)                             # (C*K, 3*C*F), tiny

    # ---- 2-D grid: (batch tiles, frame tiles); pad instead of shrinking tiles ----
    bb, tt = _choose_tiles(B, T, m_target)
    Bp = -(-B // bb) * bb
    Tp = -(-T // tt) * tt
    if (Bp, Tp) != (B, T):
        frames = jnp.pad(frames, ((0, Bp - B), (0, Tp - T), (0, 0)))
    grid = (Bp // bb, Tp // tt)

    out = pl.pallas_call(
        functools.partial(_att_encoder_kernel, C=C, F=F),
        out_shape=jax.ShapeDtypeStruct((Bp, Tp, CF), out_dtype),
        grid_spec=pltpu.PrefetchScalarGridSpec(
            num_scalar_prefetch=0,
            grid=grid,
            in_specs=[
                pl.BlockSpec((bb, tt, CK), lambda bi, tj: (bi, tj, 0)),
                # Constant block index -> the small weight block is DMA'd once and stays
                # resident in VMEM; no per-(bi, tj)-step refetch.
                pl.BlockSpec((CK, 3 * CF), lambda bi, tj: (0, 0)),
            ],
            out_specs=pl.BlockSpec((bb, tt, CF), lambda bi, tj: (bi, tj, 0)),
        ),
        compiler_params=pltpu.CompilerParams(
            dimension_semantics=("parallel", "parallel"),
            vmem_limit_bytes=vmem_limit_bytes),
    )(frames, w_packed)

    # (Bp, Tp, C*F) -> (B, C, F, T): cheap wrapper-side fix-up to the PyTorch layout.
    # A fused downstream consumer should take the lane-dense bf16 (B, T, C*F) directly.
    out = out[:B, :T].reshape(B, T, C, F)
    return jnp.transpose(out, (0, 2, 3, 1))


def att_encoder_ref(x, weights, stride):
    """Pure-JAX f32 reference mirroring the PyTorch forward exactly."""
    B, C, time = x.shape
    _, nfeat, K = weights.shape
    F = nfeat // 3
    T = (time - K) // stride + 1
    idx = jnp.arange(T)[:, None] * stride + jnp.arange(K)[None, :]
    frames = x[:, :, idx]                                         # (B, C, T, K)
    enc = jnp.einsum('bctk,cnk->bcnt', frames, weights)           # (B, C, nfeat, T)
    k = enc[:, :, 0 * F:1 * F, :]
    q = enc[:, :, 1 * F:2 * F, :]
    v = enc[:, :, 2 * F:3 * F, :]
    s = jnp.einsum('bjft,bift->bijt', k, q)                       # (B, Cq, Ck, T)
    w = jax.nn.softmax(s, axis=2)[:, :, :, None, :]               # (B, Cq, Ck, 1, T)
    out = (jnp.sum(w * v[:, None], axis=2) + v) / 2.0             # (B, C, F, T)
    return out


if __name__ == "__main__":
    # Small filterbank-like shapes: 4 coders, kernel 16, stride 8, F=32 features (C*F = 128).
    # T_frames deliberately not a multiple of 8 to exercise the padding / 2-D grid path.
    B, C = 2, 4
    K, stride, F = 16, 8, 32
    nfeat = 3 * F
    T_frames = 130
    time = stride * (T_frames - 1) + K                            # 1048

    key = jax.random.PRNGKey(0)
    kx, kw = jax.random.split(key)
    x = jax.random.normal(kx, (B, C, time), dtype=jnp.float32)
    # Deterministic per-coder filterbank weights (Conv1d(1 -> nfeat, K, stride), no bias).
    weights = 0.1 * jax.random.normal(kw, (C, nfeat, K), dtype=jnp.float32)

    out = att_encoder_pallas(x, weights, stride)
    out = jax.block_until_ready(out)

    ref = att_encoder_ref(x, weights, stride)
    assert out.shape == (B, C, F, T_frames), out.shape
    # bf16 MXU operands + bf16 output -> relaxed tolerance vs the f32 reference.
    err = float(jnp.max(jnp.abs(out.astype(jnp.float32) - ref)))
    assert jnp.allclose(out.astype(jnp.float32), ref, rtol=3e-2, atol=3e-2), err

    print("KERNEL_OK")
</pallas_src>

<mosaic_0001>
module attributes {stable_mosaic.version = 11 : i64} {
  func.func @_att_encoder_kernel(%arg0: i32, %arg1: i32, %arg2: memref<1x136x64xbf16, #tpu.memory_space<vmem>>, %arg3: memref<64x384xbf16, #tpu.memory_space<vmem>>, %arg4: memref<1x136x128xbf16, #tpu.memory_space<vmem>>) attributes {dimension_semantics = [#tpu.dimension_semantics<parallel>, #tpu.dimension_semantics<parallel>], iteration_bounds = array<i64: 2, 1>, scalar_prefetch = 0 : i64, scratch_operands = 0 : i64, tpu.core_type = #tpu.core_type<tc>, window_params = [{transform_indices = @transform_0, window_bounds = array<i64: 1, 136, 64>}, {pipeline_mode = #tpu.pipeline_mode<synchronous>, transform_indices = @transform_1, window_bounds = array<i64: 64, 384>}, {transform_indices = @transform_2, window_bounds = array<i64: 1, 136, 128>}]} {
    %c0 = arith.constant 0 : index
    %c0_0 = arith.constant 0 : index
    %c0_1 = arith.constant 0 : index
    %0 = vector.load %arg2[%c0, %c0_0, %c0_1] : memref<1x136x64xbf16, #tpu.memory_space<vmem>>, vector<1x136x64xbf16>
    %1 = vector.shape_cast %0 : vector<1x136x64xbf16> to vector<136x64xbf16>
    %c0_2 = arith.constant 0 : index
    %c0_3 = arith.constant 0 : index
    %2 = vector.load %arg3[%c0_2, %c0_3] : memref<64x384xbf16, #tpu.memory_space<vmem>>, vector<64x384xbf16>
    %cst = arith.constant dense<0.000000e+00> : vector<136x384xf32>
    %3 = tpu.matmul %1, %2, %cst {dimension_numbers = #tpu.dot_dimension_numbers<[1], [0], [0], [1], [0, 0, 1, 1], [], []>} : vector<136x64xbf16>, vector<64x384xbf16>, vector<136x384xf32> -> vector<136x384xf32>
    %4 = vector.extract_strided_slice %3 {offsets = [0, 0], sizes = [136, 32], strides = [1, 1]} : vector<136x384xf32> to vector<136x32xf32>
    %5 = vector.extract_strided_slice %3 {offsets = [0, 32], sizes = [136, 32], strides = [1, 1]} : vector<136x384xf32> to vector<136x32xf32>
    %6 = vector.extract_strided_slice %3 {offsets = [0, 64], sizes = [136, 32], strides = [1, 1]} : vector<136x384xf32> to vector<136x32xf32>
    %7 = vector.extract_strided_slice %3 {offsets = [0, 96], sizes = [136, 32], strides = [1, 1]} : vector<136x384xf32> to vector<136x32xf32>
    %8 = vector.extract_strided_slice %3 {offsets = [0, 128], sizes = [136, 32], strides = [1, 1]} : vector<136x384xf32> to vector<136x32xf32>
    %9 = vector.extract_strided_slice %3 {offsets = [0, 160], sizes = [136, 32], strides = [1, 1]} : vector<136x384xf32> to vector<136x32xf32>
    %10 = vector.extract_strided_slice %3 {offsets = [0, 192], sizes = [136, 32], strides = [1, 1]} : vector<136x384xf32> to vector<136x32xf32>
    %11 = vector.extract_strided_slice %3 {offsets = [0, 224], sizes = [136, 32], strides = [1, 1]} : vector<136x384xf32> to vector<136x32xf32>
    %12 = vector.extract_strided_slice %3 {offsets = [0, 256], sizes = [136, 32], strides = [1, 1]} : vector<136x384xf32> to vector<136x32xf32>
    %13 = vector.extract_strided_slice %3 {offsets = [0, 288], sizes = [136, 32], strides = [1, 1]} : vector<136x384xf32> to vector<136x32xf32>
    %14 = vector.extract_strided_slice %3 {offsets = [0, 320], sizes = [136, 32], strides = [1, 1]} : vector<136x384xf32> to vector<136x32xf32>
    %15 = vector.extract_strided_slice %3 {offsets = [0, 352], sizes = [136, 32], strides = [1, 1]} : vector<136x384xf32> to vector<136x32xf32>
    %16 = arith.mulf %8, %4 : vector<136x32xf32>
    %cst_4 = arith.constant dense<0.000000e+00> : vector<136xf32>
    %17 = vector.multi_reduction <add>, %16, %cst_4 [1] : vector<136x32xf32> to vector<136xf32>
    %18 = vector.shape_cast %17 : vector<136xf32> to vector<136x1xf32>
    %19 = arith.mulf %8, %5 : vector<136x32xf32>
    %cst_5 = arith.constant dense<0.000000e+00> : vector<136xf32>
    %20 = vector.multi_reduction <add>, %19, %cst_5 [1] : vector<136x32xf32> to vector<136xf32>
    %21 = vector.shape_cast %20 : vector<136xf32> to vector<136x1xf32>
    %22 = arith.mulf %8, %6 : vector<136x32xf32>
    %cst_6 = arith.constant dense<0.000000e+00> : vector<136xf32>
    %23 = vector.multi_reduction <add>, %22, %cst_6 [1] : vector<136x32xf32> to vector<136xf32>
    %24 = vector.shape_cast %23 : vector<136xf32> to vector<136x1xf32>
    %25 = arith.mulf %8, %7 : vector<136x32xf32>
    %cst_7 = arith.constant dense<0.000000e+00> : vector<136xf32>
    %26 = vector.multi_reduction <add>, %25, %cst_7 [1] : vector<136x32xf32> to vector<136xf32>
    %27 = vector.shape_cast %26 : vector<136xf32> to vector<136x1xf32>
    %28 = arith.maximumf %18, %21 : vector<136x1xf32>
    %29 = arith.maximumf %28, %24 : vector<136x1xf32>
    %30 = arith.maximumf %29, %27 : vector<136x1xf32>
    %31 = arith.subf %18, %30 : vector<136x1xf32>
    %32 = math.exp %31 : vector<136x1xf32>
    %33 = arith.subf %21, %30 : vector<136x1xf32>
    %34 = math.exp %33 : vector<136x1xf32>
    %35 = arith.subf %24, %30 : vector<136x1xf32>
    %36 = math.exp %35 : vector<136x1xf32>
    %37 = arith.subf %27, %30 : vector<136x1xf32>
    %38 = math.exp %37 : vector<136x1xf32>
    %39 = arith.addf %32, %34 : vector<136x1xf32>
    %40 = arith.addf %39, %36 : vector<136x1xf32>
    %41 = arith.addf %40, %38 : vector<136x1xf32>
    %42 = tpu.reciprocal %41 {approx = true} : vector<136x1xf32> -> vector<136x1xf32>
    %43 = arith.mulf %41, %42 : vector<136x1xf32>
    %cst_8 = arith.constant 2.000000e+00 : f32
    %44 = vector.broadcast %cst_8 : f32 to vector<136x1xf32>
    %45 = arith.subf %44, %43 : vector<136x1xf32>
    %46 = arith.mulf %42, %45 : vector<136x1xf32>
    %47 = arith.mulf %32, %46 : vector<136x1xf32>
    %48 = vector.broadcast %47 : vector<136x1xf32> to vector<136x32xf32>
    %49 = arith.mulf %48, %12 : vector<136x32xf32>
    %50 = arith.addf %12, %49 : vector<136x32xf32>
    %51 = arith.mulf %34, %46 : vector<136x1xf32>
    %52 = vector.broadcast %51 : vector<136x1xf32> to vector<136x32xf32>
    %53 = arith.mulf %52, %13 : vector<136x32xf32>
    %54 = arith.addf %50, %53 : vector<136x32xf32>
    %55 = arith.mulf %36, %46 : vector<136x1xf32>
    %56 = vector.broadcast %55 : vector<136x1xf32> to vector<136x32xf32>
    %57 = arith.mulf %56, %14 : vector<136x32xf32>
    %58 = arith.addf %54, %57 : vector<136x32xf32>
    %59 = arith.mulf %38, %46 : vector<136x1xf32>
    %60 = vector.broadcast %59 : vector<136x1xf32> to vector<136x32xf32>
    %61 = arith.mulf %60, %15 : vector<136x32xf32>
    %62 = arith.addf %58, %61 : vector<136x32xf32>
    %cst_9 = arith.constant 5.000000e-01 : f32
    %63 = vector.broadcast %cst_9 : f32 to vector<136x32xf32>
    %64 = arith.mulf %63, %62 : vector<136x32xf32>
    %65 = vector.shape_cast %64 : vector<136x32xf32> to vector<1x136x32xf32>
    %66 = arith.truncf %65 : vector<1x136x32xf32> to vector<1x136x32xbf16>
    %c0_10 = arith.constant 0 : index
    %c0_11 = arith.constant 0 : index
    %c0_12 = arith.constant 0 : index
    %67 = vector.load %arg4[%c0_10, %c0_11, %c0_12] : memref<1x136x128xbf16, #tpu.memory_space<vmem>>, vector<1x136x32xbf16>
    tpu.vector_store %arg4[%c0_10, %c0_11, %c0_12], %66 {strides = array<i32>} : memref<1x136x128xbf16, #tpu.memory_space<vmem>>, vector<1x136x32xbf16>,
    %68 = arith.mulf %9, %4 : vector<136x32xf32>
    %cst_13 = arith.constant dense<0.000000e+00> : vector<136xf32>
    %69 = vector.multi_reduction <add>, %68, %cst_13 [1] : vector<136x32xf32> to vector<136xf32>
    %70 = vector.shape_cast %69 : vector<136xf32> to vector<136x1xf32>
    %71 = arith.mulf %9, %5 : vector<136x32xf32>
    %cst_14 = arith.constant dense<0.000000e+00> : vector<136xf32>
    %72 = vector.multi_reduction <add>, %71, %cst_14 [1] : vector<136x32xf32> to vector<136xf32>
    %73 = vector.shape_cast %72 : vector<136xf32> to vector<136x1xf32>
    %74 = arith.mulf %9, %6 : vector<136x32xf32>
    %cst_15 = arith.constant dense<0.000000e+00> : vector<136xf32>
    %75 = vector.multi_reduction <add>, %74, %cst_15 [1] : vector<136x32xf32> to vector<136xf32>
    %76 = vector.shape_cast %75 : vector<136xf32> to vector<136x1xf32>
    %77 = arith.mulf %9, %7 : vector<136x32xf32>
    %cst_16 = arith.constant dense<0.000000e+00> : vector<136xf32>
    %78 = vector.multi_reduction <add>, %77, %cst_16 [1] : vector<136x32xf32> to vector<136xf32>
    %79 = vector.shape_cast %78 : vector<136xf32> to vector<136x1xf32>
    %80 = arith.maximumf %70, %73 : vector<136x1xf32>
    %81 = arith.maximumf %80, %76 : vector<136x1xf32>
    %82 = arith.maximumf %81, %79 : vector<136x1xf32>
    %83 = arith.subf %70, %82 : vector<136x1xf32>
    %84 = math.exp %83 : vector<136x1xf32>
    %85 = arith.subf %73, %82 : vector<136x1xf32>
    %86 = math.exp %85 : vector<136x1xf32>
    %87 = arith.subf %76, %82 : vector<136x1xf32>
    %88 = math.exp %87 : vector<136x1xf32>
    %89 = arith.subf %79, %82 : vector<136x1xf32>
    %90 = math.exp %89 : vector<136x1xf32>
    %91 = arith.addf %84, %86 : vector<136x1xf32>
    %92 = arith.addf %91, %88 : vector<136x1xf32>
    %93 = arith.addf %92, %90 : vector<136x1xf32>
    %94 = tpu.reciprocal %93 {approx = true} : vector<136x1xf32> -> vector<136x1xf32>
    %95 = arith.mulf %93, %94 : vector<136x1xf32>
    %cst_17 = arith.constant 2.000000e+00 : f32
    %96 = vector.broadcast %cst_17 : f32 to vector<136x1xf32>
    %97 = arith.subf %96, %95 : vector<136x1xf32>
    %98 = arith.mulf %94, %97 : vector<136x1xf32>
    %99 = arith.mulf %84, %98 : vector<136x1xf32>
    %100 = vector.broadcast %99 : vector<136x1xf32> to vector<136x32xf32>
    %101 = arith.mulf %100, %12 : vector<136x32xf32>
    %102 = arith.addf %13, %101 : vector<136x32xf32>
    %103 = arith.mulf %86, %98 : vector<136x1xf32>
    %104 = vector.broadcast %103 : vector<136x1xf32> to vector<136x32xf32>
    %105 = arith.mulf %104, %13 : vector<136x32xf32>
    %106 = arith.addf %102, %105 : vector<136x32xf32>
    %107 = arith.mulf %88, %98 : vector<136x1xf32>
    %108 = vector.broadcast %107 : vector<136x1xf32> to vector<136x32xf32>
    %109 = arith.mulf %108, %14 : vector<136x32xf32>
    %110 = arith.addf %106, %109 : vector<136x32xf32>
    %111 = arith.mulf %90, %98 : vector<136x1xf32>
    %112 = vector.broadcast %111 : vector<136x1xf32> to vector<136x32xf32>
    %113 = arith.mulf %112, %15 : vector<136x32xf32>
    %114 = arith.addf %110, %113 : vector<136x32xf32>
    %cst_18 = arith.constant 5.000000e-01 : f32
    %115 = vector.broadcast %cst_18 : f32 to vector<136x32xf32>
    %116 = arith.mulf %115, %114 : vector<136x32xf32>
    %117 = vector.shape_cast %116 : vector<136x32xf32> to vector<1x136x32xf32>
    %118 = arith.truncf %117 : vector<1x136x32xf32> to vector<1x136x32xbf16>
    %c0_19 = arith.constant 0 : index
    %c0_20 = arith.constant 0 : index
    %c32 = arith.constant 32 : index
    %119 = vector.load %arg4[%c0_19, %c0_20, %c32] : memref<1x136x128xbf16, #tpu.memory_space<vmem>>, vector<1x136x32xbf16>
    tpu.vector_store %arg4[%c0_19, %c0_20, %c32], %118 {strides = array<i32>} : memref<1x136x128xbf16, #tpu.memory_space<vmem>>, vector<1x136x32xbf16>,
    %120 = arith.mulf %10, %4 : vector<136x32xf32>
    %cst_21 = arith.constant dense<0.000000e+00> : vector<136xf32>
    %121 = vector.multi_reduction <add>, %120, %cst_21 [1] : vector<136x32xf32> to vector<136xf32>
    %122 = vector.shape_cast %121 : vector<136xf32> to vector<136x1xf32>
    %123 = arith.mulf %10, %5 : vector<136x32xf32>
    %cst_22 = arith.constant dense<0.000000e+00> : vector<136xf32>
    %124 = vector.multi_reduction <add>, %123, %cst_22 [1] : vector<136x32xf32> to vector<136xf32>
    %125 = vector.shape_cast %124 : vector<136xf32> to vector<136x1xf32>
    %126 = arith.mulf %10, %6 : vector<136x32xf32>
    %cst_23 = arith.constant dense<0.000000e+00> : vector<136xf32>
    %127 = vector.multi_reduction <add>, %126, %cst_23 [1] : vector<136x32xf32> to vector<136xf32>
    %128 = vector.shape_cast %127 : vector<136xf32> to vector<136x1xf32>
    %129 = arith.mulf %10, %7 : vector<136x32xf32>
    %cst_24 = arith.constant dense<0.000000e+00> : vector<136xf32>
    %130 = vector.multi_reduction <add>, %129, %cst_24 [1] : vector<136x32xf32> to vector<136xf32>
    %131 = vector.shape_cast %130 : vector<136xf32> to vector<136x1xf32>
    %132 = arith.maximumf %122, %125 : vector<136x1xf32>
    %133 = arith.maximumf %132, %128 : vector<136x1xf32>
    %134 = arith.maximumf %133, %131 : vector<136x1xf32>
    %135 = arith.subf %122, %134 : vector<136x1xf32>
    %136 = math.exp %135 : vector<136x1xf32>
    %137 = arith.subf %125, %134 : vector<136x1xf32>
    %138 = math.exp %137 : vector<136x1xf32>
    %139 = arith.subf %128, %134 : vector<136x1xf32>
    %140 = math.exp %139 : vector<136x1xf32>
    %141 = arith.subf %131, %134 : vector<136x1xf32>
    %142 = math.exp %141 : vector<136x1xf32>
    %143 = arith.addf %136, %138 : vector<136x1xf32>
    %144 = arith.addf %143, %140 : vector<136x1xf32>
    %145 = arith.addf %144, %142 : vector<136x1xf32>
    %146 = tpu.reciprocal %145 {approx = true} : vector<136x1xf32> -> vector<136x1xf32>
    %147 = arith.mulf %145, %146 : vector<136x1xf32>
    %cst_25 = arith.constant 2.000000e+00 : f32
    %148 = vector.broadcast %cst_25 : f32 to vector<136x1xf32>
    %149 = arith.subf %148, %147 : vector<136x1xf32>
    %150 = arith.mulf %146, %149 : vector<136x1xf32>
    %151 = arith.mulf %136, %150 : vector<136x1xf32>
    %152 = vector.broadcast %151 : vector<136x1xf32> to vector<136x32xf32>
    %153 = arith.mulf %152, %12 : vector<136x32xf32>
    %154 = arith.addf %14, %153 : vector<136x32xf32>
    %155 = arith.mulf %138, %150 : vector<136x1xf32>
    %156 = vector.broadcast %155 : vector<136x1xf32> to vector<136x32xf32>
    %157 = arith.mulf %156, %13 : vector<136x32xf32>
    %158 = arith.addf %154, %157 : vector<136x32xf32>
    %159 = arith.mulf %140, %150 : vector<136x1xf32>
    %160 = vector.broadcast %159 : vector<136x1xf32> to vector<136x32xf32>
    %161 = arith.mulf %160, %14 : vector<136x32xf32>
    %162 = arith.addf %158, %161 : vector<136x32xf32>
    %163 = arith.mulf %142, %150 : vector<136x1xf32>
    %164 = vector.broadcast %163 : vector<136x1xf32> to vector<136x32xf32>
    %165 = arith.mulf %164, %15 : vector<136x32xf32>
    %166 = arith.addf %162, %165 : vector<136x32xf32>
    %cst_26 = arith.constant 5.000000e-01 : f32
    %167 = vector.broadcast %cst_26 : f32 to vector<136x32xf32>
    %168 = arith.mulf %167, %166 : vector<136x32xf32>
    %169 = vector.shape_cast %168 : vector<136x32xf32> to vector<1x136x32xf32>
    %170 = arith.truncf %169 : vector<1x136x32xf32> to vector<1x136x32xbf16>
    %c0_27 = arith.constant 0 : index
    %c0_28 = arith.constant 0 : index
    %c64 = arith.constant 64 : index
    %171 = vector.load %arg4[%c0_27, %c0_28, %c64] : memref<1x136x128xbf16, #tpu.memory_space<vmem>>, vector<1x136x32xbf16>
    tpu.vector_store %arg4[%c0_27, %c0_28, %c64], %170 {strides = array<i32>} : memref<1x136x128xbf16, #tpu.memory_space<vmem>>, vector<1x136x32xbf16>,
    %172 = arith.mulf %11, %4 : vector<136x32xf32>
    %cst_29 = arith.constant dense<0.000000e+00> : vector<136xf32>
    %173 = vector.multi_reduction <add>, %172, %cst_29 [1] : vector<136x32xf32> to vector<136xf32>
    %174 = vector.shape_cast %173 : vector<136xf32> to vector<136x1xf32>
    %175 = arith.mulf %11, %5 : vector<136x32xf32>
    %cst_30 = arith.constant dense<0.000000e+00> : vector<136xf32>
    %176 = vector.multi_reduction <add>, %175, %cst_30 [1] : vector<136x32xf32> to vector<136xf32>
    %177 = vector.shape_cast %176 : vector<136xf32> to vector<136x1xf32>
    %178 = arith.mulf %11, %6 : vector<136x32xf32>
    %cst_31 = arith.constant dense<0.000000e+00> : vector<136xf32>
    %179 = vector.multi_reduction <add>, %178, %cst_31 [1] : vector<136x32xf32> to vector<136xf32>
    %180 = vector.shape_cast %179 : vector<136xf32> to vector<136x1xf32>
    %181 = arith.mulf %11, %7 : vector<136x32xf32>
    %cst_32 = arith.constant dense<0.000000e+00> : vector<136xf32>
    %182 = vector.multi_reduction <add>, %181, %cst_32 [1] : vector<136x32xf32> to vector<136xf32>
    %183 = vector.shape_cast %182 : vector<136xf32> to vector<136x1xf32>
    %184 = arith.maximumf %174, %177 : vector<136x1xf32>
    %185 = arith.maximumf %184, %180 : vector<136x1xf32>
    %186 = arith.maximumf %185, %183 : vector<136x1xf32>
    %187 = arith.subf %174, %186 : vector<136x1xf32>
    %188 = math.exp %187 : vector<136x1xf32>
    %189 = arith.subf %177, %186 : vector<136x1xf32>
    %190 = math.exp %189 : vector<136x1xf32>
    %191 = arith.subf %180, %186 : vector<136x1xf32>
    %192 = math.exp %191 : vector<136x1xf32>
    %193 = arith.subf %183, %186 : vector<136x1xf32>
    %194 = math.exp %193 : vector<136x1xf32>
    %195 = arith.addf %188, %190 : vector<136x1xf32>
    %196 = arith.addf %195, %192 : vector<136x1xf32>
    %197 = arith.addf %196, %194 : vector<136x1xf32>
    %198 = tpu.reciprocal %197 {approx = true} : vector<136x1xf32> -> vector<136x1xf32>
    %199 = arith.mulf %197, %198 : vector<136x1xf32>
    %cst_33 = arith.constant 2.000000e+00 : f32
    %200 = vector.broadcast %cst_33 : f32 to vector<136x1xf32>
    %201 = arith.subf %200, %199 : vector<136x1xf32>
    %202 = arith.mulf %198, %201 : vector<136x1xf32>
    %203 = arith.mulf %188, %202 : vector<136x1xf32>
    %204 = vector.broadcast %203 : vector<136x1xf32> to vector<136x32xf32>
    %205 = arith.mulf %204, %12 : vector<136x32xf32>
    %206 = arith.addf %15, %205 : vector<136x32xf32>
    %207 = arith.mulf %190, %202 : vector<136x1xf32>
    %208 = vector.broadcast %207 : vector<136x1xf32> to vector<136x32xf32>
    %209 = arith.mulf %208, %13 : vector<136x32xf32>
    %210 = arith.addf %206, %209 : vector<136x32xf32>
    %211 = arith.mulf %192, %202 : vector<136x1xf32>
    %212 = vector.broadcast %211 : vector<136x1xf32> to vector<136x32xf32>
    %213 = arith.mulf %212, %14 : vector<136x32xf32>
    %214 = arith.addf %210, %213 : vector<136x32xf32>
    %215 = arith.mulf %194, %202 : vector<136x1xf32>
    %216 = vector.broadcast %215 : vector<136x1xf32> to vector<136x32xf32>
    %217 = arith.mulf %216, %15 : vector<136x32xf32>
    %218 = arith.addf %214, %217 : vector<136x32xf32>
    %cst_34 = arith.constant 5.000000e-01 : f32
    %219 = vector.broadcast %cst_34 : f32 to vector<136x32xf32>
    %220 = arith.mulf %219, %218 : vector<136x32xf32>
    %221 = vector.shape_cast %220 : vector<136x32xf32> to vector<1x136x32xf32>
    %222 = arith.truncf %221 : vector<1x136x32xf32> to vector<1x136x32xbf16>
    %c0_35 = arith.constant 0 : index
    %c0_36 = arith.constant 0 : index
    %c96 = arith.constant 96 : index
    %223 = vector.load %arg4[%c0_35, %c0_36, %c96] : memref<1x136x128xbf16, #tpu.memory_space<vmem>>, vector<1x136x32xbf16>
    tpu.vector_store %arg4[%c0_35, %c0_36, %c96], %222 {strides = array<i32>} : memref<1x136x128xbf16, #tpu.memory_space<vmem>>, vector<1x136x32xbf16>,
    return
  }
  func.func @transform_0(%arg0: i32, %arg1: i32) -> (i32, i32, i32) {
    %c0_i32 = arith.constant 0 : i32
    %c0_i32_0 = arith.constant 0 : i32
    return %arg0, %arg1, %c0_i32 : i32, i32, i32
  }
  func.func @transform_1(%arg0: i32, %arg1: i32) -> (i32, i32) {
    %c0_i32 = arith.constant 0 : i32
    %c0_i32_0 = arith.constant 0 : i32
    %c0_i32_1 = arith.constant 0 : i32
    return %c0_i32, %c0_i32_0 : i32, i32
  }
  func.func @transform_2(%arg0: i32, %arg1: i32) -> (i32, i32, i32) {
    %c0_i32 = arith.constant 0 : i32
    %c0_i32_0 = arith.constant 0 : i32
    return %arg0, %arg1, %c0_i32 : i32, i32, i32
  }
}

</mosaic_0001>

<bundles_post_ra>
// kernel: tpu_custom_call.1
= control target key start
LH: loop header
LB: loop body
LE: loop exit
PB: predicated region body
PF: predicated region fallthrough
CT: control target
= control target key end

     0   :  { %7 = vsyncpa [#allocation3], 0  ;;  %s12075_s0 = inlined_call_operand.vmem [shape: bf16[2,136,64], index: 0, kind: input, shape index: {}]   ;;  %s12076_s1 = inlined_call_operand.vmem [shape: bf16[64,384], index: 1, kind: input, shape index: {}]   ;;  %s12077_s2 = inlined_call_operand.hbm [shape: bf16[2,136,128], index: 2, kind: output, shape index: {}]  }
   0x1   :  { %9 = vsyncpa [#allocation3 + $0x1], 0  ;;  %s6658_s9 = smov 0   ;;  %s6660_s10 = smov 0  }
   0x2   :  { %s6662_s11 = smov 0   ;;  %s6664_s12 = smov 0  }
   0x3   :  { %s6666_s13 = smov 0   ;;  %s6668_s14 = smov 0  }
   0x4 LB: > { %s5669_s15 = sadd.s32 4294967295, %s6637_s14   ;;  %s5670_s16 = sadd.s32 4294967294, %s6637_s14   ;;  %s6637_s14 = sphi %s6668_s14, %s15_s14   ;;  %s6633_s13 = sphi %s6666_s13, %s13206_s13   ;;  %s6629_s12 = sphi %s6664_s12, %s13205_s12   ;;  %s6625_s11 = sphi %s6662_s11, %s13204_s11   ;;  %s6621_s10 = sphi %s6660_s10, %s13203_s10   ;;  %s6617_s9 = sphi %s6658_s9, %s13202_s9  }
   0x5   : > { %s27_s17 = sadd.s32 1, %s6633_s13  ;;  %s85_s18 = sadd.s32 1, %s6625_s11 }
   0x6   : > { %p29_p0 = scmp.ge.s32.totalorder %s27_s17, 2  ;;  %p95_p1 = scmp.ne.s32.totalorder %s6625_s11, %s6621_s10 }
   0x7   : > { %p96_p2 = scmp.eq.s32.totalorder %s5669_s15, 1  ;;  %p101_p3 = scmp.ne.s32.totalorder %s6621_s10, %s6617_s9 }
   0x8   : > { %s13208_s17 = smov (%p29_p0, %s27_s17), 0  ;;  %p102_p5 = scmp.eq.s32.totalorder %s5670_s16, 1 }
   0x9   : > { %p6698_p4 = por %p96_p2, %p95_p1  ;;  %s80_s20 = ssub.s32 %s6633_s13, %s13208_s17 }
   0xa   : > { %p5673_p6 = scmp.ge.s32.totalorder %s6637_s14, 1  ;;  %p83_p7 = scmp.eq.s32.totalorder %s80_s20, 0 }
   0xb   : > { %p6705_p8 = por %p102_p5, %p101_p3  ;;  %p136_p9 = scmp.lt.s32.totalorder %s6637_s14, 3 }
   0xc   : > { %s6711_s22 = scalar_select %p83_p7, %s6625_s11, %s85_s18  }
   0xd   : > { %p137_p10 = pnand %p5673_p6, %p136_p9 }
   0xf   : > { %140 = sbr.rel (%p137_p10) target bundleno = 4215 (0x1077), region = 28 }
  0x14   : > { %v5745_v0 = vld [vmem:[%s12076_s1 + $0x48] sm:$0xf]  ;;  %v5803_v1 = vld [vmem:[%s12076_s1 + $0x50] sm:$0xf0]  ;;  %v5802_v2 = vld [vmem:[%s12076_s1 + $0x4c] sm:$0xf] }
  0x15   : > { %v5746_v3 = vor.u32 %v5803_v1, %v5745_v0  ;;  %v5747_v4 = vld [vmem:[%s12076_s1 + $0x54] sm:$0xf0]  ;;  %v5733_v5 = vld [vmem:[%s12076_s1 + $0x30] sm:$0xf]  ;;  %v5800_v6 = vld [vmem:[%s12076_s1 + $0x38] sm:$0xf0] }
  0x16   : > { %v5750_v7 = vor.u32 %v5802_v2, %v5747_v4  ;;  %v5799_v8 = vld [vmem:[%s12076_s1 + $0x34] sm:$0xf]  ;;  %v5735_v9 = vld [vmem:[%s12076_s1 + $0x3c] sm:$0xf0]  ;;  %v5734_v10 = vor.u32 %v5800_v6, %v5733_v5  ;;  %v5721_v12 = vld [vmem:[%s12076_s1 + $0x18] sm:$0xf] }
  0x17   : > { %346 = vmatpush.bf16.msra.mxu0 %v5746_v3  ;;  %5805 = vmatpush.bf16.msra.mxu3 %v5746_v3  ;;  %v5738_v11 = vor.u32 %v5799_v8, %v5735_v9  ;;  %v5797_v13 = vld [vmem:[%s12076_s1 + $0x20] sm:$0xf0]  ;;  %v5796_v14 = vld [vmem:[%s12076_s1 + $0x1c] sm:$0xf]  ;;  %v5723_v15 = vld [vmem:[%s12076_s1 + $0x24] sm:$0xf0] }
  0x18   : > { %399 = vmatpush.bf16.msra.mxu1 %v5750_v7  ;;  %p163_p11 = scmp.lt.s32.totalorder %s6629_s12, 1  ;;  %v5722_v16 = vor.u32 %v5797_v13, %v5721_v12  ;;  %v5726_v17 = vor.u32 %v5796_v14, %v5723_v15  ;;  %v5709_v18 = vld [vmem:[%s12076_s1] sm:$0xf]  ;;  %v5794_v19 = vld [vmem:[%s12076_s1 + $0x8] sm:$0xf0]  ;;  %vm314_vm0 = vcmask 523264  }
  0x19   : > { %v5793_v20 = vld [vmem:[%s12076_s1 + $0x4] sm:$0xf]  ;;  %v5711_v21 = vld [vmem:[%s12076_s1 + $0xc] sm:$0xf0]  ;;  %v5710_v22 = vor.u32 %v5794_v19, %v5709_v18  ;;  %s6639_s24 = smov 64   ;;  %s6640_s25 = smov 96  }
  0x1a   : > { %s164_s29 = scalar_select %p163_p11, %s6629_s12, 1  ;;  %v5714_v23 = vor.u32 %v5793_v20, %v5711_v21  ;;  %vm518_vm1 = vcmask 261120   ;;  %vm1760_vm2 = vcmask 257024   ;;  %vm3070_vm3 = vcmask 519424  }
  0x1b   : > { %347 = vmatpush.bf16.msra.mxu0 %v5734_v10  ;;  %5806 = vmatpush.bf16.msra.mxu3 %v5734_v10  ;;  %s6641_s26 = smov 32   ;;  %s159_s28 = sand.u32 1, %s6621_s10   ;;  %vm4312_vm4 = vcmask 781824   ;;  %vm5554_vm5 = vcmask 1044224  }
  0x1c   : > { %400 = vmatpush.bf16.msra.mxu1 %v5738_v11  ;;  %s5818_s16 = smul.u32 68, %s164_s29  ;;  %s5573_s6 = scalar_lea.sflag [#allocation3], %s159_s28 }
  0x1d   : > { %s5817_s29 = smul.u32 68, %s159_s28  ;;  %s6579_s18 = scalar_lea.hbm %s12077_s2, 136 }
  0x1e   : > { %s6766_s23 = scalar_lea.vmem %s12075_s0, %s5818_s16 }
  0x1f   : > { %348 = vmatpush.bf16.msra.mxu0 %v5722_v16  ;;  %5807 = vmatpush.bf16.msra.mxu3 %v5722_v16  ;;  %v6769_v24 = vld [vmem:[%s6766_s23] sm:$0xff]  ;;  %v6772_v25 = vld [vmem:[%s6766_s23 + $0x38] sm:$0xff]  ;;  %v6784_v29 = vld [vmem:[%s6766_s23 + $0x8] sm:$0xff]  ;;  %s8287_s30 = scalar_lea.vmem [#allocation2], %s5817_s29 }
  0x20   : > { %401 = vmatpush.bf16.msra.mxu1 %v5726_v17  ;;  %v190_v26 = vld [vmem:[%s6766_s23 + $0x40] sm:$0xf]  ;;  %v6793_v30 = vld [vmem:[%s6766_s23 + $0x10] sm:$0xff]  ;;  %v6802_v31 = vld [vmem:[%s6766_s23 + $0x18] sm:$0xff] }
  0x21   : > { %v240_v27 = vunpack.c.l.b16 %v190_v26  ;;  %v6835_v38 = vld [vmem:[%s6766_s23 + $0x20] sm:$0xff]  ;;  %v6898_v58 = vld [vmem:[%s6766_s23 + $0x28] sm:$0xff]  ;;  %v6919_v0 = vld [vmem:[%s6766_s23 + $0x30] sm:$0xff] }
  0x23   : > { %349 = vmatpush.bf16.msra.mxu0 %v5710_v22  ;;  %5808 = vmatpush.bf16.msra.mxu3 %v5710_v22  ;;  %v6781_v28 = vpack.c.b16 %v240_v27, %v240_v27 }
  0x24   : > { %402 = vmatpush.bf16.msra.mxu1 %v5714_v23 }
  0x26   : > { %5755 = vmatmul.msk.bf16.vlgmr.msra.gmra.mxu0 %vm314_vm0, %v6769_v24  ;;  %5762 = vmatmul.msk.bf16.vlgmr.msra.gmra.mxu3 %vm314_vm0, %v6772_v25 }
  0x27   : > { %5809 = vmatpush.bf16.msrb.mxu3 %v5750_v7  ;;  %5764 = vmatmul.msk.bf16.vlgmr.msra.gmra.mxu1 %vm314_vm0, %v6769_v24 }
  0x2b   : > { %5810 = vmatpush.bf16.msrb.mxu3 %v5738_v11 }
  0x2f   : > { %5811 = vmatpush.bf16.msrb.mxu3 %v5726_v17 }
  0x33   : > { %5812 = vmatpush.bf16.msrb.mxu3 %v5714_v23 }
  0x36   : > { %5763 = vmatmul.msk.bf16.gmra.mxu3 %vm314_vm0, %v6781_v28  ;;  %5756 = vmatmul.msk.bf16.gmra.mxu0 %vm314_vm0, %v6784_v29 }
  0x37   : > { %5765 = vmatmul.msk.bf16.gmra.mxu1 %vm314_vm0, %v6784_v29 }
  0x46   : > { %5771 = vmatmul.msk.bf16.vlgmr.msrb.gmra.mxu3 %vm314_vm0, %v6772_v25  ;;  %5757 = vmatmul.msk.bf16.gmra.mxu0 %vm314_vm0, %v6793_v30 }
  0x47   : > { %5766 = vmatmul.msk.bf16.gmra.mxu1 %vm314_vm0, %v6793_v30 }
  0x56   : > { %5772 = vmatmul.msk.bf16.gmra.mxu3 %vm314_vm0, %v6781_v28  ;;  %5758 = vmatmul.msk.bf16.gmra.mxu0 %vm314_vm0, %v6802_v31 }
  0x57   : > { %5767 = vmatmul.msk.bf16.gmra.mxu1 %vm314_vm0, %v6802_v31 }
  0x66   : > { %5759 = vmatmul.msk.bf16.gmra.mxu0 %vm314_vm0, %v6835_v38 }
  0x67   : > { %5768 = vmatmul.msk.bf16.gmra.mxu1 %vm314_vm0, %v6835_v38 }
  0x76   : > { %5760 = vmatmul.msk.bf16.gmra.mxu0 %vm314_vm0, %v6898_v58 }
  0x77   : > { %5769 = vmatmul.msk.bf16.gmra.mxu1 %vm314_vm0, %v6898_v58 }
  0x86   : > { %5761 = vmatmul.msk.bf16.gmra.mxu0 %vm314_vm0, %v6919_v0 }
  0x87   : > { %5770 = vmatmul.msk.bf16.gmra.mxu1 %vm314_vm0, %v6919_v0 }
  0xa3   : > { %v6810_v32 = vpop.f32.mrf.mxu0 }
  0xa4   : > { %706 = vrot.lane.b32.xlu0 %v6810_v32, %s6639_s24  ;;  %587 = vrot.lane.b32.xlu2 %v6810_v32, %s6640_s25  ;;  %v6849_v41 = vpop.f32.mrf.mxu1 }
  0xa5   : > { %v6853_v42 = vmul.f32 %v6849_v41, %v6810_v32 }
  0xa7   : > { %12444 = vst [vmem:[#allocation5_spill] sm:$0xff] %v6853_v42  ;;  %v519_v45 = vsel %vm518_vm1, %v6853_v42, 0.0 }
  0xa9   : > { %v6816_v33 = vpop.f32.mrf.mxu3 }
  0xab   : > { %v6820_v34 = vpop.f32.mrf.mxu0 }
  0xac   : > { %615 = vrot.lane.b32.xlu2 %v6816_v33, %s6640_s25  ;;  %v6867_v47 = vpop.f32.mrf.mxu1 }
  0xad   : > { %v6912_v61 = vmul.f32 %v6867_v47, %v6820_v34 }
  0xaf   : > { %12448 = vst [vmem:[#allocation9_spill] sm:$0xff] %v6912_v61  ;;  %v522_v63 = vsel %vm518_vm1, %v6912_v61, 0.0 }
  0xb1   : > { %v6822_v35 = vpop.f32.mrf.mxu3 }
  0xb2   : > { %617 = vrot.lane.b32.xlu1 %v6822_v35, %s6640_s25 }
  0xb3   : > { %v6828_v36 = vpop.f32.mrf.mxu0 }
  0xb4   : > { %708 = vrot.lane.b32.xlu2 %v6820_v34, %s6639_s24  ;;  %v6871_v49 = vpop.f32.mrf.mxu1 }
  0xb5   : > { %v6881_v52 = vmul.f32 %v6871_v49, %v6828_v36 }
  0xb7   : > { %12445 = vst [vmem:[#allocation6_spill] sm:$0xff] %v6881_v52  ;;  %v525_v55 = vsel %vm518_vm1, %v6881_v52, 0.0 }
  0xb9   : > { %v6830_v37 = vpop.f32.mrf.mxu3 }
  0xba   : > { %736 = vrot.lane.b32.xlu1 %v6822_v35, %s6639_s24 }
  0xbb   : > { %v6843_v39 = vpop.f32.mrf.mxu0 }
  0xbc   : > { %738 = vrot.lane.b32.xlu2 %v6830_v37, %s6639_s24  ;;  %v6875_v51 = vpop.f32.mrf.mxu1 }
  0xbd   : > { %v6895_v57 = vmul.f32 %v6875_v51, %v6843_v39 }
  0xbf   : > { %12447 = vst [vmem:[#allocation8_spill] sm:$0xff] %v6895_v57  ;;  %v528_v59 = vsel %vm518_vm1, %v6895_v57, 0.0 }
  0xc1   : > { %v393_v40 = vpop.f32.mrf.mxu3 }
  0xc2   : > { %591 = vrot.lane.b32.xlu1 %v6828_v36, %s6640_s25 }
  0xc3   : > { %v6857_v44 = vpop.f32.mrf.mxu0 }
  0xc4   : > { %593 = vrot.lane.b32.xlu2 %v6843_v39, %s6640_s25  ;;  %v6883_v53 = vpop.f32.mrf.mxu1 }
  0xc5   : > { %v6887_v54 = vmul.f32 %v6883_v53, %v6857_v44 }
  0xc7   : > { %12446 = vst [vmem:[#allocation7_spill] sm:$0xff] %v6887_v54  ;;  %v531_v56 = vsel %vm518_vm1, %v6887_v54, 0.0 }
  0xc9   : > { %v6855_v43 = vpop.f32.mrf.mxu3 }
  0xca   : > { %710 = vrot.lane.b32.xlu1 %v6828_v36, %s6639_s24  ;;  %v6935_v1 = vmul.f32 %v6855_v43, %v6816_v33 }
  0xcb   : > { %v6906_v60 = vpop.f32.mrf.mxu0 }
  0xcc   : > { %714 = vrot.lane.b32.xlu2 %v6857_v44, %s6639_s24  ;;  %12449 = vst [vmem:[#allocation10_spill] sm:$0xff] %v6935_v1  ;;  %v6937_v2 = vpop.f32.mrf.mxu1  ;;  %v561_v3 = vsel %vm518_vm1, %v6935_v1, 0.0 }
  0xcd   : > { %v6945_v4 = vmul.f32 %v6937_v2, %v6906_v60 }
  0xce   : > { %520 = vadd.xlane.f32.xlu0 %v519_v45 }
  0xcf   : > { %12450 = vst [vmem:[#allocation11_spill] sm:$0xff] %v6945_v4  ;;  %v534_v6 = vsel %vm518_vm1, %v6945_v4, 0.0 }
  0xd1   : > { %v6865_v46 = vpop.f32.mrf.mxu3 }
  0xd2   : > { %v6977_v14 = vmul.f32 %v6865_v46, %v6822_v35 }
  0xd3   : > { %v6914_v62 = vpop.f32.mrf.mxu0 }
  0xd4   : > { %v6947_v5 = vpop.f32.mrf.mxu1  ;;  %12453 = vst [vmem:[#allocation14_spill] sm:$0xff] %v6977_v14  ;;  %v564_v16 = vsel %vm518_vm1, %v6977_v14, 0.0 }
  0xd5   : > { %v6987_v17 = vmul.f32 %v6947_v5, %v6914_v62 }
  0xd7   : > { %12454 = vst [vmem:[#allocation15_spill] sm:$0xff] %v6987_v17  ;;  %v537_v18 = vsel %vm518_vm1, %v6987_v17, 0.0 }
  0xd9   : > { %v6869_v48 = vpop.f32.mrf.mxu3 }
  0xda   : > { %v6955_v7 = vmul.f32 %v6869_v48, %v6830_v37 }
  0xdb   : > { %v6959_v9 = vpop.f32.mrf.mxu0 }
  0xdc   : > { %12451 = vst [vmem:[#allocation12_spill] sm:$0xff] %v6955_v7  ;;  %v567_v8 = vsel %vm518_vm1, %v6955_v7, 0.0  ;;  %v6961_v10 = vpop.f32.mrf.mxu1 }
  0xdd   : > { %v6965_v11 = vmul.f32 %v6961_v10, %v6959_v9 }
  0xdf   : > { %12452 = vst [vmem:[#allocation13_spill] sm:$0xff] %v6965_v11  ;;  %v540_v12 = vsel %vm518_vm1, %v6965_v11, 0.0 }
  0xe1   : > { %v446_v50 = vpop.f32.mrf.mxu3 }
  0xe2   : > { %734 = vrot.lane.b32.xlu0 %v6816_v33, %s6639_s24 }
  0xe3   : > { %v6971_v13 = vpop.f32.mrf.mxu0 }
  0xe4   : > { %v6993_v19 = vpop.f32.mrf.mxu1 }
  0xe5   : > { %v6997_v20 = vmul.f32 %v6993_v19, %v6971_v13 }
  0xe7   : > { %12455 = vst [vmem:[#allocation16_spill] sm:$0xff] %v6997_v20  ;;  %v543_v21 = vsel %vm518_vm1, %v6997_v20, 0.0 }
  0xea   : > { %589 = vrot.lane.b32.xlu0 %v6820_v34, %s6640_s25 }
  0xeb   : > { %v6979_v15 = vpop.f32.mrf.mxu0 }
  0xec   : > { %v7003_v22 = vpop.f32.mrf.mxu1 }
  0xf3   : > { %v7007_v23 = vpop.f32.mrf.mxu0 }
  0xf4   : > { %526 = vadd.xlane.f32.xlu1 %v525_v55  ;;  %v7009_v26 = vpop.f32.mrf.mxu1  ;;  %v7027_v55 = vmul.f32 %v7003_v22, %v6979_v15 }
  0xf5   : > { %532 = vadd.xlane.f32.xlu2 %v531_v56  ;;  %v7013_v27 = vmul.f32 %v7009_v26, %v7007_v23 }
  0xf6   : > { %12457 = vst [vmem:[#allocation18_spill] sm:$0xff] %v7027_v55  ;;  %v546_v56 = vsel %vm518_vm1, %v7027_v55, 0.0 }
  0xf7   : > { %12456 = vst [vmem:[#allocation17_spill] sm:$0xff] %v7013_v27  ;;  %v549_v40 = vsel %vm518_vm1, %v7013_v27, 0.0 }
  0xfb   : > { %v7019_v45 = vpop.f32.mrf.mxu0 }
  0xfc   : > { %529 = vadd.xlane.f32.xlu1 %v528_v59 }
 0x103   : > { %v7023_v50 = vpop.f32.mrf.mxu0 }
 0x10d   : > { %597 = vrot.lane.b32.xlu2 %v6906_v60, %s6640_s25 }
 0x114   : > { %523 = vadd.xlane.f32.xlu0 %v522_v63  ;;  %v7037_v63 = vpop.f32.mrf.mxu1 }
 0x115   : > { %599 = vrot.lane.b32.xlu1 %v6914_v62, %s6640_s25 }
 0x116   : > { %v7035_v59 = vpop.permute.xlu0 %706 }
 0x11d   : > { %718 = vrot.lane.b32.xlu1 %v6914_v62, %s6639_s24 }
 0x128   : > { %619 = vrot.lane.b32.xlu0 %v6830_v37, %s6640_s25 }
 0x130   : > { %712 = vrot.lane.b32.xlu0 %v6843_v39, %s6639_s24 }
 0x136   : > { %562 = vadd.xlane.f32.xlu2 %v561_v3  ;;  %v7041_v3 = vmul.f32 %v7037_v63, %v7019_v45 }
 0x138   : > { %595 = vrot.lane.b32.xlu0 %v6857_v44, %s6640_s25  ;;  %12458 = vst [vmem:[#allocation19_spill] sm:$0xff] %v7041_v3 }
 0x13e   : > { %535 = vadd.xlane.f32.xlu2 %v534_v6 }
 0x140   : > { %716 = vrot.lane.b32.xlu0 %v6906_v60, %s6639_s24 }
 0x141   : > { %v7045_v6 = vpop.xlane.xlu0 %520 }
 0x147   : > { %568 = vadd.xlane.f32.xlu1 %v567_v8  ;;  %v552_v8 = vsel %vm518_vm1, %v7041_v3, 0.0 }
 0x14f   : > { %541 = vadd.xlane.f32.xlu1 %v540_v12  ;;  %v7049_v12 = vpop.f32.mrf.mxu1 }
 0x150   : > { %v7082_v4 = vmul.f32 %v7049_v12, %v7023_v50 }
 0x152   : > { %12463 = vst [vmem:[#allocation24_spill] sm:$0xff] %v7082_v4 }
 0x156   : > { %720 = vrot.lane.b32.xlu2 %v6959_v9, %s6639_s24 }
 0x15e   : > { %603 = vrot.lane.b32.xlu2 %v6971_v13, %s6640_s25 }
 0x168   : > { %605 = vrot.lane.b32.xlu1 %v6979_v15, %s6640_s25 }
 0x16a   : > { %565 = vadd.xlane.f32.xlu0 %v564_v16  ;;  %v735_v16 = vpop.permute.xlu0 %734 }
 0x170   : > { %724 = vrot.lane.b32.xlu1 %v6979_v15, %s6639_s24 }
 0x172   : > { %538 = vadd.xlane.f32.xlu0 %v537_v18  ;;  %v588_v18 = vpop.permute.xlu2 %587  ;;  %v590_v14 = vpop.permute.xlu0 %589 }
 0x173   : > { %v7064_v7 = vmul.f32 %v590_v14, %v6867_v47 }
 0x175   : > { %12460 = vst [vmem:[#allocation21_spill] sm:$0xff] %v7064_v7  ;;  %v658_v55 = vsel %vm518_vm1, %v7064_v7, 0.0 }
 0x17a   : > { %v616_v1 = vpop.permute.xlu2 %615 }
 0x182   : > { %v709_v20 = vpop.permute.xlu2 %708 }
 0x183   : > { %v7073_v27 = vmul.f32 %v709_v20, %v6867_v47  ;;  %v555_v20 = vsel %vm518_vm1, %v7082_v4, 0.0 }
 0x185   : > { %12461 = vst [vmem:[#allocation22_spill] sm:$0xff] %v7073_v27 }
 0x186   : > { %601 = vrot.lane.b32.xlu0 %v6959_v9, %s6640_s25 }
 0x187   : > { %544 = vadd.xlane.f32.xlu2 %v543_v21  ;;  %v7053_v21 = vpop.f32.mrf.mxu1  ;;  %v7068_v3 = vpop.xlane.xlu0 %523 }
 0x18e   : > { %722 = vrot.lane.b32.xlu0 %v6971_v13, %s6639_s24 }
 0x19a   : > { %550 = vadd.xlane.f32.xlu1 %v549_v40  ;;  %v7055_v40 = vpop.f32.mrf.mxu0  ;;  %v620_v17 = vpop.permute.xlu0 %619 }
 0x19b   : > { %v7078_v14 = vmul.f32 %v620_v17, %v6869_v48  ;;  %v618_v17 = vpop.permute.xlu1 %617 }
 0x19d   : > { %12462 = vst [vmem:[#allocation23_spill] sm:$0xff] %v7078_v14 }
 0x19f   : > { %726 = vrot.lane.b32.xlu2 %v7007_v23, %s6639_s24 }
 0x1a2   : > { %v713_v11 = vpop.permute.xlu0 %712 }
 0x1a3   : > { %v737_v4 = vpop.permute.xlu1 %736 }
 0x1a7   : > { %609 = vrot.lane.b32.xlu2 %v7019_v45, %s6640_s25 }
 0x1aa   : > { %v596_v61 = vpop.permute.xlu0 %595 }
 0x1ab   : > { %v7094_v52 = vmul.f32 %v596_v61, %v6883_v53  ;;  %v7109_v61 = vmul.f32 %v735_v16, %v6855_v43 }
 0x1ad   : > { %12465 = vst [vmem:[#allocation26_spill] sm:$0xff] %v7094_v52 }
 0x1ae   : > { %12468 = vst [vmem:[#allocation29_spill] sm:$0xff] %v7109_v61 }
 0x1b3   : > { %611 = vrot.lane.b32.xlu1 %v7023_v50, %s6640_s25 }
 0x1b8   : > { %547 = vadd.xlane.f32.xlu0 %v546_v56  ;;  %v7059_v56 = vmul.f32 %v7053_v21, %v7055_v40 }
 0x1ba   : > { %12459 = vst [vmem:[#allocation20_spill] sm:$0xff] %v7059_v56 }
 0x1bb   : > { %730 = vrot.lane.b32.xlu1 %v7023_v50, %s6639_s24 }
 0x1cc   : > { %607 = vrot.lane.b32.xlu0 %v7007_v23, %s6640_s25 }
 0x1d0   : > { %553 = vadd.xlane.f32.xlu2 %v552_v8  ;;  %v558_v8 = vsel %vm518_vm1, %v7059_v56, 0.0  ;;  %v739_v56 = vpop.permute.xlu2 %738 }
 0x1d4   : > { %728 = vrot.lane.b32.xlu0 %v7019_v45, %s6639_s24 }
 0x1e5   : > { %559 = vadd.xlane.f32.xlu1 %v558_v8  ;;  %v777_v8 = vsel %vm518_vm1, %v7073_v27, 0.0  ;;  %v7089_v27 = vmul.f32 %v739_v56, %v6869_v48 }
 0x1e7   : > { %12464 = vst [vmem:[#allocation25_spill] sm:$0xff] %v7089_v27  ;;  %v822_v7 = vsel %vm518_vm1, %v7089_v27, 0.0 }
 0x1e8   : > { %732 = vrot.lane.b32.xlu2 %v7055_v40, %s6639_s24 }
 0x1ed   : > { %659 = vadd.xlane.f32.xlu1 %v658_v55  ;;  %v703_v55 = vsel %vm518_vm1, %v7078_v14, 0.0  ;;  %v7097_v14 = vmul.f32 %v588_v18, %v6849_v41  ;;  %v592_v18 = vpop.permute.xlu1 %591 }
 0x1ef   : > { %12466 = vst [vmem:[#allocation27_spill] sm:$0xff] %v7097_v14  ;;  %v655_v27 = vsel %vm518_vm1, %v7097_v14, 0.0 }
 0x1f5   : > { %778 = vadd.xlane.f32.xlu1 %v777_v8  ;;  %v594_v8 = vpop.permute.xlu2 %593 }
 0x1fd   : > { %704 = vadd.xlane.f32.xlu1 %v703_v55  ;;  %v667_v55 = vsel %vm518_vm1, %v7094_v52, 0.0  ;;  %v711_v52 = vpop.permute.xlu1 %710 }
 0x1fe   : > { %556 = vadd.xlane.f32.xlu0 %v555_v20  ;;  %v715_v20 = vpop.permute.xlu2 %714  ;;  %v7121_v16 = vmul.f32 %v711_v52, %v6871_v49  ;;  %v7136_v52 = vmul.f32 %v7035_v59, %v6849_v41 }
 0x1ff   : > { %v7102_v56 = vmul.f32 %v715_v20, %v6883_v53  ;;  %v7116_v20 = vmul.f32 %v618_v17, %v6865_v46 }
 0x200   : > { %12470 = vst [vmem:[#allocation31_spill] sm:$0xff] %v7121_v16 }
 0x201   : > { %12467 = vst [vmem:[#allocation28_spill] sm:$0xff] %v7102_v56 }
 0x202   : > { %12469 = vst [vmem:[#allocation30_spill] sm:$0xff] %v7116_v20 }
 0x203   : > { %12472 = vst [vmem:[#allocation33_spill] sm:$0xff] %v7136_v52 }
 0x205   : > { %823 = vadd.xlane.f32.xlu1 %v822_v7  ;;  %v786_v7 = vsel %vm518_vm1, %v7102_v56, 0.0  ;;  %v780_v56 = vsel %vm518_vm1, %v7121_v16, 0.0 }
 0x20d   : > { %668 = vadd.xlane.f32.xlu1 %v667_v55  ;;  %v816_v55 = vsel %vm518_vm1, %v7109_v61, 0.0 }
 0x211   : > { %656 = vadd.xlane.f32.xlu2 %v655_v27  ;;  %v700_v27 = vsel %vm518_vm1, %v7116_v20, 0.0  ;;  %v7150_v20 = vmul.f32 %v737_v4, %v6865_v46 }
 0x212   : > { %613 = vrot.lane.b32.xlu0 %v7055_v40, %s6640_s25 }
 0x213   : > { %12475 = vst [vmem:[#allocation36_spill] sm:$0xff] %v7150_v20 }
 0x215   : > { %787 = vadd.xlane.f32.xlu1 %v786_v7  ;;  %v7126_v7 = vmul.f32 %v594_v8, %v6875_v51 }
 0x217   : > { %12471 = vst [vmem:[#allocation32_spill] sm:$0xff] %v7126_v7  ;;  %v664_v17 = vsel %vm518_vm1, %v7126_v7, 0.0  ;;  %v7169_v7 = vmul.f32 %v713_v11, %v6875_v51 }
 0x219   : > { %817 = vadd.xlane.f32.xlu2 %v816_v55  ;;  %v7132_v55 = vpop.xlane.xlu2 %532  ;;  %12478 = vst [vmem:[#allocation39_spill] sm:$0xff] %v7169_v7 }
 0x221   : > { %701 = vadd.xlane.f32.xlu2 %v700_v27  ;;  %v717_v27 = vpop.permute.xlu0 %716  ;;  %v598_v8 = vpop.permute.xlu2 %597 }
 0x229   : > { %781 = vadd.xlane.f32.xlu2 %v780_v56  ;;  %v774_v56 = vsel %vm518_vm1, %v7136_v52, 0.0  ;;  %v7140_v61 = vpop.xlane.xlu0 %565  ;;  %v7147_v16 = vpop.xlane.xlu2 %562  ;;  %v7161_v52 = vmul.f32 %v592_v18, %v6871_v49  ;;  %v783_v18 = vsel %vm518_vm1, %v7169_v7, 0.0 }
 0x22a   : > { %12473 = vst [vmem:[#allocation34_spill] sm:$0xff] %v7140_v61 }
 0x22b   : > { %12476 = vst [vmem:[#allocation37_spill] sm:$0xff] %v7161_v52  ;;  %v661_v4 = vsel %vm518_vm1, %v7161_v52, 0.0  ;;  %v7180_v52 = vpop.xlane.xlu1 %526 }
 0x22e   : > { %829 = vrot.lane.b32.xlu1 %v6828_v36, %s6641_s26  ;;  %v7143_v36 = vmul.f32 %v616_v1, %v6855_v43 }
 0x230   : > { %12474 = vst [vmem:[#allocation35_spill] sm:$0xff] %v7143_v36 }
 0x231   : > { %665 = vadd.xlane.f32.xlu2 %v664_v17  ;;  %v697_v17 = vsel %vm518_vm1, %v7143_v36, 0.0  ;;  %v7152_v59 = vpop.xlane.xlu0 %538  ;;  %v7158_v1 = vpop.xlane.xlu2 %535 }
 0x233   : > { %v7182_v11 = vpop.xlane.xlu1 %529 }
 0x239   : > { %v602_v36 = vpop.permute.xlu0 %601 }
 0x23c   : > { %775 = vadd.xlane.f32.xlu0 %v774_v56  ;;  %v819_v56 = vsel %vm518_vm1, %v7150_v20, 0.0 }
 0x244   : > { %698 = vadd.xlane.f32.xlu0 %v697_v17  ;;  %v7164_v17 = vmul.f32 %v602_v36, %v6961_v10 }
 0x246   : > { %12477 = vst [vmem:[#allocation38_spill] sm:$0xff] %v7164_v17 }
 0x249   : > { %825 = vrot.lane.b32.xlu2 %v6810_v32, %s6641_s26  ;;  %v676_v32 = vsel %vm518_vm1, %v7164_v17, 0.0 }
 0x24c   : > { %820 = vadd.xlane.f32.xlu0 %v819_v56  ;;  %v721_v56 = vpop.permute.xlu2 %720 }
 0x24d   : > { %v7174_v20 = vmul.f32 %v721_v56, %v6961_v10  ;;  %v600_v56 = vpop.permute.xlu1 %599 }
 0x24f   : > { %12479 = vst [vmem:[#allocation40_spill] sm:$0xff] %v7174_v20  ;;  %v795_v36 = vsel %vm518_vm1, %v7174_v20, 0.0  ;;  %v7203_v20 = vmul.f32 %v598_v8, %v6937_v2 }
 0x251   : > { %12483 = vst [vmem:[#allocation44_spill] sm:$0xff] %v7203_v20 }
 0x254   : > { %662 = vadd.xlane.f32.xlu0 %v661_v4  ;;  %v7185_v4 = vmul.f32 %v717_v27, %v6937_v2  ;;  %v723_v27 = vpop.permute.xlu0 %722  ;;  %v604_v7 = vpop.permute.xlu2 %603 }
 0x255   : > { %v7229_v14 = vmul.f32 %v723_v27, %v6993_v19 }
 0x256   : > { %12480 = vst [vmem:[#allocation41_spill] sm:$0xff] %v7185_v4 }
 0x257   : > { %12487 = vst [vmem:[#allocation48_spill] sm:$0xff] %v7229_v14 }
 0x258   : > { %677 = vadd.xlane.f32.xlu1 %v676_v32  ;;  %v789_v32 = vsel %vm518_vm1, %v7185_v4, 0.0 }
 0x25c   : > { %784 = vadd.xlane.f32.xlu0 %v783_v18  ;;  %v7192_v18 = vmul.f32 %v600_v56, %v6947_v5  ;;  %v670_v56 = vsel %vm518_vm1, %v7203_v20, 0.0 }
 0x25e   : > { %12481 = vst [vmem:[#allocation42_spill] sm:$0xff] %v7192_v18 }
 0x260   : > { %796 = vadd.xlane.f32.xlu1 %v795_v36  ;;  %v673_v36 = vsel %vm518_vm1, %v7192_v18, 0.0 }
 0x270   : > { %827 = vrot.lane.b32.xlu0 %v6820_v34, %s6641_s26  ;;  %v7200_v34 = vpop.xlane.xlu0 %547 }
 0x271   : > { %12482 = vst [vmem:[#allocation43_spill] sm:$0xff] %v7200_v34 }
 0x272   : > { %790 = vadd.xlane.f32.xlu2 %v789_v32  ;;  %v7205_v32 = vpop.xlane.xlu2 %544 }
 0x278   : > { %v608_v4 = vpop.permute.xlu0 %607 }
 0x279   : > { %835 = vrot.lane.b32.xlu1 %v6906_v60, %s6641_s26  ;;  %v719_v60 = vpop.permute.xlu1 %718  ;;  %v7213_v18 = vmul.f32 %v608_v4, %v7009_v26 }
 0x27a   : > { %674 = vadd.xlane.f32.xlu2 %v673_v36  ;;  %v7210_v36 = vmul.f32 %v719_v60, %v6947_v5  ;;  %v727_v17 = vpop.permute.xlu2 %726 }
 0x27b   : > { %12485 = vst [vmem:[#allocation46_spill] sm:$0xff] %v7213_v18  ;;  %v685_v8 = vsel %vm518_vm1, %v7213_v18, 0.0  ;;  %v7220_v20 = vmul.f32 %v727_v17, %v7009_v26 }
 0x27c   : > { %12484 = vst [vmem:[#allocation45_spill] sm:$0xff] %v7210_v36 }
 0x27d   : > { %12486 = vst [vmem:[#allocation47_spill] sm:$0xff] %v7220_v20  ;;  %v804_v60 = vsel %vm518_vm1, %v7220_v20, 0.0 }
 0x280   : > { %v729_v20 = vpop.permute.xlu0 %728 }
 0x292   : > { %833 = vrot.lane.b32.xlu2 %v6857_v44, %s6641_s26  ;;  %v792_v44 = vsel %vm518_vm1, %v7210_v36, 0.0 }
 0x29a   : > { %671 = vadd.xlane.f32.xlu0 %v670_v56  ;;  %v7222_v56 = vpop.xlane.xlu1 %568 }
 0x2a2   : > { %793 = vadd.xlane.f32.xlu0 %v792_v44  ;;  %v7226_v4 = vpop.xlane.xlu1 %541  ;;  %v798_v44 = vsel %vm518_vm1, %v7229_v14, 0.0 }
 0x2a3   : > { %686 = vadd.xlane.f32.xlu1 %v685_v8 }
 0x2aa   : > { %v606_v8 = vpop.permute.xlu1 %605 }
 0x2ab   : > { %805 = vadd.xlane.f32.xlu1 %v804_v60  ;;  %v7236_v17 = vmul.f32 %v606_v8, %v7003_v22  ;;  %v7249_v8 = vpop.xlane.xlu0 %556 }
 0x2ac   : > { %12491 = vst [vmem:[#allocation52_spill] sm:$0xff] %v7249_v8 }
 0x2ad   : > { %12488 = vst [vmem:[#allocation49_spill] sm:$0xff] %v7236_v17  ;;  %v682_v36 = vsel %vm518_vm1, %v7236_v17, 0.0 }
 0x2b2   : > { %v725_v27 = vpop.permute.xlu1 %724 }
 0x2b3   : > { %v614_v54 = vpop.permute.xlu0 %613 }
 0x2b6   : > { %831 = vrot.lane.b32.xlu0 %v6843_v39, %s6641_s26  ;;  %v7245_v39 = vmul.f32 %v604_v7, %v6993_v19 }
 0x2b8   : > { %12490 = vst [vmem:[#allocation51_spill] sm:$0xff] %v7245_v39 }
 0x2ba   : > { %v7242_v60 = vpop.xlane.xlu1 %550 }
 0x2bb   : > { %799 = vadd.xlane.f32.xlu2 %v798_v44  ;;  %12489 = vst [vmem:[#allocation50_spill] sm:$0xff] %v7242_v60  ;;  %v610_v44 = vpop.permute.xlu2 %609  ;;  %v5729_v60 = vld [vmem:[%s12076_s1 + $0x20] sm:$0xf] }
 0x2c2   : > { %v612_v14 = vpop.permute.xlu1 %611 }
 0x2c3   : > { %683 = vadd.xlane.f32.xlu2 %v682_v36  ;;  %v679_v36 = vsel %vm518_vm1, %v7245_v39, 0.0  ;;  %v7256_v17 = vpop.xlane.xlu2 %553 }
 0x2c4   : > { %841 = vrot.lane.b32.xlu1 %v6971_v13, %s6641_s26  ;;  %v7254_v13 = vmul.f32 %v725_v27, %v7003_v22 }
 0x2c6   : > { %12492 = vst [vmem:[#allocation53_spill] sm:$0xff] %v7254_v13  ;;  %v801_v7 = vsel %vm518_vm1, %v7254_v13, 0.0 }
 0x2ca   : > { %v731_v18 = vpop.permute.xlu1 %730 }
 0x2d2   : > { %v7263_v57 = vpop.xlane.xlu1 %559 }
 0x2d3   : > { %12494 = vst [vmem:[#allocation55_spill] sm:$0xff] %v7263_v57 }
 0x2da   : > { %v7272_v61 = vpop.xlane.xlu1 %659 }
 0x2db   : > { %839 = vrot.lane.b32.xlu2 %v6959_v9, %s6641_s26  ;;  %v7261_v9 = vmul.f32 %v614_v54, %v7053_v21  ;;  %v7279_v54 = vmul.f32 %v729_v20, %v7037_v63  ;;  %v5753_v20 = vld [vmem:[%s12076_s1 + $0x50] sm:$0xf] }
 0x2dd   : > { %12493 = vst [vmem:[#allocation54_spill] sm:$0xff] %v7261_v9  ;;  %v694_v39 = vsel %vm518_vm1, %v7261_v9, 0.0 }
 0x2de   : > { %12496 = vst [vmem:[#allocation57_spill] sm:$0xff] %v7279_v54 }
 0x2e0   : > { %680 = vadd.xlane.f32.xlu0 %v679_v36  ;;  %v733_v36 = vpop.permute.xlu2 %732 }
 0x2e1   : > { %v7268_v27 = vmul.f32 %v733_v36, %v7053_v21  ;;  %v807_v36 = vsel %vm518_vm1, %v7279_v54, 0.0 }
 0x2e2   : > { %v7281_v13 = vpop.xlane.xlu1 %778 }
 0x2e3   : > { %12495 = vst [vmem:[#allocation56_spill] sm:$0xff] %v7268_v27  ;;  %v813_v42 = vsel %vm518_vm1, %v7268_v27, 0.0 }
 0x2e8   : > { %802 = vadd.xlane.f32.xlu0 %v801_v7  ;;  %v7274_v7 = vpop.xlane.xlu0 %775  ;;  %v7287_v27 = vpop.xlane.xlu2 %656 }
 0x2ea   : > { %v7292_v9 = vpop.xlane.xlu1 %704 }
 0x2ee   : > { %695 = vadd.xlane.f32.xlu1 %v694_v39 }
 0x2f0   : > { %v7283_v39 = vpop.xlane.xlu0 %698  ;;  %v7307_v54 = vpop.xlane.xlu2 %817 }
 0x2f2   : > { %v7314_v34 = vpop.xlane.xlu1 %823 }
 0x2f3   : > { %12499 = vst [vmem:[#allocation60_spill] sm:$0xff] %v7314_v34 }
 0x2f6   : > { %814 = vadd.xlane.f32.xlu1 %v813_v42  ;;  %v7290_v42 = vmul.f32 %v612_v14, %v7049_v12  ;;  %v5741_v14 = vld [vmem:[%s12076_s1 + $0x38] sm:$0xf] }
 0x2f8   : > { %12497 = vst [vmem:[#allocation58_spill] sm:$0xff] %v7290_v42  ;;  %v7294_v8 = vpop.xlane.xlu0 %820 }
 0x2f9   : > { %12498 = vst [vmem:[#allocation59_spill] sm:$0xff] %v7294_v8 }
 0x2fc   : > { %837 = vrot.lane.b32.xlu0 %v6914_v62, %s6641_s26  ;;  %v691_v62 = vsel %vm518_vm1, %v7290_v42, 0.0 }
 0x300   : > { %v7316_v57 = vpop.xlane.xlu0 %662 }
 0x304   : > { %808 = vadd.xlane.f32.xlu2 %v807_v36  ;;  %v5804_v36 = vld [vmem:[%s12076_s1 + $0x58] sm:$0xf0] }
 0x305   : > { %v5754_v8 = vor.u32 %v5804_v36, %v5753_v20  ;;  %v7332_v36 = vpop.xlane.xlu2 %701 }
 0x306   : > { %12500 = vst [vmem:[#allocation61_spill] sm:$0xff] %v7332_v36 }
 0x307   : > { %452 = vmatpush.bf16.msra.mxu2 %v5754_v8  ;;  %5813 = vmatpush.bf16.msra.mxu3 %v5754_v8  ;;  %v5717_v8 = vld [vmem:[%s12076_s1 + $0x8] sm:$0xf] }
 0x308   : > { %v7336_v34 = vpop.xlane.xlu0 %784 }
 0x30c   : > { %692 = vadd.xlane.f32.xlu2 %v691_v62  ;;  %v5801_v62 = vld [vmem:[%s12076_s1 + $0x40] sm:$0xf0] }
 0x30d   : > { %v5742_v42 = vor.u32 %v5801_v62, %v5741_v14  ;;  %v7334_v62 = vpop.xlane.xlu1 %668 }
 0x30f   : > { %847 = vrot.lane.b32.xlu1 %v7019_v45, %s6641_s26  ;;  %453 = vmatpush.bf16.msra.mxu2 %v5742_v42  ;;  %v5798_v45 = vld [vmem:[%s12076_s1 + $0x28] sm:$0xf0] }
 0x310   : > { %5814 = vmatpush.bf16.msra.mxu3 %v5742_v42  ;;  %v5730_v20 = vor.u32 %v5798_v45, %v5729_v60  ;;  %v5795_v42 = vld [vmem:[%s12076_s1 + $0x10] sm:$0xf0]  ;;  %v7345_v60 = vpop.xlane.xlu2 %781 }
 0x311   : > { %v5718_v14 = vor.u32 %v5795_v42, %v5717_v8  ;;  %v7352_v8 = vmul.f32 %v731_v18, %v7049_v12 }
 0x313   : > { %454 = vmatpush.bf16.msra.mxu2 %v5730_v20  ;;  %12502 = vst [vmem:[#allocation63_spill] sm:$0xff] %v7352_v8 }
 0x314   : > { %5815 = vmatpush.bf16.msra.mxu3 %v5730_v20  ;;  %v828_v20 = vpop.permute.xlu0 %827 }
 0x317   : > { %853 = vrot.lane.b32.xlu1 %v6816_v33, %s6641_s26  ;;  %455 = vmatpush.bf16.msra.mxu2 %v5718_v14  ;;  %v7343_v33 = vmul.f32 %v610_v44, %v7037_v63  ;;  %v810_v44 = vsel %vm518_vm1, %v7352_v8, 0.0 }
 0x318   : > { %5816 = vmatpush.bf16.msra.mxu3 %v5718_v14 }
 0x319   : > { %12501 = vst [vmem:[#allocation62_spill] sm:$0xff] %v7343_v33  ;;  %v688_v45 = vsel %vm518_vm1, %v7343_v33, 0.0 }
 0x31a   : > { %5773 = vmatmul.msk.bf16.vlgmr.msra.gmra.mxu2 %vm314_vm0, %v6769_v24  ;;  %v7354_v24 = vpop.xlane.xlu1 %787 }
 0x31b   : > { %5780 = vmatmul.msk.bf16.vlgmr.msra.gmra.mxu3 %vm314_vm0, %v6772_v25  ;;  %v7358_v25 = vpop.xlane.xlu2 %665 }
 0x322   : > { %v830_v18 = vpop.permute.xlu1 %829 }
 0x323   : > { %v826_v42 = vpop.permute.xlu2 %825 }
 0x324   : > { %845 = vrot.lane.b32.xlu2 %v7007_v23, %s6641_s26  ;;  %v7362_v23 = vpop.xlane.xlu0 %671 }
 0x326   : > { %689 = vadd.xlane.f32.xlu0 %v688_v45  ;;  %v7375_v45 = vmul.f32 %v826_v42, %v6849_v41 }
 0x328   : > { %12503 = vst [vmem:[#allocation64_spill] sm:$0xff] %v7375_v45 }
 0x32a   : > { %5774 = vmatmul.msk.bf16.gmra.mxu2 %vm314_vm0, %v6784_v29  ;;  %v893_v29 = vsel %vm518_vm1, %v7375_v45, 0.0 }
 0x32b   : > { %5781 = vmatmul.msk.bf16.gmra.mxu3 %vm314_vm0, %v6781_v28 }
 0x32c   : > { %851 = vrot.lane.b32.xlu2 %v7055_v40, %s6641_s26  ;;  %v7370_v40 = vpop.xlane.xlu1 %677  ;;  %v7372_v14 = vpop.xlane.xlu0 %793 }
 0x32e   : > { %811 = vadd.xlane.f32.xlu0 %v810_v44  ;;  %v7377_v44 = vpop.xlane.xlu2 %790 }
 0x334   : > { %857 = vrot.lane.b32.xlu2 %v6830_v37, %s6641_s26  ;;  %v832_v28 = vpop.permute.xlu0 %831  ;;  %v7385_v37 = vpop.xlane.xlu1 %796 }
 0x335   : > { %v7388_v8 = vmul.f32 %v832_v28, %v6875_v51  ;;  %v7403_v51 = vmul.f32 %v830_v18, %v6871_v49 }
 0x336   : > { %v7392_v42 = vpop.xlane.xlu2 %674 }
 0x337   : > { %12504 = vst [vmem:[#allocation65_spill] sm:$0xff] %v7388_v8  ;;  %v902_v41 = vsel %vm518_vm1, %v7388_v8, 0.0 }
 0x338   : > { %12505 = vst [vmem:[#allocation66_spill] sm:$0xff] %v7403_v51 }
 0x33a   : > { %5775 = vmatmul.msk.bf16.gmra.mxu2 %vm314_vm0, %v6793_v30 }
 0x33c   : > { %v836_v30 = vpop.permute.xlu1 %835 }
 0x341   : > { %894 = vadd.xlane.f32.xlu1 %v893_v29 }
 0x342   : > { %843 = vrot.lane.b32.xlu0 %v6979_v15, %s6641_s26  ;;  %v834_v15 = vpop.permute.xlu2 %833 }
 0x344   : > { %v7400_v29 = vpop.xlane.xlu1 %686 }
 0x349   : > { %903 = vadd.xlane.f32.xlu1 %v902_v41 }
 0x34a   : > { %849 = vrot.lane.b32.xlu0 %v7023_v50, %s6641_s26  ;;  %5776 = vmatmul.msk.bf16.gmra.mxu2 %vm314_vm0, %v6802_v31  ;;  %v7405_v28 = vpop.xlane.xlu2 %799  ;;  %v899_v50 = vsel %vm518_vm1, %v7403_v51, 0.0  ;;  %v7414_v31 = vmul.f32 %v836_v30, %v6937_v2 }
 0x34c   : > { %v7411_v41 = vpop.xlane.xlu1 %805  ;;  %12506 = vst [vmem:[#allocation67_spill] sm:$0xff] %v7414_v31 }
 0x352   : > { %855 = vrot.lane.b32.xlu0 %v6822_v35, %s6641_s26  ;;  %v908_v35 = vsel %vm518_vm1, %v7414_v31, 0.0  ;;  %v7420_v49 = vpop.xlane.xlu2 %683 }
 0x353   : > { %v7407_v33 = vpop.xlane.xlu0 %680  ;;  %12507 = vst [vmem:[#allocation68_spill] sm:$0xff] %v7420_v49 }
 0x354   : > { %v842_v18 = vpop.permute.xlu1 %841 }
 0x355   : > { %v7425_v45 = vmul.f32 %v842_v18, %v6993_v19  ;;  %v7439_v19 = vmul.f32 %v828_v20, %v6867_v47 }
 0x357   : > { %12509 = vst [vmem:[#allocation70_spill] sm:$0xff] %v7425_v45 }
 0x358   : > { %12511 = vst [vmem:[#allocation72_spill] sm:$0xff] %v7439_v19 }
 0x35a   : > { %5777 = vmatmul.msk.bf16.gmra.mxu2 %vm314_vm0, %v6835_v38  ;;  %v840_v30 = vpop.permute.xlu2 %839 }
 0x35b   : > { %v7422_v8 = vpop.xlane.xlu0 %802 }
 0x35c   : > { %12508 = vst [vmem:[#allocation69_spill] sm:$0xff] %v7422_v8 }
 0x35d   : > { %900 = vadd.xlane.f32.xlu2 %v899_v50  ;;  %v917_v50 = vsel %vm518_vm1, %v7425_v45, 0.0  ;;  %v896_v45 = vsel %vm518_vm1, %v7439_v19, 0.0 }
 0x361   : > { %v7429_v51 = vpop.xlane.xlu1 %695 }
 0x365   : > { %909 = vadd.xlane.f32.xlu2 %v908_v35 }
 0x36a   : > { %5778 = vmatmul.msk.bf16.gmra.mxu2 %vm314_vm0, %v6898_v58 }
 0x36d   : > { %918 = vadd.xlane.f32.xlu2 %v917_v50  ;;  %v7443_v50 = vpop.xlane.xlu1 %814 }
 0x36e   : > { %v838_v2 = vpop.permute.xlu0 %837 }
 0x36f   : > { %v7432_v38 = vmul.f32 %v838_v2, %v6947_v5  ;;  %v7448_v5 = vmul.f32 %v834_v15, %v6883_v53  ;;  %v7462_v53 = vmul.f32 %v840_v30, %v6961_v10 }
 0x371   : > { %12510 = vst [vmem:[#allocation71_spill] sm:$0xff] %v7432_v38  ;;  %v911_v35 = vsel %vm518_vm1, %v7432_v38, 0.0  ;;  %v905_v20 = vsel %vm518_vm1, %v7448_v5, 0.0 }
 0x372   : > { %912 = vadd.xlane.f32.xlu1 %v911_v35  ;;  %12512 = vst [vmem:[#allocation73_spill] sm:$0xff] %v7448_v5 }
 0x373   : > { %12515 = vst [vmem:[#allocation76_spill] sm:$0xff] %v7462_v53 }
 0x377   : > { %v7441_v18 = vpop.xlane.xlu2 %808 }
 0x37a   : > { %5779 = vmatmul.msk.bf16.gmra.mxu2 %vm314_vm0, %v6919_v0  ;;  %v914_v0 = vsel %vm518_vm1, %v7462_v53, 0.0 }
 0x37c   : > { %897 = vadd.xlane.f32.xlu0 %v896_v45 }
 0x37f   : > { %v7450_v2 = vpop.xlane.xlu2 %692 }
 0x380   : > { %12513 = vst [vmem:[#allocation74_spill] sm:$0xff] %v7450_v2 }
 0x381   : > { %v848_v58 = vpop.permute.xlu1 %847 }
 0x382   : > { %v7455_v47 = vmul.f32 %v848_v58, %v7037_v63 }
 0x384   : > { %12514 = vst [vmem:[#allocation75_spill] sm:$0xff] %v7455_v47  ;;  %906 = vadd.xlane.f32.xlu0 %v905_v20  ;;  %v926_v35 = vsel %vm518_vm1, %v7455_v47, 0.0 }
 0x385   : > { %927 = vadd.xlane.f32.xlu2 %v926_v35 }
 0x387   : > { %v846_v45 = vpop.permute.xlu2 %845 }
 0x388   : > { %v7472_v58 = vmul.f32 %v846_v45, %v7009_v26 }
 0x389   : > { %v854_v15 = vpop.permute.xlu1 %853 }
 0x38a   : > { %v7465_v38 = vmul.f32 %v854_v15, %v6855_v43  ;;  %12517 = vst [vmem:[#allocation78_spill] sm:$0xff] %v7472_v58  ;;  %v923_v10 = vsel %vm518_vm1, %v7472_v58, 0.0  ;;  %v947_v58 = vmax.f32 %v7182_v11, %v7358_v25 }
 0x38c   : > { %12516 = vst [vmem:[#allocation77_spill] sm:$0xff] %v7465_v38  ;;  %915 = vadd.xlane.f32.xlu0 %v914_v0  ;;  %v935_v63 = vsel %vm518_vm1, %v7465_v38, 0.0 }
 0x38d   : > { %936 = vadd.xlane.f32.xlu2 %v935_v63 }
 0x38f   : > { %v852_v20 = vpop.permute.xlu2 %851 }
 0x390   : > { %v7477_v30 = vmul.f32 %v852_v20, %v7053_v21  ;;  %v944_v21 = vmax.f32 %v7045_v6, %v7287_v27 }
 0x392   : > { %12518 = vst [vmem:[#allocation79_spill] sm:$0xff] %v7477_v30  ;;  %v932_v43 = vsel %vm518_vm1, %v7477_v30, 0.0  ;;  %v961_v63 = vmax.f32 %v944_v21, %v7274_v7 }
 0x394   : > { %924 = vadd.xlane.f32.xlu0 %v923_v10 }
 0x397   : > { %v858_v35 = vpop.permute.xlu2 %857 }
 0x398   : > { %v7482_v15 = vmul.f32 %v858_v35, %v6869_v48 }
 0x399   : > { %v7484_v0 = vpop.xlane.xlu0 %689 }
 0x39a   : > { %12519 = vst [vmem:[#allocation80_spill] sm:$0xff] %v7482_v15  ;;  %v941_v26 = vsel %vm518_vm1, %v7482_v15, 0.0 }
 0x39c   : > { %933 = vadd.xlane.f32.xlu0 %v932_v43 }
 0x3a1   : > { %v7488_v45 = vpop.xlane.xlu0 %811 }
 0x3a2   : > { %12520 = vst [vmem:[#allocation81_spill] sm:$0xff] %v7488_v45 }
 0x3a4   : > { %942 = vadd.xlane.f32.xlu0 %v941_v26 }
 0x3b4   : > { %v844_v20 = vpop.permute.xlu0 %843  ;;  %v895_v10 = vpop.xlane.xlu1 %894 }
 0x3b5   : > { %v7494_v43 = vmul.f32 %v844_v20, %v7003_v22  ;;  %v978_v48 = vmax.f32 %v961_v63, %v895_v10  ;;  %v964_v22 = vmax.f32 %v947_v58, %v7336_v34  ;;  %v7504_v63 = vpop.f32.mrf.mxu2 }
 0x3b6   : > { %12522 = vst [vmem:[#allocation83_spill] sm:$0xff] %v7504_v63 }
 0x3b7   : > { %12521 = vst [vmem:[#allocation82_spill] sm:$0xff] %v7494_v43  ;;  %v995_v35 = vsub.f32 %v7045_v6, %v978_v48  ;;  %v1046_v30 = vsub.f32 %v7287_v27, %v978_v48  ;;  %v1097_v15 = vsub.f32 %v7274_v7, %v978_v48  ;;  %v1148_v26 = vsub.f32 %v895_v10, %v978_v48 }
 0x3b8   : > { %v920_v38 = vsel %vm518_vm1, %v7494_v43, 0.0 }
 0x3b9   : > { %v1012_v21 = vmul.f32 1.442695, %v995_v35  ;;  %v1063_v47 = vmul.f32 1.442695, %v1046_v30  ;;  %921 = vadd.xlane.f32.xlu1 %v920_v38  ;;  %v1114_v53 = vmul.f32 1.442695, %v1097_v15 }
 0x3ba   : > { %v1165_v6 = vmul.f32 1.442695, %v1148_v26 }
 0x3bb   : > { %5879 = vpow2.f32 %v1012_v21 }
 0x3bc   : > { %5881 = vpow2.f32 %v1063_v47  ;;  %v850_v27 = vpop.permute.xlu0 %849  ;;  %v904_v7 = vpop.xlane.xlu1 %903 }
 0x3bd   : > { %v7507_v20 = vmul.f32 %v850_v27, %v7049_v12  ;;  %v981_v10 = vmax.f32 %v964_v22, %v904_v7  ;;  %5883 = vpow2.f32 %v1114_v53 }
 0x3be   : > { %5885 = vpow2.f32 %v1165_v6 }
 0x3bf   : > { %12523 = vst [vmem:[#allocation84_spill] sm:$0xff] %v7507_v20  ;;  %v998_v48 = vsub.f32 %v7182_v11, %v981_v10  ;;  %v1049_v30 = vsub.f32 %v7358_v25, %v981_v10  ;;  %v1100_v38 = vsub.f32 %v7336_v34, %v981_v10  ;;  %v1151_v58 = vsub.f32 %v904_v7, %v981_v10  ;;  %v7517_v7 = vpop.f32.mrf.mxu2 }
 0x3c0   : > { %v929_v15 = vsel %vm518_vm1, %v7507_v20, 0.0  ;;  %12525 = vst [vmem:[#allocation86_spill] sm:$0xff] %v7517_v7 }
 0x3c1   : > { %v5880_v47 = vpop.eup %5879  ;;  %v1018_v35 = vmul.f32 1.442695, %v998_v48  ;;  %v1069_v26 = vmul.f32 1.442695, %v1049_v30  ;;  %930 = vadd.xlane.f32.xlu1 %v929_v15  ;;  %v1120_v12 = vmul.f32 1.442695, %v1100_v38 }
 0x3c2   : > { %v5882_v21 = vpop.eup %5881  ;;  %v1171_v11 = vmul.f32 1.442695, %v1151_v58  ;;  %v946_v58 = vmax.f32 %v7180_v52, %v7316_v57 }
 0x3c3   : > { %v1199_v27 = vadd.f32 %v5882_v21, %v5880_v47  ;;  %5887 = vpow2.f32 %v1018_v35  ;;  %v5884_v53 = vpop.eup %5883 }
 0x3c4   : > { %5889 = vpow2.f32 %v1069_v26  ;;  %v856_v22 = vpop.permute.xlu0 %855  ;;  %v5886_v6 = vpop.eup %5885 }
 0x3c5   : > { %v1216_v25 = vadd.f32 %v5884_v53, %v1199_v27  ;;  %v7515_v34 = vmul.f32 %v856_v22, %v6865_v46  ;;  %5891 = vpow2.f32 %v1120_v12  ;;  %v963_v22 = vmax.f32 %v946_v58, %v7345_v60 }
 0x3c6   : > { %5893 = vpow2.f32 %v1171_v11 }
 0x3c7   : > { %12524 = vst [vmem:[#allocation85_spill] sm:$0xff] %v7515_v34  ;;  %v1233_v10 = vadd.f32 %v5886_v6, %v1216_v25  ;;  %v938_v48 = vsel %vm518_vm1, %v7515_v34, 0.0  ;;  %v7524_v43 = vpop.f32.mrf.mxu2 }
 0x3c8   : > { %12526 = vst [vmem:[#allocation87_spill] sm:$0xff] %v7524_v43 }
 0x3c9   : > { %v5888_v30 = vpop.eup %5887  ;;  %5895 = vrcp.f32 %v1233_v10  ;;  %939 = vadd.xlane.f32.xlu1 %v938_v48  ;;  %v949_v48 = vmax.f32 %v7158_v1, %v7362_v23 }
 0x3ca   : > { %v5890_v38 = vpop.eup %5889 }
 0x3cb   : > { %v1202_v15 = vadd.f32 %v5890_v38, %v5888_v30  ;;  %v5892_v35 = vpop.eup %5891 }
 0x3cc   : > { %v5894_v26 = vpop.eup %5893 }
 0x3cd   : > { %v1219_v46 = vadd.f32 %v5892_v35, %v1202_v15 }
 0x3cf   : > { %v5896_v27 = vpop.eup %5895  ;;  %v1236_v12 = vadd.f32 %v5894_v26, %v1219_v46 }
 0x3d0   : > { %v1267_v25 = vmul.f32 %v5896_v27, %v1233_v10  ;;  %v901_v20 = vpop.xlane.xlu2 %900 }
 0x3d1   : > { %5897 = vrcp.f32 %v1236_v12  ;;  %v980_v11 = vmax.f32 %v963_v22, %v901_v20 }
 0x3d2   : > { %v1284_v34 = vsub.f32 2.0, %v1267_v25  ;;  %v966_v25 = vmax.f32 %v949_v48, %v7377_v44 }
 0x3d3   : > { %v997_v5 = vsub.f32 %v7180_v52, %v980_v11  ;;  %v1048_v31 = vsub.f32 %v7316_v57, %v980_v11  ;;  %v1099_v15 = vsub.f32 %v7345_v60, %v980_v11  ;;  %v1150_v19 = vsub.f32 %v901_v20, %v980_v11 }
 0x3d4   : > { %v1301_v46 = vmul.f32 %v5896_v27, %v1284_v34 }
 0x3d5   : > { %v1016_v36 = vmul.f32 1.442695, %v997_v5  ;;  %v1067_v58 = vmul.f32 1.442695, %v1048_v31  ;;  %v1118_v10 = vmul.f32 1.442695, %v1099_v15 }
 0x3d6   : > { %v1369_v45 = vmul.f32 %v5882_v21, %v1301_v46  ;;  %v7531_v2 = vmul.f32 %v5880_v47, %v1301_v46  ;;  %v7533_v8 = vmul.f32 %v5884_v53, %v1301_v46  ;;  %v7536_v49 = vmul.f32 %v5886_v6, %v1301_v46  ;;  %v7540_v47 = vpop.f32.mrf.mxu2 }
 0x3d7   : > { %v5898_v22 = vpop.eup %5897  ;;  %5899 = vpow2.f32 %v1016_v36  ;;  %v1169_v57 = vmul.f32 1.442695, %v1150_v19  ;;  %12529 = vst [vmem:[#allocation90_spill] sm:$0xff] %v7540_v47  ;;  %v952_v36 = vmax.f32 %v7205_v32, %v7407_v33 }
 0x3d8   : > { %12527 = vst [vmem:[#allocation88_spill] sm:$0xff] %v7531_v2  ;;  %v1270_v52 = vmul.f32 %v5898_v22, %v1236_v12  ;;  %5901 = vpow2.f32 %v1067_v58  ;;  %v910_v60 = vpop.xlane.xlu2 %909  ;;  %v1386_v20 = vmul.f32 %v1369_v45, %v7504_v63 }
 0x3d9   : > { %12528 = vst [vmem:[#allocation89_spill] sm:$0xff] %v7536_v49  ;;  %v983_v5 = vmax.f32 %v966_v25, %v910_v60  ;;  %5903 = vpow2.f32 %v1118_v10 }
 0x3da   : > { %v1287_v31 = vsub.f32 2.0, %v1270_v52  ;;  %1420 = vrot.lane.b32.xlu2 %v1386_v20, %s6640_s25  ;;  %5905 = vpow2.f32 %v1169_v57  ;;  %v950_v52 = vmax.f32 %v7152_v59, %v7392_v42 }
 0x3db   : > { %v1000_v21 = vsub.f32 %v7158_v1, %v983_v5  ;;  %v1051_v53 = vsub.f32 %v7362_v23, %v983_v5  ;;  %v1102_v19 = vsub.f32 %v7377_v44, %v983_v5  ;;  %v1153_v11 = vsub.f32 %v910_v60, %v983_v5 }
 0x3dc   : > { %v1304_v34 = vmul.f32 %v5898_v22, %v1287_v31  ;;  %v969_v23 = vmax.f32 %v952_v36, %v7405_v28  ;;  %v967_v5 = vmax.f32 %v950_v52, %v7372_v14 }
 0x3dd   : > { %v7547_v6 = vpop.eup %5899  ;;  %v1022_v45 = vmul.f32 1.442695, %v1000_v21  ;;  %v1073_v27 = vmul.f32 1.442695, %v1051_v53  ;;  %v1124_v10 = vmul.f32 1.442695, %v1102_v19 }
 0x3de   : > { %v7549_v12 = vpop.eup %5901  ;;  %v1372_v48 = vmul.f32 %v5890_v38, %v1304_v34  ;;  %v7551_v15 = vmul.f32 %v5888_v30, %v1304_v34  ;;  %v7553_v46 = vmul.f32 %v5892_v35, %v1304_v34  ;;  %v7558_v44 = vmul.f32 %v5894_v26, %v1304_v34  ;;  %v7573_v31 = vpop.f32.mrf.mxu2 }
 0x3df   : > { %v1201_v1 = vadd.f32 %v7549_v12, %v7547_v6  ;;  %5907 = vpow2.f32 %v1022_v45  ;;  %v7560_v58 = vpop.eup %5903  ;;  %v1175_v57 = vmul.f32 1.442695, %v1153_v11  ;;  %12533 = vst [vmem:[#allocation94_spill] sm:$0xff] %v7573_v31 }
 0x3e0   : > { %12530 = vst [vmem:[#allocation91_spill] sm:$0xff] %v7551_v15  ;;  %5909 = vpow2.f32 %v1073_v27  ;;  %v919_v22 = vpop.xlane.xlu2 %918  ;;  %v1389_v25 = vmul.f32 %v1372_v48, %v7540_v47  ;;  %v7564_v35 = vpop.eup %5905 }
 0x3e1   : > { %12531 = vst [vmem:[#allocation92_spill] sm:$0xff] %v7558_v44  ;;  %v1218_v30 = vadd.f32 %v7560_v58, %v1201_v1  ;;  %v986_v38 = vmax.f32 %v969_v23, %v919_v22  ;;  %5911 = vpow2.f32 %v1124_v10 }
 0x3e2   : > { %12532 = vst [vmem:[#allocation93_spill] sm:$0xff] %v7564_v35  ;;  %1426 = vrot.lane.b32.xlu2 %v1389_v25, %s6640_s25 }
 0x3e3   : > { %v1235_v26 = vadd.f32 %v7564_v35, %v1218_v30  ;;  %v1003_v60 = vsub.f32 %v7205_v32, %v986_v38  ;;  %v1054_v20 = vsub.f32 %v7407_v33, %v986_v38  ;;  %v1105_v19 = vsub.f32 %v7405_v28, %v986_v38 }
 0x3e4   : > { %v1156_v33 = vsub.f32 %v919_v22, %v986_v38  ;;  %v945_v22 = vmax.f32 %v7068_v3, %v7272_v61 }
 0x3e5   : > { %v7575_v36 = vpop.eup %5907  ;;  %5913 = vrcp.f32 %v1235_v26  ;;  %v1028_v21 = vmul.f32 1.442695, %v1003_v60  ;;  %v1079_v53 = vmul.f32 1.442695, %v1054_v20  ;;  %v913_v34 = vpop.xlane.xlu1 %912  ;;  %v1130_v23 = vmul.f32 1.442695, %v1105_v19 }
 0x3e6   : > { %12534 = vst [vmem:[#allocation95_spill] sm:$0xff] %v7575_v36  ;;  %v7578_v45 = vpop.eup %5909  ;;  %5915 = vpow2.f32 %v1175_v57  ;;  %v984_v27 = vmax.f32 %v967_v5, %v913_v34  ;;  %v1181_v60 = vmul.f32 1.442695, %v1156_v33  ;;  %v7597_v19 = vpop.f32.mrf.mxu2  ;;  %v948_v33 = vmax.f32 %v7132_v55, %v7334_v62 }
 0x3e7   : > { %v1204_v32 = vadd.f32 %v7578_v45, %v7575_v36  ;;  %5917 = vpow2.f32 %v1028_v21  ;;  %v7585_v28 = vpop.eup %5911  ;;  %v962_v21 = vmax.f32 %v945_v22, %v7281_v13  ;;  %12537 = vst [vmem:[#allocation98_spill] sm:$0xff] %v7597_v19 }
 0x3e8   : > { %5919 = vpow2.f32 %v1079_v53  ;;  %v1001_v11 = vsub.f32 %v7152_v59, %v984_v27  ;;  %v1052_v48 = vsub.f32 %v7392_v42, %v984_v27  ;;  %v1103_v1 = vsub.f32 %v7372_v14, %v984_v27  ;;  %12535 = vst [vmem:[#allocation96_spill] sm:$0xff] %v7585_v28 }
 0x3e9   : > { %v1154_v10 = vsub.f32 %v913_v34, %v984_v27  ;;  %v1221_v57 = vadd.f32 %v7585_v28, %v1204_v32 }
 0x3ea   : > { %v1024_v25 = vmul.f32 1.442695, %v1001_v11  ;;  %v1075_v30 = vmul.f32 1.442695, %v1052_v48  ;;  %v1126_v42 = vmul.f32 1.442695, %v1103_v1  ;;  %v955_v11 = vmax.f32 %v7256_v17, %v7484_v0 }
 0x3eb   : > { %v5914_v52 = vpop.eup %5913  ;;  %v1177_v14 = vmul.f32 1.442695, %v1154_v10 }
 0x3ec   : > { %v7588_v20 = vpop.eup %5915  ;;  %v1269_v59 = vmul.f32 %v5914_v52, %v1235_v26  ;;  %5921 = vpow2.f32 %v1024_v25 }
 0x3ed   : > { %12536 = vst [vmem:[#allocation97_spill] sm:$0xff] %v7588_v20  ;;  %v7592_v38 = vpop.eup %5917  ;;  %5923 = vpow2.f32 %v1130_v23  ;;  %v1238_v34 = vadd.f32 %v7588_v20, %v1221_v57 }
 0x3ee   : > { %v7594_v5 = vpop.eup %5919  ;;  %v1286_v53 = vsub.f32 2.0, %v1269_v59  ;;  %5925 = vpow2.f32 %v1075_v30 }
 0x3ef   : > { %5927 = vpow2.f32 %v1181_v60  ;;  %v898_v27 = vpop.xlane.xlu0 %897  ;;  %v1207_v48 = vadd.f32 %v7594_v5, %v7592_v38 }
 0x3f0   : > { %5929 = vpow2.f32 %v1126_v42  ;;  %v979_v26 = vmax.f32 %v962_v21, %v898_v27  ;;  %v7600_v32 = vmul.f32 %v5914_v52, %v1286_v53 }
 0x3f1   : > { %5931 = vpow2.f32 %v1177_v14 }
 0x3f2   : > { %12538 = vst [vmem:[#allocation99_spill] sm:$0xff] %v7600_v32  ;;  %v7608_v1 = vpop.eup %5921  ;;  %v996_v23 = vsub.f32 %v7068_v3, %v979_v26  ;;  %v1047_v10 = vsub.f32 %v7272_v61, %v979_v26  ;;  %v1098_v25 = vsub.f32 %v7281_v13, %v979_v26  ;;  %v1149_v30 = vsub.f32 %v898_v27, %v979_v26 }
 0x3f3   : > { %v7613_v52 = vpop.eup %5923  ;;  %5933 = vrcp.f32 %v1238_v34  ;;  %v1371_v57 = vmul.f32 %v7549_v12, %v7600_v32  ;;  %v7619_v60 = vmul.f32 %v7560_v58, %v7600_v32  ;;  %v7623_v22 = vmul.f32 %v7547_v6, %v7600_v32 }
 0x3f4   : > { %12539 = vst [vmem:[#allocation100_spill] sm:$0xff] %v7613_v52  ;;  %v7625_v3 = vpop.eup %5925  ;;  %v958_v61 = vmax.f32 %v7147_v16, %v7283_v39  ;;  %v1014_v13 = vmul.f32 1.442695, %v996_v23  ;;  %v1065_v59 = vmul.f32 1.442695, %v1047_v10  ;;  %v1224_v12 = vadd.f32 %v7613_v52, %v1207_v48 }
 0x3f5   : > { %12540 = vst [vmem:[#allocation101_spill] sm:$0xff] %v7619_v60  ;;  %v1116_v42 = vmul.f32 1.442695, %v1098_v25  ;;  %v7629_v14 = vpop.eup %5927  ;;  %v1205_v58 = vadd.f32 %v7625_v3, %v7608_v1  ;;  %v1167_v21 = vmul.f32 1.442695, %v1149_v30  ;;  %v1388_v53 = vmul.f32 %v1371_v57, %v7524_v43  ;;  %v7647_v57 = vpop.f32.mrf.mxu2 }
 0x3f6   : > { %12541 = vst [vmem:[#allocation102_spill] sm:$0xff] %v7623_v22  ;;  %v7635_v6 = vpop.eup %5929  ;;  %v965_v27 = vmax.f32 %v948_v33, %v7354_v24  ;;  %5935 = vpow2.f32 %v1014_v13  ;;  %v972_v25 = vmax.f32 %v955_v11, %v7441_v18  ;;  %v951_v30 = vmax.f32 %v7226_v4, %v7370_v40 }
 0x3f7   : > { %v7638_v26 = vpop.eup %5931  ;;  %v1222_v10 = vadd.f32 %v7635_v6, %v1205_v58  ;;  %5937 = vpow2.f32 %v1065_v59  ;;  %1424 = vrot.lane.b32.xlu0 %v1388_v53, %s6640_s25  ;;  %v907_v48 = vpop.xlane.xlu0 %906  ;;  %12542 = vst [vmem:[#allocation103_spill] sm:$0xff] %v7647_v57  ;;  %v975_v36 = vmax.f32 %v958_v61, %v7307_v54  ;;  %v7653_v58 = vadd.f32 %v7629_v14, %v1224_v12 }
 0x3f8   : > { %5939 = vpow2.f32 %v1116_v42  ;;  %v982_v33 = vmax.f32 %v965_v27, %v907_v48  ;;  %v928_v13 = vpop.xlane.xlu2 %927  ;;  %v12543_v27 = vld [vmem:[#allocation50_spill] sm:$0xff] }
 0x3f9   : > { %v7650_v22 = vpop.eup %5933  ;;  %v1239_v59 = vadd.f32 %v7638_v26, %v1222_v10  ;;  %5941 = vpow2.f32 %v1167_v21  ;;  %v989_v53 = vmax.f32 %v972_v25, %v928_v13  ;;  %v954_v2 = vmax.f32 %v12543_v27, %v7400_v29 }
 0x3fa   : > { %v999_v11 = vsub.f32 %v7132_v55, %v982_v33  ;;  %v1050_v23 = vsub.f32 %v7334_v62, %v982_v33  ;;  %v1101_v42 = vsub.f32 %v7354_v24, %v982_v33  ;;  %v1152_v15 = vsub.f32 %v907_v48, %v982_v33 }
 0x3fb   : > { %5943 = vrcp.f32 %v1239_v59  ;;  %v1006_v61 = vsub.f32 %v7256_v17, %v989_v53  ;;  %v1057_v12 = vsub.f32 %v7484_v0, %v989_v53  ;;  %v7666_v21 = vmul.f32 %v7650_v22, %v1238_v34 }
 0x3fc   : > { %v7663_v20 = vpop.eup %5935  ;;  %v1020_v10 = vmul.f32 1.442695, %v999_v11  ;;  %v1071_v55 = vmul.f32 1.442695, %v1050_v23  ;;  %v1122_v25 = vmul.f32 1.442695, %v1101_v42  ;;  %5945 = vrcp.f32 %v7653_v58 }
 0x3fd   : > { %v7668_v62 = vpop.eup %5937  ;;  %v1173_v24 = vmul.f32 1.442695, %v1152_v15  ;;  %v1108_v48 = vsub.f32 %v7441_v18, %v989_v53  ;;  %v1159_v33 = vsub.f32 %v928_v13, %v989_v53  ;;  %v968_v17 = vmax.f32 %v951_v30, %v7385_v37  ;;  %v12544_v42 = vld [vmem:[#allocation55_spill] sm:$0xff]  ;;  %v7685_v32 = vpop.f32.mrf.mxu2 }
 0x3fe   : > { %v7672_v35 = vpop.eup %5939  ;;  %v1200_v0 = vadd.f32 %v7668_v62, %v7663_v20  ;;  %5947 = vpow2.f32 %v1020_v10  ;;  %v1034_v34 = vmul.f32 1.442695, %v1006_v61  ;;  %v971_v23 = vmax.f32 %v954_v2, %v7411_v41  ;;  %12545 = vst [vmem:[#allocation50_spill] sm:$0xff] %v7685_v32 }
 0x3ff   : > { %v7677_v11 = vpop.eup %5941  ;;  %5949 = vpow2.f32 %v1071_v55  ;;  %v1085_v15 = vmul.f32 1.442695, %v1057_v12  ;;  %v916_v18 = vpop.xlane.xlu0 %915  ;;  %v1136_v61 = vmul.f32 1.442695, %v1108_v48  ;;  %v1187_v10 = vmul.f32 1.442695, %v1159_v33 }
 0x400   : > { %v1217_v53 = vadd.f32 %v7672_v35, %v1200_v0  ;;  %5951 = vpow2.f32 %v1122_v25  ;;  %v985_v30 = vmax.f32 %v968_v17, %v916_v18  ;;  %v937_v44 = vpop.xlane.xlu2 %936 }
 0x401   : > { %v5944_v49 = vpop.eup %5943  ;;  %5953 = vpow2.f32 %v1173_v24  ;;  %v992_v52 = vmax.f32 %v975_v36, %v937_v44 }
 0x402   : > { %v1273_v28 = vmul.f32 %v5944_v49, %v1239_v59  ;;  %v1234_v2 = vadd.f32 %v7677_v11, %v1217_v53  ;;  %5955 = vpow2.f32 %v1034_v34  ;;  %v1002_v12 = vsub.f32 %v7226_v4, %v985_v30  ;;  %v7688_v55 = vpop.eup %5945 }
 0x403   : > { %5957 = vpow2.f32 %v1085_v15  ;;  %v1053_v25 = vsub.f32 %v7370_v40, %v985_v30  ;;  %v1104_v17 = vsub.f32 %v7385_v37, %v985_v30  ;;  %v1155_v0 = vsub.f32 %v916_v18, %v985_v30 }
 0x404   : > { %v7692_v24 = vpop.eup %5947  ;;  %v1290_v48 = vsub.f32 2.0, %v1273_v28  ;;  %5959 = vrcp.f32 %v1234_v2  ;;  %v1026_v36 = vmul.f32 1.442695, %v1002_v12  ;;  %v1009_v59 = vsub.f32 %v7147_v16, %v992_v52 }
 0x405   : > { %v7695_v33 = vpop.eup %5949  ;;  %5961 = vpow2.f32 %v1136_v61  ;;  %v1077_v34 = vmul.f32 1.442695, %v1053_v25  ;;  %v1128_v4 = vmul.f32 1.442695, %v1104_v17  ;;  %v1179_v53 = vmul.f32 1.442695, %v1155_v0 }
 0x406   : > { %v7697_v13 = vpop.eup %5951  ;;  %v1203_v40 = vadd.f32 %v7695_v33, %v7692_v24  ;;  %5963 = vpow2.f32 %v1187_v10  ;;  %v1040_v37 = vmul.f32 1.442695, %v1009_v59  ;;  %v1060_v15 = vsub.f32 %v7283_v39, %v992_v52 }
 0x407   : > { %v7702_v28 = vpop.eup %5953  ;;  %5965 = vpow2.f32 %v1026_v36  ;;  %v1111_v16 = vsub.f32 %v7307_v54, %v992_v52  ;;  %v1162_v18 = vsub.f32 %v937_v44, %v992_v52  ;;  %v925_v30 = vpop.xlane.xlu0 %924  ;;  %v7705_v61 = vmul.f32 %v5944_v49, %v1290_v48 }
 0x408   : > { %v7707_v12 = vpop.eup %5955  ;;  %v1220_v25 = vadd.f32 %v7697_v13, %v1203_v40  ;;  %5967 = vpow2.f32 %v1077_v34  ;;  %v1091_v17 = vmul.f32 1.442695, %v1060_v15  ;;  %v988_v0 = vmax.f32 %v971_v23, %v925_v30 }
 0x409   : > { %v7710_v10 = vpop.eup %5957  ;;  %5969 = vpow2.f32 %v1128_v4  ;;  %v1142_v39 = vmul.f32 1.442695, %v1111_v16  ;;  %v1193_v59 = vmul.f32 1.442695, %v1162_v18  ;;  %v1375_v36 = vmul.f32 %v7625_v3, %v7705_v61  ;;  %v7729_v16 = vpop.f32.mrf.mxu2 }
 0x40a   : > { %v5960_v54 = vpop.eup %5959  ;;  %v1237_v44 = vadd.f32 %v7702_v28, %v1220_v25  ;;  %v1210_v49 = vadd.f32 %v7710_v10, %v7707_v12  ;;  %5971 = vpow2.f32 %v1179_v53  ;;  %v1005_v52 = vsub.f32 %v12543_v27, %v988_v0  ;;  %12548 = vst [vmem:[#allocation104_spill] sm:$0xff] %v7729_v16 }
 0x40b   : > { %v7718_v48 = vpop.eup %5961  ;;  %v1268_v23 = vmul.f32 %v5960_v54, %v1234_v2  ;;  %5973 = vpow2.f32 %v1040_v37  ;;  %v1056_v34 = vsub.f32 %v7400_v29, %v988_v0  ;;  %v1107_v4 = vsub.f32 %v7411_v41, %v988_v0 }
 0x40c   : > { %12546 = vst [vmem:[#allocation55_spill] sm:$0xff] %v7718_v48  ;;  %v7722_v40 = vpop.eup %5963  ;;  %v12547_v3 = vmax.f32 %v12544_v42, %v7429_v51  ;;  %5975 = vrcp.f32 %v1237_v44  ;;  %v1227_v53 = vadd.f32 %v7718_v48, %v1210_v49  ;;  %v1158_v27 = vsub.f32 %v925_v30, %v988_v0 }
 0x40d   : > { %v7731_v18 = vpop.eup %5965  ;;  %v1285_v2 = vsub.f32 2.0, %v1268_v23  ;;  %5977 = vpow2.f32 %v1091_v17  ;;  %v1032_v29 = vmul.f32 1.442695, %v1005_v52  ;;  %v12549_v41 = vsub.f32 2.0, %v7666_v21 }
 0x40e   : > { %v974_v15 = vmax.f32 %v12547_v3, %v7443_v50  ;;  %v7738_v25 = vpop.eup %5967  ;;  %v7741_v3 = vadd.f32 %v7722_v40, %v1227_v53  ;;  %5979 = vpow2.f32 %v1142_v39  ;;  %v1083_v49 = vmul.f32 1.442695, %v1056_v34 }
 0x40f   : > { %v7736_v37 = vmul.f32 %v7650_v22, %v12549_v41  ;;  %v1392_v48 = vmul.f32 %v1375_v36, %v7647_v57  ;;  %v7744_v30 = vpop.eup %5969  ;;  %v1206_v17 = vadd.f32 %v7738_v25, %v7731_v18  ;;  %5981 = vpow2.f32 %v1193_v59  ;;  %v934_v21 = vpop.xlane.xlu0 %933 }
 0x410   : > { %v1134_v0 = vmul.f32 1.442695, %v1107_v4  ;;  %v7748_v52 = vmul.f32 %v5960_v54, %v1285_v2  ;;  %v7750_v22 = vpop.eup %5971  ;;  %5983 = vrcp.f32 %v7741_v3  ;;  %v1185_v23 = vmul.f32 1.442695, %v1158_v27  ;;  %v7791_v57 = vpop.f32.mrf.mxu3 }
 0x411   : > { %12550 = vst [vmem:[#allocation105_spill] sm:$0xff] %v7736_v37  ;;  %1432 = vrot.lane.b32.xlu2 %v1392_v48, %s6640_s25  ;;  %v991_v39 = vmax.f32 %v974_v15, %v934_v21  ;;  %v7756_v36 = vmul.f32 %v7635_v6, %v7705_v61  ;;  %v7758_v34 = vpop.eup %5973  ;;  %v1275_v59 = vmul.f32 %v7688_v55, %v7653_v58  ;;  %5985 = vpow2.f32 %v1032_v29 }
 0x412   : > { %v1223_v54 = vadd.f32 %v7744_v30, %v1206_v17  ;;  %v1370_v4 = vmul.f32 %v7668_v62, %v7748_v52  ;;  %v5976_v53 = vpop.eup %5975  ;;  %5987 = vpow2.f32 %v1083_v49  ;;  %12556 = vst [vmem:[#allocation108_spill] sm:$0xff] %v7791_v57 }
 0x413   : > { %12551 = vst [vmem:[#allocation106_spill] sm:$0xff] %v7756_v36  ;;  %v1008_v48 = vsub.f32 %v12544_v42, %v991_v39  ;;  %v1059_v15 = vsub.f32 %v7429_v51, %v991_v39  ;;  %v1110_v6 = vsub.f32 %v7443_v50, %v991_v39  ;;  %v7768_v27 = vpop.eup %5977  ;;  %v1271_v2 = vmul.f32 %v5976_v53, %v1237_v44  ;;  %v12553_v44 = vld [vmem:[#allocation60_spill] sm:$0xff] }
 0x414   : > { %v1240_v41 = vadd.f32 %v7750_v22, %v1223_v54  ;;  %5989 = vpow2.f32 %v1134_v0  ;;  %v1161_v58 = vsub.f32 %v934_v21, %v991_v39  ;;  %v7771_v17 = vpop.eup %5979  ;;  %v1213_v62 = vadd.f32 %v7768_v27, %v7758_v34  ;;  %v7784_v54 = vpop.f32.mrf.mxu2 }
 0x415   : > { %12552 = vst [vmem:[#allocation107_spill] sm:$0xff] %v7771_v17  ;;  %5991 = vpow2.f32 %v1185_v23  ;;  %v1038_v29 = vmul.f32 1.442695, %v1008_v48  ;;  %v1089_v49 = vmul.f32 1.442695, %v1059_v15  ;;  %v7775_v42 = vpop.eup %5981  ;;  %v1288_v51 = vsub.f32 2.0, %v1271_v2 }
 0x416   : > { %5993 = vrcp.f32 %v1240_v41  ;;  %v1140_v50 = vmul.f32 1.442695, %v1110_v6  ;;  %v7777_v36 = vpop.eup %5983  ;;  %v12554_v0 = vmax.f32 %v7222_v56, %v7292_v9  ;;  %v1230_v39 = vadd.f32 %v7771_v17, %v1213_v62  ;;  %12555 = vst [vmem:[#allocation60_spill] sm:$0xff] %v7784_v54 }
 0x417   : > { %5995 = vpow2.f32 %v1038_v29  ;;  %v1387_v23 = vmul.f32 %v1370_v4, %v7517_v7  ;;  %v7787_v48 = vpop.eup %5985  ;;  %v1191_v15 = vmul.f32 1.442695, %v1161_v58  ;;  %v943_v2 = vpop.xlane.xlu0 %942  ;;  %v7789_v6 = vmul.f32 %v5976_v53, %v1288_v51 }
 0x418   : > { %v977_v21 = vmax.f32 %v12554_v0, %v12553_v44  ;;  %5997 = vpow2.f32 %v1089_v49  ;;  %v7793_v60 = vpop.eup %5987  ;;  %v1292_v43 = vsub.f32 2.0, %v1275_v59  ;;  %v1374_v29 = vmul.f32 %v7578_v45, %v7736_v37 }
 0x419   : > { %1422 = vrot.lane.b32.xlu1 %v1387_v23, %s6640_s25  ;;  %v7800_v4 = vmul.f32 %v7608_v1, %v7705_v61  ;;  %v1247_v53 = vadd.f32 %v7775_v42, %v1230_v39  ;;  %v1209_v58 = vadd.f32 %v7793_v60, %v7787_v48  ;;  %5999 = vpow2.f32 %v1140_v50 }
 0x41a   : > { %v994_v62 = vmax.f32 %v977_v21, %v943_v2  ;;  %v7802_v49 = vpop.eup %5989  ;;  %v1373_v59 = vmul.f32 %v7695_v33, %v7789_v6  ;;  %6001 = vpow2.f32 %v1191_v15  ;;  %v7819_v37 = vmul.f32 %v7688_v55, %v1292_v43 }
 0x41b   : > { %12557 = vst [vmem:[#allocation109_spill] sm:$0xff] %v7800_v4  ;;  %v7809_v51 = vpop.eup %5991  ;;  %v1226_v23 = vadd.f32 %v7802_v49, %v1209_v58  ;;  %6003 = vrcp.f32 %v1247_v53  ;;  %v1391_v15 = vmul.f32 %v1374_v29, %v7597_v19  ;;  %v7832_v58 = vpop.f32.mrf.mxu3 }
 0x41c   : > { %v1011_v0 = vsub.f32 %v7222_v56, %v994_v62  ;;  %v1062_v45 = vsub.f32 %v7292_v9, %v994_v62  ;;  %v1113_v1 = vsub.f32 %v12553_v44, %v994_v62  ;;  %v5994_v21 = vpop.eup %5993  ;;  %v1164_v39 = vsub.f32 %v943_v2, %v994_v62  ;;  %12558 = vst [vmem:[#allocation110_spill] sm:$0xff] %v7832_v58 }
 0x41d   : > { %v1390_v4 = vmul.f32 %v1373_v59, %v7573_v31  ;;  %v7816_v17 = vpop.eup %5995  ;;  %v1274_v50 = vmul.f32 %v5994_v21, %v1240_v41  ;;  %v1278_v9 = vmul.f32 %v7777_v36, %v7741_v3  ;;  %v1243_v44 = vadd.f32 %v7809_v51, %v1226_v23 }
 0x41e   : > { %v1044_v7 = vmul.f32 1.442695, %v1011_v0  ;;  %v1095_v33 = vmul.f32 1.442695, %v1062_v45  ;;  %v7821_v56 = vpop.eup %5997  ;;  %v1146_v62 = vmul.f32 1.442695, %v1113_v1  ;;  %v7836_v3 = vmul.f32 %v7672_v35, %v7748_v52  ;;  %v7844_v0 = vpop.f32.mrf.mxu2 }
 0x41f   : > { %1428 = vrot.lane.b32.xlu0 %v1390_v4, %s6640_s25  ;;  %v1291_v2 = vsub.f32 2.0, %v1274_v50  ;;  %v1212_v41 = vadd.f32 %v7821_v56, %v7816_v17  ;;  %v7830_v43 = vpop.eup %5999  ;;  %v1197_v55 = vmul.f32 1.442695, %v1164_v39  ;;  %12559 = vst [vmem:[#allocation111_spill] sm:$0xff] %v7844_v0  ;;  %v1377_v45 = vmul.f32 %v7594_v5, %v7819_v37 }
 0x420   : > { %6005 = vpow2.f32 %v1044_v7  ;;  %v7842_v59 = vpop.eup %6001  ;;  %v1295_v7 = vsub.f32 2.0, %v1278_v9  ;;  %v7850_v1 = vmul.f32 %v7677_v11, %v7748_v52  ;;  %v7861_v50 = vmul.f32 %v7702_v28, %v7789_v6 }
 0x421   : > { %6007 = vrcp.f32 %v1243_v44  ;;  %v1229_v4 = vadd.f32 %v7830_v43, %v1212_v41  ;;  %1430 = vrot.lane.b32.xlu1 %v1391_v15, %s6640_s25  ;;  %v7840_v29 = vmul.f32 %v5994_v21, %v1291_v2  ;;  %v7857_v21 = vmul.f32 %v7697_v13, %v7789_v6  ;;  %v6004_v39 = vpop.eup %6003 }
 0x422   : > { %6009 = vpow2.f32 %v1095_v33  ;;  %v1394_v9 = vmul.f32 %v1377_v45, %v7729_v16  ;;  %v7876_v15 = vmul.f32 %v7777_v36, %v1295_v7  ;;  %v7880_v28 = vmul.f32 %v7638_v26, %v7705_v61 }
 0x423   : > { %v1246_v35 = vadd.f32 %v7842_v59, %v1229_v4  ;;  %6011 = vpow2.f32 %v1146_v62  ;;  %v1376_v23 = vmul.f32 %v7738_v25, %v7840_v29  ;;  %v7865_v5 = vmul.f32 %v7744_v30, %v7840_v29  ;;  %v12565_v4 = vld [vmem:[#allocation43_spill] sm:$0xff] }
 0x424   : > { %6013 = vpow2.f32 %v1197_v55  ;;  %v7872_v25 = vmul.f32 %v7750_v22, %v7840_v29  ;;  %12560 = vst [vmem:[#allocation112_spill] sm:$0xff] %v7880_v28  ;;  %v1281_v2 = vmul.f32 %v6004_v39, %v1247_v53  ;;  %v7887_v22 = vmul.f32 %v7663_v20, %v7748_v52  ;;  %v7895_v55 = vpop.f32.mrf.mxu3 }
 0x425   : > { %6015 = vrcp.f32 %v1246_v35  ;;  %v1393_v33 = vmul.f32 %v1376_v23, %v7685_v32  ;;  %v7891_v62 = vmul.f32 %v7692_v24, %v7789_v6  ;;  %12563 = vst [vmem:[#allocation115_spill] sm:$0xff] %v7895_v55  ;;  %v7907_v24 = vmul.f32 %v7592_v38, %v7819_v37 }
 0x426   : > { %v7867_v11 = vpop.eup %6005  ;;  %12561 = vst [vmem:[#allocation113_spill] sm:$0xff] %v7887_v22  ;;  %v1298_v7 = vsub.f32 2.0, %v1281_v2  ;;  %v1380_v23 = vmul.f32 %v7710_v10, %v7876_v15  ;;  %v7915_v22 = vpop.f32.mrf.mxu2 }
 0x427   : > { %v6008_v13 = vpop.eup %6007  ;;  %1434 = vrot.lane.b32.xlu0 %v1393_v33, %s6640_s25  ;;  %12562 = vst [vmem:[#allocation114_spill] sm:$0xff] %v7891_v62  ;;  %v12567_v33 = vld [vmem:[#allocation69_spill] sm:$0xff] }
 0x428   : > { %v7882_v30 = vpop.eup %6009  ;;  %v1277_v41 = vmul.f32 %v6008_v13, %v1243_v44  ;;  %v12564_v44 = vld [vmem:[#allocation68_spill] sm:$0xff]  ;;  %12568 = vst [vmem:[#allocation43_spill] sm:$0xff] %v7915_v22 }
 0x429   : > { %v1215_v36 = vadd.f32 %v7882_v30, %v7867_v11  ;;  %v7897_v26 = vpop.eup %6011  ;;  %1436 = vrot.lane.b32.xlu1 %v1394_v9, %s6640_s25  ;;  %v953_v20 = vmax.f32 %v12565_v4, %v12564_v44  ;;  %12566 = vst [vmem:[#allocation68_spill] sm:$0xff] %v7907_v24 }
 0x42a   : > { %v1294_v61 = vsub.f32 2.0, %v1277_v41  ;;  %v7900_v53 = vpop.eup %6013 }
 0x42b   : > { %v1232_v52 = vadd.f32 %v7897_v26, %v1215_v36  ;;  %v6016_v6 = vpop.eup %6015  ;;  %v970_v9 = vmax.f32 %v953_v20, %v12567_v33  ;;  %v7929_v20 = vmul.f32 %v6004_v39, %v1298_v7  ;;  %v12570_v39 = vld [vmem:[#allocation74_spill] sm:$0xff]  ;;  %v12571_v7 = vld [vmem:[#allocation52_spill] sm:$0xff] }
 0x42c   : > { %v7909_v45 = vmul.f32 %v6008_v13, %v1294_v61  ;;  %v1280_v41 = vmul.f32 %v6016_v6, %v1246_v35  ;;  %v922_v28 = vpop.xlane.xlu1 %921  ;;  %v1397_v61 = vmul.f32 %v1380_v23, %v7915_v22  ;;  %v499_v24 = vpop.f32.mrf.mxu3  ;;  %v956_v23 = vmax.f32 %v12571_v7, %v12570_v39 }
 0x42d   : > { %v1249_v62 = vadd.f32 %v7900_v53, %v1232_v52  ;;  %v987_v2 = vmax.f32 %v970_v9, %v922_v28  ;;  %v7940_v9 = vmul.f32 %v7731_v18, %v7840_v29  ;;  %v1383_v24 = vmul.f32 %v7768_v27, %v7929_v20 }
 0x42e   : > { %v1379_v36 = vmul.f32 %v7793_v60, %v7909_v45  ;;  %v7921_v38 = vmul.f32 %v7802_v49, %v7909_v45  ;;  %v7925_v13 = vmul.f32 %v7809_v51, %v7909_v45  ;;  %v1297_v10 = vsub.f32 2.0, %v1280_v41 }
 0x42f   : > { %6017 = vrcp.f32 %v1249_v62  ;;  %v1004_v52 = vsub.f32 %v12565_v4, %v987_v2  ;;  %v1055_v60 = vsub.f32 %v12564_v44, %v987_v2  ;;  %v1106_v49 = vsub.f32 %v12567_v33, %v987_v2  ;;  %v12572_v33 = vld [vmem:[#allocation81_spill] sm:$0xff] }
 0x430   : > { %12569 = vst [vmem:[#allocation69_spill] sm:$0xff] %v7921_v38  ;;  %v1396_v35 = vmul.f32 %v1379_v36, %v7844_v0  ;;  %v1157_v38 = vsub.f32 %v922_v28, %v987_v2  ;;  %v7936_v51 = vmul.f32 %v6016_v6, %v1297_v10  ;;  %v7946_v44 = vmul.f32 %v7629_v14, %v7819_v37 }
 0x431   : > { %1442 = vrot.lane.b32.xlu1 %v1397_v61, %s6640_s25  ;;  %v1030_v4 = vmul.f32 1.442695, %v1004_v52  ;;  %v1081_v41 = vmul.f32 1.442695, %v1055_v60  ;;  %v1132_v28 = vmul.f32 1.442695, %v1106_v49  ;;  %v973_v36 = vmax.f32 %v956_v23, %v12572_v33  ;;  %v7964_v52 = vpop.f32.mrf.mxu2 }
 0x432   : > { %1440 = vrot.lane.b32.xlu0 %v1396_v35, %s6640_s25  ;;  %v7952_v6 = vmul.f32 %v7830_v43, %v7936_v51  ;;  %v7956_v18 = vmul.f32 %v7842_v59, %v7936_v51  ;;  %v1183_v14 = vmul.f32 1.442695, %v1157_v38  ;;  %v1400_v27 = vmul.f32 %v1383_v24, %v7791_v57  ;;  %12574 = vst [vmem:[#allocation52_spill] sm:$0xff] %v7964_v52 }
 0x433   : > { %6019 = vpow2.f32 %v1030_v4  ;;  %v7962_v43 = vmul.f32 %v7707_v12, %v7876_v15  ;;  %v7974_v23 = vmul.f32 %v7722_v40, %v7876_v15  ;;  %v12575_v4 = vld [vmem:[#allocation61_spill] sm:$0xff] }
 0x434   : > { %6021 = vpow2.f32 %v1081_v41  ;;  %v931_v2 = vpop.xlane.xlu1 %930  ;;  %v12576_v41 = vld [vmem:[#allocation34_spill] sm:$0xff] }
 0x435   : > { %v6018_v29 = vpop.eup %6017  ;;  %v990_v35 = vmax.f32 %v973_v36, %v931_v2  ;;  %6023 = vpow2.f32 %v1132_v28  ;;  %12573 = vst [vmem:[#allocation74_spill] sm:$0xff] %v7962_v43  ;;  %v959_v28 = vmax.f32 %v12576_v41, %v12575_v4 }
 0x436   : > { %v1283_v10 = vmul.f32 %v6018_v29, %v1249_v62  ;;  %6025 = vpow2.f32 %v1183_v14 }
 0x437   : > { %v1007_v59 = vsub.f32 %v12571_v7, %v990_v35  ;;  %v1058_v60 = vsub.f32 %v12570_v39, %v990_v35  ;;  %v1109_v62 = vsub.f32 %v12572_v33, %v990_v35  ;;  %v1160_v49 = vsub.f32 %v931_v2, %v990_v35 }
 0x438   : > { %v1300_v61 = vsub.f32 2.0, %v1283_v10  ;;  %v12577_v10 = vld [vmem:[#allocation59_spill] sm:$0xff] }
 0x439   : > { %1448 = vrot.lane.b32.xlu1 %v1400_v27, %s6640_s25  ;;  %v7976_v12 = vpop.eup %6019  ;;  %v1036_v7 = vmul.f32 1.442695, %v1007_v59  ;;  %v1087_v24 = vmul.f32 1.442695, %v1058_v60  ;;  %v1138_v33 = vmul.f32 1.442695, %v1109_v62  ;;  %v7992_v27 = vmul.f32 %v7758_v34, %v7929_v20 }
 0x43a   : > { %v7970_v38 = vmul.f32 %v6018_v29, %v1300_v61  ;;  %v7980_v39 = vpop.eup %6021  ;;  %v976_v29 = vmax.f32 %v959_v28, %v12577_v10  ;;  %v1189_v40 = vmul.f32 1.442695, %v1160_v49  ;;  %v1505_v49 = vmul.f32 %v7533_v8, %v7504_v63 }
 0x43b   : > { %v1208_v14 = vadd.f32 %v7980_v39, %v7976_v12  ;;  %6027 = vpow2.f32 %v1036_v7  ;;  %v7987_v2 = vpop.eup %6023  ;;  %12578 = vst [vmem:[#allocation81_spill] sm:$0xff] %v7992_v27 }
 0x43c   : > { %v1385_v36 = vmul.f32 %v7882_v30, %v7970_v38  ;;  %6029 = vpow2.f32 %v1087_v24  ;;  %v940_v35 = vpop.xlane.xlu1 %939  ;;  %v7996_v30 = vmul.f32 %v7775_v42, %v7929_v20  ;;  %v7999_v62 = vpop.eup %6025 }
 0x43d   : > { %v1225_v59 = vadd.f32 %v7987_v2, %v1208_v14  ;;  %v993_v60 = vmax.f32 %v976_v29, %v940_v35  ;;  %6031 = vpow2.f32 %v1138_v33  ;;  %v1382_v33 = vmul.f32 %v7821_v56, %v7936_v51  ;;  %v8013_v29 = vpop.f32.mrf.mxu2 }
 0x43e   : > { %v1402_v61 = vmul.f32 %v1385_v36, %v7895_v55  ;;  %6033 = vpow2.f32 %v1189_v40  ;;  %12579 = vst [vmem:[#allocation61_spill] sm:$0xff] %v8013_v29 }
 0x43f   : > { %v1242_v28 = vadd.f32 %v7999_v62, %v1225_v59  ;;  %v1010_v34 = vsub.f32 %v12576_v41, %v993_v60  ;;  %v1061_v7 = vsub.f32 %v12575_v4, %v993_v60  ;;  %v1112_v42 = vsub.f32 %v12577_v10, %v993_v60 }
 0x440   : > { %1452 = vrot.lane.b32.xlu0 %v1402_v61, %s6640_s25  ;;  %v1163_v24 = vsub.f32 %v940_v35, %v993_v60  ;;  %v8018_v10 = vmul.f32 %v7787_v48, %v7909_v45  ;;  %v1399_v56 = vmul.f32 %v1382_v33, %v8013_v29  ;;  %v8029_v48 = vmul.f32 %v7897_v26, %v7970_v38 }
 0x441   : > { %1539 = vrot.lane.b32.xlu1 %v1505_v49, %s6639_s24  ;;  %v8011_v36 = vpop.eup %6027  ;;  %6035 = vrcp.f32 %v1242_v28  ;;  %v1042_v8 = vmul.f32 1.442695, %v1010_v34  ;;  %v1093_v14 = vmul.f32 1.442695, %v1061_v7  ;;  %v1144_v41 = vmul.f32 1.442695, %v1112_v42 }
 0x442   : > { %v6030_v61 = vpop.eup %6029  ;;  %v1195_v35 = vmul.f32 1.442695, %v1163_v24  ;;  %v1508_v49 = vmul.f32 %v7553_v46, %v7540_v47  ;;  %v8033_v45 = vmul.f32 %v7900_v53, %v7970_v38 }
 0x443   : > { %v1211_v4 = vadd.f32 %v6030_v61, %v8011_v36  ;;  %6037 = vpow2.f32 %v1042_v8  ;;  %v6032_v40 = vpop.eup %6031 }
 0x444   : > { %6039 = vpow2.f32 %v1093_v14  ;;  %v8021_v60 = vpop.eup %6033  ;;  %v8041_v14 = vmul.f32 %v7816_v17, %v7936_v51 }
 0x445   : > { %v1228_v59 = vadd.f32 %v6032_v40, %v1211_v4  ;;  %6041 = vpow2.f32 %v1144_v41  ;;  %v12581_v41 = vld [vmem:[#allocation87_spill] sm:$0xff]  ;;  %v12582_v4 = vld [vmem:[#allocation101_spill] sm:$0xff] }
 0x446   : > { %6043 = vpow2.f32 %v1195_v35  ;;  %12580 = vst [vmem:[#allocation34_spill] sm:$0xff] %v8041_v14  ;;  %v1507_v53 = vmul.f32 %v12582_v4, %v12581_v41 }
 0x447   : > { %v6036_v34 = vpop.eup %6035  ;;  %v1245_v7 = vadd.f32 %v8021_v60, %v1228_v59  ;;  %v12583_v59 = vld [vmem:[#allocation103_spill] sm:$0xff] }
 0x448   : > { %1446 = vrot.lane.b32.xlu0 %v1399_v56, %s6640_s25  ;;  %v1276_v42 = vmul.f32 %v6036_v34, %v1242_v28 }
 0x449   : > { %1545 = vrot.lane.b32.xlu1 %v1508_v49, %s6639_s24  ;;  %v8036_v24 = vpop.eup %6037  ;;  %6045 = vrcp.f32 %v1245_v7  ;;  %v12584_v49 = vld [vmem:[#allocation106_spill] sm:$0xff] }
 0x44a   : > { %v6040_v33 = vpop.eup %6039  ;;  %v1293_v46 = vsub.f32 2.0, %v1276_v42  ;;  %v1511_v42 = vmul.f32 %v12584_v49, %v12583_v59 }
 0x44b   : > { %v1214_v8 = vadd.f32 %v6040_v33, %v8036_v24  ;;  %v6042_v26 = vpop.eup %6041 }
 0x44c   : > { %v8045_v56 = vmul.f32 %v6036_v34, %v1293_v46  ;;  %v8047_v35 = vpop.eup %6043  ;;  %v12585_v46 = vld [vmem:[#allocation105_spill] sm:$0xff] }
 0x44d   : > { %v1231_v28 = vadd.f32 %v6042_v26, %v1214_v8  ;;  %v12586_v8 = vld [vmem:[#allocation96_spill] sm:$0xff] }
 0x44e   : > { %v1378_v27 = vmul.f32 %v7980_v39, %v8045_v56  ;;  %v1493_v4 = vmul.f32 %v12586_v8, %v12585_v46  ;;  %v8064_v39 = vmul.f32 %v7867_v11, %v7970_v38 }
 0x44f   : > { %v6046_v43 = vpop.eup %6045  ;;  %v1248_v17 = vadd.f32 %v8047_v35, %v1231_v28 }
 0x450   : > { %1543 = vrot.lane.b32.xlu0 %v1507_v53, %s6639_s24  ;;  %v1279_v51 = vmul.f32 %v6046_v43, %v1245_v7  ;;  %v1395_v34 = vmul.f32 %v1378_v27, %v7784_v54  ;;  %v1497_v53 = vmul.f32 %v7987_v2, %v8045_v56  ;;  %v1510_v7 = vmul.f32 %v1493_v4, %v7597_v19 }
 0x451   : > { %1551 = vrot.lane.b32.xlu1 %v1511_v42, %s6639_s24  ;;  %6047 = vrcp.f32 %v1248_v17 }
 0x452   : > { %v1296_v14 = vsub.f32 2.0, %v1279_v51  ;;  %1438 = vrot.lane.b32.xlu2 %v1395_v34, %s6640_s25  ;;  %v1514_v27 = vmul.f32 %v1497_v53, %v7784_v54  ;;  %v12587_v34 = vld [vmem:[#allocation100_spill] sm:$0xff]  ;;  %v12588_v53 = vld [vmem:[#allocation55_spill] sm:$0xff] }
 0x453   : > { %v1496_v11 = vmul.f32 %v12587_v34, %v7819_v37  ;;  %v1499_v37 = vmul.f32 %v12588_v53, %v7876_v15  ;;  %v12590_v15 = vld [vmem:[#allocation107_spill] sm:$0xff] }
 0x454   : > { %v8067_v28 = vmul.f32 %v6046_v43, %v1296_v14 }
 0x455   : > { %v1513_v14 = vmul.f32 %v1496_v11, %v7729_v16  ;;  %v1628_v11 = vmul.f32 %v7861_v50, %v7573_v31  ;;  %v12593_v50 = vld [vmem:[#allocation69_spill] sm:$0xff] }
 0x456   : > { %v1381_v49 = vmul.f32 %v6030_v61, %v8067_v28  ;;  %v1500_v43 = vmul.f32 %v6032_v40, %v8067_v28  ;;  %v1516_v40 = vmul.f32 %v1499_v37, %v7915_v22 }
 0x457   : > { %v6048_v42 = vpop.eup %6047 }
 0x458   : > { %1549 = vrot.lane.b32.xlu0 %v1510_v7, %s6639_s24  ;;  %v1282_v51 = vmul.f32 %v6048_v42, %v1248_v17  ;;  %v1398_v2 = vmul.f32 %v1381_v49, %v7964_v52  ;;  %v1517_v61 = vmul.f32 %v1500_v43, %v7964_v52  ;;  %v8091_v49 = vmul.f32 %v7976_v12, %v8045_v56 }
 0x459   : > { %1557 = vrot.lane.b32.xlu1 %v1514_v27, %s6639_s24  ;;  %v8105_v12 = vmul.f32 %v8011_v36, %v8067_v28  ;;  %v1512_v36 = vmul.f32 %v7865_v5, %v7685_v32  ;;  %v1631_v43 = vmul.f32 %v7872_v25, %v7685_v32  ;;  %v1518_v25 = vmul.f32 %v7952_v6, %v8013_v29 }
 0x45a   : > { %v1299_v38 = vsub.f32 2.0, %v1282_v51  ;;  %1444 = vrot.lane.b32.xlu2 %v1398_v2, %s6640_s25  ;;  %v1502_v51 = vmul.f32 %v12590_v15, %v7929_v20  ;;  %v12591_v20 = vld [vmem:[#allocation89_spill] sm:$0xff]  ;;  %v1521_v6 = vmul.f32 %v8029_v48, %v7895_v55  ;;  %v1640_v48 = vmul.f32 %v8033_v45, %v7895_v55  ;;  %v12598_v45 = vld [vmem:[#allocation66_spill] sm:$0xff] }
 0x45b   : > { %v1624_v34 = vmul.f32 %v12591_v20, %v7504_v63 }
 0x45c   : > { %v1316_v8 = vmul.f32 %v6048_v42, %v1299_v38 }
 0x45e   : > { %v1384_v17 = vmul.f32 %v6040_v33, %v1316_v8  ;;  %v1503_v7 = vmul.f32 %v6042_v26, %v1316_v8  ;;  %v12589_v33 = vld [vmem:[#allocation86_spill] sm:$0xff]  ;;  %v1519_v26 = vmul.f32 %v1502_v51, %v7791_v57 }
 0x45f   : > { %v1506_v42 = vmul.f32 %v7836_v3, %v12589_v33  ;;  %v1625_v2 = vmul.f32 %v7850_v1, %v12589_v33  ;;  %v1509_v3 = vmul.f32 %v7857_v21, %v7573_v31  ;;  %v8117_v1 = vmul.f32 %v8036_v24, %v1316_v8  ;;  %v12592_v21 = vld [vmem:[#allocation92_spill] sm:$0xff] }
 0x460   : > { %1555 = vrot.lane.b32.xlu0 %v1513_v14, %s6639_s24  ;;  %v1401_v4 = vmul.f32 %v1384_v17, %v7832_v58  ;;  %v1520_v27 = vmul.f32 %v1503_v7, %v7832_v58  ;;  %v1627_v38 = vmul.f32 %v12592_v21, %v7540_v47  ;;  %v1515_v24 = vmul.f32 %v12593_v50, %v7844_v0  ;;  %v12594_v14 = vld [vmem:[#allocation112_spill] sm:$0xff] }
 0x461   : > { %1563 = vrot.lane.b32.xlu1 %v1517_v61, %s6639_s24  ;;  %v1630_v5 = vmul.f32 %v12594_v14, %v12583_v59  ;;  %v1634_v61 = vmul.f32 %v7925_v13, %v7844_v0  ;;  %v1616_v17 = vmul.f32 %v7999_v62, %v8045_v56  ;;  %v1637_v13 = vmul.f32 %v7956_v18, %v8013_v29  ;;  %v8156_v56 = vpop.permute.xlu2 %1420  ;;  %v12596_v18 = vld [vmem:[#allocation93_spill] sm:$0xff] }
 0x462   : > { %1450 = vrot.lane.b32.xlu2 %v1401_v4, %s6640_s25  ;;  %v1619_v62 = vmul.f32 %v8021_v60, %v8067_v28  ;;  %v1622_v28 = vmul.f32 %v8047_v35, %v1316_v8  ;;  %v12602_v14 = vld [vmem:[#allocation73_spill] sm:$0xff] }
 0x463   : > { %v1633_v37 = vmul.f32 %v1616_v17, %v7784_v54 }
 0x468   : > { %1561 = vrot.lane.b32.xlu0 %v1516_v40, %s6639_s24 }
 0x469   : > { %1569 = vrot.lane.b32.xlu1 %v1520_v27, %s6639_s24  ;;  %v8145_v53 = vpop.permute.xlu0 %1424  ;;  %v1636_v27 = vmul.f32 %v1619_v62, %v7964_v52  ;;  %v1638_v62 = vmul.f32 %v7996_v30, %v7791_v57 }
 0x46a   : > { %1541 = vrot.lane.b32.xlu2 %v1506_v42, %s6639_s24  ;;  %v12595_v42 = vld [vmem:[#allocation99_spill] sm:$0xff] }
 0x46b   : > { %v1609_v15 = vmul.f32 %v12596_v18, %v12595_v42  ;;  %v12607_v42 = vld [vmem:[#allocation78_spill] sm:$0xff]  ;;  %v12608_v18 = vld [vmem:[#allocation77_spill] sm:$0xff] }
 0x46d   : > { %v1626_v60 = vmul.f32 %v1609_v15, %v12581_v41 }
 0x470   : > { %1567 = vrot.lane.b32.xlu0 %v1519_v26, %s6639_s24  ;;  %v8175_v26 = vpop.permute.xlu2 %1426 }
 0x471   : > { %1660 = vrot.lane.b32.xlu1 %v1625_v2, %s6641_s26  ;;  %v1639_v2 = vmul.f32 %v1622_v28, %v7832_v58  ;;  %v12610_v28 = vld [vmem:[#allocation79_spill] sm:$0xff] }
 0x472   : > { %1547 = vrot.lane.b32.xlu2 %v1509_v3, %s6639_s24  ;;  %v12597_v3 = vld [vmem:[#allocation97_spill] sm:$0xff] }
 0x473   : > { %v1612_v20 = vmul.f32 %v12597_v3, %v12585_v46 }
 0x475   : > { %v1629_v35 = vmul.f32 %v1612_v20, %v7597_v19  ;;  %v12611_v20 = vld [vmem:[#allocation65_spill] sm:$0xff] }
 0x478   : > { %1658 = vrot.lane.b32.xlu0 %v1624_v34, %s6641_s26 }
 0x479   : > { %1666 = vrot.lane.b32.xlu1 %v1628_v11, %s6641_s26  ;;  %v8189_v11 = vpop.permute.xlu2 %1432 }
 0x47a   : > { %1553 = vrot.lane.b32.xlu2 %v1512_v36, %s6639_s24  ;;  %v12599_v36 = vld [vmem:[#allocation72_spill] sm:$0xff] }
 0x480   : > { %1664 = vrot.lane.b32.xlu0 %v1627_v38, %s6641_s26  ;;  %v12600_v38 = vld [vmem:[#allocation67_spill] sm:$0xff] }
 0x481   : > { %1672 = vrot.lane.b32.xlu1 %v1631_v43, %s6641_s26  ;;  %v1632_v43 = vmul.f32 %v7946_v44, %v7729_v16 }
 0x482   : > { %1559 = vrot.lane.b32.xlu2 %v1515_v24, %s6639_s24 }
 0x488   : > { %1670 = vrot.lane.b32.xlu0 %v1630_v5, %s6641_s26  ;;  %v12603_v5 = vld [vmem:[#allocation70_spill] sm:$0xff] }
 0x489   : > { %1678 = vrot.lane.b32.xlu1 %v1634_v61, %s6641_s26 }
 0x48a   : > { %1565 = vrot.lane.b32.xlu2 %v1518_v25, %s6639_s24  ;;  %v1635_v25 = vmul.f32 %v7974_v23, %v7915_v22 }
 0x48b   : > { %v8142_v4 = vpop.permute.xlu1 %1422 }
 0x490   : > { %1676 = vrot.lane.b32.xlu0 %v1633_v37, %s6641_s26  ;;  %v12604_v37 = vld [vmem:[#allocation76_spill] sm:$0xff] }
 0x491   : > { %1684 = vrot.lane.b32.xlu1 %v1637_v13, %s6641_s26  ;;  %v8161_v40 = vpop.permute.xlu0 %1428  ;;  %v12605_v13 = vld [vmem:[#allocation75_spill] sm:$0xff] }
 0x492   : > { %1571 = vrot.lane.b32.xlu2 %v1521_v6, %s6639_s24 }
 0x493   : > { %v8158_v7 = vpop.permute.xlu1 %1430 }
 0x498   : > { %1682 = vrot.lane.b32.xlu0 %v1636_v27, %s6641_s26 }
 0x499   : > { %1690 = vrot.lane.b32.xlu1 %v1640_v48, %s6641_s26  ;;  %v8180_v34 = vpop.permute.xlu0 %1434 }
 0x49a   : > { %1662 = vrot.lane.b32.xlu2 %v1626_v60, %s6641_s26  ;;  %v12609_v60 = vld [vmem:[#allocation64_spill] sm:$0xff] }
 0x49b   : > { %v8172_v51 = vpop.permute.xlu1 %1436 }
 0x4a0   : > { %1688 = vrot.lane.b32.xlu0 %v1639_v2, %s6641_s26 }
 0x4a1   : > { %1799 = vrot.lane.b32.xlu1 %v12598_v45, %s6640_s25 }
 0x4a2   : > { %1668 = vrot.lane.b32.xlu2 %v1629_v35, %s6641_s26 }
 0x4a3   : > { %v8186_v8 = vpop.permute.xlu1 %1442 }
 0x4a4   : > { %v8193_v21 = vpop.permute.xlu0 %1440 }
 0x4a8   : > { %1797 = vrot.lane.b32.xlu0 %v12599_v36, %s6640_s25  ;;  %v12620_v36 = vld [vmem:[#allocation114_spill] sm:$0xff] }
 0x4a9   : > { %1805 = vrot.lane.b32.xlu1 %v12600_v38, %s6640_s25 }
 0x4aa   : > { %1674 = vrot.lane.b32.xlu2 %v1632_v43, %s6641_s26  ;;  %v12612_v43 = vld [vmem:[#allocation80_spill] sm:$0xff] }
 0x4ab   : > { %v8199_v50 = vpop.permute.xlu1 %1448 }
 0x4ac   : > { %12601 = vst [vmem:[#allocation59_spill] sm:$0xff] %v8199_v50  ;;  %v8202_v24 = vpop.permute.xlu2 %1438 }
 0x4b0   : > { %1803 = vrot.lane.b32.xlu0 %v12602_v14, %s6640_s25  ;;  %v12615_v14 = vld [vmem:[#allocation113_spill] sm:$0xff] }
 0x4b1   : > { %1811 = vrot.lane.b32.xlu1 %v12603_v5, %s6640_s25  ;;  %v1336_v45 = vmul.f32 %v12615_v14, %v12589_v33  ;;  %v1339_v14 = vmul.f32 %v12620_v36, %v7573_v31  ;;  %v12622_v36 = vld [vmem:[#allocation91_spill] sm:$0xff] }
 0x4b2   : > { %v8208_v61 = vpop.permute.xlu0 %1452  ;;  %1680 = vrot.lane.b32.xlu2 %v1635_v25, %s6641_s26 }
 0x4b3   : > { %v1540_v17 = vpop.permute.xlu1 %1539 }
 0x4b4   : > { %v8213_v44 = vpop.permute.xlu2 %1444 }
 0x4b8   : > { %1809 = vrot.lane.b32.xlu0 %v12604_v37, %s6640_s25 }
 0x4b9   : > { %1817 = vrot.lane.b32.xlu1 %v12605_v13, %s6640_s25  ;;  %v1353_v13 = vadd.f32 %v1336_v45, %v12589_v33 }
 0x4ba   : > { %v8219_v6 = vpop.permute.xlu0 %1446  ;;  %1686 = vrot.lane.b32.xlu2 %v1638_v62, %s6641_s26 }
 0x4bb   : > { %v8223_v27 = vpop.permute.xlu1 %1545 }
 0x4bc   : > { %v8226_v23 = vpop.permute.xlu2 %1450 }
 0x4bd   : > { %12606 = vst [vmem:[#allocation101_spill] sm:$0xff] %v8226_v23 }
 0x4c0   : > { %1815 = vrot.lane.b32.xlu0 %v12607_v42, %s6640_s25  ;;  %v12613_v42 = vld [vmem:[#allocation71_spill] sm:$0xff] }
 0x4c1   : > { %1823 = vrot.lane.b32.xlu1 %v12608_v18, %s6640_s25 }
 0x4c2   : > { %v8232_v15 = vpop.permute.xlu0 %1543  ;;  %1795 = vrot.lane.b32.xlu2 %v12609_v60, %s6640_s25  ;;  %v12618_v60 = vld [vmem:[#allocation88_spill] sm:$0xff] }
 0x4c3   : > { %v8234_v48 = vpop.permute.xlu1 %1551  ;;  %v1335_v5 = vmul.f32 %v12618_v60, %v7504_v63 }
 0x4c4   : > { %v1542_v30 = vpop.permute.xlu2 %1541 }
 0x4c5   : > { %v1352_v45 = vadd.f32 %v1335_v5, %v7504_v63  ;;  %v1342_v5 = vmul.f32 %v7940_v9, %v7685_v32 }
 0x4c8   : > { %1821 = vrot.lane.b32.xlu0 %v12610_v28, %s6640_s25 }
 0x4ca   : > { %v8240_v2 = vpop.permute.xlu0 %1549  ;;  %1801 = vrot.lane.b32.xlu2 %v12611_v20, %s6640_s25  ;;  %v12617_v20 = vld [vmem:[#allocation82_spill] sm:$0xff] }
 0x4cb   : > { %v8242_v3 = vpop.permute.xlu1 %1557 }
 0x4cc   : > { %v1548_v35 = vpop.permute.xlu2 %1547 }
 0x4d0   : > { %1827 = vrot.lane.b32.xlu0 %v12612_v43, %s6640_s25 }
 0x4d2   : > { %v8248_v25 = vpop.permute.xlu0 %1555  ;;  %1807 = vrot.lane.b32.xlu2 %v12613_v42, %s6640_s25  ;;  %v1472_v42 = vadd.f32 %v8142_v4, %v1353_v13  ;;  %v1471_v4 = vadd.f32 %v8156_v56, %v1352_v45  ;;  %v1356_v13 = vadd.f32 %v1339_v14, %v7573_v31 }
 0x4d3   : > { %v8250_v62 = vpop.permute.xlu1 %1563 }
 0x4d4   : > { %v1554_v28 = vpop.permute.xlu2 %1553  ;;  %v1591_v50 = vadd.f32 %v1542_v30, %v1472_v42  ;;  %v1338_v42 = vmul.f32 %v12622_v36, %v7540_v47  ;;  %v1475_v30 = vadd.f32 %v8161_v40, %v1356_v13  ;;  %v12624_v40 = vld [vmem:[#allocation85_spill] sm:$0xff] }
 0x4da   : > { %v8254_v37 = vpop.permute.xlu0 %1561  ;;  %1813 = vrot.lane.b32.xlu2 %v12617_v20, %s6640_s25  ;;  %v12621_v20 = vld [vmem:[#allocation84_spill] sm:$0xff] }
 0x4db   : > { %12614 = vst [vmem:[#allocation106_spill] sm:$0xff] %v8254_v37  ;;  %v8258_v18 = vpop.permute.xlu1 %1569 }
 0x4dc   : > { %12616 = vst [vmem:[#allocation105_spill] sm:$0xff] %v8258_v18  ;;  %v8262_v43 = vpop.permute.xlu2 %1559 }
 0x4e2   : > { %v8269_v38 = vpop.permute.xlu0 %1567  ;;  %1819 = vrot.lane.b32.xlu2 %v12621_v20, %s6640_s25  ;;  %v12688_v20 = vld [vmem:[#allocation29_spill] sm:$0xff] }
 0x4e3   : > { %12619 = vst [vmem:[#allocation96_spill] sm:$0xff] %v8269_v38  ;;  %v1661_v18 = vpop.permute.xlu1 %1660  ;;  %v1590_v38 = vadd.f32 %v1540_v17, %v1471_v4  ;;  %v1355_v17 = vadd.f32 %v1338_v42, %v7540_v47 }
 0x4e4   : > { %v1710_v33 = vadd.f32 %v1661_v18, %v1591_v50  ;;  %v8278_v23 = vpop.permute.xlu2 %1565  ;;  %v1594_v50 = vadd.f32 %v1548_v35, %v1475_v30  ;;  %v12626_v30 = vld [vmem:[#allocation109_spill] sm:$0xff] }
 0x4e5   : > { %v1474_v35 = vadd.f32 %v8175_v26, %v1355_v17  ;;  %v1345_v26 = vmul.f32 %v8018_v10, %v7844_v0 }
 0x4e6   : > { %v1727_v60 = vmul.f32 0.5, %v1710_v33  ;;  %v12623_v33 = vld [vmem:[#allocation102_spill] sm:$0xff] }
 0x4e7   : > { %v1337_v18 = vmul.f32 %v12623_v33, %v12581_v41  ;;  %v1341_v33 = vmul.f32 %v12626_v30, %v12583_v59 }
 0x4e8   : > { %v1744_v37 = vpack.c.bf16 %v1727_v60, %v1727_v60  ;;  %v12625_v60 = vld [vmem:[#allocation95_spill] sm:$0xff] }
 0x4e9   : > { %v1354_v13 = vadd.f32 %v1337_v18, %v12581_v41  ;;  %v1323_v36 = vmul.f32 %v12625_v60, %v12585_v46  ;;  %v1344_v60 = vmul.f32 %v8091_v49, %v7784_v54 }
 0x4ea   : > { %v1659_v57 = vpop.permute.xlu0 %1658  ;;  %1762 = vst.msk [vmem:[%s8287_s30 + $0x4] sm:$0xf] %vm1760_vm2, %v1744_v37  ;;  %1825 = vrot.lane.b32.xlu2 %v12624_v40, %s6640_s25  ;;  %v1359_v37 = vadd.f32 %v1342_v5, %v7685_v32 }
 0x4eb   : > { %v1709_v56 = vadd.f32 %v1659_v57, %v1590_v38  ;;  %v1667_v14 = vpop.permute.xlu1 %1666  ;;  %v1340_v17 = vmul.f32 %v1323_v36, %v7597_v19 }
 0x4ec   : > { %v1713_v4 = vadd.f32 %v1667_v14, %v1594_v50  ;;  %v8296_v9 = vpop.permute.xlu2 %1571  ;;  %v1478_v42 = vadd.f32 %v8180_v34, %v1359_v37  ;;  %v1593_v50 = vadd.f32 %v8223_v27, %v1474_v35  ;;  %v1473_v14 = vadd.f32 %v8145_v53, %v1354_v13 }
 0x4ed   : > { %v1726_v45 = vmul.f32 0.5, %v1709_v56  ;;  %v1358_v34 = vadd.f32 %v1341_v33, %v12583_v59  ;;  %v1362_v37 = vadd.f32 %v1345_v26, %v7844_v0  ;;  %v1357_v13 = vadd.f32 %v1340_v17, %v7597_v19 }
 0x4ee   : > { %v1730_v38 = vmul.f32 0.5, %v1713_v4  ;;  %v1597_v18 = vadd.f32 %v1554_v28, %v1478_v42  ;;  %v1592_v27 = vadd.f32 %v8232_v15, %v1473_v14  ;;  %v12627_v42 = vld [vmem:[#allocation34_spill] sm:$0xff] }
 0x4ef   : > { %v1743_v57 = vpack.c.bf16 %v1726_v45, %v1726_v45  ;;  %v1477_v53 = vadd.f32 %v8189_v11, %v1358_v34  ;;  %v1481_v36 = vadd.f32 %v8193_v21, %v1362_v37  ;;  %v1348_v11 = vmul.f32 %v12627_v42, %v8013_v29  ;;  %v12628_v21 = vld [vmem:[#allocation68_spill] sm:$0xff] }
 0x4f0   : > { %v1747_v56 = vpack.c.bf16 %v1730_v38, %v1730_v38  ;;  %v1343_v14 = vmul.f32 %v12628_v21, %v7729_v16 }
 0x4f1   : > { %1761 = vst.msk [vmem:[%s8287_s30] sm:$0xf] %vm1760_vm2, %v1743_v57  ;;  %v1596_v15 = vadd.f32 %v8234_v48, %v1477_v53  ;;  %v1600_v26 = vadd.f32 %v8262_v43, %v1481_v36 }
 0x4f2   : > { %v1665_v5 = vpop.permute.xlu0 %1664  ;;  %1765 = vst.msk [vmem:[%s8287_s30 + $0x10] sm:$0xf] %vm1760_vm2, %v1747_v56  ;;  %v1476_v56 = vadd.f32 %v8158_v7, %v1357_v13  ;;  %v1365_v7 = vadd.f32 %v1348_v11, %v8013_v29  ;;  %v1360_v37 = vadd.f32 %v1343_v14, %v7729_v16 }
 0x4f3   : > { %v1712_v46 = vadd.f32 %v1665_v5, %v1593_v50  ;;  %v1673_v45 = vpop.permute.xlu1 %1672 }
 0x4f4   : > { %v1716_v35 = vadd.f32 %v1673_v45, %v1597_v18  ;;  %v1663_v10 = vpop.permute.xlu2 %1662  ;;  %v1361_v18 = vadd.f32 %v1344_v60, %v7784_v54  ;;  %v1479_v13 = vadd.f32 %v8172_v51, %v1360_v37 }
 0x4f5   : > { %v1729_v4 = vmul.f32 0.5, %v1712_v46  ;;  %v1711_v38 = vadd.f32 %v1663_v10, %v1592_v27  ;;  %v1595_v46 = vadd.f32 %v8240_v2, %v1476_v56  ;;  %v1347_v10 = vmul.f32 %v8105_v12, %v7964_v52 }
 0x4f6   : > { %v1733_v57 = vmul.f32 0.5, %v1716_v35  ;;  %v1480_v34 = vadd.f32 %v8202_v24, %v1361_v18  ;;  %v1484_v2 = vadd.f32 %v8219_v6, %v1365_v7  ;;  %v1351_v24 = vmul.f32 %v8064_v39, %v7895_v55  ;;  %v12629_v6 = vld [vmem:[#allocation74_spill] sm:$0xff]  ;;  %v12631_v7 = vld [vmem:[#allocation81_spill] sm:$0xff] }
 0x4f7   : > { %v1746_v28 = vpack.c.bf16 %v1729_v4, %v1729_v4  ;;  %v1728_v33 = vmul.f32 0.5, %v1711_v38 }
 0x4f8   : > { %v1750_v30 = vpack.c.bf16 %v1733_v57, %v1733_v57  ;;  %v1599_v53 = vadd.f32 %v8242_v3, %v1480_v34  ;;  %v1603_v60 = vadd.f32 %v8278_v23, %v1484_v2  ;;  %v1368_v51 = vadd.f32 %v1351_v24, %v7895_v55  ;;  %v12632_v34 = vld [vmem:[#allocation106_spill] sm:$0xff] }
 0x4f9   : > { %1764 = vst.msk [vmem:[%s8287_s30 + $0xc] sm:$0xf] %vm1760_vm2, %v1746_v28  ;;  %v1745_v49 = vpack.c.bf16 %v1728_v33, %v1728_v33  ;;  %v1598_v33 = vadd.f32 %v8248_v25, %v1479_v13 }
 0x4fa   : > { %v1671_v50 = vpop.permute.xlu0 %1670  ;;  %1768 = vst.msk [vmem:[%s8287_s30 + $0x1c] sm:$0xf] %vm1760_vm2, %v1750_v30  ;;  %v1364_v30 = vadd.f32 %v1347_v10, %v7964_v52  ;;  %v1487_v25 = vadd.f32 %v8208_v61, %v1368_v51 }
 0x4fb   : > { %v1715_v5 = vadd.f32 %v1671_v50, %v1596_v15  ;;  %v1679_v48 = vpop.permute.xlu1 %1678  ;;  %1763 = vst.msk [vmem:[%s8287_s30 + $0x8] sm:$0xf] %vm1760_vm2, %v1745_v49  ;;  %v1346_v15 = vmul.f32 %v12629_v6, %v7915_v22 }
 0x4fc   : > { %v1719_v45 = vadd.f32 %v1679_v48, %v1600_v26  ;;  %v1669_v43 = vpop.permute.xlu2 %1668  ;;  %v1483_v11 = vadd.f32 %v8213_v44, %v1364_v30  ;;  %v12636_v30 = vld [vmem:[#allocation96_spill] sm:$0xff] }
 0x4fd   : > { %v1732_v17 = vmul.f32 0.5, %v1715_v5  ;;  %v1714_v35 = vadd.f32 %v1669_v43, %v1595_v46  ;;  %v1363_v49 = vadd.f32 %v1346_v15, %v7915_v22  ;;  %v1350_v5 = vmul.f32 %v8117_v1, %v7832_v58  ;;  %v12630_v1 = vld [vmem:[#allocation108_spill] sm:$0xff] }
 0x4fe   : > { %v1736_v4 = vmul.f32 0.5, %v1719_v45  ;;  %v1602_v21 = vadd.f32 %v8250_v62, %v1483_v11  ;;  %v1606_v46 = vadd.f32 %v8296_v9, %v1487_v25  ;;  %v1349_v43 = vmul.f32 %v12631_v7, %v12630_v1  ;;  %v12633_v9 = vld [vmem:[#allocation101_spill] sm:$0xff] }
 0x4ff   : > { %v1749_v27 = vpack.c.bf16 %v1732_v17, %v1732_v17  ;;  %v1731_v57 = vmul.f32 0.5, %v1714_v35  ;;  %v1482_v44 = vadd.f32 %v8186_v8, %v1363_v49  ;;  %v1367_v62 = vadd.f32 %v1350_v5, %v7832_v58 }
 0x500   : > { %v1753_v28 = vpack.c.bf16 %v1736_v4, %v1736_v4 }
 0x501   : > { %1767 = vst.msk [vmem:[%s8287_s30 + $0x18] sm:$0xf] %vm1760_vm2, %v1749_v27  ;;  %v1748_v12 = vpack.c.bf16 %v1731_v57, %v1731_v57  ;;  %v1601_v27 = vadd.f32 %v12632_v34, %v1482_v44  ;;  %v1486_v37 = vadd.f32 %v12633_v9, %v1367_v62  ;;  %v12634_v57 = vld [vmem:[#allocation105_spill] sm:$0xff] }
 0x502   : > { %v1677_v38 = vpop.permute.xlu0 %1676  ;;  %1771 = vst.msk [vmem:[%s8287_s30 + $0x28] sm:$0xf] %vm1760_vm2, %v1753_v28  ;;  %v1366_v28 = vadd.f32 %v1349_v43, %v12630_v1 }
 0x503   : > { %v1718_v36 = vadd.f32 %v1677_v38, %v1599_v53  ;;  %v1685_v3 = vpop.permute.xlu1 %1684  ;;  %1766 = vst.msk [vmem:[%s8287_s30 + $0x14] sm:$0xf] %vm1760_vm2, %v1748_v12  ;;  %v1605_v24 = vadd.f32 %v12634_v57, %v1486_v37  ;;  %v12635_v12 = vld [vmem:[#allocation59_spill] sm:$0xff] }
 0x504   : > { %v1722_v42 = vadd.f32 %v1685_v3, %v1603_v60  ;;  %v1675_v23 = vpop.permute.xlu2 %1674 }
 0x505   : > { %v1735_v39 = vmul.f32 0.5, %v1718_v36  ;;  %v1717_v26 = vadd.f32 %v1675_v23, %v1598_v33  ;;  %v1485_v36 = vadd.f32 %v12635_v12, %v1366_v28  ;;  %v12637_v12 = vld [vmem:[#allocation5_spill] sm:$0xff] }
 0x506   : > { %v1739_v56 = vmul.f32 0.5, %v1722_v42 }
 0x507   : > { %v1752_v50 = vpack.c.bf16 %v1735_v39, %v1735_v39  ;;  %v1734_v48 = vmul.f32 0.5, %v1717_v26  ;;  %v1604_v33 = vadd.f32 %v12636_v30, %v1485_v36  ;;  %v12638_v36 = vld [vmem:[#allocation8_spill] sm:$0xff]  ;;  %v12642_v30 = vld [vmem:[#allocation13_spill] sm:$0xff] }
 0x508   : > { %v1756_v14 = vpack.c.bf16 %v1739_v56, %v1739_v56 }
 0x509   : > { %1770 = vst.msk [vmem:[%s8287_s30 + $0x24] sm:$0xf] %vm1760_vm2, %v1752_v50  ;;  %v1751_v17 = vpack.c.bf16 %v1734_v48, %v1734_v48 }
 0x50a   : > { %v1683_v18 = vpop.permute.xlu0 %1682  ;;  %1774 = vst.msk [vmem:[%s8287_s30 + $0x34] sm:$0xf] %vm1760_vm2, %v1756_v14 }
 0x50b   : > { %v1721_v45 = vadd.f32 %v1683_v18, %v1602_v21  ;;  %v1691_v61 = vpop.permute.xlu1 %1690  ;;  %1769 = vst.msk [vmem:[%s8287_s30 + $0x20] sm:$0xf] %vm1760_vm2, %v1751_v17 }
 0x50c   : > { %v1725_v8 = vadd.f32 %v1691_v61, %v1606_v46  ;;  %v1681_v35 = vpop.permute.xlu2 %1680 }
 0x50d   : > { %v1738_v4 = vmul.f32 0.5, %v1721_v45  ;;  %v1720_v53 = vadd.f32 %v1681_v35, %v1601_v27 }
 0x50e   : > { %v1742_v2 = vmul.f32 0.5, %v1725_v8 }
 0x50f   : > { %v1755_v10 = vpack.c.bf16 %v1738_v4, %v1738_v4  ;;  %v1737_v13 = vmul.f32 0.5, %v1720_v53 }
 0x510   : > { %v1759_v38 = vpack.c.bf16 %v1742_v2, %v1742_v2 }
 0x511   : > { %1773 = vst.msk [vmem:[%s8287_s30 + $0x30] sm:$0xf] %vm1760_vm2, %v1755_v10  ;;  %v1754_v6 = vpack.c.bf16 %v1737_v13, %v1737_v13 }
 0x512   : > { %v1689_v60 = vpop.permute.xlu0 %1688  ;;  %1777 = vst.msk [vmem:[%s8287_s30 + $0x40] sm:$0xf] %vm1760_vm2, %v1759_v38 }
 0x513   : > { %v1724_v15 = vadd.f32 %v1689_v60, %v1605_v24  ;;  %v1800_v3 = vpop.permute.xlu1 %1799  ;;  %1772 = vst.msk [vmem:[%s8287_s30 + $0x2c] sm:$0xf] %vm1760_vm2, %v1754_v6  ;;  %v12639_v6 = vld [vmem:[#allocation7_spill] sm:$0xff] }
 0x514   : > { %v1852_v42 = vsel %vm518_vm1, %v1800_v3, 0.0  ;;  %v1687_v51 = vpop.permute.xlu2 %1686  ;;  %v12641_v3 = vld [vmem:[#allocation9_spill] sm:$0xff] }
 0x515   : > { %v1741_v39 = vmul.f32 0.5, %v1724_v15  ;;  %1853 = vadd.xlane.f32.xlu0 %v1852_v42  ;;  %v1723_v11 = vadd.f32 %v1687_v51, %v1604_v33  ;;  %v12640_v15 = vld [vmem:[#allocation6_spill] sm:$0xff]  ;;  %v12643_v33 = vld [vmem:[#allocation11_spill] sm:$0xff]  ;;  %v12645_v42 = vld [vmem:[#allocation17_spill] sm:$0xff] }
 0x516   : > { %v12646_v51 = vld [vmem:[#allocation16_spill] sm:$0xff] }
 0x517   : > { %v1758_v23 = vpack.c.bf16 %v1741_v39, %v1741_v39  ;;  %v1740_v50 = vmul.f32 0.5, %v1723_v11  ;;  %v12644_v39 = vld [vmem:[#allocation15_spill] sm:$0xff]  ;;  %v12648_v11 = vld [vmem:[#allocation20_spill] sm:$0xff] }
 0x519   : > { %1776 = vst.msk [vmem:[%s8287_s30 + $0x3c] sm:$0xf] %vm1760_vm2, %v1758_v23  ;;  %v1757_v26 = vpack.c.bf16 %v1740_v50, %v1740_v50  ;;  %v12647_v23 = vld [vmem:[#allocation18_spill] sm:$0xff]  ;;  %v12649_v50 = vld [vmem:[#allocation19_spill] sm:$0xff] }
 0x51a   : > { %v1798_v56 = vpop.permute.xlu0 %1797 }
 0x51b   : > { %v1849_v49 = vsel %vm518_vm1, %v1798_v56, 0.0  ;;  %v1806_v5 = vpop.permute.xlu1 %1805  ;;  %1775 = vst.msk [vmem:[%s8287_s30 + $0x38] sm:$0xf] %vm1760_vm2, %v1757_v26  ;;  %v12650_v56 = vld [vmem:[#allocation24_spill] sm:$0xff] }
 0x51c   : > { %1850 = vadd.xlane.f32.xlu2 %v1849_v49  ;;  %v1861_v25 = vsel %vm518_vm1, %v1806_v5, 0.0  ;;  %v1796_v21 = vpop.permute.xlu2 %1795  ;;  %v12651_v26 = vld [vmem:[#allocation12_spill] sm:$0xff]  ;;  %v12652_v49 = vld [vmem:[#allocation10_spill] sm:$0xff] }
 0x51d   : > { %1862 = vadd.xlane.f32.xlu0 %v1861_v25  ;;  %v1846_v14 = vsel %vm518_vm1, %v1796_v21, 0.0  ;;  %v12653_v5 = vld [vmem:[#allocation14_spill] sm:$0xff] }
 0x51e   : > { %1847 = vadd.xlane.f32.xlu1 %v1846_v14 }
 0x522   : > { %v1804_v48 = vpop.permute.xlu0 %1803 }
 0x523   : > { %v1858_v18 = vsel %vm518_vm1, %v1804_v48, 0.0  ;;  %v1812_v44 = vpop.permute.xlu1 %1811 }
 0x524   : > { %1859 = vadd.xlane.f32.xlu2 %v1858_v18  ;;  %v1870_v46 = vsel %vm518_vm1, %v1812_v44, 0.0  ;;  %v1802_v17 = vpop.permute.xlu2 %1801 }
 0x525   : > { %1871 = vadd.xlane.f32.xlu0 %v1870_v46  ;;  %v1855_v45 = vsel %vm518_vm1, %v1802_v17, 0.0 }
 0x526   : > { %1856 = vadd.xlane.f32.xlu1 %v1855_v45 }
 0x52a   : > { %v1810_v7 = vpop.permute.xlu0 %1809 }
 0x52b   : > { %v1867_v43 = vsel %vm518_vm1, %v1810_v7, 0.0  ;;  %v1818_v61 = vpop.permute.xlu1 %1817 }
 0x52c   : > { %1868 = vadd.xlane.f32.xlu2 %v1867_v43  ;;  %v1879_v62 = vsel %vm518_vm1, %v1818_v61, 0.0  ;;  %v1808_v34 = vpop.permute.xlu2 %1807 }
 0x52d   : > { %1880 = vadd.xlane.f32.xlu0 %v1879_v62  ;;  %v1864_v27 = vsel %vm518_vm1, %v1808_v34, 0.0 }
 0x52e   : > { %1865 = vadd.xlane.f32.xlu1 %v1864_v27 }
 0x532   : > { %v1816_v4 = vpop.permute.xlu0 %1815 }
 0x533   : > { %v1876_v8 = vsel %vm518_vm1, %v1816_v4, 0.0  ;;  %v1824_v35 = vpop.permute.xlu1 %1823 }
 0x534   : > { %1877 = vadd.xlane.f32.xlu2 %v1876_v8  ;;  %v1888_v9 = vsel %vm518_vm1, %v1824_v35, 0.0  ;;  %v1814_v37 = vpop.permute.xlu2 %1813 }
 0x535   : > { %1889 = vadd.xlane.f32.xlu0 %v1888_v9  ;;  %v1873_v10 = vsel %vm518_vm1, %v1814_v37, 0.0 }
 0x536   : > { %1874 = vadd.xlane.f32.xlu1 %v1873_v10 }
 0x53a   : > { %v1822_v2 = vpop.permute.xlu0 %1821 }
 0x53b   : > { %v1885_v53 = vsel %vm518_vm1, %v1822_v2, 0.0 }
 0x53c   : > { %1886 = vadd.xlane.f32.xlu2 %v1885_v53  ;;  %v1820_v28 = vpop.permute.xlu2 %1819 }
 0x53d   : > { %v1882_v57 = vsel %vm518_vm1, %v1820_v28, 0.0 }
 0x53e   : > { %1883 = vadd.xlane.f32.xlu1 %v1882_v57 }
 0x542   : > { %v1828_v24 = vpop.permute.xlu0 %1827 }
 0x543   : > { %v1894_v38 = vsel %vm518_vm1, %v1828_v24, 0.0 }
 0x544   : > { %1895 = vadd.xlane.f32.xlu2 %v1894_v38  ;;  %v1826_v13 = vpop.permute.xlu2 %1825 }
 0x545   : > { %v1891_v60 = vsel %vm518_vm1, %v1826_v13, 0.0 }
 0x546   : > { %1892 = vadd.xlane.f32.xlu1 %v1891_v60 }
 0x549   : > { %1914 = vrot.lane.b32.xlu0 %v12637_v12, %s6640_s25 }
 0x551   : > { %1920 = vrot.lane.b32.xlu0 %v12638_v36, %s6640_s25 }
 0x559   : > { %1922 = vrot.lane.b32.xlu0 %v12639_v6, %s6640_s25 }
 0x55c   : > { %1918 = vrot.lane.b32.xlu2 %v12640_v15, %s6640_s25 }
 0x55f   : > { %1916 = vrot.lane.b32.xlu1 %v12641_v3, %s6640_s25 }
 0x561   : > { %1928 = vrot.lane.b32.xlu0 %v12642_v30, %s6640_s25 }
 0x564   : > { %1924 = vrot.lane.b32.xlu2 %v12643_v33, %s6640_s25 }
 0x567   : > { %1926 = vrot.lane.b32.xlu1 %v12644_v39, %s6640_s25 }
 0x569   : > { %1934 = vrot.lane.b32.xlu0 %v12645_v42, %s6640_s25 }
 0x56c   : > { %1930 = vrot.lane.b32.xlu2 %v12646_v51, %s6640_s25 }
 0x56f   : > { %1932 = vrot.lane.b32.xlu1 %v12647_v23, %s6640_s25 }
 0x571   : > { %1940 = vrot.lane.b32.xlu0 %v12648_v11, %s6640_s25 }
 0x574   : > { %1936 = vrot.lane.b32.xlu2 %v12649_v50, %s6640_s25 }
 0x577   : > { %1938 = vrot.lane.b32.xlu1 %v12650_v56, %s6640_s25 }
 0x579   : > { %1946 = vrot.lane.b32.xlu0 %v12651_v26, %s6640_s25 }
 0x57c   : > { %1942 = vrot.lane.b32.xlu2 %v12652_v49, %s6640_s25 }
 0x57f   : > { %1944 = vrot.lane.b32.xlu1 %v12653_v5, %s6640_s25 }
 0x588   : > { %v8444_v25 = vpop.xlane.xlu0 %1853 }
 0x58f   : > { %v8446_v21 = vpop.xlane.xlu2 %1850 }
 0x590   : > { %v8448_v14 = vpop.xlane.xlu0 %1862 }
 0x591   : > { %v8452_v18 = vpop.xlane.xlu1 %1847 }
 0x597   : > { %v8450_v48 = vpop.xlane.xlu2 %1859 }
 0x598   : > { %v8456_v46 = vpop.xlane.xlu0 %1871 }
 0x599   : > { %v8458_v17 = vpop.xlane.xlu1 %1856 }
 0x59f   : > { %v8454_v44 = vpop.xlane.xlu2 %1868 }
 0x5a0   : > { %v8462_v7 = vpop.xlane.xlu0 %1880 }
 0x5a1   : > { %v8464_v43 = vpop.xlane.xlu1 %1865 }
 0x5a7   : > { %v8460_v45 = vpop.xlane.xlu2 %1877 }
 0x5a8   : > { %v8468_v62 = vpop.xlane.xlu0 %1889 }
 0x5a9   : > { %12654 = vst [vmem:[#allocation100_spill] sm:$0xff] %v8468_v62  ;;  %v8470_v34 = vpop.xlane.xlu1 %1874 }
 0x5af   : > { %v8466_v61 = vpop.xlane.xlu2 %1886 }
 0x5b1   : > { %v8476_v37 = vpop.xlane.xlu1 %1883 }
 0x5b7   : > { %v8472_v27 = vpop.xlane.xlu2 %1895 }
 0x5b8   : > { %12655 = vst [vmem:[#allocation55_spill] sm:$0xff] %v8472_v27 }
 0x5b9   : > { %v8479_v28 = vpop.xlane.xlu1 %1892 }
 0x5bb   : > { %v1915_v4 = vpop.permute.xlu0 %1914 }
 0x5bc   : > { %v1965_v8 = vsel %vm518_vm1, %v1915_v4, 0.0 }
 0x5bd   : > { %1966 = vadd.xlane.f32.xlu2 %v1965_v8 }
 0x5bf   : > { %v1919_v35 = vpop.permute.xlu2 %1918 }
 0x5c0   : > { %v1971_v9 = vsel %vm518_vm1, %v1919_v35, 0.0 }
 0x5c1   : > { %1972 = vadd.xlane.f32.xlu0 %v1971_v9 }
 0x5c3   : > { %v1921_v10 = vpop.permute.xlu0 %1920 }
 0x5c4   : > { %v1974_v2 = vsel %vm518_vm1, %v1921_v10, 0.0 }
 0x5c5   : > { %1975 = vadd.xlane.f32.xlu2 %v1974_v2 }
 0x5c7   : > { %v1925_v53 = vpop.permute.xlu2 %1924 }
 0x5c8   : > { %v1980_v57 = vsel %vm518_vm1, %v1925_v53, 0.0 }
 0x5cb   : > { %v1923_v38 = vpop.permute.xlu0 %1922 }
 0x5cc   : > { %v1977_v10 = vsel %vm518_vm1, %v1923_v38, 0.0 }
 0x5cd   : > { %1981 = vadd.xlane.f32.xlu2 %v1980_v57 }
 0x5cf   : > { %v1931_v24 = vpop.permute.xlu2 %1930 }
 0x5d0   : > { %v1989_v4 = vsel %vm518_vm1, %v1931_v24, 0.0 }
 0x5d1   : > { %v1917_v13 = vpop.permute.xlu1 %1916 }
 0x5d2   : > { %v1968_v60 = vsel %vm518_vm1, %v1917_v13, 0.0 }
 0x5d3   : > { %1969 = vadd.xlane.f32.xlu1 %v1968_v60  ;;  %v1929_v35 = vpop.permute.xlu0 %1928 }
 0x5d4   : > { %v1986_v13 = vsel %vm518_vm1, %v1929_v35, 0.0 }
 0x5d5   : > { %1990 = vadd.xlane.f32.xlu2 %v1989_v4 }
 0x5d7   : > { %v1937_v8 = vpop.permute.xlu2 %1936 }
 0x5d8   : > { %v1998_v49 = vsel %vm518_vm1, %v1937_v8, 0.0 }
 0x5d9   : > { %v1927_v9 = vpop.permute.xlu1 %1926 }
 0x5da   : > { %v1983_v2 = vsel %vm518_vm1, %v1927_v9, 0.0 }
 0x5db   : > { %1978 = vadd.xlane.f32.xlu1 %v1977_v10  ;;  %1984 = vadd.xlane.f32.xlu0 %v1983_v2  ;;  %v1935_v60 = vpop.permute.xlu0 %1934 }
 0x5dc   : > { %v1995_v9 = vsel %vm518_vm1, %v1935_v60, 0.0  ;;  %v12658_v60 = vld [vmem:[#allocation21_spill] sm:$0xff] }
 0x5dd   : > { %1999 = vadd.xlane.f32.xlu2 %v1998_v49 }
 0x5df   : > { %v1943_v53 = vpop.permute.xlu2 %1942 }
 0x5e0   : > { %v2007_v4 = vsel %vm518_vm1, %v1943_v53, 0.0 }
 0x5e1   : > { %v1933_v57 = vpop.permute.xlu1 %1932 }
 0x5e2   : > { %v1992_v24 = vsel %vm518_vm1, %v1933_v57, 0.0 }
 0x5e3   : > { %1987 = vadd.xlane.f32.xlu1 %v1986_v13  ;;  %1993 = vadd.xlane.f32.xlu0 %v1992_v24  ;;  %v1941_v49 = vpop.permute.xlu0 %1940  ;;  %v12656_v13 = vld [vmem:[#allocation27_spill] sm:$0xff]  ;;  %v12657_v24 = vld [vmem:[#allocation26_spill] sm:$0xff] }
 0x5e4   : > { %v2004_v2 = vsel %vm518_vm1, %v1941_v49, 0.0  ;;  %v12663_v49 = vld [vmem:[#allocation42_spill] sm:$0xff] }
 0x5e5   : > { %2008 = vadd.xlane.f32.xlu2 %v2007_v4  ;;  %v12659_v4 = vld [vmem:[#allocation38_spill] sm:$0xff] }
 0x5e9   : > { %v1939_v38 = vpop.permute.xlu1 %1938 }
 0x5ea   : > { %v2001_v8 = vsel %vm518_vm1, %v1939_v38, 0.0  ;;  %v12660_v38 = vld [vmem:[#allocation32_spill] sm:$0xff] }
 0x5eb   : > { %1996 = vadd.xlane.f32.xlu1 %v1995_v9  ;;  %2002 = vadd.xlane.f32.xlu0 %v2001_v8  ;;  %v1947_v57 = vpop.permute.xlu0 %1946  ;;  %v12661_v9 = vld [vmem:[#allocation46_spill] sm:$0xff]  ;;  %v12662_v8 = vld [vmem:[#allocation37_spill] sm:$0xff] }
 0x5ec   : > { %v2013_v53 = vsel %vm518_vm1, %v1947_v57, 0.0  ;;  %v12667_v57 = vld [vmem:[#allocation23_spill] sm:$0xff] }
 0x5f1   : > { %v1945_v10 = vpop.permute.xlu1 %1944 }
 0x5f2   : > { %v2010_v35 = vsel %vm518_vm1, %v1945_v10, 0.0  ;;  %v12664_v10 = vld [vmem:[#allocation54_spill] sm:$0xff] }
 0x5f3   : > { %2005 = vadd.xlane.f32.xlu1 %v2004_v2  ;;  %2011 = vadd.xlane.f32.xlu0 %v2010_v35  ;;  %v12665_v2 = vld [vmem:[#allocation44_spill] sm:$0xff]  ;;  %v12666_v35 = vld [vmem:[#allocation49_spill] sm:$0xff] }
 0x5fb   : > { %2014 = vadd.xlane.f32.xlu1 %v2013_v53  ;;  %v12668_v53 = vld [vmem:[#allocation51_spill] sm:$0xff] }
 0x5fd   : > { %2033 = vrot.lane.b32.xlu2 %v12656_v13, %s6640_s25 }
 0x605   : > { %2041 = vrot.lane.b32.xlu2 %v12657_v24, %s6640_s25 }
 0x607   : > { %2035 = vrot.lane.b32.xlu0 %v12658_v60, %s6640_s25 }
 0x60d   : > { %2047 = vrot.lane.b32.xlu2 %v12659_v4, %s6640_s25 }
 0x60f   : > { %2039 = vrot.lane.b32.xlu0 %v12660_v38, %s6640_s25 }
 0x614   : > { %2037 = vrot.lane.b32.xlu1 %v12662_v8, %s6640_s25  ;;  %v12669_v8 = vld [vmem:[#allocation58_spill] sm:$0xff] }
 0x615   : > { %2053 = vrot.lane.b32.xlu2 %v12661_v9, %s6640_s25 }
 0x617   : > { %2045 = vrot.lane.b32.xlu0 %v12663_v49, %s6640_s25  ;;  %v12670_v49 = vld [vmem:[#allocation62_spill] sm:$0xff] }
 0x61c   : > { %2043 = vrot.lane.b32.xlu1 %v12665_v2, %s6640_s25  ;;  %v12672_v2 = vld [vmem:[#allocation35_spill] sm:$0xff] }
 0x61d   : > { %2059 = vrot.lane.b32.xlu2 %v12664_v10, %s6640_s25  ;;  %v12671_v10 = vld [vmem:[#allocation30_spill] sm:$0xff] }
 0x61f   : > { %2051 = vrot.lane.b32.xlu0 %v12666_v35, %s6640_s25 }
 0x624   : > { %2049 = vrot.lane.b32.xlu1 %v12668_v53, %s6640_s25 }
 0x625   : > { %2065 = vrot.lane.b32.xlu2 %v12667_v57, %s6640_s25 }
 0x627   : > { %2057 = vrot.lane.b32.xlu0 %v12669_v8, %s6640_s25 }
 0x62c   : > { %2055 = vrot.lane.b32.xlu1 %v12670_v49, %s6640_s25 }
 0x62f   : > { %2063 = vrot.lane.b32.xlu0 %v12671_v10, %s6640_s25 }
 0x630   : > { %v8525_v9 = vpop.xlane.xlu2 %1966 }
 0x634   : > { %2061 = vrot.lane.b32.xlu1 %v12672_v2, %s6640_s25  ;;  %v8537_v53 = vpop.xlane.xlu0 %1972 }
 0x638   : > { %v8531_v35 = vpop.xlane.xlu2 %1975 }
 0x640   : > { %v8533_v57 = vpop.xlane.xlu2 %1981 }
 0x646   : > { %v8539_v8 = vpop.xlane.xlu1 %1969 }
 0x648   : > { %v8535_v38 = vpop.xlane.xlu2 %1990 }
 0x64e   : > { %v8543_v49 = vpop.xlane.xlu0 %1984  ;;  %v8545_v13 = vpop.xlane.xlu1 %1978 }
 0x650   : > { %v8541_v4 = vpop.xlane.xlu2 %1999 }
 0x656   : > { %v8549_v24 = vpop.xlane.xlu0 %1993  ;;  %v8551_v60 = vpop.xlane.xlu1 %1987 }
 0x658   : > { %v8547_v10 = vpop.xlane.xlu2 %2008 }
 0x659   : > { %12673 = vst [vmem:[#allocation107_spill] sm:$0xff] %v8547_v10 }
 0x65e   : > { %v8554_v5 = vpop.xlane.xlu0 %2002  ;;  %v8556_v50 = vpop.xlane.xlu1 %1996 }
 0x660   : > { %v2034_v2 = vpop.permute.xlu2 %2033 }
 0x661   : > { %v2084_v26 = vsel %vm518_vm1, %v2034_v2, 0.0 }
 0x662   : > { %2085 = vadd.xlane.f32.xlu1 %v2084_v26 }
 0x666   : > { %v8558_v11 = vpop.xlane.xlu0 %2011  ;;  %v8560_v56 = vpop.xlane.xlu1 %2005 }
 0x668   : > { %v2042_v51 = vpop.permute.xlu2 %2041 }
 0x669   : > { %v2096_v2 = vsel %vm518_vm1, %v2042_v51, 0.0 }
 0x66e   : > { %v8563_v33 = vpop.xlane.xlu1 %2014 }
 0x66f   : > { %12674 = vst [vmem:[#allocation89_spill] sm:$0xff] %v8563_v33 }
 0x670   : > { %v2048_v30 = vpop.permute.xlu2 %2047 }
 0x671   : > { %v2105_v15 = vsel %vm518_vm1, %v2048_v30, 0.0 }
 0x679   : > { %v2036_v42 = vpop.permute.xlu0 %2035 }
 0x67a   : > { %v2087_v23 = vsel %vm518_vm1, %v2036_v42, 0.0 }
 0x67b   : > { %2088 = vadd.xlane.f32.xlu0 %v2087_v23  ;;  %v2054_v23 = vpop.permute.xlu2 %2053 }
 0x681   : > { %v2040_v39 = vpop.permute.xlu0 %2039 }
 0x682   : > { %v2093_v26 = vsel %vm518_vm1, %v2040_v39, 0.0  ;;  %v2114_v39 = vsel %vm518_vm1, %v2054_v23, 0.0 }
 0x683   : > { %2097 = vadd.xlane.f32.xlu0 %v2096_v2  ;;  %2094 = vadd.xlane.f32.xlu1 %v2093_v26 }
 0x686   : > { %v2038_v3 = vpop.permute.xlu1 %2037 }
 0x687   : > { %v2090_v6 = vsel %vm518_vm1, %v2038_v3, 0.0 }
 0x688   : > { %2091 = vadd.xlane.f32.xlu2 %v2090_v6  ;;  %v2060_v6 = vpop.permute.xlu2 %2059 }
 0x689   : > { %v2046_v36 = vpop.permute.xlu0 %2045 }
 0x68a   : > { %v2102_v42 = vsel %vm518_vm1, %v2046_v36, 0.0 }
 0x68b   : > { %2106 = vadd.xlane.f32.xlu0 %v2105_v15  ;;  %2103 = vadd.xlane.f32.xlu1 %v2102_v42  ;;  %v2123_v15 = vsel %vm518_vm1, %v2060_v6, 0.0  ;;  %v12675_v6 = vld [vmem:[#allocation31_spill] sm:$0xff] }
 0x68e   : > { %v2044_v12 = vpop.permute.xlu1 %2043 }
 0x68f   : > { %v2099_v40 = vsel %vm518_vm1, %v2044_v12, 0.0 }
 0x690   : > { %2100 = vadd.xlane.f32.xlu2 %v2099_v40  ;;  %v2066_v12 = vpop.permute.xlu2 %2065 }
 0x691   : > { %v2052_v51 = vpop.permute.xlu0 %2051 }
 0x692   : > { %v2111_v2 = vsel %vm518_vm1, %v2052_v51, 0.0  ;;  %v2132_v51 = vsel %vm518_vm1, %v2066_v12, 0.0  ;;  %v12681_v12 = vld [vmem:[#allocation39_spill] sm:$0xff] }
 0x693   : > { %2115 = vadd.xlane.f32.xlu0 %v2114_v39  ;;  %2112 = vadd.xlane.f32.xlu1 %v2111_v2 }
 0x696   : > { %v2050_v3 = vpop.permute.xlu1 %2049 }
 0x697   : > { %v2108_v30 = vsel %vm518_vm1, %v2050_v3, 0.0 }
 0x698   : > { %2109 = vadd.xlane.f32.xlu2 %v2108_v30  ;;  %v12676_v30 = vld [vmem:[#allocation22_spill] sm:$0xff] }
 0x699   : > { %v2058_v36 = vpop.permute.xlu0 %2057 }
 0x69a   : > { %v2120_v26 = vsel %vm518_vm1, %v2058_v36, 0.0  ;;  %v12677_v36 = vld [vmem:[#allocation28_spill] sm:$0xff] }
 0x69b   : > { %2124 = vadd.xlane.f32.xlu0 %v2123_v15  ;;  %2121 = vadd.xlane.f32.xlu1 %v2120_v26  ;;  %v12678_v15 = vld [vmem:[#allocation33_spill] sm:$0xff] }
 0x69c   : > { %v12679_v26 = vld [vmem:[#allocation41_spill] sm:$0xff] }
 0x69e   : > { %v2056_v40 = vpop.permute.xlu1 %2055 }
 0x69f   : > { %v2117_v42 = vsel %vm518_vm1, %v2056_v40, 0.0  ;;  %v12680_v40 = vld [vmem:[#allocation40_spill] sm:$0xff] }
 0x6a0   : > { %2118 = vadd.xlane.f32.xlu2 %v2117_v42  ;;  %v12682_v42 = vld [vmem:[#allocation48_spill] sm:$0xff] }
 0x6a1   : > { %v2064_v23 = vpop.permute.xlu0 %2063 }
 0x6a2   : > { %v2129_v39 = vsel %vm518_vm1, %v2064_v23, 0.0  ;;  %v12683_v23 = vld [vmem:[#allocation47_spill] sm:$0xff] }
 0x6a3   : > { %2133 = vadd.xlane.f32.xlu0 %v2132_v51  ;;  %2130 = vadd.xlane.f32.xlu1 %v2129_v39  ;;  %v12684_v51 = vld [vmem:[#allocation45_spill] sm:$0xff] }
 0x6a4   : > { %v12685_v39 = vld [vmem:[#allocation57_spill] sm:$0xff] }
 0x6a6   : > { %v2062_v2 = vpop.permute.xlu1 %2061 }
 0x6a7   : > { %v2126_v3 = vsel %vm518_vm1, %v2062_v2, 0.0  ;;  %v12686_v2 = vld [vmem:[#allocation56_spill] sm:$0xff] }
 0x6a8   : > { %2127 = vadd.xlane.f32.xlu2 %v2126_v3  ;;  %v12687_v3 = vld [vmem:[#allocation53_spill] sm:$0xff] }
 0x6b7   : > { %2156 = vrot.lane.b32.xlu0 %v12675_v6, %s6640_s25 }
 0x6bc   : > { %2154 = vrot.lane.b32.xlu1 %v12676_v30, %s6640_s25 }
 0x6bf   : > { %2160 = vrot.lane.b32.xlu0 %v12677_v36, %s6640_s25 }
 0x6c0   : > { %2152 = vrot.lane.b32.xlu2 %v12678_v15, %s6640_s25 }
 0x6c4   : > { %2162 = vrot.lane.b32.xlu1 %v12679_v26, %s6640_s25 }
 0x6c7   : > { %2166 = vrot.lane.b32.xlu0 %v12680_v40, %s6640_s25  ;;  %v12691_v40 = vld [vmem:[#allocation36_spill] sm:$0xff] }
 0x6c8   : > { %2158 = vrot.lane.b32.xlu2 %v12681_v12, %s6640_s25 }
 0x6cc   : > { %2168 = vrot.lane.b32.xlu1 %v12682_v42, %s6640_s25  ;;  %v12689_v42 = vld [vmem:[#allocation25_spill] sm:$0xff] }
 0x6cf   : > { %2172 = vrot.lane.b32.xlu0 %v12683_v23, %s6640_s25  ;;  %v12690_v23 = vld [vmem:[#allocation63_spill] sm:$0xff] }
 0x6d0   : > { %2164 = vrot.lane.b32.xlu2 %v12684_v51, %s6640_s25 }
 0x6d4   : > { %2174 = vrot.lane.b32.xlu1 %v12685_v39, %s6640_s25 }
 0x6d5   : > { %v8616_v39 = vpop.xlane.xlu1 %2085 }
 0x6d7   : > { %2178 = vrot.lane.b32.xlu0 %v12686_v2, %s6640_s25 }
 0x6d8   : > { %2170 = vrot.lane.b32.xlu2 %v12687_v3, %s6640_s25 }
 0x6dc   : > { %2180 = vrot.lane.b32.xlu1 %v12688_v20, %s6640_s25 }
 0x6df   : > { %2184 = vrot.lane.b32.xlu0 %v12689_v42, %s6640_s25 }
 0x6e0   : > { %2176 = vrot.lane.b32.xlu2 %v12690_v23, %s6640_s25 }
 0x6e8   : > { %2182 = vrot.lane.b32.xlu2 %v12691_v40, %s6640_s25 }
 0x6ee   : > { %v8614_v26 = vpop.xlane.xlu0 %2088 }
 0x6f6   : > { %v8618_v2 = vpop.xlane.xlu0 %2097  ;;  %v8622_v3 = vpop.xlane.xlu1 %2094 }
 0x6fb   : > { %v8620_v36 = vpop.xlane.xlu2 %2091 }
 0x6fe   : > { %v8624_v20 = vpop.xlane.xlu0 %2106  ;;  %v8628_v42 = vpop.xlane.xlu1 %2103 }
 0x703   : > { %v8626_v51 = vpop.xlane.xlu2 %2100 }
 0x706   : > { %v8632_v6 = vpop.xlane.xlu0 %2115  ;;  %v8634_v40 = vpop.xlane.xlu1 %2112 }
 0x70b   : > { %v8630_v23 = vpop.xlane.xlu2 %2109 }
 0x70e   : > { %v8638_v12 = vpop.xlane.xlu0 %2124  ;;  %v8642_v55 = vpop.xlane.xlu1 %2121 }
 0x713   : > { %v8636_v30 = vpop.xlane.xlu2 %2118 }
 0x716   : > { %v8644_v1 = vpop.xlane.xlu0 %2133  ;;  %v8647_v22 = vpop.xlane.xlu1 %2130 }
 0x717   : > { %12693 = vst [vmem:[#allocation69_spill] sm:$0xff] %v8644_v1 }
 0x718   : > { %12694 = vst [vmem:[#allocation112_spill] sm:$0xff] %v8647_v22 }
 0x71b   : > { %v8640_v15 = vpop.xlane.xlu2 %2127 }
 0x71c   : > { %12692 = vst [vmem:[#allocation92_spill] sm:$0xff] %v8640_v15 }
 0x723   : > { %v2153_v29 = vpop.permute.xlu2 %2152 }
 0x724   : > { %v2203_v58 = vsel %vm518_vm1, %v2153_v29, 0.0 }
 0x725   : > { %2204 = vadd.xlane.f32.xlu1 %v2203_v58 }
 0x729   : > { %v2157_v0 = vpop.permute.xlu0 %2156 }
 0x72a   : > { %v2209_v52 = vsel %vm518_vm1, %v2157_v0, 0.0 }
 0x72b   : > { %2210 = vadd.xlane.f32.xlu0 %v2209_v52  ;;  %v2159_v16 = vpop.permute.xlu2 %2158 }
 0x72c   : > { %v2212_v32 = vsel %vm518_vm1, %v2159_v16, 0.0 }
 0x72d   : > { %2213 = vadd.xlane.f32.xlu1 %v2212_v32 }
 0x72e   : > { %v2155_v54 = vpop.permute.xlu1 %2154 }
 0x72f   : > { %v2206_v31 = vsel %vm518_vm1, %v2155_v54, 0.0 }
 0x730   : > { %2207 = vadd.xlane.f32.xlu2 %v2206_v31 }
 0x731   : > { %v2161_v19 = vpop.permute.xlu0 %2160 }
 0x732   : > { %v2215_v29 = vsel %vm518_vm1, %v2161_v19, 0.0 }
 0x733   : > { %v2165_v59 = vpop.permute.xlu2 %2164 }
 0x734   : > { %v2221_v47 = vsel %vm518_vm1, %v2165_v59, 0.0 }
 0x735   : > { %2222 = vadd.xlane.f32.xlu1 %v2221_v47 }
 0x736   : > { %v2163_v58 = vpop.permute.xlu1 %2162 }
 0x737   : > { %v2218_v41 = vsel %vm518_vm1, %v2163_v58, 0.0 }
 0x738   : > { %2216 = vadd.xlane.f32.xlu2 %v2215_v29  ;;  %2219 = vadd.xlane.f32.xlu0 %v2218_v41 }
 0x739   : > { %v2167_v0 = vpop.permute.xlu0 %2166 }
 0x73a   : > { %v2224_v31 = vsel %vm518_vm1, %v2167_v0, 0.0 }
 0x73b   : > { %v2171_v52 = vpop.permute.xlu2 %2170 }
 0x73c   : > { %v2230_v32 = vsel %vm518_vm1, %v2171_v52, 0.0 }
 0x73d   : > { %2231 = vadd.xlane.f32.xlu1 %v2230_v32 }
 0x73e   : > { %v2169_v16 = vpop.permute.xlu1 %2168 }
 0x73f   : > { %v2227_v54 = vsel %vm518_vm1, %v2169_v16, 0.0 }
 0x740   : > { %2225 = vadd.xlane.f32.xlu2 %v2224_v31  ;;  %2228 = vadd.xlane.f32.xlu0 %v2227_v54 }
 0x741   : > { %v2173_v47 = vpop.permute.xlu0 %2172 }
 0x742   : > { %v2233_v41 = vsel %vm518_vm1, %v2173_v47, 0.0  ;;  %v2254_v47 = vmax.f32 %v8452_v18, %v8525_v9 }
 0x743   : > { %v2177_v59 = vpop.permute.xlu2 %2176 }
 0x744   : > { %v2239_v19 = vsel %vm518_vm1, %v2177_v59, 0.0 }
 0x745   : > { %2240 = vadd.xlane.f32.xlu1 %v2239_v19 }
 0x746   : > { %v2175_v58 = vpop.permute.xlu1 %2174 }
 0x747   : > { %v2236_v29 = vsel %vm518_vm1, %v2175_v58, 0.0  ;;  %v2271_v58 = vmax.f32 %v2254_v47, %v8616_v39 }
 0x748   : > { %2234 = vadd.xlane.f32.xlu2 %v2233_v41  ;;  %2237 = vadd.xlane.f32.xlu0 %v2236_v29 }
 0x749   : > { %v2179_v52 = vpop.permute.xlu0 %2178 }
 0x74a   : > { %v2242_v31 = vsel %vm518_vm1, %v2179_v52, 0.0 }
 0x74b   : > { %v2183_v32 = vpop.permute.xlu2 %2182 }
 0x74c   : > { %v2248_v0 = vsel %vm518_vm1, %v2183_v32, 0.0  ;;  %v2256_v32 = vmax.f32 %v8444_v25, %v8537_v53 }
 0x74d   : > { %2249 = vadd.xlane.f32.xlu1 %v2248_v0 }
 0x74e   : > { %v2181_v16 = vpop.permute.xlu1 %2180 }
 0x74f   : > { %v2245_v54 = vsel %vm518_vm1, %v2181_v16, 0.0 }
 0x750   : > { %2243 = vadd.xlane.f32.xlu2 %v2242_v31  ;;  %2246 = vadd.xlane.f32.xlu0 %v2245_v54  ;;  %v2257_v54 = vmax.f32 %v8458_v17, %v8531_v35 }
 0x751   : > { %v2185_v59 = vpop.permute.xlu0 %2184 }
 0x752   : > { %v2251_v19 = vsel %vm518_vm1, %v2185_v59, 0.0 }
 0x758   : > { %2252 = vadd.xlane.f32.xlu2 %v2251_v19  ;;  %v2255_v19 = vmax.f32 %v8446_v21, %v8539_v8 }
 0x798   : > { %v2205_v41 = vpop.xlane.xlu1 %2204 }
 0x799   : > { %v2288_v29 = vmax.f32 %v2271_v58, %v2205_v41  ;;  %v2273_v58 = vmax.f32 %v2256_v32, %v8620_v36 }
 0x79b   : > { %v2305_v52 = vsub.f32 %v8452_v18, %v2288_v29  ;;  %v2356_v0 = vsub.f32 %v8525_v9, %v2288_v29  ;;  %v2407_v16 = vsub.f32 %v8616_v39, %v2288_v29  ;;  %v2458_v31 = vsub.f32 %v2205_v41, %v2288_v29 }
 0x79c   : > { %v2260_v39 = vmax.f32 %v8464_v43, %v8543_v49 }
 0x79d   : > { %v2322_v18 = vmul.f32 1.442695, %v2305_v52  ;;  %v2373_v63 = vmul.f32 1.442695, %v2356_v0  ;;  %v2424_v29 = vmul.f32 1.442695, %v2407_v16  ;;  %v2274_v0 = vmax.f32 %v2257_v54, %v8622_v3 }
 0x79e   : > { %v2211_v59 = vpop.xlane.xlu0 %2210  ;;  %v2475_v47 = vmul.f32 1.442695, %v2458_v31 }
 0x79f   : > { %6049 = vpow2.f32 %v2322_v18  ;;  %v2290_v22 = vmax.f32 %v2273_v58, %v2211_v59  ;;  %v2272_v58 = vmax.f32 %v2255_v19, %v8614_v26 }
 0x7a0   : > { %6051 = vpow2.f32 %v2373_v63  ;;  %v2214_v9 = vpop.xlane.xlu1 %2213 }
 0x7a1   : > { %v2307_v41 = vsub.f32 %v8444_v25, %v2290_v22  ;;  %v2358_v15 = vsub.f32 %v8537_v53, %v2290_v22  ;;  %v2409_v31 = vsub.f32 %v8620_v36, %v2290_v22  ;;  %6053 = vpow2.f32 %v2424_v29 }
 0x7a2   : > { %v2460_v18 = vsub.f32 %v2211_v59, %v2290_v22  ;;  %v2291_v32 = vmax.f32 %v2274_v0, %v2214_v9  ;;  %6055 = vpow2.f32 %v2475_v47 }
 0x7a3   : > { %v2326_v52 = vmul.f32 1.442695, %v2307_v41  ;;  %v2377_v10 = vmul.f32 1.442695, %v2358_v15  ;;  %v2428_v54 = vmul.f32 1.442695, %v2409_v31  ;;  %v2208_v63 = vpop.xlane.xlu2 %2207  ;;  %v2277_v15 = vmax.f32 %v2260_v39, %v8628_v42 }
 0x7a4   : > { %v2479_v62 = vmul.f32 1.442695, %v2460_v18  ;;  %v2308_v1 = vsub.f32 %v8458_v17, %v2291_v32  ;;  %v2359_v16 = vsub.f32 %v8531_v35, %v2291_v32  ;;  %v2410_v25 = vsub.f32 %v8622_v3, %v2291_v32 }
 0x7a5   : > { %v8704_v53 = vpop.eup %6049  ;;  %6057 = vpow2.f32 %v2326_v52  ;;  %v2461_v22 = vsub.f32 %v2214_v9, %v2291_v32  ;;  %v2289_v59 = vmax.f32 %v2272_v58, %v2208_v63 }
 0x7a6   : > { %v8708_v19 = vpop.eup %6051  ;;  %6059 = vpow2.f32 %v2377_v10  ;;  %v2328_v47 = vmul.f32 1.442695, %v2308_v1  ;;  %v2379_v41 = vmul.f32 1.442695, %v2359_v16  ;;  %v2430_v35 = vmul.f32 1.442695, %v2410_v25 }
 0x7a7   : > { %12695 = vst [vmem:[#allocation99_spill] sm:$0xff] %v8708_v19  ;;  %v2509_v17 = vadd.f32 %v8708_v19, %v8704_v53  ;;  %6061 = vpow2.f32 %v2428_v54  ;;  %v2306_v3 = vsub.f32 %v8446_v21, %v2289_v59  ;;  %v8714_v29 = vpop.eup %6053  ;;  %v2481_v52 = vmul.f32 1.442695, %v2461_v22 }
 0x7a8   : > { %12696 = vst [vmem:[#allocation93_spill] sm:$0xff] %v8714_v29  ;;  %6063 = vpow2.f32 %v2479_v62  ;;  %v2357_v9 = vsub.f32 %v8539_v8, %v2289_v59  ;;  %v2408_v32 = vsub.f32 %v8614_v26, %v2289_v59  ;;  %v2223_v0 = vpop.xlane.xlu1 %2222  ;;  %v8718_v39 = vpop.eup %6055  ;;  %v2459_v10 = vsub.f32 %v2208_v63, %v2289_v59 }
 0x7a9   : > { %12697 = vst [vmem:[#allocation97_spill] sm:$0xff] %v8718_v39  ;;  %v2526_v1 = vadd.f32 %v8714_v29, %v2509_v17  ;;  %6065 = vpow2.f32 %v2328_v47  ;;  %v2294_v16 = vmax.f32 %v2277_v15, %v2223_v0  ;;  %v2324_v21 = vmul.f32 1.442695, %v2306_v3 }
 0x7aa   : > { %6067 = vpow2.f32 %v2379_v41  ;;  %v2375_v58 = vmul.f32 1.442695, %v2357_v9  ;;  %v12699_v63 = vmax.f32 %v8450_v48, %v8545_v13  ;;  %v2426_v22 = vmul.f32 1.442695, %v2408_v32 }
 0x7ab   : > { %v8723_v62 = vpop.eup %6057  ;;  %v8726_v8 = vadd.f32 %v8718_v39, %v2526_v1  ;;  %6069 = vpow2.f32 %v2430_v35  ;;  %v2311_v26 = vsub.f32 %v8464_v43, %v2294_v16  ;;  %v2362_v18 = vsub.f32 %v8543_v49, %v2294_v16  ;;  %v2217_v15 = vpop.xlane.xlu2 %2216 }
 0x7ac   : > { %v8730_v54 = vpop.eup %6059  ;;  %v2275_v25 = vmax.f32 %v12699_v63, %v8618_v2  ;;  %6071 = vpow2.f32 %v2481_v52  ;;  %v2413_v59 = vsub.f32 %v8628_v42, %v2294_v16  ;;  %v2267_v41 = vmax.f32 %v8466_v61, %v8560_v56 }
 0x7ad   : > { %12698 = vst [vmem:[#allocation113_spill] sm:$0xff] %v8730_v54  ;;  %v8737_v47 = vpop.eup %6061  ;;  %6073 = vrcp.f32 %v8726_v8  ;;  %v2511_v43 = vadd.f32 %v8730_v54, %v8723_v62  ;;  %v2477_v49 = vmul.f32 1.442695, %v2459_v10  ;;  %v2334_v35 = vmul.f32 1.442695, %v2311_v26 }
 0x7ae   : > { %12700 = vst [vmem:[#allocation88_spill] sm:$0xff] %v8737_v47  ;;  %v8744_v17 = vpop.eup %6063  ;;  %6075 = vpow2.f32 %v2324_v21  ;;  %v2464_v3 = vsub.f32 %v2223_v0, %v2294_v16  ;;  %v2292_v52 = vmax.f32 %v2275_v25, %v2217_v15  ;;  %v12702_v42 = vmax.f32 %v8448_v14, %v8533_v57 }
 0x7af   : > { %12701 = vst [vmem:[#allocation114_spill] sm:$0xff] %v8744_v17  ;;  %v8746_v9 = vpop.eup %6065  ;;  %v2528_v1 = vadd.f32 %v8737_v47, %v2511_v43  ;;  %6077 = vpow2.f32 %v2375_v58  ;;  %v2385_v63 = vmul.f32 1.442695, %v2362_v18  ;;  %v2436_v10 = vmul.f32 1.442695, %v2413_v59  ;;  %v2220_v18 = vpop.xlane.xlu0 %2219 }
 0x7b0   : > { %v2276_v32 = vmax.f32 %v12702_v42, %v8626_v51  ;;  %v8753_v31 = vpop.eup %6067  ;;  %6079 = vpow2.f32 %v2426_v22  ;;  %v2309_v21 = vsub.f32 %v8450_v48, %v2292_v52  ;;  %v2360_v0 = vsub.f32 %v8545_v13, %v2292_v52 }
 0x7b1   : > { %12703 = vst [vmem:[#allocation91_spill] sm:$0xff] %v8753_v31  ;;  %v8757_v16 = vpop.eup %6069  ;;  %v8760_v26 = vadd.f32 %v8744_v17, %v2528_v1  ;;  %v2512_v25 = vadd.f32 %v8753_v31, %v8746_v9  ;;  %6081 = vpow2.f32 %v2477_v49  ;;  %v2411_v58 = vsub.f32 %v8618_v2, %v2292_v52 }
 0x7b2   : > { %12704 = vst [vmem:[#allocation102_spill] sm:$0xff] %v8757_v16  ;;  %v8765_v43 = vpop.eup %6071  ;;  %v2270_v22 = vmax.f32 %v8472_v27, %v8563_v33  ;;  %v12706_v48 = vmax.f32 %v8454_v44, %v8551_v60  ;;  %6083 = vpow2.f32 %v2334_v35  ;;  %v2487_v59 = vmul.f32 1.442695, %v2464_v3 }
 0x7b3   : > { %12705 = vst [vmem:[#allocation95_spill] sm:$0xff] %v8765_v43  ;;  %v8775_v42 = vpop.eup %6073  ;;  %6085 = vrcp.f32 %v8760_v26  ;;  %v2529_v2 = vadd.f32 %v8757_v16, %v2512_v25  ;;  %v2462_v49 = vsub.f32 %v2217_v15, %v2292_v52  ;;  %v2293_v1 = vmax.f32 %v2276_v32, %v2220_v18 }
 0x7b4   : > { %v8773_v13 = vmax.f32 %v12706_v48, %v8624_v20  ;;  %v8779_v36 = vpop.eup %6075  ;;  %v12707_v31 = vmax.f32 %v8460_v45, %v8556_v50  ;;  %6087 = vpow2.f32 %v2385_v63  ;;  %v2330_v48 = vmul.f32 1.442695, %v2309_v21  ;;  %v2232_v21 = vpop.xlane.xlu1 %2231 }
 0x7b5   : > { %v2381_v35 = vmul.f32 1.442695, %v2360_v0  ;;  %v8787_v3 = vpop.eup %6077  ;;  %v8790_v54 = vadd.f32 %v8765_v43, %v2529_v2  ;;  %6089 = vpow2.f32 %v2436_v10  ;;  %v2432_v25 = vmul.f32 1.442695, %v2411_v58 }
 0x7b6   : > { %v8785_v19 = vmax.f32 %v12707_v31, %v8632_v6  ;;  %12708 = vst [vmem:[#allocation109_spill] sm:$0xff] %v8787_v3  ;;  %v2310_v15 = vsub.f32 %v8448_v14, %v2293_v1  ;;  %v8793_v52 = vpop.eup %6079  ;;  %v2510_v32 = vadd.f32 %v8787_v3, %v8779_v36  ;;  %6091 = vpow2.f32 %v2487_v59 }
 0x7b7   : > { %12709 = vst [vmem:[#allocation34_spill] sm:$0xff] %v8793_v52  ;;  %v2361_v31 = vsub.f32 %v8533_v57, %v2293_v1  ;;  %v2412_v63 = vsub.f32 %v8626_v51, %v2293_v1  ;;  %v8799_v0 = vpop.eup %6081  ;;  %v12711_v10 = vmax.f32 %v8470_v34, %v8549_v24  ;;  %v12712_v14 = vmax.f32 %v8456_v46, %v8535_v38 }
 0x7b8   : > { %12710 = vst [vmem:[#allocation68_spill] sm:$0xff] %v8799_v0  ;;  %6093 = vrcp.f32 %v8790_v54  ;;  %v2483_v59 = vmul.f32 1.442695, %v2462_v49  ;;  %v8812_v57 = vpop.eup %6083  ;;  %v8815_v51 = vmax.f32 %v2267_v41, %v8638_v12  ;;  %v2527_v3 = vadd.f32 %v8793_v52, %v2510_v32 }
 0x7b9   : > { %v2280_v58 = vmax.f32 %v12711_v10, %v8634_v40  ;;  %v8809_v2 = vmax.f32 %v12712_v14, %v8630_v23  ;;  %6095 = vpow2.f32 %v2330_v48  ;;  %v2463_v43 = vsub.f32 %v2220_v18, %v2293_v1  ;;  %v8818_v39 = vpop.eup %6085 }
 0x7ba   : > { %v2577_v10 = vmul.f32 %v8775_v42, %v8726_v8  ;;  %6097 = vpow2.f32 %v2381_v35  ;;  %v2332_v14 = vmul.f32 1.442695, %v2310_v15  ;;  %v8822_v16 = vpop.eup %6087  ;;  %v8825_v49 = vadd.f32 %v8799_v0, %v2527_v3  ;;  %v2226_v15 = vpop.xlane.xlu2 %2225 }
 0x7bb   : > { %v2297_v17 = vmax.f32 %v2280_v58, %v2232_v21  ;;  %12713 = vst [vmem:[#allocation74_spill] sm:$0xff] %v8822_v16  ;;  %6099 = vpow2.f32 %v2432_v25  ;;  %v2383_v41 = vmul.f32 1.442695, %v2361_v31  ;;  %v2434_v47 = vmul.f32 1.442695, %v2412_v63  ;;  %v8827_v29 = vpop.eup %6089 }
 0x7bc   : > { %12714 = vst [vmem:[#allocation81_spill] sm:$0xff] %v8827_v29  ;;  %v2515_v18 = vadd.f32 %v8822_v16, %v8812_v57  ;;  %6101 = vpow2.f32 %v2483_v59  ;;  %v8833_v48 = vpop.eup %6091  ;;  %v2485_v35 = vmul.f32 1.442695, %v2463_v43  ;;  %v12716_v31 = vmax.f32 %v8476_v37, %v8554_v5 }
 0x7bd   : > { %v2314_v1 = vsub.f32 %v8470_v34, %v2297_v17  ;;  %v2365_v8 = vsub.f32 %v8549_v24, %v2297_v17  ;;  %12715 = vst [vmem:[#allocation106_spill] sm:$0xff] %v8833_v48  ;;  %6103 = vrcp.f32 %v8825_v49  ;;  %v2416_v3 = vsub.f32 %v8634_v40, %v2297_v17  ;;  %v12719_v40 = vld [vmem:[#allocation69_spill] sm:$0xff] }
 0x7be   : > { %v2467_v25 = vsub.f32 %v2232_v21, %v2297_v17  ;;  %v8837_v32 = vpop.eup %6093  ;;  %v2283_v63 = vmax.f32 %v12716_v31, %v8642_v55  ;;  %v12717_v34 = vmax.f32 %v8462_v7, %v8541_v4  ;;  %v2532_v58 = vadd.f32 %v8827_v29, %v2515_v18  ;;  %v12727_v29 = vld [vmem:[#allocation107_spill] sm:$0xff] }
 0x7bf   : > { %6105 = vpow2.f32 %v2332_v14  ;;  %v8850_v43 = vpop.eup %6095  ;;  %v8853_v17 = vmax.f32 %v2270_v22, %v12719_v40  ;;  %v2594_v21 = vsub.f32 2.0, %v2577_v10  ;;  %v2340_v59 = vmul.f32 1.442695, %v2314_v1 }
 0x7c0   : > { %v8847_v24 = vmax.f32 %v12717_v34, %v8636_v30  ;;  %12718 = vst [vmem:[#allocation101_spill] sm:$0xff] %v8850_v43  ;;  %6107 = vpow2.f32 %v2383_v41  ;;  %v8855_v16 = vpop.eup %6097  ;;  %v8858_v31 = vadd.f32 %v8833_v48, %v2532_v58  ;;  %v2391_v0 = vmul.f32 1.442695, %v2365_v8 }
 0x7c1   : > { %12720 = vst [vmem:[#allocation105_spill] sm:$0xff] %v8855_v16  ;;  %6109 = vpow2.f32 %v2434_v47  ;;  %v2295_v34 = vmax.f32 %v8773_v13, %v2226_v15  ;;  %v8861_v52 = vpop.eup %6099  ;;  %v2513_v14 = vadd.f32 %v8855_v16, %v8850_v43  ;;  %v2442_v22 = vmul.f32 1.442695, %v2416_v3  ;;  %v2229_v3 = vpop.xlane.xlu0 %2228  ;;  %v12723_v16 = vld [vmem:[#allocation112_spill] sm:$0xff] }
 0x7c2   : > { %12721 = vst [vmem:[#allocation59_spill] sm:$0xff] %v8861_v52  ;;  %6111 = vpow2.f32 %v2485_v35  ;;  %v2493_v18 = vmul.f32 1.442695, %v2467_v25  ;;  %v8865_v10 = vpop.eup %6101  ;;  %v2579_v13 = vmul.f32 %v8818_v39, %v8760_v26 }
 0x7c3   : > { %12722 = vst [vmem:[#allocation96_spill] sm:$0xff] %v8865_v10  ;;  %6113 = vrcp.f32 %v8858_v31  ;;  %v2312_v41 = vsub.f32 %v8454_v44, %v2295_v34  ;;  %v2363_v1 = vsub.f32 %v8551_v60, %v2295_v34  ;;  %v2414_v47 = vsub.f32 %v8624_v20, %v2295_v34  ;;  %v8871_v8 = vpop.eup %6103  ;;  %v12725_v60 = vld [vmem:[#allocation92_spill] sm:$0xff] }
 0x7c4   : > { %v2530_v58 = vadd.f32 %v8861_v52, %v2513_v14  ;;  %6115 = vpow2.f32 %v2340_v59  ;;  %v2465_v35 = vsub.f32 %v2226_v15, %v2295_v34  ;;  %v12724_v44 = vmax.f32 %v8479_v28, %v8558_v11  ;;  %v12726_v20 = vld [vmem:[#allocation100_spill] sm:$0xff] }
 0x7c5   : > { %v8876_v25 = vpop.eup %6105  ;;  %v12728_v43 = vmax.f32 %v12726_v20, %v12727_v29  ;;  %6117 = vpow2.f32 %v2391_v0  ;;  %v2336_v26 = vmul.f32 1.442695, %v2312_v41  ;;  %v8893_v15 = vmul.f32 %v8775_v42, %v2594_v21  ;;  %v2241_v41 = vpop.xlane.xlu1 %2240 }
 0x7c6   : > { %v8882_v48 = vmax.f32 %v12724_v44, %v12723_v16  ;;  %v8890_v14 = vpop.eup %6107  ;;  %v8896_v59 = vadd.f32 %v8865_v10, %v2530_v58  ;;  %6119 = vpow2.f32 %v2442_v22  ;;  %v2387_v34 = vmul.f32 1.442695, %v2363_v1 }
 0x7c7   : > { %v8888_v40 = vmax.f32 %v12728_v43, %v12725_v60  ;;  %12729 = vst [vmem:[#allocation112_spill] sm:$0xff] %v8890_v14  ;;  %v8898_v44 = vpop.eup %6109  ;;  %v2514_v52 = vadd.f32 %v8890_v14, %v8876_v25  ;;  %6121 = vpow2.f32 %v2493_v18  ;;  %v2438_v43 = vmul.f32 1.442695, %v2414_v47 }
 0x7c8   : > { %12730 = vst [vmem:[#allocation92_spill] sm:$0xff] %v8898_v44  ;;  %v2296_v0 = vmax.f32 %v8809_v2, %v2229_v3  ;;  %v8903_v33 = vpop.eup %6111  ;;  %v2596_v27 = vsub.f32 2.0, %v2579_v13  ;;  %v2580_v42 = vmul.f32 %v8837_v32, %v8790_v54  ;;  %6123 = vrcp.f32 %v8896_v59 }
 0x7c9   : > { %v2489_v21 = vmul.f32 1.442695, %v2465_v35  ;;  %v8908_v22 = vpop.eup %6113  ;;  %v2531_v1 = vadd.f32 %v8898_v44, %v2514_v52  ;;  %6125 = vpow2.f32 %v2336_v26  ;;  %v2300_v47 = vmax.f32 %v2283_v63, %v2241_v41 }
 0x7ca   : > { %v2313_v18 = vsub.f32 %v8456_v46, %v2296_v0  ;;  %v8912_v58 = vpop.eup %6115  ;;  %v2578_v2 = vmul.f32 %v8871_v8, %v8825_v49  ;;  %6127 = vpow2.f32 %v2387_v34  ;;  %v2364_v13 = vsub.f32 %v8535_v38, %v2296_v0 }
 0x7cb   : > { %v2415_v54 = vsub.f32 %v8630_v23, %v2296_v0  ;;  %v8918_v14 = vpop.eup %6117  ;;  %v8921_v35 = vadd.f32 %v8903_v33, %v2531_v1  ;;  %6129 = vpow2.f32 %v2438_v43  ;;  %v2466_v26 = vsub.f32 %v2229_v3, %v2296_v0 }
 0x7cc   : > { %12731 = vst [vmem:[#allocation100_spill] sm:$0xff] %v8918_v14  ;;  %v2338_v52 = vmul.f32 1.442695, %v2313_v18  ;;  %v8923_v46 = vpop.eup %6119  ;;  %v2597_v63 = vsub.f32 2.0, %v2580_v42  ;;  %v2518_v10 = vadd.f32 %v8918_v14, %v8912_v58  ;;  %6131 = vpow2.f32 %v2489_v21 }
 0x7cd   : > { %12732 = vst [vmem:[#allocation107_spill] sm:$0xff] %v8923_v46  ;;  %v2389_v49 = vmul.f32 1.442695, %v2364_v13  ;;  %v8927_v34 = vpop.eup %6121  ;;  %6133 = vrcp.f32 %v8921_v35  ;;  %v2440_v38 = vmul.f32 1.442695, %v2415_v54  ;;  %v2317_v1 = vsub.f32 %v8476_v37, %v2300_v47  ;;  %v2235_v54 = vpop.xlane.xlu2 %2234 }
 0x7ce   : > { %v2491_v23 = vmul.f32 1.442695, %v2466_v26  ;;  %v8931_v44 = vpop.eup %6123  ;;  %v8934_v3 = vmul.f32 %v8818_v39, %v2596_v27  ;;  %v2535_v43 = vadd.f32 %v8923_v46, %v2518_v10  ;;  %6135 = vpow2.f32 %v2338_v52 }
 0x7cf   : > { %v2368_v0 = vsub.f32 %v8554_v5, %v2300_v47  ;;  %v8938_v42 = vpop.eup %6125  ;;  %v2595_v21 = vsub.f32 2.0, %v2578_v2  ;;  %6137 = vpow2.f32 %v2389_v49  ;;  %v2346_v18 = vmul.f32 1.442695, %v2317_v1 }
 0x7d0   : > { %v2419_v13 = vsub.f32 %v8642_v55, %v2300_v47  ;;  %v8941_v26 = vpop.eup %6127  ;;  %v8944_v37 = vadd.f32 %v8927_v34, %v2535_v43  ;;  %6139 = vpow2.f32 %v2440_v38  ;;  %v2470_v39 = vsub.f32 %v2241_v41, %v2300_v47  ;;  %v2238_v55 = vpop.xlane.xlu0 %2237 }
 0x7d1   : > { %v2397_v27 = vmul.f32 1.442695, %v2368_v0  ;;  %v8946_v10 = vpop.eup %6129  ;;  %v8949_v5 = vmul.f32 %v8837_v32, %v2597_v63  ;;  %v2516_v2 = vadd.f32 %v8941_v26, %v8938_v42  ;;  %6141 = vpow2.f32 %v2491_v23 }
 0x7d2   : > { %12733 = vst [vmem:[#allocation116_spill] sm:$0xff] %v8946_v10  ;;  %v2448_v52 = vmul.f32 1.442695, %v2419_v13  ;;  %v8953_v49 = vpop.eup %6131  ;;  %v2583_v1 = vmul.f32 %v8908_v22, %v8858_v31  ;;  %6143 = vrcp.f32 %v8944_v37  ;;  %v2499_v38 = vmul.f32 1.442695, %v2470_v39 }
 0x7d3   : > { %v2298_v41 = vmax.f32 %v8785_v19, %v2235_v54  ;;  %v8959_v47 = vpop.eup %6133  ;;  %v8962_v32 = vmul.f32 %v8871_v8, %v2595_v21  ;;  %v2581_v63 = vmul.f32 %v8931_v44, %v8896_v59  ;;  %v2533_v23 = vadd.f32 %v8946_v10, %v2516_v2 }
 0x7d4   : > { %6145 = vpow2.f32 %v2346_v18  ;;  %v8967_v43 = vpop.eup %6135  ;;  %v2299_v19 = vmax.f32 %v8847_v24, %v2238_v55  ;;  %v2600_v18 = vsub.f32 2.0, %v2583_v1 }
 0x7d5   : > { %6147 = vpow2.f32 %v2397_v27  ;;  %v2315_v31 = vsub.f32 %v8460_v45, %v2298_v41  ;;  %v2366_v0 = vsub.f32 %v8556_v50, %v2298_v41  ;;  %v8972_v13 = vpop.eup %6137  ;;  %v2550_v8 = vadd.f32 %v8953_v49, %v2533_v23 }
 0x7d6   : > { %6149 = vpow2.f32 %v2448_v52  ;;  %v2417_v21 = vsub.f32 %v8632_v6, %v2298_v41  ;;  %v2468_v59 = vsub.f32 %v2235_v54, %v2298_v41  ;;  %v8976_v39 = vpop.eup %6139  ;;  %v2517_v27 = vadd.f32 %v8972_v13, %v8967_v43 }
 0x7d7   : > { %12734 = vst [vmem:[#allocation117_spill] sm:$0xff] %v8976_v39  ;;  %6151 = vpow2.f32 %v2499_v38  ;;  %v2342_v45 = vmul.f32 1.442695, %v2315_v31  ;;  %v8980_v2 = vpop.eup %6141  ;;  %v2393_v50 = vmul.f32 1.442695, %v2366_v0  ;;  %v2598_v52 = vsub.f32 2.0, %v2581_v63 }
 0x7d8   : > { %6153 = vrcp.f32 %v2550_v8  ;;  %v2444_v24 = vmul.f32 1.442695, %v2417_v21  ;;  %v2495_v14 = vmul.f32 1.442695, %v2468_v59  ;;  %v8982_v46 = vpop.eup %6143  ;;  %v2534_v6 = vadd.f32 %v8976_v39, %v2517_v27  ;;  %v2250_v59 = vpop.xlane.xlu1 %2249  ;;  %v12739_v39 = vld [vmem:[#allocation87_spill] sm:$0xff] }
 0x7d9   : > { %6155 = vpow2.f32 %v2342_v45  ;;  %v2316_v54 = vsub.f32 %v8462_v7, %v2299_v19  ;;  %v2582_v38 = vmul.f32 %v8959_v47, %v8921_v35  ;;  %v2367_v41 = vsub.f32 %v8541_v4, %v2299_v19  ;;  %v2247_v10 = vpop.xlane.xlu0 %2246 }
 0x7da   : > { %v8986_v1 = vpop.eup %6145  ;;  %6157 = vpow2.f32 %v2393_v50  ;;  %v2418_v23 = vsub.f32 %v8636_v30, %v2299_v19  ;;  %v2551_v0 = vadd.f32 %v8980_v2, %v2534_v6  ;;  %v2469_v21 = vsub.f32 %v2238_v55, %v2299_v19 }
 0x7db   : > { %v8992_v31 = vpop.eup %6147  ;;  %6159 = vpow2.f32 %v2444_v24  ;;  %v2344_v63 = vmul.f32 1.442695, %v2316_v54  ;;  %v8998_v7 = vmul.f32 %v8908_v22, %v2600_v18  ;;  %v2395_v4 = vmul.f32 1.442695, %v2367_v41  ;;  %v12737_v54 = vld [vmem:[#allocation83_spill] sm:$0xff] }
 0x7dc   : > { %v8995_v27 = vpop.eup %6149  ;;  %v2521_v35 = vadd.f32 %v8992_v31, %v8986_v1  ;;  %6161 = vpow2.f32 %v2495_v14  ;;  %v9005_v30 = vmul.f32 %v8931_v44, %v2598_v52  ;;  %v2446_v50 = vmul.f32 1.442695, %v2418_v23 }
 0x7dd   : > { %12735 = vst [vmem:[#allocation118_spill] sm:$0xff] %v8995_v27  ;;  %v9002_v45 = vpop.eup %6151  ;;  %6163 = vrcp.f32 %v2551_v0  ;;  %v2628_v55 = vmul.f32 %v8704_v53, %v8893_v15  ;;  %v2497_v18 = vmul.f32 1.442695, %v2469_v21  ;;  %v2303_v24 = vmax.f32 %v8882_v48, %v2250_v59 }
 0x7de   : > { %12736 = vst [vmem:[#allocation119_spill] sm:$0xff] %v8998_v7  ;;  %v9009_v19 = vpop.eup %6153  ;;  %v2538_v22 = vadd.f32 %v8995_v27, %v2521_v35  ;;  %6165 = vpow2.f32 %v2344_v63  ;;  %v2599_v6 = vsub.f32 2.0, %v2582_v38  ;;  %v2630_v52 = vmul.f32 %v8723_v62, %v8934_v3  ;;  %v2244_v35 = vpop.xlane.xlu2 %2243 }
 0x7df   : > { %v9013_v14 = vpop.eup %6155  ;;  %6167 = vpow2.f32 %v2395_v4  ;;  %v2645_v44 = vmul.f32 %v2628_v55, %v12737_v54  ;;  %v9022_v53 = vmul.f32 %v8982_v46, %v8944_v37  ;;  %v2320_v48 = vsub.f32 %v8479_v28, %v2303_v24 }
 0x7e0   : > { %v9018_v41 = vpop.eup %6157  ;;  %v9025_v23 = vadd.f32 %v9002_v45, %v2538_v22  ;;  %v2371_v63 = vsub.f32 %v8558_v11, %v2303_v24  ;;  %v9032_v21 = vmul.f32 %v9009_v19, %v2550_v8  ;;  %6169 = vpow2.f32 %v2446_v50 }
 0x7e1   : > { %v9029_v38 = vpop.eup %6159  ;;  %v2519_v62 = vadd.f32 %v9018_v41, %v9013_v14  ;;  %2679 = vrot.lane.b32.xlu0 %v2645_v44, %s6641_s26  ;;  %v2422_v37 = vsub.f32 %v12723_v16, %v2303_v24  ;;  %6171 = vpow2.f32 %v2497_v18  ;;  %v2352_v28 = vmul.f32 1.442695, %v2320_v48 }
 0x7e2   : > { %12738 = vst [vmem:[#allocation120_spill] sm:$0xff] %v9029_v38  ;;  %v9038_v4 = vpop.eup %6161  ;;  %v2403_v55 = vmul.f32 1.442695, %v2371_v63  ;;  %v2473_v11 = vsub.f32 %v2250_v59, %v2303_v24  ;;  %6173 = vrcp.f32 %v9025_v23  ;;  %v2647_v50 = vmul.f32 %v2630_v52, %v12739_v39 }
 0x7e3   : > { %v9040_v22 = vpop.eup %6163  ;;  %v2536_v8 = vadd.f32 %v9029_v38, %v2519_v62  ;;  %v2454_v27 = vmul.f32 1.442695, %v2422_v37  ;;  %v9048_v16 = vmul.f32 %v8959_v47, %v2599_v6  ;;  %v2603_v18 = vsub.f32 2.0, %v9022_v53  ;;  %v12748_v38 = vld [vmem:[#allocation103_spill] sm:$0xff] }
 0x7e4   : > { %v9045_v44 = vpop.eup %6165  ;;  %6175 = vpow2.f32 %v2352_v28  ;;  %v2301_v59 = vmax.f32 %v8815_v51, %v2244_v35  ;;  %v2601_v48 = vsub.f32 2.0, %v9032_v21  ;;  %v2505_v52 = vmul.f32 1.442695, %v2473_v11  ;;  %2683 = vrot.lane.b32.xlu2 %v2647_v50, %s6641_s26 }
 0x7e5   : > { %v9052_v24 = vpop.eup %6167  ;;  %v9056_v63 = vadd.f32 %v9038_v4, %v2536_v8  ;;  %6177 = vpow2.f32 %v2403_v55  ;;  %v2585_v62 = vmul.f32 %v9040_v22, %v2551_v0  ;;  %v2302_v51 = vmax.f32 %v8888_v40, %v2247_v10 }
 0x7e6   : > { %v2520_v47 = vadd.f32 %v9052_v24, %v9045_v44  ;;  %v2318_v6 = vsub.f32 %v8466_v61, %v2301_v59  ;;  %v9064_v53 = vpop.eup %6169  ;;  %6179 = vpow2.f32 %v2454_v27  ;;  %v2369_v21 = vsub.f32 %v8560_v56, %v2301_v59 }
 0x7e7   : > { %12740 = vst [vmem:[#allocation121_spill] sm:$0xff] %v9064_v53  ;;  %v2420_v37 = vsub.f32 %v8638_v12, %v2301_v59  ;;  %v2471_v28 = vsub.f32 %v2244_v35, %v2301_v59  ;;  %v9068_v55 = vpop.eup %6171  ;;  %6181 = vrcp.f32 %v9056_v63  ;;  %v2631_v61 = vmul.f32 %v8746_v9, %v8949_v5 }
 0x7e8   : > { %v2537_v0 = vadd.f32 %v9064_v53, %v2520_v47  ;;  %v2348_v11 = vmul.f32 1.442695, %v2318_v6  ;;  %v9074_v8 = vpop.eup %6173  ;;  %6183 = vpow2.f32 %v2505_v52  ;;  %v2399_v40 = vmul.f32 1.442695, %v2369_v21 }
 0x7e9   : > { %v2450_v27 = vmul.f32 1.442695, %v2420_v37  ;;  %v2501_v50 = vmul.f32 1.442695, %v2471_v28  ;;  %v2319_v35 = vsub.f32 %v12726_v20, %v2302_v51  ;;  %v2370_v59 = vsub.f32 %v12727_v29, %v2302_v51  ;;  %v2253_v28 = vpop.xlane.xlu2 %2252 }
 0x7ea   : > { %v9076_v56 = vpop.eup %6175  ;;  %v2554_v12 = vadd.f32 %v9068_v55, %v2537_v0  ;;  %6185 = vpow2.f32 %v2348_v11  ;;  %v2602_v6 = vsub.f32 2.0, %v2585_v62  ;;  %v2421_v9 = vsub.f32 %v12725_v60, %v2302_v51 }
 0x7eb   : > { %v9081_v47 = vpop.eup %6177  ;;  %6187 = vpow2.f32 %v2399_v40  ;;  %v2472_v53 = vsub.f32 %v2247_v10, %v2302_v51  ;;  %v2350_v21 = vmul.f32 1.442695, %v2319_v35  ;;  %v2401_v37 = vmul.f32 1.442695, %v2370_v59  ;;  %v12742_v51 = vld [vmem:[#allocation90_spill] sm:$0xff]  ;;  %v12744_v59 = vld [vmem:[#allocation55_spill] sm:$0xff] }
 0x7ec   : > { %6189 = vrcp.f32 %v2554_v12  ;;  %v2524_v52 = vadd.f32 %v9081_v47, %v9076_v56  ;;  %v9086_v0 = vpop.eup %6179  ;;  %v9089_v20 = vmul.f32 %v8982_v46, %v2603_v18  ;;  %v9092_v29 = vmul.f32 %v9009_v19, %v2601_v48 }
 0x7ed   : > { %12741 = vst [vmem:[#allocation122_spill] sm:$0xff] %v9086_v0  ;;  %6191 = vpow2.f32 %v2450_v27  ;;  %v2452_v62 = vmul.f32 1.442695, %v2421_v9  ;;  %v9094_v11 = vpop.eup %6181  ;;  %v2589_v60 = vmul.f32 %v9074_v8, %v9025_v23  ;;  %v2648_v40 = vmul.f32 %v2631_v61, %v12742_v51  ;;  %v12745_v9 = vld [vmem:[#allocation89_spill] sm:$0xff] }
 0x7ee   : > { %v2541_v10 = vadd.f32 %v9086_v0, %v2524_v52  ;;  %6193 = vpow2.f32 %v2501_v50  ;;  %v9100_v35 = vpop.eup %6183  ;;  %v2503_v46 = vmul.f32 1.442695, %v2472_v53  ;;  %v2629_v19 = vmul.f32 %v8779_v36, %v8962_v32  ;;  %v12743_v53 = vld [vmem:[#allocation86_spill] sm:$0xff] }
 0x7ef   : > { %6195 = vpow2.f32 %v2350_v21  ;;  %v2304_v18 = vmax.f32 %v8853_v17, %v2253_v28  ;;  %v9108_v27 = vmul.f32 %v9040_v22, %v2602_v6  ;;  %2685 = vrot.lane.b32.xlu0 %v2648_v40, %s6641_s26  ;;  %v2634_v61 = vmul.f32 %v8812_v57, %v8998_v7 }
 0x7f0   : > { %v9105_v48 = vpop.eup %6185  ;;  %v2558_v23 = vadd.f32 %v9100_v35, %v2541_v10  ;;  %6197 = vpow2.f32 %v2401_v37  ;;  %v2646_v36 = vmul.f32 %v2629_v19, %v12743_v53  ;;  %v2606_v22 = vsub.f32 2.0, %v2589_v60  ;;  %v12746_v37 = vld [vmem:[#allocation69_spill] sm:$0xff] }
 0x7f1   : > { %v9114_v50 = vpop.eup %6187  ;;  %6199 = vpow2.f32 %v2452_v62  ;;  %v2321_v17 = vsub.f32 %v12744_v59, %v2304_v18  ;;  %v2372_v52 = vsub.f32 %v12745_v9, %v2304_v18  ;;  %v2423_v10 = vsub.f32 %v12746_v37, %v2304_v18 }
 0x7f2   : > { %v6190_v21 = vpop.eup %6189  ;;  %6201 = vrcp.f32 %v2558_v23  ;;  %v2522_v6 = vadd.f32 %v9114_v50, %v9105_v48  ;;  %2681 = vrot.lane.b32.xlu1 %v2646_v36, %s6641_s26  ;;  %v2633_v19 = vmul.f32 %v8876_v25, %v9048_v16  ;;  %v2474_v0 = vsub.f32 %v2253_v28, %v2304_v18  ;;  %v12749_v36 = vld [vmem:[#allocation101_spill] sm:$0xff] }
 0x7f3   : > { %v9122_v40 = vpop.eup %6191  ;;  %6203 = vpow2.f32 %v2503_v46  ;;  %v2354_v57 = vmul.f32 1.442695, %v2321_v17  ;;  %v2405_v62 = vmul.f32 1.442695, %v2372_v52  ;;  %v2456_v9 = vmul.f32 1.442695, %v2423_v10 }
 0x7f4   : > { %12747 = vst [vmem:[#allocation55_spill] sm:$0xff] %v9122_v40  ;;  %v9127_v59 = vpop.eup %6193  ;;  %v2539_v60 = vadd.f32 %v9122_v40, %v2522_v6  ;;  %v2651_v7 = vmul.f32 %v2634_v61, %v12748_v38  ;;  %v2587_v46 = vmul.f32 %v9094_v11, %v9056_v63  ;;  %v2588_v37 = vmul.f32 %v6190_v21, %v2554_v12  ;;  %v12751_v12 = vld [vmem:[#allocation98_spill] sm:$0xff] }
 0x7f5   : > { %v9131_v51 = vpop.eup %6195  ;;  %6205 = vpow2.f32 %v2354_v57  ;;  %v2632_v17 = vmul.f32 %v12749_v36, %v9005_v30  ;;  %v2507_v6 = vmul.f32 1.442695, %v2474_v0  ;;  %v2637_v28 = vmul.f32 %v8912_v58, %v9089_v20  ;;  %v12752_v10 = vld [vmem:[#allocation94_spill] sm:$0xff] }
 0x7f6   : > { %v9137_v52 = vpop.eup %6197  ;;  %v2556_v25 = vadd.f32 %v9127_v59, %v2539_v60  ;;  %6207 = vpow2.f32 %v2405_v62  ;;  %2691 = vrot.lane.b32.xlu2 %v2651_v7, %s6641_s26  ;;  %v2650_v61 = vmul.f32 %v2633_v19, %v12751_v12  ;;  %v2604_v0 = vsub.f32 2.0, %v2587_v46  ;;  %v12753_v19 = vld [vmem:[#allocation60_spill] sm:$0xff] }
 0x7f7   : > { %v9143_v18 = vpop.eup %6199  ;;  %v2523_v63 = vadd.f32 %v9137_v52, %v9131_v51  ;;  %6209 = vpow2.f32 %v2456_v9  ;;  %v2649_v57 = vmul.f32 %v2632_v17, %v12752_v10  ;;  %v2635_v58 = vmul.f32 %v8938_v42, %v9092_v29 }
 0x7f8   : > { %12750 = vst [vmem:[#allocation89_spill] sm:$0xff] %v9143_v18  ;;  %v6202_v36 = vpop.eup %6201  ;;  %6211 = vrcp.f32 %v2556_v25  ;;  %v9156_v62 = vmul.f32 %v9074_v8, %v2606_v22  ;;  %v2654_v40 = vmul.f32 %v2637_v28, %v12753_v19  ;;  %v2605_v38 = vsub.f32 2.0, %v2588_v37 }
 0x7f9   : > { %v9149_v60 = vpop.eup %6203  ;;  %v2540_v7 = vadd.f32 %v9143_v18, %v2523_v63  ;;  %2687 = vrot.lane.b32.xlu0 %v2649_v57, %s6641_s26  ;;  %v2592_v9 = vmul.f32 %v6202_v36, %v2558_v23  ;;  %6213 = vpow2.f32 %v2507_v6  ;;  %v2636_v46 = vmul.f32 %v8967_v43, %v9108_v27  ;;  %v12755_v23 = vld [vmem:[#allocation50_spill] sm:$0xff]  ;;  %v12756_v18 = vld [vmem:[#allocation104_spill] sm:$0xff] }
 0x7fa   : > { %2689 = vrot.lane.b32.xlu1 %v2650_v61, %s6641_s26  ;;  %v9168_v42 = vmul.f32 %v9094_v11, %v2604_v0  ;;  %v2652_v22 = vmul.f32 %v2635_v58, %v12755_v23  ;;  %v2640_v28 = vmul.f32 %v8986_v1, %v9156_v62  ;;  %v9175_v43 = vmul.f32 %v6190_v21, %v2605_v38 }
 0x7fb   : > { %v6206_v17 = vpop.eup %6205  ;;  %v2557_v12 = vadd.f32 %v9149_v60, %v2540_v7  ;;  %v2609_v6 = vsub.f32 2.0, %v2592_v9  ;;  %v2653_v11 = vmul.f32 %v2636_v46, %v12756_v18  ;;  %v12758_v46 = vld [vmem:[#allocation111_spill] sm:$0xff] }
 0x7fc   : > { %v9163_v63 = vpop.eup %6207  ;;  %v2638_v58 = vmul.f32 %v9013_v14, %v9168_v42  ;;  %v2639_v38 = vmul.f32 %v9045_v44, %v9175_v43 }
 0x7fd   : > { %12754 = vst [vmem:[#allocation69_spill] sm:$0xff] %v9163_v63  ;;  %v9165_v57 = vpop.eup %6209  ;;  %6215 = vrcp.f32 %v2557_v12  ;;  %v2525_v8 = vadd.f32 %v9163_v63, %v6206_v17  ;;  %v9182_v9 = vmul.f32 %v6202_v36, %v2609_v6  ;;  %v12759_v36 = vld [vmem:[#allocation43_spill] sm:$0xff] }
 0x7fe   : > { %v6212_v37 = vpop.eup %6211  ;;  %2697 = vrot.lane.b32.xlu2 %v2654_v40, %s6641_s26  ;;  %v12757_v40 = vld [vmem:[#allocation52_spill] sm:$0xff]  ;;  %v2656_v6 = vmul.f32 %v2639_v38, %v12759_v36 }
 0x7ff   : > { %v2590_v61 = vmul.f32 %v6212_v37, %v2556_v25  ;;  %v2542_v7 = vadd.f32 %v9165_v57, %v2525_v8  ;;  %v6214_v0 = vpop.eup %6213  ;;  %v2657_v63 = vmul.f32 %v2640_v28, %v12757_v40  ;;  %v2655_v8 = vmul.f32 %v2638_v58, %v12758_v46  ;;  %v12761_v58 = vld [vmem:[#allocation61_spill] sm:$0xff]  ;;  %v12762_v38 = vld [vmem:[#allocation108_spill] sm:$0xff] }
 0x800   : > { %v2643_v14 = vmul.f32 %v9076_v56, %v9182_v9 }
 0x801   : > { %v2607_v19 = vsub.f32 2.0, %v2590_v61  ;;  %v2559_v39 = vadd.f32 %v6214_v0, %v2542_v7  ;;  %2693 = vrot.lane.b32.xlu0 %v2652_v22, %s6641_s26  ;;  %v9199_v61 = vmul.f32 %v8903_v33, %v9048_v16  ;;  %v9210_v7 = vmul.f32 %v8980_v2, %v9108_v27 }
 0x802   : > { %2695 = vrot.lane.b32.xlu1 %v2653_v11, %s6641_s26  ;;  %v9214_v11 = vmul.f32 %v8953_v49, %v9092_v29  ;;  %v9228_v2 = vmul.f32 %v9038_v4, %v9168_v42  ;;  %v9232_v49 = vmul.f32 %v9002_v45, %v9156_v62 }
 0x803   : > { %v6216_v1 = vpop.eup %6215  ;;  %6217 = vrcp.f32 %v2559_v39  ;;  %v9188_v25 = vmul.f32 %v6212_v37, %v2607_v19  ;;  %v12760_v37 = vld [vmem:[#allocation110_spill] sm:$0xff] }
 0x804   : > { %v2591_v21 = vmul.f32 %v6216_v1, %v2557_v12 }
 0x805   : > { %v2641_v12 = vmul.f32 %v9105_v48, %v9188_v25  ;;  %v9223_v48 = vmul.f32 %v8927_v34, %v9089_v20  ;;  %v12763_v34 = vld [vmem:[#allocation34_spill] sm:$0xff]  ;;  %v9248_v45 = vmul.f32 %v9127_v59, %v9188_v25  ;;  %v9266_v59 = vmul.f32 %v8972_v13, %v9108_v27  ;;  %v12767_v13 = vld [vmem:[#allocation88_spill] sm:$0xff] }
 0x806   : > { %v2608_v22 = vsub.f32 2.0, %v2591_v21  ;;  %2703 = vrot.lane.b32.xlu2 %v2657_v63, %s6641_s26  ;;  %v2660_v63 = vmul.f32 %v2643_v14, %v12760_v37  ;;  %v9252_v14 = vmul.f32 %v8941_v26, %v9092_v29  ;;  %v9270_v26 = vmul.f32 %v9052_v24, %v9175_v43 }
 0x807   : > { %v9287_v24 = vmul.f32 %v9081_v47, %v9182_v9  ;;  %v12772_v47 = vld [vmem:[#allocation116_spill] sm:$0xff] }
 0x808   : > { %v9195_v28 = vmul.f32 %v6216_v1, %v2608_v22  ;;  %v2658_v1 = vmul.f32 %v2641_v12, %v12761_v58 }
 0x809   : > { %v6218_v44 = vpop.eup %6217  ;;  %2699 = vrot.lane.b32.xlu0 %v2655_v8, %s6641_s26  ;;  %v2799_v8 = vmul.f32 %v12763_v34, %v8962_v32  ;;  %12768 = vst [vmem:[#allocation101_spill] sm:$0xff] %v9287_v24 }
 0x80a   : > { %v2593_v19 = vmul.f32 %v6218_v44, %v2559_v39  ;;  %2701 = vrot.lane.b32.xlu1 %v2656_v6, %s6641_s26  ;;  %v2642_v56 = vmul.f32 %v9131_v51, %v9195_v28  ;;  %v9219_v39 = vmul.f32 %v9068_v55, %v9175_v43  ;;  %v9237_v55 = vmul.f32 %v9100_v35, %v9182_v9  ;;  %v12764_v6 = vld [vmem:[#allocation93_spill] sm:$0xff] }
 0x80b   : > { %v9244_v4 = vmul.f32 %v9149_v60, %v9195_v28  ;;  %v9257_v35 = vmul.f32 %v9018_v41, %v9168_v42  ;;  %v2798_v60 = vmul.f32 %v12764_v6, %v8893_v15  ;;  %v9274_v41 = vmul.f32 %v8992_v31, %v9156_v62 }
 0x80c   : > { %v2610_v33 = vsub.f32 2.0, %v2593_v19  ;;  %v2659_v21 = vmul.f32 %v2642_v56, %v12762_v38  ;;  %v12766_v19 = vld [vmem:[#allocation59_spill] sm:$0xff]  ;;  %v2805_v6 = vmul.f32 %v12772_v47, %v9092_v29  ;;  %v12779_v29 = vld [vmem:[#allocation98_spill] sm:$0xff] }
 0x80d   : > { %v2815_v56 = vmul.f32 %v2798_v60, %v12737_v54  ;;  %v12773_v60 = vld [vmem:[#allocation90_spill] sm:$0xff]  ;;  %v12781_v47 = vld [vmem:[#allocation103_spill] sm:$0xff] }
 0x80e   : > { %v2627_v51 = vmul.f32 %v6218_v44, %v2610_v33  ;;  %2709 = vrot.lane.b32.xlu2 %v2660_v63, %s6641_s26  ;;  %v12765_v44 = vld [vmem:[#allocation115_spill] sm:$0xff]  ;;  %v2802_v63 = vmul.f32 %v12766_v19, %v9005_v30  ;;  %v12774_v19 = vld [vmem:[#allocation92_spill] sm:$0xff] }
 0x810   : > { %v2644_v22 = vmul.f32 %v6206_v17, %v2627_v51  ;;  %v2816_v17 = vmul.f32 %v2799_v8, %v12743_v53  ;;  %v9280_v33 = vmul.f32 %v6214_v0, %v2627_v51  ;;  %v2819_v31 = vmul.f32 %v2802_v63, %v12752_v10 }
 0x811   : > { %2705 = vrot.lane.b32.xlu0 %v2658_v1, %s6641_s26  ;;  %v2800_v1 = vmul.f32 %v12767_v13, %v8934_v3  ;;  %v9295_v0 = vmul.f32 %v9114_v50, %v9188_v25  ;;  %v9299_v8 = vmul.f32 %v9137_v52, %v9195_v28  ;;  %v2803_v63 = vmul.f32 %v12774_v19, %v9048_v16  ;;  %v12776_v13 = vld [vmem:[#allocation81_spill] sm:$0xff] }
 0x812   : > { %2707 = vrot.lane.b32.xlu1 %v2659_v21, %s6641_s26  ;;  %v2661_v12 = vmul.f32 %v2644_v22, %v12765_v44  ;;  %v12769_v21 = vld [vmem:[#allocation102_spill] sm:$0xff]  ;;  %v12771_v22 = vld [vmem:[#allocation87_spill] sm:$0xff]  ;;  %v2822_v50 = vmul.f32 %v2805_v6, %v12755_v23  ;;  %v12782_v6 = vld [vmem:[#allocation117_spill] sm:$0xff] }
 0x813   : > { %v2801_v34 = vmul.f32 %v12769_v21, %v8949_v5  ;;  %12770 = vst [vmem:[#allocation34_spill] sm:$0xff] %v9295_v0  ;;  %v2820_v21 = vmul.f32 %v2803_v63, %v12779_v29  ;;  %v2806_v19 = vmul.f32 %v12782_v6, %v9108_v27  ;;  %v12786_v27 = vld [vmem:[#allocation121_spill] sm:$0xff]  ;;  %v12787_v6 = vld [vmem:[#allocation118_spill] sm:$0xff] }
 0x815   : > { %v2823_v63 = vmul.f32 %v2806_v19, %v12756_v18 }
 0x816   : > { %2851 = vrot.lane.b32.xlu2 %v2816_v17, %s6640_s25  ;;  %v2817_v17 = vmul.f32 %v2800_v1, %v12771_v22  ;;  %v12777_v1 = vld [vmem:[#allocation69_spill] sm:$0xff] }
 0x819   : > { %2711 = vrot.lane.b32.xlu0 %v2661_v12, %s6641_s26  ;;  %v2818_v12 = vmul.f32 %v2801_v34, %v12773_v60  ;;  %v12780_v34 = vld [vmem:[#allocation120_spill] sm:$0xff] }
 0x81a   : > { %2849 = vrot.lane.b32.xlu1 %v2815_v56, %s6640_s25  ;;  %v12775_v56 = vld [vmem:[#allocation119_spill] sm:$0xff] }
 0x81b   : > { %v2804_v52 = vmul.f32 %v12776_v13, %v12775_v56 }
 0x81e   : > { %2857 = vrot.lane.b32.xlu2 %v2819_v31, %s6640_s25  ;;  %v9314_v31 = vmul.f32 %v12777_v1, %v2627_v51 }
 0x820   : > { %12778 = vst [vmem:[#allocation93_spill] sm:$0xff] %v9314_v31 }
 0x821   : > { %2853 = vrot.lane.b32.xlu0 %v2817_v17, %s6640_s25  ;;  %v2808_v17 = vmul.f32 %v12780_v34, %v9168_v42  ;;  %v12784_v42 = vld [vmem:[#allocation55_spill] sm:$0xff] }
 0x822   : > { %2855 = vrot.lane.b32.xlu1 %v2818_v12, %s6640_s25  ;;  %v2821_v12 = vmul.f32 %v2804_v52, %v12781_v47  ;;  %v2811_v34 = vmul.f32 %v12784_v42, %v9188_v25  ;;  %v12785_v52 = vld [vmem:[#allocation60_spill] sm:$0xff]  ;;  %v2814_v25 = vmul.f32 %v9165_v57, %v2627_v51  ;;  %v12789_v42 = vld [vmem:[#allocation122_spill] sm:$0xff] }
 0x823   : > { %v2825_v13 = vmul.f32 %v2808_v17, %v12758_v46  ;;  %v12790_v57 = vld [vmem:[#allocation114_spill] sm:$0xff] }
 0x824   : > { %v2828_v17 = vmul.f32 %v2811_v34, %v12761_v58  ;;  %v2919_v51 = vmul.f32 %v12790_v57, %v8934_v3  ;;  %v12795_v57 = vld [vmem:[#allocation106_spill] sm:$0xff] }
 0x826   : > { %2863 = vrot.lane.b32.xlu2 %v2822_v50, %s6640_s25  ;;  %v12783_v50 = vld [vmem:[#allocation107_spill] sm:$0xff] }
 0x827   : > { %v2807_v1 = vmul.f32 %v12783_v50, %v9089_v20  ;;  %v2810_v50 = vmul.f32 %v12787_v6, %v9156_v62  ;;  %v2813_v62 = vmul.f32 %v12789_v42, %v9182_v9  ;;  %v12792_v9 = vld [vmem:[#allocation68_spill] sm:$0xff] }
 0x829   : > { %2859 = vrot.lane.b32.xlu0 %v2820_v21, %s6640_s25  ;;  %v2824_v21 = vmul.f32 %v2807_v1, %v12785_v52  ;;  %v12788_v1 = vld [vmem:[#allocation89_spill] sm:$0xff] }
 0x82a   : > { %2861 = vrot.lane.b32.xlu1 %v2821_v12, %s6640_s25  ;;  %v2809_v12 = vmul.f32 %v12786_v27, %v9175_v43  ;;  %v2812_v43 = vmul.f32 %v12788_v1, %v9195_v28  ;;  %v12791_v28 = vld [vmem:[#allocation97_spill] sm:$0xff]  ;;  %v2939_v1 = vmul.f32 %v9199_v61, %v12779_v29  ;;  %v2942_v61 = vmul.f32 %v9210_v7, %v12756_v18 }
 0x82b   : > { %v2917_v27 = vmul.f32 %v12791_v28, %v8893_v15  ;;  %v2943_v7 = vmul.f32 %v9223_v48, %v12785_v52  ;;  %v2946_v48 = vmul.f32 %v9232_v49, %v12757_v40  ;;  %v2950_v49 = vmul.f32 %v9280_v33, %v12765_v44  ;;  %v12801_v33 = vld [vmem:[#allocation45_spill] sm:$0xff] }
 0x82c   : > { %v2826_v19 = vmul.f32 %v2809_v12, %v12759_v36  ;;  %v2829_v34 = vmul.f32 %v2812_v43, %v12762_v38  ;;  %v2936_v12 = vmul.f32 %v2919_v51, %v12771_v22  ;;  %v12794_v43 = vld [vmem:[#allocation96_spill] sm:$0xff]  ;;  %v2923_v51 = vmul.f32 %v12795_v57, %v12775_v56 }
 0x82d   : > { %v2934_v6 = vmul.f32 %v2917_v27, %v12737_v54 }
 0x82e   : > { %2869 = vrot.lane.b32.xlu2 %v2825_v13, %s6640_s25  ;;  %v2827_v13 = vmul.f32 %v2810_v50, %v12757_v40 }
 0x831   : > { %2865 = vrot.lane.b32.xlu0 %v2823_v63, %s6640_s25  ;;  %v2831_v63 = vmul.f32 %v2814_v25, %v12765_v44  ;;  %v12793_v25 = vld [vmem:[#allocation95_spill] sm:$0xff] }
 0x832   : > { %2867 = vrot.lane.b32.xlu1 %v2824_v21, %s6640_s25  ;;  %v2830_v21 = vmul.f32 %v2813_v62, %v12760_v37 }
 0x836   : > { %2875 = vrot.lane.b32.xlu2 %v2828_v17, %s6640_s25  ;;  %v2918_v17 = vmul.f32 %v12792_v9, %v8962_v32  ;;  %v2945_v9 = vmul.f32 %v9219_v39, %v12759_v36 }
 0x839   : > { %2871 = vrot.lane.b32.xlu0 %v2826_v19, %s6640_s25  ;;  %v2935_v19 = vmul.f32 %v2918_v17, %v12743_v53 }
 0x83a   : > { %2873 = vrot.lane.b32.xlu1 %v2827_v13, %s6640_s25  ;;  %v2920_v13 = vmul.f32 %v12793_v25, %v8949_v5 }
 0x83c   : > { %v2937_v42 = vmul.f32 %v2920_v13, %v12773_v60 }
 0x83e   : > { %2881 = vrot.lane.b32.xlu2 %v2831_v63, %s6640_s25  ;;  %v9364_v50 = vpop.permute.xlu2 %2683  ;;  %v2921_v63 = vmul.f32 %v12794_v43, %v9005_v30  ;;  %v2949_v43 = vmul.f32 %v9237_v55, %v12760_v37  ;;  %v12800_v55 = vld [vmem:[#allocation31_spill] sm:$0xff] }
 0x841   : > { %2877 = vrot.lane.b32.xlu0 %v2829_v34, %s6640_s25  ;;  %v2938_v34 = vmul.f32 %v2921_v63, %v12752_v10 }
 0x842   : > { %2879 = vrot.lane.b32.xlu1 %v2830_v21, %s6640_s25  ;;  %v2940_v21 = vmul.f32 %v2923_v51, %v12781_v47  ;;  %v12799_v51 = vld [vmem:[#allocation22_spill] sm:$0xff] }
 0x846   : > { %2972 = vrot.lane.b32.xlu2 %v2936_v12, %s6639_s24  ;;  %v2941_v12 = vmul.f32 %v9214_v11, %v12755_v23  ;;  %v2948_v11 = vmul.f32 %v9244_v4, %v12762_v38  ;;  %v12797_v4 = vld [vmem:[#allocation33_spill] sm:$0xff] }
 0x849   : > { %2968 = vrot.lane.b32.xlu0 %v2934_v6, %s6639_s24  ;;  %v2944_v6 = vmul.f32 %v9228_v2, %v12758_v46  ;;  %v2947_v2 = vmul.f32 %v9248_v45, %v12761_v58 }
 0x84a   : > { %2970 = vrot.lane.b32.xlu1 %v2935_v19, %s6639_s24 }
 0x84e   : > { %2978 = vrot.lane.b32.xlu2 %v2939_v1, %s6639_s24 }
 0x850   : > { %v9377_v62 = vpop.permute.xlu2 %2691 }
 0x851   : > { %2974 = vrot.lane.b32.xlu0 %v2937_v42, %s6639_s24 }
 0x852   : > { %2976 = vrot.lane.b32.xlu1 %v2938_v34, %s6639_s24  ;;  %v12798_v34 = vld [vmem:[#allocation39_spill] sm:$0xff] }
 0x853   : > { %v9390_v27 = vpop.permute.xlu0 %2679 }
 0x856   : > { %2984 = vrot.lane.b32.xlu2 %v2942_v61, %s6639_s24 }
 0x858   : > { %v9388_v28 = vpop.permute.xlu2 %2697 }
 0x859   : > { %2980 = vrot.lane.b32.xlu0 %v2940_v21, %s6639_s24 }
 0x85a   : > { %2982 = vrot.lane.b32.xlu1 %v2941_v12, %s6639_s24 }
 0x85e   : > { %2990 = vrot.lane.b32.xlu2 %v2945_v9, %s6639_s24  ;;  %v12802_v9 = vld [vmem:[#allocation28_spill] sm:$0xff] }
 0x860   : > { %v9401_v17 = vpop.permute.xlu2 %2703 }
 0x861   : > { %2986 = vrot.lane.b32.xlu0 %v2943_v7, %s6639_s24  ;;  %v9406_v19 = vpop.permute.xlu0 %2685  ;;  %v12803_v7 = vld [vmem:[#allocation41_spill] sm:$0xff] }
 0x862   : > { %2988 = vrot.lane.b32.xlu1 %v2944_v6, %s6639_s24 }
 0x864   : > { %v9411_v39 = vpop.permute.xlu1 %2681 }
 0x866   : > { %2996 = vrot.lane.b32.xlu2 %v2948_v11, %s6639_s24 }
 0x868   : > { %v9416_v25 = vpop.permute.xlu2 %2709 }
 0x869   : > { %12796 = vst [vmem:[#allocation59_spill] sm:$0xff] %v9416_v25  ;;  %2992 = vrot.lane.b32.xlu0 %v2946_v48, %s6639_s24  ;;  %v12804_v48 = vld [vmem:[#allocation53_spill] sm:$0xff] }
 0x86a   : > { %2994 = vrot.lane.b32.xlu1 %v2947_v2, %s6639_s24 }
 0x86b   : > { %v9422_v13 = vpop.permute.xlu0 %2687 }
 0x86c   : > { %v2690_v1 = vpop.permute.xlu1 %2689 }
 0x86e   : > { %3088 = vrot.lane.b32.xlu2 %v12797_v4, %s6639_s24  ;;  %v12813_v4 = vld [vmem:[#allocation113_spill] sm:$0xff] }
 0x86f   : > { %v2749_v31 = vmul.f32 %v12813_v4, %v8934_v3  ;;  %v12817_v3 = vld [vmem:[#allocation112_spill] sm:$0xff] }
 0x870   : > { %v9428_v63 = vpop.permute.xlu2 %2851  ;;  %v2752_v4 = vmul.f32 %v12817_v3, %v9048_v16 }
 0x871   : > { %2998 = vrot.lane.b32.xlu0 %v2949_v43, %s6639_s24  ;;  %v12805_v43 = vld [vmem:[#allocation40_spill] sm:$0xff] }
 0x872   : > { %3000 = vrot.lane.b32.xlu1 %v2950_v49, %s6639_s24  ;;  %v12806_v49 = vld [vmem:[#allocation48_spill] sm:$0xff] }
 0x873   : > { %v9434_v45 = vpop.permute.xlu0 %2693 }
 0x874   : > { %v2696_v42 = vpop.permute.xlu1 %2695 }
 0x876   : > { %3094 = vrot.lane.b32.xlu2 %v12798_v34, %s6639_s24  ;;  %v12808_v34 = vld [vmem:[#allocation63_spill] sm:$0xff] }
 0x878   : > { %v9438_v57 = vpop.permute.xlu2 %2857 }
 0x879   : > { %3090 = vrot.lane.b32.xlu0 %v12799_v51, %s6639_s24 }
 0x87a   : > { %3092 = vrot.lane.b32.xlu1 %v12800_v55, %s6639_s24  ;;  %v12810_v55 = vld [vmem:[#allocation47_spill] sm:$0xff] }
 0x87b   : > { %v9444_v61 = vpop.permute.xlu0 %2699 }
 0x87c   : > { %v2702_v21 = vpop.permute.xlu1 %2701 }
 0x87e   : > { %3100 = vrot.lane.b32.xlu2 %v12801_v33, %s6639_s24 }
 0x880   : > { %v9448_v12 = vpop.permute.xlu2 %2863 }
 0x881   : > { %3096 = vrot.lane.b32.xlu0 %v12802_v9, %s6639_s24 }
 0x882   : > { %3098 = vrot.lane.b32.xlu1 %v12803_v7, %s6639_s24 }
 0x883   : > { %v9454_v6 = vpop.permute.xlu0 %2705 }
 0x884   : > { %v9456_v11 = vpop.permute.xlu1 %2707 }
 0x886   : > { %3106 = vrot.lane.b32.xlu2 %v12804_v48, %s6639_s24  ;;  %v12811_v48 = vld [vmem:[#allocation57_spill] sm:$0xff] }
 0x888   : > { %v9460_v2 = vpop.permute.xlu2 %2869 }
 0x889   : > { %3102 = vrot.lane.b32.xlu0 %v12805_v43, %s6639_s24 }
 0x88a   : > { %3104 = vrot.lane.b32.xlu1 %v12806_v49, %s6639_s24  ;;  %v12812_v49 = vld [vmem:[#allocation36_spill] sm:$0xff] }
 0x88b   : > { %v9466_v33 = vpop.permute.xlu0 %2711 }
 0x88c   : > { %12807 = vst [vmem:[#allocation88_spill] sm:$0xff] %v9466_v33  ;;  %v9468_v9 = vpop.permute.xlu1 %2849  ;;  %v12815_v33 = vld [vmem:[#allocation56_spill] sm:$0xff] }
 0x88e   : > { %3112 = vrot.lane.b32.xlu2 %v12808_v34, %s6639_s24  ;;  %v2732_v34 = vadd.f32 %v9364_v50, %v12771_v22  ;;  %v2735_v50 = vadd.f32 %v2690_v1, %v12779_v29  ;;  %v2738_v1 = vadd.f32 %v2696_v42, %v12756_v18  ;;  %v12819_v42 = vld [vmem:[#allocation99_spill] sm:$0xff] }
 0x890   : > { %v9472_v51 = vpop.permute.xlu2 %2875 }
 0x891   : > { %12809 = vst [vmem:[#allocation102_spill] sm:$0xff] %v9472_v51  ;;  %3108 = vrot.lane.b32.xlu0 %v12810_v55, %s6639_s24  ;;  %v2766_v55 = vmul.f32 %v2749_v31, %v12771_v22  ;;  %v2769_v31 = vmul.f32 %v2752_v4, %v12779_v29 }
 0x892   : > { %3110 = vrot.lane.b32.xlu1 %v12811_v48, %s6639_s24  ;;  %v12816_v48 = vld [vmem:[#allocation29_spill] sm:$0xff] }
 0x893   : > { %v2854_v7 = vpop.permute.xlu0 %2853  ;;  %v2783_v51 = vadd.f32 %v2766_v55, %v2732_v34  ;;  %v2786_v34 = vadd.f32 %v2769_v31, %v2735_v50 }
 0x894   : > { %v9478_v43 = vpop.permute.xlu1 %2855 }
 0x895   : > { %v2902_v25 = vadd.f32 %v2854_v7, %v2783_v51 }
 0x896   : > { %3118 = vrot.lane.b32.xlu2 %v12812_v49, %s6639_s24 }
 0x898   : > { %v9484_v24 = vpop.permute.xlu2 %2881 }
 0x899   : > { %12814 = vst [vmem:[#allocation116_spill] sm:$0xff] %v9484_v24  ;;  %3114 = vrot.lane.b32.xlu0 %v12815_v33, %s6639_s24  ;;  %v12818_v33 = vld [vmem:[#allocation25_spill] sm:$0xff] }
 0x89a   : > { %3116 = vrot.lane.b32.xlu1 %v12816_v48, %s6639_s24 }
 0x89b   : > { %v2860_v44 = vpop.permute.xlu0 %2859 }
 0x89c   : > { %v9493_v49 = vpop.permute.xlu1 %2861  ;;  %v2905_v51 = vadd.f32 %v2860_v44, %v2786_v34  ;;  %v2747_v34 = vmul.f32 %v12819_v42, %v8893_v15 }
 0x89e   : > { %v2764_v15 = vmul.f32 %v2747_v34, %v12737_v54 }
 0x8a0   : > { %v2973_v24 = vpop.permute.xlu2 %2972 }
 0x8a1   : > { %v3021_v37 = vadd.f32 %v2973_v24, %v2902_v25  ;;  %3120 = vrot.lane.b32.xlu0 %v12818_v33, %s6639_s24  ;;  %v2772_v25 = vmul.f32 %v9266_v59, %v12756_v18  ;;  %v2775_v59 = vmul.f32 %v9270_v26, %v12759_v36 }
 0x8a3   : > { %v3038_v22 = vmul.f32 0.5, %v3021_v37  ;;  %v2866_v48 = vpop.permute.xlu0 %2865  ;;  %v2789_v37 = vadd.f32 %v2772_v25, %v2738_v1 }
 0x8a4   : > { %v9501_v0 = vpop.permute.xlu1 %2867 }
 0x8a5   : > { %v3055_v55 = vpack.c.bf16 %v3038_v22, %v3038_v22  ;;  %v2908_v50 = vadd.f32 %v2866_v48, %v2789_v37  ;;  %v2741_v22 = vadd.f32 %v2702_v21, %v12759_v36  ;;  %v12820_v48 = vld [vmem:[#allocation109_spill] sm:$0xff]  ;;  %v2731_v21 = vadd.f32 %v9411_v39, %v12743_v53 }
 0x8a6   : > { %v2748_v1 = vmul.f32 %v12820_v48, %v8962_v32  ;;  %v2778_v39 = vmul.f32 %v9299_v8, %v12762_v38 }
 0x8a7   : > { %3073 = vst.msk [vmem:[%s8287_s30 + $0x8] sm:$0xf] %vm3070_vm3, %v3055_v55 }
 0x8a8   : > { %v2979_v16 = vpop.permute.xlu2 %2978  ;;  %v2765_v26 = vmul.f32 %v2748_v1, %v12743_v53 }
 0x8a9   : > { %v3024_v24 = vadd.f32 %v2979_v16, %v2905_v51  ;;  %v2730_v16 = vadd.f32 %v9390_v27, %v12737_v54  ;;  %v2744_v27 = vadd.f32 %v9456_v11, %v12762_v38  ;;  %v12822_v11 = vld [vmem:[#allocation105_spill] sm:$0xff] }
 0x8ab   : > { %v3041_v7 = vmul.f32 0.5, %v3024_v24  ;;  %v2872_v3 = vpop.permute.xlu0 %2871  ;;  %v2792_v24 = vadd.f32 %v2775_v59, %v2741_v22  ;;  %v2733_v59 = vadd.f32 %v9406_v19, %v12773_v60  ;;  %v2795_v1 = vadd.f32 %v2778_v39, %v2744_v27 }
 0x8ac   : > { %v9508_v33 = vpop.permute.xlu1 %2873 }
 0x8ad   : > { %v3058_v4 = vpack.c.bf16 %v3041_v7, %v3041_v7  ;;  %v2911_v37 = vadd.f32 %v2872_v3, %v2792_v24 }
 0x8af   : > { %3076 = vst.msk [vmem:[%s8287_s30 + $0x14] sm:$0xf] %vm3070_vm3, %v3058_v4  ;;  %v2781_v4 = vadd.f32 %v2764_v15, %v2730_v16  ;;  %v2751_v16 = vmul.f32 %v12822_v11, %v9005_v30 }
 0x8b0   : > { %v2985_v44 = vpop.permute.xlu2 %2984 }
 0x8b1   : > { %v3027_v31 = vadd.f32 %v2985_v44, %v2908_v50  ;;  %v2782_v44 = vadd.f32 %v2765_v26, %v2731_v21  ;;  %v2900_v22 = vadd.f32 %v9468_v9, %v2781_v4  ;;  %v2768_v19 = vmul.f32 %v2751_v16, %v12752_v10 }
 0x8b3   : > { %v3044_v55 = vmul.f32 0.5, %v3027_v31  ;;  %v2878_v51 = vpop.permute.xlu0 %2877  ;;  %v12821_v31 = vld [vmem:[#allocation91_spill] sm:$0xff] }
 0x8b4   : > { %v9521_v7 = vpop.permute.xlu1 %2879  ;;  %v2750_v42 = vmul.f32 %v12821_v31, %v8949_v5  ;;  %v2734_v5 = vadd.f32 %v9422_v13, %v12752_v10  ;;  %v2914_v15 = vadd.f32 %v2878_v51, %v2795_v1  ;;  %v12823_v13 = vld [vmem:[#allocation74_spill] sm:$0xff]  ;;  %v2736_v31 = vadd.f32 %v9377_v62, %v12781_v47  ;;  %v12824_v1 = vld [vmem:[#allocation100_spill] sm:$0xff] }
 0x8b5   : > { %v3061_v25 = vpack.c.bf16 %v3044_v55, %v3044_v55  ;;  %v2901_v55 = vadd.f32 %v9428_v63, %v2782_v44  ;;  %v2771_v62 = vmul.f32 %v9252_v14, %v12755_v23  ;;  %v2739_v14 = vadd.f32 %v9388_v28, %v12785_v52 }
 0x8b6   : > { %v2767_v8 = vmul.f32 %v2750_v42, %v12773_v60 }
 0x8b7   : > { %3079 = vst.msk [vmem:[%s8287_s30 + $0x20] sm:$0xf] %vm3070_vm3, %v3061_v25 }
 0x8b8   : > { %v2991_v50 = vpop.permute.xlu2 %2990  ;;  %v2784_v63 = vadd.f32 %v2767_v8, %v2733_v59 }
 0x8b9   : > { %v3030_v32 = vadd.f32 %v2991_v50, %v2911_v37  ;;  %v2785_v50 = vadd.f32 %v2768_v19, %v2734_v5  ;;  %v2740_v19 = vadd.f32 %v9444_v61, %v12758_v46 }
 0x8ba   : > { %v2903_v27 = vadd.f32 %v9478_v43, %v2784_v63 }
 0x8bb   : > { %v3047_v3 = vmul.f32 0.5, %v3030_v32  ;;  %v2969_v34 = vpop.permute.xlu0 %2968  ;;  %v2753_v32 = vmul.f32 %v12823_v13, %v12775_v56  ;;  %v2904_v42 = vadd.f32 %v9438_v57, %v2785_v50 }
 0x8bc   : > { %v3019_v48 = vadd.f32 %v2969_v34, %v2900_v22  ;;  %v2971_v24 = vpop.permute.xlu1 %2970  ;;  %v2737_v34 = vadd.f32 %v9434_v45, %v12755_v23 }
 0x8bd   : > { %v3064_v9 = vpack.c.bf16 %v3047_v3, %v3047_v3  ;;  %v3020_v21 = vadd.f32 %v2971_v24, %v2901_v55  ;;  %v2770_v56 = vmul.f32 %v2753_v32, %v12781_v47 }
 0x8be   : > { %v3036_v25 = vmul.f32 0.5, %v3019_v48  ;;  %v2788_v45 = vadd.f32 %v2771_v62, %v2737_v34 }
 0x8bf   : > { %3082 = vst.msk [vmem:[%s8287_s30 + $0x2c] sm:$0xf] %vm3070_vm3, %v3064_v9  ;;  %v3037_v37 = vmul.f32 0.5, %v3020_v21  ;;  %v2787_v57 = vadd.f32 %v2770_v56, %v2736_v31  ;;  %v2756_v9 = vmul.f32 %v12824_v1, %v9089_v20  ;;  %v2743_v31 = vadd.f32 %v9454_v6, %v12761_v58 }
 0x8c0   : > { %v3053_v30 = vpack.c.bf16 %v3036_v25, %v3036_v25  ;;  %v2997_v26 = vpop.permute.xlu2 %2996  ;;  %v2907_v21 = vadd.f32 %v9448_v12, %v2788_v45  ;;  %v12829_v45 = vld [vmem:[#allocation115_spill] sm:$0xff] }
 0x8c1   : > { %v3033_v4 = vadd.f32 %v2997_v26, %v2914_v15  ;;  %v3054_v51 = vpack.c.bf16 %v3037_v37, %v3037_v37  ;;  %v2906_v5 = vadd.f32 %v9493_v49, %v2787_v57  ;;  %v2773_v49 = vmul.f32 %v2756_v9, %v12785_v52  ;;  %v12826_v57 = vld [vmem:[#allocation110_spill] sm:$0xff] }
 0x8c2   : > { %3071 = vst.msk [vmem:[%s8287_s30] sm:$0xf] %vm3070_vm3, %v3053_v30  ;;  %v2774_v37 = vmul.f32 %v9257_v35, %v12758_v46 }
 0x8c3   : > { %v3050_v44 = vmul.f32 0.5, %v3033_v4  ;;  %v2975_v22 = vpop.permute.xlu0 %2974  ;;  %3072 = vst.msk [vmem:[%s8287_s30 + $0x4] sm:$0xf] %vm3070_vm3, %v3054_v51  ;;  %v2790_v26 = vadd.f32 %v2773_v49, %v2739_v14  ;;  %v2742_v51 = vadd.f32 %v9401_v17, %v12757_v40 }
 0x8c4   : > { %v3022_v39 = vadd.f32 %v2975_v22, %v2903_v27  ;;  %v2977_v43 = vpop.permute.xlu1 %2976  ;;  %v2791_v27 = vadd.f32 %v2774_v37, %v2740_v19 }
 0x8c5   : > { %v3067_v3 = vpack.c.bf16 %v3050_v44, %v3050_v44  ;;  %v3023_v55 = vadd.f32 %v2977_v43, %v2904_v42  ;;  %v2909_v13 = vadd.f32 %v9501_v0, %v2790_v26  ;;  %v2776_v0 = vmul.f32 %v9274_v41, %v12757_v40 }
 0x8c6   : > { %v3039_v59 = vmul.f32 0.5, %v3022_v39  ;;  %v2910_v44 = vadd.f32 %v9460_v2, %v2791_v27 }
 0x8c7   : > { %3085 = vst.msk [vmem:[%s8287_s30 + $0x38] sm:$0xf] %vm3070_vm3, %v3067_v3  ;;  %v3040_v16 = vmul.f32 0.5, %v3023_v55  ;;  %v12825_v3 = vld [vmem:[#allocation34_spill] sm:$0xff]  ;;  %v2793_v17 = vadd.f32 %v2776_v0, %v2742_v51 }
 0x8c8   : > { %v3056_v11 = vpack.c.bf16 %v3039_v59, %v3039_v59  ;;  %v3089_v48 = vpop.permute.xlu2 %3088  ;;  %v2777_v43 = vmul.f32 %v12825_v3, %v12761_v58 }
 0x8c9   : > { %v3139_v24 = vsel %vm518_vm1, %v3089_v48, 0.0  ;;  %v3057_v8 = vpack.c.bf16 %v3040_v16, %v3040_v16  ;;  %v2912_v62 = vadd.f32 %v9508_v33, %v2793_v17  ;;  %v12828_v48 = vld [vmem:[#allocation102_spill] sm:$0xff]  ;;  %v12831_v33 = vld [vmem:[#allocation101_spill] sm:$0xff] }
 0x8ca   : > { %3074 = vst.msk [vmem:[%s8287_s30 + $0xc] sm:$0xf] %vm3070_vm3, %v3056_v11  ;;  %3140 = vadd.xlane.f32.xlu1 %v3139_v24  ;;  %v2794_v55 = vadd.f32 %v2777_v43, %v2743_v31  ;;  %v12827_v11 = vld [vmem:[#allocation59_spill] sm:$0xff] }
 0x8cb   : > { %v2981_v25 = vpop.permute.xlu0 %2980  ;;  %3075 = vst.msk [vmem:[%s8287_s30 + $0x10] sm:$0xf] %vm3070_vm3, %v3057_v8  ;;  %v2745_v16 = vadd.f32 %v12827_v11, %v12826_v57 }
 0x8cc   : > { %v3025_v15 = vadd.f32 %v2981_v25, %v2906_v5  ;;  %v2983_v20 = vpop.permute.xlu1 %2982  ;;  %v2913_v1 = vadd.f32 %v12828_v48, %v2794_v55  ;;  %v12830_v5 = vld [vmem:[#allocation88_spill] sm:$0xff]  ;;  %v2779_v25 = vmul.f32 %v12831_v33, %v12826_v57 }
 0x8cd   : > { %v3026_v30 = vadd.f32 %v2983_v20, %v2907_v21  ;;  %v2746_v8 = vadd.f32 %v12830_v5, %v12829_v45 }
 0x8ce   : > { %v3042_v63 = vmul.f32 0.5, %v3025_v15  ;;  %v12832_v15 = vld [vmem:[#allocation93_spill] sm:$0xff]  ;;  %v2796_v19 = vadd.f32 %v2779_v25, %v2745_v16 }
 0x8cf   : > { %v3043_v4 = vmul.f32 0.5, %v3026_v30  ;;  %v2780_v20 = vmul.f32 %v12832_v15, %v12829_v45  ;;  %v12836_v15 = vld [vmem:[#allocation70_spill] sm:$0xff] }
 0x8d0   : > { %v3059_v28 = vpack.c.bf16 %v3042_v63, %v3042_v63  ;;  %v3095_v12 = vpop.permute.xlu2 %3094 }
 0x8d1   : > { %v3148_v50 = vsel %vm518_vm1, %v3095_v12, 0.0  ;;  %v3060_v61 = vpack.c.bf16 %v3043_v4, %v3043_v4  ;;  %v2797_v26 = vadd.f32 %v2780_v20, %v2746_v8  ;;  %v12837_v20 = vld [vmem:[#allocation64_spill] sm:$0xff] }
 0x8d2   : > { %3077 = vst.msk [vmem:[%s8287_s30 + $0x18] sm:$0xf] %vm3070_vm3, %v3059_v28  ;;  %3149 = vadd.xlane.f32.xlu1 %v3148_v50  ;;  %v2915_v28 = vadd.f32 %v9521_v7, %v2796_v19  ;;  %v12833_v50 = vld [vmem:[#allocation116_spill] sm:$0xff]  ;;  %v12838_v19 = vld [vmem:[#allocation75_spill] sm:$0xff] }
 0x8d3   : > { %v2987_v32 = vpop.permute.xlu0 %2986  ;;  %3078 = vst.msk [vmem:[%s8287_s30 + $0x1c] sm:$0xf] %vm3070_vm3, %v3060_v61  ;;  %v2916_v27 = vadd.f32 %v12833_v50, %v2797_v26  ;;  %v12843_v26 = vld [vmem:[#allocation73_spill] sm:$0xff]  ;;  %v12846_v50 = vld [vmem:[#allocation84_spill] sm:$0xff] }
 0x8d4   : > { %v3028_v35 = vadd.f32 %v2987_v32, %v2909_v13  ;;  %v2989_v22 = vpop.permute.xlu1 %2988 }
 0x8d5   : > { %v3029_v39 = vadd.f32 %v2989_v22, %v2910_v44 }
 0x8d6   : > { %v3045_v42 = vmul.f32 0.5, %v3028_v35 }
 0x8d7   : > { %v3046_v2 = vmul.f32 0.5, %v3029_v39 }
 0x8d8   : > { %v3062_v34 = vpack.c.bf16 %v3045_v42, %v3045_v42  ;;  %v3101_v56 = vpop.permute.xlu2 %3100 }
 0x8d9   : > { %v3157_v59 = vsel %vm518_vm1, %v3101_v56, 0.0  ;;  %v3063_v6 = vpack.c.bf16 %v3046_v2, %v3046_v2 }
 0x8da   : > { %3080 = vst.msk [vmem:[%s8287_s30 + $0x24] sm:$0xf] %vm3070_vm3, %v3062_v34  ;;  %3158 = vadd.xlane.f32.xlu1 %v3157_v59 }
 0x8db   : > { %v2993_v41 = vpop.permute.xlu0 %2992  ;;  %3081 = vst.msk [vmem:[%s8287_s30 + $0x28] sm:$0xf] %vm3070_vm3, %v3063_v6 }
 0x8dc   : > { %v3031_v9 = vadd.f32 %v2993_v41, %v2912_v62  ;;  %v2995_v24 = vpop.permute.xlu1 %2994 }
 0x8dd   : > { %v3032_v21 = vadd.f32 %v2995_v24, %v2913_v1  ;;  %v12834_v24 = vld [vmem:[#allocation72_spill] sm:$0xff] }
 0x8de   : > { %v3048_v14 = vmul.f32 0.5, %v3031_v9 }
 0x8df   : > { %v3049_v63 = vmul.f32 0.5, %v3032_v21 }
 0x8e0   : > { %v3065_v49 = vpack.c.bf16 %v3048_v14, %v3048_v14  ;;  %v3107_v30 = vpop.permute.xlu2 %3106  ;;  %v12835_v14 = vld [vmem:[#allocation67_spill] sm:$0xff] }
 0x8e1   : > { %v3166_v37 = vsel %vm518_vm1, %v3107_v30, 0.0  ;;  %v3066_v4 = vpack.c.bf16 %v3049_v63, %v3049_v63  ;;  %v12840_v63 = vld [vmem:[#allocation77_spill] sm:$0xff]  ;;  %v12841_v30 = vld [vmem:[#allocation66_spill] sm:$0xff] }
 0x8e2   : > { %3083 = vst.msk [vmem:[%s8287_s30 + $0x30] sm:$0xf] %vm3070_vm3, %v3065_v49  ;;  %3167 = vadd.xlane.f32.xlu1 %v3166_v37  ;;  %v12839_v49 = vld [vmem:[#allocation65_spill] sm:$0xff]  ;;  %v12842_v37 = vld [vmem:[#allocation71_spill] sm:$0xff] }
 0x8e3   : > { %v2999_v12 = vpop.permute.xlu0 %2998  ;;  %3084 = vst.msk [vmem:[%s8287_s30 + $0x34] sm:$0xf] %vm3070_vm3, %v3066_v4  ;;  %v12845_v4 = vld [vmem:[#allocation76_spill] sm:$0xff] }
 0x8e4   : > { %v3034_v13 = vadd.f32 %v2999_v12, %v2915_v28  ;;  %v3001_v61 = vpop.permute.xlu1 %3000  ;;  %v12844_v28 = vld [vmem:[#allocation82_spill] sm:$0xff] }
 0x8e5   : > { %v3035_v51 = vadd.f32 %v3001_v61, %v2916_v27  ;;  %v12847_v27 = vld [vmem:[#allocation78_spill] sm:$0xff] }
 0x8e6   : > { %v3051_v32 = vmul.f32 0.5, %v3034_v13  ;;  %v12848_v13 = vld [vmem:[#allocation85_spill] sm:$0xff] }
 0x8e7   : > { %v3052_v35 = vmul.f32 0.5, %v3035_v51  ;;  %v12850_v51 = vld [vmem:[#allocation80_spill] sm:$0xff] }
 0x8e8   : > { %v3068_v44 = vpack.c.bf16 %v3051_v32, %v3051_v32  ;;  %v3113_v22 = vpop.permute.xlu2 %3112  ;;  %v12849_v32 = vld [vmem:[#allocation79_spill] sm:$0xff] }
 0x8e9   : > { %v3175_v31 = vsel %vm518_vm1, %v3113_v22, 0.0  ;;  %v3069_v7 = vpack.c.bf16 %v3052_v35, %v3052_v35 }
 0x8ea   : > { %3086 = vst.msk [vmem:[%s8287_s30 + $0x3c] sm:$0xf] %vm3070_vm3, %v3068_v44  ;;  %3176 = vadd.xlane.f32.xlu1 %v3175_v31 }
 0x8eb   : > { %v3091_v0 = vpop.permute.xlu0 %3090  ;;  %3087 = vst.msk [vmem:[%s8287_s30 + $0x40] sm:$0xf] %vm3070_vm3, %v3069_v7 }
 0x8ec   : > { %v3142_v42 = vsel %vm518_vm1, %v3091_v0, 0.0  ;;  %v3093_v39 = vpop.permute.xlu1 %3092 }
 0x8ed   : > { %3143 = vadd.xlane.f32.xlu2 %v3142_v42  ;;  %v3145_v3 = vsel %vm518_vm1, %v3093_v39, 0.0 }
 0x8ee   : > { %3146 = vadd.xlane.f32.xlu0 %v3145_v3 }
 0x8f0   : > { %v3119_v43 = vpop.permute.xlu2 %3118 }
 0x8f1   : > { %v3184_v17 = vsel %vm518_vm1, %v3119_v43, 0.0 }
 0x8f2   : > { %3185 = vadd.xlane.f32.xlu1 %v3184_v17 }
 0x8f3   : > { %v3097_v34 = vpop.permute.xlu0 %3096 }
 0x8f4   : > { %v3151_v2 = vsel %vm518_vm1, %v3097_v34, 0.0  ;;  %v3099_v56 = vpop.permute.xlu1 %3098 }
 0x8f5   : > { %3152 = vadd.xlane.f32.xlu2 %v3151_v2  ;;  %v3154_v59 = vsel %vm518_vm1, %v3099_v56, 0.0 }
 0x8f6   : > { %3155 = vadd.xlane.f32.xlu0 %v3154_v59 }
 0x8fb   : > { %v3103_v55 = vpop.permute.xlu0 %3102 }
 0x8fc   : > { %v3160_v62 = vsel %vm518_vm1, %v3103_v55, 0.0  ;;  %v3105_v6 = vpop.permute.xlu1 %3104 }
 0x8fd   : > { %3161 = vadd.xlane.f32.xlu2 %v3160_v62  ;;  %v3163_v41 = vsel %vm518_vm1, %v3105_v6, 0.0 }
 0x8fe   : > { %3164 = vadd.xlane.f32.xlu0 %v3163_v41 }
 0x903   : > { %v3109_v11 = vpop.permute.xlu0 %3108 }
 0x904   : > { %v3169_v16 = vsel %vm518_vm1, %v3109_v11, 0.0  ;;  %v3111_v48 = vpop.permute.xlu1 %3110 }
 0x905   : > { %3170 = vadd.xlane.f32.xlu2 %v3169_v16  ;;  %v3172_v1 = vsel %vm518_vm1, %v3111_v48, 0.0 }
 0x906   : > { %3173 = vadd.xlane.f32.xlu0 %v3172_v1 }
 0x90b   : > { %v3115_v9 = vpop.permute.xlu0 %3114  ;;  %3192 = vrot.lane.b32.xlu1 %v12834_v24, %s6639_s24 }
 0x90c   : > { %v3178_v5 = vsel %vm518_vm1, %v3115_v9, 0.0  ;;  %v3117_v8 = vpop.permute.xlu1 %3116 }
 0x90d   : > { %3179 = vadd.xlane.f32.xlu2 %v3178_v5  ;;  %v3181_v33 = vsel %vm518_vm1, %v3117_v8, 0.0 }
 0x90e   : > { %3182 = vadd.xlane.f32.xlu0 %v3181_v33 }
 0x913   : > { %v3121_v25 = vpop.permute.xlu0 %3120  ;;  %3200 = vrot.lane.b32.xlu1 %v12835_v14, %s6639_s24 }
 0x914   : > { %v3187_v21 = vsel %vm518_vm1, %v3121_v25, 0.0 }
 0x915   : > { %3188 = vadd.xlane.f32.xlu2 %v3187_v21 }
 0x91b   : > { %3206 = vrot.lane.b32.xlu1 %v12836_v15, %s6639_s24 }
 0x922   : > { %3190 = vrot.lane.b32.xlu0 %v12837_v20, %s6639_s24  ;;  %v12881_v20 = vld [vmem:[#allocation62_spill] sm:$0xff] }
 0x923   : > { %3212 = vrot.lane.b32.xlu1 %v12838_v19, %s6639_s24 }
 0x92a   : > { %3196 = vrot.lane.b32.xlu0 %v12839_v49, %s6639_s24 }
 0x92b   : > { %3218 = vrot.lane.b32.xlu1 %v12840_v63, %s6639_s24 }
 0x92d   : > { %3194 = vrot.lane.b32.xlu2 %v12841_v30, %s6639_s24 }
 0x932   : > { %3202 = vrot.lane.b32.xlu0 %v12842_v37, %s6639_s24 }
 0x935   : > { %3198 = vrot.lane.b32.xlu2 %v12843_v26, %s6639_s24 }
 0x93a   : > { %3208 = vrot.lane.b32.xlu0 %v12844_v28, %s6639_s24 }
 0x93d   : > { %3204 = vrot.lane.b32.xlu2 %v12845_v4, %s6639_s24  ;;  %v9658_v12 = vpop.xlane.xlu1 %3140 }
 0x942   : > { %3214 = vrot.lane.b32.xlu0 %v12846_v50, %s6639_s24 }
 0x945   : > { %3210 = vrot.lane.b32.xlu2 %v12847_v27, %s6639_s24  ;;  %v9666_v61 = vpop.xlane.xlu1 %3149 }
 0x94a   : > { %3220 = vrot.lane.b32.xlu0 %v12848_v13, %s6639_s24 }
 0x94d   : > { %3216 = vrot.lane.b32.xlu2 %v12849_v32, %s6639_s24  ;;  %v9672_v44 = vpop.xlane.xlu1 %3158 }
 0x955   : > { %3222 = vrot.lane.b32.xlu2 %v12850_v51, %s6639_s24  ;;  %v9676_v22 = vpop.xlane.xlu1 %3167 }
 0x95d   : > { %v9682_v0 = vpop.xlane.xlu1 %3176 }
 0x960   : > { %v9674_v35 = vpop.xlane.xlu2 %3143 }
 0x961   : > { %v9678_v31 = vpop.xlane.xlu0 %3146 }
 0x965   : > { %v9688_v3 = vpop.xlane.xlu1 %3185 }
 0x968   : > { %v9680_v7 = vpop.xlane.xlu2 %3152 }
 0x969   : > { %v9684_v42 = vpop.xlane.xlu0 %3155 }
 0x970   : > { %v9686_v39 = vpop.xlane.xlu2 %3161 }
 0x971   : > { %v9692_v17 = vpop.xlane.xlu0 %3164 }
 0x978   : > { %v9690_v43 = vpop.xlane.xlu2 %3170 }
 0x979   : > { %v9697_v59 = vpop.xlane.xlu0 %3173 }
 0x97d   : > { %v3193_v34 = vpop.permute.xlu1 %3192 }
 0x97e   : > { %v3244_v2 = vsel %vm518_vm1, %v3193_v34, 0.0 }
 0x97f   : > { %3245 = vadd.xlane.f32.xlu0 %v3244_v2 }
 0x980   : > { %v9695_v56 = vpop.xlane.xlu2 %3179 }
 0x981   : > { %v9701_v62 = vpop.xlane.xlu0 %3182 }
 0x985   : > { %v3201_v6 = vpop.permute.xlu1 %3200 }
 0x986   : > { %v3256_v5 = vsel %vm518_vm1, %v3201_v6, 0.0 }
 0x988   : > { %v9699_v55 = vpop.xlane.xlu2 %3188 }
 0x98d   : > { %v3207_v8 = vpop.permute.xlu1 %3206 }
 0x98e   : > { %v3265_v2 = vsel %vm518_vm1, %v3207_v8, 0.0 }
 0x990   : > { %v3195_v41 = vpop.permute.xlu2 %3194 }
 0x991   : > { %v3247_v11 = vsel %vm518_vm1, %v3195_v41, 0.0 }
 0x992   : > { %3248 = vadd.xlane.f32.xlu2 %v3247_v11 }
 0x994   : > { %v3191_v16 = vpop.permute.xlu0 %3190 }
 0x995   : > { %v3241_v48 = vsel %vm518_vm1, %v3191_v16, 0.0  ;;  %v3213_v41 = vpop.permute.xlu1 %3212 }
 0x996   : > { %3242 = vadd.xlane.f32.xlu1 %v3241_v48 }
 0x998   : > { %v3199_v1 = vpop.permute.xlu2 %3198 }
 0x999   : > { %v3253_v9 = vsel %vm518_vm1, %v3199_v1, 0.0  ;;  %v3274_v1 = vsel %vm518_vm1, %v3213_v41, 0.0 }
 0x99a   : > { %3254 = vadd.xlane.f32.xlu0 %v3253_v9  ;;  %3257 = vadd.xlane.f32.xlu2 %v3256_v5 }
 0x99c   : > { %v3197_v33 = vpop.permute.xlu0 %3196 }
 0x99d   : > { %v3250_v25 = vsel %vm518_vm1, %v3197_v33, 0.0  ;;  %v3219_v5 = vpop.permute.xlu1 %3218 }
 0x99e   : > { %3251 = vadd.xlane.f32.xlu1 %v3250_v25 }
 0x9a0   : > { %v3205_v21 = vpop.permute.xlu2 %3204 }
 0x9a1   : > { %v3262_v34 = vsel %vm518_vm1, %v3205_v21, 0.0  ;;  %v3283_v21 = vsel %vm518_vm1, %v3219_v5, 0.0  ;;  %v12854_v5 = vld [vmem:[#allocation7_spill] sm:$0xff] }
 0x9a2   : > { %3263 = vadd.xlane.f32.xlu0 %v3262_v34  ;;  %3266 = vadd.xlane.f32.xlu2 %v3265_v2 }
 0x9a4   : > { %v3203_v11 = vpop.permute.xlu0 %3202 }
 0x9a5   : > { %v3259_v16 = vsel %vm518_vm1, %v3203_v11, 0.0 }
 0x9a6   : > { %3260 = vadd.xlane.f32.xlu1 %v3259_v16 }
 0x9a8   : > { %v3211_v6 = vpop.permute.xlu2 %3210 }
 0x9a9   : > { %v3271_v48 = vsel %vm518_vm1, %v3211_v6, 0.0 }
 0x9aa   : > { %3272 = vadd.xlane.f32.xlu0 %v3271_v48  ;;  %3275 = vadd.xlane.f32.xlu2 %v3274_v1  ;;  %v12851_v48 = vld [vmem:[#allocation5_spill] sm:$0xff]  ;;  %v12852_v1 = vld [vmem:[#allocation6_spill] sm:$0xff] }
 0x9ac   : > { %v3209_v9 = vpop.permute.xlu0 %3208 }
 0x9ad   : > { %v3268_v33 = vsel %vm518_vm1, %v3209_v9, 0.0  ;;  %v12853_v9 = vld [vmem:[#allocation8_spill] sm:$0xff] }
 0x9ae   : > { %3269 = vadd.xlane.f32.xlu1 %v3268_v33  ;;  %v12855_v33 = vld [vmem:[#allocation9_spill] sm:$0xff] }
 0x9b0   : > { %v3217_v8 = vpop.permute.xlu2 %3216 }
 0x9b1   : > { %v3280_v25 = vsel %vm518_vm1, %v3217_v8, 0.0  ;;  %v12856_v8 = vld [vmem:[#allocation15_spill] sm:$0xff] }
 0x9b2   : > { %3281 = vadd.xlane.f32.xlu0 %v3280_v25  ;;  %3284 = vadd.xlane.f32.xlu2 %v3283_v21  ;;  %v12857_v25 = vld [vmem:[#allocation13_spill] sm:$0xff]  ;;  %v12858_v21 = vld [vmem:[#allocation11_spill] sm:$0xff] }
 0x9b4   : > { %v3215_v34 = vpop.permute.xlu0 %3214 }
 0x9b5   : > { %v3277_v2 = vsel %vm518_vm1, %v3215_v34, 0.0  ;;  %v12859_v34 = vld [vmem:[#allocation18_spill] sm:$0xff] }
 0x9b6   : > { %3278 = vadd.xlane.f32.xlu1 %v3277_v2  ;;  %v12860_v2 = vld [vmem:[#allocation17_spill] sm:$0xff] }
 0x9b8   : > { %v3223_v11 = vpop.permute.xlu2 %3222 }
 0x9b9   : > { %v3289_v41 = vsel %vm518_vm1, %v3223_v11, 0.0  ;;  %v12861_v11 = vld [vmem:[#allocation16_spill] sm:$0xff] }
 0x9ba   : > { %3290 = vadd.xlane.f32.xlu0 %v3289_v41  ;;  %v12862_v41 = vld [vmem:[#allocation24_spill] sm:$0xff] }
 0x9bc   : > { %v3221_v16 = vpop.permute.xlu0 %3220 }
 0x9bd   : > { %v3286_v6 = vsel %vm518_vm1, %v3221_v16, 0.0  ;;  %v12863_v16 = vld [vmem:[#allocation20_spill] sm:$0xff] }
 0x9be   : > { %3287 = vadd.xlane.f32.xlu1 %v3286_v6  ;;  %v12864_v6 = vld [vmem:[#allocation19_spill] sm:$0xff] }
 0x9ca   : > { %3292 = vrot.lane.b32.xlu2 %v12851_v48, %s6639_s24 }
 0x9ce   : > { %3296 = vrot.lane.b32.xlu0 %v12852_v1, %s6639_s24  ;;  %v12866_v1 = vld [vmem:[#allocation12_spill] sm:$0xff] }
 0x9d2   : > { %3298 = vrot.lane.b32.xlu2 %v12853_v9, %s6639_s24 }
 0x9d6   : > { %3300 = vrot.lane.b32.xlu0 %v12854_v5, %s6639_s24 }
 0x9d7   : > { %3294 = vrot.lane.b32.xlu1 %v12855_v33, %s6639_s24 }
 0x9da   : > { %3304 = vrot.lane.b32.xlu2 %v12856_v8, %s6639_s24 }
 0x9de   : > { %3306 = vrot.lane.b32.xlu0 %v12857_v25, %s6639_s24 }
 0x9df   : > { %3302 = vrot.lane.b32.xlu1 %v12858_v21, %s6639_s24  ;;  %v12865_v21 = vld [vmem:[#allocation14_spill] sm:$0xff] }
 0x9e2   : > { %3310 = vrot.lane.b32.xlu2 %v12859_v34, %s6639_s24 }
 0x9e6   : > { %3312 = vrot.lane.b32.xlu0 %v12860_v2, %s6639_s24  ;;  %v12867_v2 = vld [vmem:[#allocation10_spill] sm:$0xff] }
 0x9e7   : > { %3308 = vrot.lane.b32.xlu1 %v12861_v11, %s6639_s24 }
 0x9ea   : > { %3316 = vrot.lane.b32.xlu2 %v12862_v41, %s6639_s24 }
 0x9ee   : > { %3318 = vrot.lane.b32.xlu0 %v12863_v16, %s6639_s24 }
 0x9ef   : > { %3314 = vrot.lane.b32.xlu1 %v12864_v6, %s6639_s24 }
 0x9f2   : > { %3322 = vrot.lane.b32.xlu2 %v12865_v21, %s6639_s24  ;;  %v9755_v11 = vpop.xlane.xlu0 %3245 }
 0x9f6   : > { %3324 = vrot.lane.b32.xlu0 %v12866_v1, %s6639_s24 }
 0x9f7   : > { %3320 = vrot.lane.b32.xlu1 %v12867_v2, %s6639_s24 }
 0xa05   : > { %v9753_v34 = vpop.xlane.xlu2 %3248 }
 0xa09   : > { %v9759_v25 = vpop.xlane.xlu1 %3242 }
 0xa0d   : > { %v9757_v41 = vpop.xlane.xlu2 %3257  ;;  %v9761_v16 = vpop.xlane.xlu0 %3254 }
 0xa11   : > { %v9765_v8 = vpop.xlane.xlu1 %3251 }
 0xa15   : > { %v9763_v6 = vpop.xlane.xlu2 %3266  ;;  %v9767_v21 = vpop.xlane.xlu0 %3263 }
 0xa19   : > { %v9771_v5 = vpop.xlane.xlu1 %3260 }
 0xa1d   : > { %v9769_v1 = vpop.xlane.xlu2 %3275  ;;  %v9773_v2 = vpop.xlane.xlu0 %3272 }
 0xa21   : > { %v9777_v33 = vpop.xlane.xlu1 %3269 }
 0xa25   : > { %v9775_v9 = vpop.xlane.xlu2 %3284  ;;  %v9779_v51 = vpop.xlane.xlu0 %3281 }
 0xa29   : > { %v9783_v50 = vpop.xlane.xlu1 %3278 }
 0xa2d   : > { %v3293_v48 = vpop.permute.xlu2 %3292  ;;  %v9785_v4 = vpop.xlane.xlu0 %3290 }
 0xa2e   : > { %v3343_v32 = vsel %vm518_vm1, %v3293_v48, 0.0 }
 0xa2f   : > { %3344 = vadd.xlane.f32.xlu1 %v3343_v32 }
 0xa31   : > { %v9789_v19 = vpop.xlane.xlu1 %3287 }
 0xa35   : > { %v3299_v13 = vpop.permute.xlu2 %3298 }
 0xa36   : > { %v3352_v27 = vsel %vm518_vm1, %v3299_v13, 0.0 }
 0xa37   : > { %3353 = vadd.xlane.f32.xlu1 %v3352_v27 }
 0xa3d   : > { %v3305_v28 = vpop.permute.xlu2 %3304 }
 0xa3e   : > { %v3361_v63 = vsel %vm518_vm1, %v3305_v28, 0.0 }
 0xa3f   : > { %3362 = vadd.xlane.f32.xlu1 %v3361_v63 }
 0xa40   : > { %v3297_v26 = vpop.permute.xlu0 %3296 }
 0xa41   : > { %v3349_v37 = vsel %vm518_vm1, %v3297_v26, 0.0 }
 0xa42   : > { %3350 = vadd.xlane.f32.xlu0 %v3349_v37 }
 0xa45   : > { %v3311_v48 = vpop.permute.xlu2 %3310 }
 0xa46   : > { %v3370_v32 = vsel %vm518_vm1, %v3311_v48, 0.0 }
 0xa47   : > { %3371 = vadd.xlane.f32.xlu1 %v3370_v32 }
 0xa48   : > { %v3301_v13 = vpop.permute.xlu0 %3300 }
 0xa49   : > { %v3295_v27 = vpop.permute.xlu1 %3294  ;;  %v3355_v26 = vsel %vm518_vm1, %v3301_v13, 0.0 }
 0xa4a   : > { %v3346_v24 = vsel %vm518_vm1, %v3295_v27, 0.0 }
 0xa4b   : > { %3347 = vadd.xlane.f32.xlu2 %v3346_v24 }
 0xa4d   : > { %v3317_v30 = vpop.permute.xlu2 %3316 }
 0xa4e   : > { %v3379_v15 = vsel %vm518_vm1, %v3317_v30, 0.0 }
 0xa4f   : > { %3380 = vadd.xlane.f32.xlu1 %v3379_v15 }
 0xa50   : > { %v3307_v63 = vpop.permute.xlu0 %3306 }
 0xa51   : > { %v3303_v28 = vpop.permute.xlu1 %3302  ;;  %v3364_v27 = vsel %vm518_vm1, %v3307_v63, 0.0 }
 0xa52   : > { %v3358_v14 = vsel %vm518_vm1, %v3303_v28, 0.0 }
 0xa53   : > { %3356 = vadd.xlane.f32.xlu2 %v3355_v26  ;;  %3359 = vadd.xlane.f32.xlu0 %v3358_v14 }
 0xa55   : > { %v3323_v37 = vpop.permute.xlu2 %3322 }
 0xa56   : > { %v3388_v48 = vsel %vm518_vm1, %v3323_v37, 0.0 }
 0xa57   : > { %3389 = vadd.xlane.f32.xlu1 %v3388_v48  ;;  %v12868_v48 = vld [vmem:[#allocation21_spill] sm:$0xff] }
 0xa58   : > { %v3313_v49 = vpop.permute.xlu0 %3312 }
 0xa59   : > { %v3309_v32 = vpop.permute.xlu1 %3308  ;;  %v3373_v30 = vsel %vm518_vm1, %v3313_v49, 0.0  ;;  %v12869_v49 = vld [vmem:[#allocation26_spill] sm:$0xff] }
 0xa5a   : > { %v3367_v24 = vsel %vm518_vm1, %v3309_v32, 0.0 }
 0xa5b   : > { %3365 = vadd.xlane.f32.xlu2 %v3364_v27  ;;  %3368 = vadd.xlane.f32.xlu0 %v3367_v24  ;;  %v12870_v27 = vld [vmem:[#allocation27_spill] sm:$0xff]  ;;  %v12871_v24 = vld [vmem:[#allocation38_spill] sm:$0xff] }
 0xa60   : > { %v3319_v14 = vpop.permute.xlu0 %3318 }
 0xa61   : > { %v3315_v15 = vpop.permute.xlu1 %3314  ;;  %v3382_v26 = vsel %vm518_vm1, %v3319_v14, 0.0  ;;  %v12875_v14 = vld [vmem:[#allocation44_spill] sm:$0xff] }
 0xa62   : > { %v3376_v13 = vsel %vm518_vm1, %v3315_v15, 0.0  ;;  %v12872_v15 = vld [vmem:[#allocation32_spill] sm:$0xff] }
 0xa63   : > { %3374 = vadd.xlane.f32.xlu2 %v3373_v30  ;;  %3377 = vadd.xlane.f32.xlu0 %v3376_v13  ;;  %v12873_v30 = vld [vmem:[#allocation46_spill] sm:$0xff]  ;;  %v12874_v13 = vld [vmem:[#allocation37_spill] sm:$0xff] }
 0xa68   : > { %v3325_v63 = vpop.permute.xlu0 %3324 }
 0xa69   : > { %v3321_v28 = vpop.permute.xlu1 %3320  ;;  %v3391_v32 = vsel %vm518_vm1, %v3325_v63, 0.0  ;;  %v12879_v63 = vld [vmem:[#allocation23_spill] sm:$0xff] }
 0xa6a   : > { %v3385_v37 = vsel %vm518_vm1, %v3321_v28, 0.0  ;;  %v12876_v28 = vld [vmem:[#allocation54_spill] sm:$0xff] }
 0xa6b   : > { %3383 = vadd.xlane.f32.xlu2 %v3382_v26  ;;  %3386 = vadd.xlane.f32.xlu0 %v3385_v37  ;;  %v12877_v26 = vld [vmem:[#allocation42_spill] sm:$0xff]  ;;  %v12878_v37 = vld [vmem:[#allocation51_spill] sm:$0xff] }
 0xa70   : > { %3396 = vrot.lane.b32.xlu1 %v12868_v48, %s6639_s24 }
 0xa73   : > { %3392 = vadd.xlane.f32.xlu2 %v3391_v32  ;;  %v12880_v32 = vld [vmem:[#allocation49_spill] sm:$0xff] }
 0xa78   : > { %3402 = vrot.lane.b32.xlu1 %v12869_v49, %s6639_s24 }
 0xa7f   : > { %3394 = vrot.lane.b32.xlu0 %v12870_v27, %s6639_s24 }
 0xa80   : > { %3408 = vrot.lane.b32.xlu1 %v12871_v24, %s6639_s24 }
 0xa87   : > { %3400 = vrot.lane.b32.xlu0 %v12872_v15, %s6639_s24 }
 0xa88   : > { %3414 = vrot.lane.b32.xlu1 %v12873_v30, %s6639_s24  ;;  %v12882_v30 = vld [vmem:[#allocation58_spill] sm:$0xff] }
 0xa8b   : > { %3398 = vrot.lane.b32.xlu2 %v12874_v13, %s6639_s24 }
 0xa8f   : > { %3404 = vrot.lane.b32.xlu0 %v12875_v14, %s6639_s24 }
 0xa90   : > { %3420 = vrot.lane.b32.xlu1 %v12876_v28, %s6639_s24  ;;  %v12883_v28 = vld [vmem:[#allocation35_spill] sm:$0xff] }
 0xa93   : > { %3406 = vrot.lane.b32.xlu2 %v12877_v26, %s6639_s24  ;;  %v12884_v26 = vld [vmem:[#allocation30_spill] sm:$0xff] }
 0xa97   : > { %3410 = vrot.lane.b32.xlu0 %v12878_v37, %s6639_s24 }
 0xa98   : > { %3426 = vrot.lane.b32.xlu1 %v12879_v63, %s6639_s24 }
 0xa9b   : > { %3412 = vrot.lane.b32.xlu2 %v12880_v32, %s6639_s24 }
 0xa9f   : > { %3416 = vrot.lane.b32.xlu0 %v12881_v20, %s6639_s24 }
 0xaa2   : > { %v9834_v24 = vpop.xlane.xlu1 %3344 }
 0xaa3   : > { %3418 = vrot.lane.b32.xlu2 %v12882_v30, %s6639_s24 }
 0xaa7   : > { %3422 = vrot.lane.b32.xlu0 %v12883_v28, %s6639_s24 }
 0xaaa   : > { %v9840_v37 = vpop.xlane.xlu1 %3353 }
 0xaab   : > { %3424 = vrot.lane.b32.xlu2 %v12884_v26, %s6639_s24 }
 0xab2   : > { %v9842_v63 = vpop.xlane.xlu1 %3362 }
 0xab5   : > { %v9846_v32 = vpop.xlane.xlu0 %3350 }
 0xaba   : > { %v9848_v20 = vpop.xlane.xlu1 %3371 }
 0xabe   : > { %v9844_v14 = vpop.xlane.xlu2 %3347 }
 0xac2   : > { %v9856_v28 = vpop.xlane.xlu1 %3380 }
 0xac6   : > { %v9850_v49 = vpop.xlane.xlu2 %3356  ;;  %v9852_v30 = vpop.xlane.xlu0 %3359 }
 0xaca   : > { %v9862_v48 = vpop.xlane.xlu1 %3389 }
 0xace   : > { %v9854_v15 = vpop.xlane.xlu2 %3365  ;;  %v9858_v13 = vpop.xlane.xlu0 %3368 }
 0xad6   : > { %v9860_v26 = vpop.xlane.xlu2 %3374  ;;  %v9866_v45 = vpop.xlane.xlu0 %3377 }
 0xad7   : > { %12885 = vst [vmem:[#allocation92_spill] sm:$0xff] %v9866_v45 }
 0xade   : > { %v9864_v27 = vpop.xlane.xlu2 %3383  ;;  %v9871_v40 = vpop.xlane.xlu0 %3386 }
 0xadf   : > { %12887 = vst [vmem:[#allocation81_spill] sm:$0xff] %v9871_v40 }
 0xae2   : > { %v3397_v38 = vpop.permute.xlu1 %3396 }
 0xae3   : > { %v3448_v57 = vsel %vm518_vm1, %v3397_v38, 0.0 }
 0xae4   : > { %3449 = vadd.xlane.f32.xlu2 %v3448_v57 }
 0xae6   : > { %v9869_v58 = vpop.xlane.xlu2 %3392 }
 0xae7   : > { %12886 = vst [vmem:[#allocation119_spill] sm:$0xff] %v9869_v58 }
 0xaea   : > { %v3403_v36 = vpop.permute.xlu1 %3402 }
 0xaeb   : > { %v3457_v46 = vsel %vm518_vm1, %v3403_v36, 0.0 }
 0xaec   : > { %3458 = vadd.xlane.f32.xlu2 %v3457_v46 }
 0xaee   : > { %v3399_v52 = vpop.permute.xlu2 %3398 }
 0xaef   : > { %v3451_v18 = vsel %vm518_vm1, %v3399_v52, 0.0 }
 0xaf0   : > { %3452 = vadd.xlane.f32.xlu1 %v3451_v18 }
 0xaf1   : > { %v3395_v23 = vpop.permute.xlu0 %3394 }
 0xaf2   : > { %v3409_v29 = vpop.permute.xlu1 %3408  ;;  %v3445_v47 = vsel %vm518_vm1, %v3395_v23, 0.0 }
 0xaf3   : > { %v3466_v10 = vsel %vm518_vm1, %v3409_v29, 0.0  ;;  %3446 = vadd.xlane.f32.xlu0 %v3445_v47 }
 0xaf4   : > { %3467 = vadd.xlane.f32.xlu2 %v3466_v10 }
 0xaf6   : > { %v3407_v38 = vpop.permute.xlu2 %3406 }
 0xaf7   : > { %v3463_v18 = vsel %vm518_vm1, %v3407_v38, 0.0 }
 0xaf9   : > { %v3401_v57 = vpop.permute.xlu0 %3400 }
 0xafa   : > { %v3415_v60 = vpop.permute.xlu1 %3414  ;;  %v3454_v54 = vsel %vm518_vm1, %v3401_v57, 0.0 }
 0xafb   : > { %v3475_v36 = vsel %vm518_vm1, %v3415_v60, 0.0  ;;  %3455 = vadd.xlane.f32.xlu0 %v3454_v54 }
 0xafc   : > { %3476 = vadd.xlane.f32.xlu2 %v3475_v36 }
 0xafe   : > { %v3413_v29 = vpop.permute.xlu2 %3412 }
 0xaff   : > { %v3472_v57 = vsel %vm518_vm1, %v3413_v29, 0.0 }
 0xb01   : > { %v3405_v46 = vpop.permute.xlu0 %3404 }
 0xb02   : > { %v3421_v52 = vpop.permute.xlu1 %3420  ;;  %v3460_v53 = vsel %vm518_vm1, %v3405_v46, 0.0 }
 0xb03   : > { %v3484_v23 = vsel %vm518_vm1, %v3421_v52, 0.0  ;;  %3464 = vadd.xlane.f32.xlu0 %v3463_v18  ;;  %3461 = vadd.xlane.f32.xlu1 %v3460_v53 }
 0xb04   : > { %3485 = vadd.xlane.f32.xlu2 %v3484_v23 }
 0xb06   : > { %v3419_v38 = vpop.permute.xlu2 %3418 }
 0xb07   : > { %v3481_v46 = vsel %vm518_vm1, %v3419_v38, 0.0 }
 0xb09   : > { %v3411_v10 = vpop.permute.xlu0 %3410 }
 0xb0a   : > { %v3427_v47 = vpop.permute.xlu1 %3426  ;;  %v3469_v60 = vsel %vm518_vm1, %v3411_v10, 0.0  ;;  %v3497_v10 = vmax.f32 %v9674_v35, %v9755_v11 }
 0xb0b   : > { %v3493_v54 = vsel %vm518_vm1, %v3427_v47, 0.0  ;;  %3473 = vadd.xlane.f32.xlu0 %v3472_v57  ;;  %3470 = vadd.xlane.f32.xlu1 %v3469_v60 }
 0xb0c   : > { %3494 = vadd.xlane.f32.xlu2 %v3493_v54  ;;  %v3514_v47 = vmax.f32 %v3497_v10, %v9844_v14 }
 0xb0e   : > { %v3425_v53 = vpop.permute.xlu2 %3424 }
 0xb0f   : > { %v3490_v23 = vsel %vm518_vm1, %v3425_v53, 0.0 }
 0xb11   : > { %v3417_v36 = vpop.permute.xlu0 %3416 }
 0xb12   : > { %v3478_v52 = vsel %vm518_vm1, %v3417_v36, 0.0 }
 0xb13   : > { %3482 = vadd.xlane.f32.xlu0 %v3481_v46  ;;  %3479 = vadd.xlane.f32.xlu1 %v3478_v52  ;;  %v3500_v46 = vmax.f32 %v9680_v7, %v9761_v16 }
 0xb19   : > { %v3423_v18 = vpop.permute.xlu0 %3422 }
 0xb1a   : > { %v3487_v29 = vsel %vm518_vm1, %v3423_v18, 0.0 }
 0xb1b   : > { %3491 = vadd.xlane.f32.xlu0 %v3490_v23  ;;  %3488 = vadd.xlane.f32.xlu1 %v3487_v29  ;;  %v3517_v23 = vmax.f32 %v3500_v46, %v9850_v49 }
 0xb57   : > { %v3450_v57 = vpop.xlane.xlu2 %3449 }
 0xb58   : > { %v3531_v60 = vmax.f32 %v3514_v47, %v3450_v57 }
 0xb5a   : > { %v3548_v54 = vsub.f32 %v9674_v35, %v3531_v60  ;;  %v3599_v38 = vsub.f32 %v9755_v11, %v3531_v60  ;;  %v3650_v36 = vsub.f32 %v9844_v14, %v3531_v60  ;;  %v3701_v18 = vsub.f32 %v3450_v57, %v3531_v60 }
 0xb5b   : > { %v3498_v35 = vmax.f32 %v9678_v31, %v9753_v34  ;;  %v3496_v11 = vmax.f32 %v9658_v12, %v9759_v25 }
 0xb5c   : > { %v3566_v52 = vmul.f32 1.442695, %v3548_v54  ;;  %v3617_v53 = vmul.f32 1.442695, %v3599_v38  ;;  %v3668_v29 = vmul.f32 1.442695, %v3650_v36  ;;  %v3499_v38 = vmax.f32 %v9666_v61, %v9765_v8 }
 0xb5d   : > { %v3719_v14 = vmul.f32 1.442695, %v3701_v18  ;;  %v3503_v36 = vmax.f32 %v9686_v39, %v9767_v21  ;;  %v3515_v46 = vmax.f32 %v3498_v35, %v9846_v32  ;;  %v3513_v35 = vmax.f32 %v3496_v11, %v9834_v24 }
 0xb5e   : > { %6219 = vpow2.f32 %v3566_v52 }
 0xb5f   : > { %6221 = vpow2.f32 %v3617_v53  ;;  %v3459_v10 = vpop.xlane.xlu2 %3458  ;;  %v3520_v11 = vmax.f32 %v3503_v36, %v9854_v15 }
 0xb60   : > { %v3534_v58 = vmax.f32 %v3517_v23, %v3459_v10  ;;  %6223 = vpow2.f32 %v3668_v29 }
 0xb61   : > { %6225 = vpow2.f32 %v3719_v14 }
 0xb62   : > { %v3551_v54 = vsub.f32 %v9680_v7, %v3534_v58  ;;  %v3602_v57 = vsub.f32 %v9761_v16, %v3534_v58  ;;  %v3653_v60 = vsub.f32 %v9850_v49, %v3534_v58  ;;  %v3704_v23 = vsub.f32 %v3459_v10, %v3534_v58 }
 0xb63   : > { %v3453_v16 = vpop.xlane.xlu1 %3452 }
 0xb64   : > { %v9912_v52 = vpop.eup %6219  ;;  %v3572_v18 = vmul.f32 1.442695, %v3551_v54  ;;  %v3623_v7 = vmul.f32 1.442695, %v3602_v57  ;;  %v3674_v40 = vmul.f32 1.442695, %v3653_v60  ;;  %v3532_v45 = vmax.f32 %v3515_v46, %v3453_v16 }
 0xb65   : > { %12888 = vst [vmem:[#allocation69_spill] sm:$0xff] %v9912_v52  ;;  %v9916_v47 = vpop.eup %6221  ;;  %v3725_v60 = vmul.f32 1.442695, %v3704_v23 }
 0xb66   : > { %12889 = vst [vmem:[#allocation120_spill] sm:$0xff] %v9916_v47  ;;  %v3752_v53 = vadd.f32 %v9916_v47, %v9912_v52  ;;  %6227 = vpow2.f32 %v3572_v18  ;;  %v3549_v58 = vsub.f32 %v9678_v31, %v3532_v45  ;;  %v3600_v10 = vsub.f32 %v9753_v34, %v3532_v45  ;;  %v3447_v57 = vpop.xlane.xlu0 %3446  ;;  %v9930_v29 = vpop.eup %6223 }
 0xb67   : > { %6229 = vpow2.f32 %v3623_v7  ;;  %v3651_v54 = vsub.f32 %v9846_v32, %v3532_v45  ;;  %v3702_v46 = vsub.f32 %v3453_v16, %v3532_v45  ;;  %v3530_v49 = vmax.f32 %v3513_v35, %v3447_v57  ;;  %12890 = vst [vmem:[#allocation117_spill] sm:$0xff] %v9930_v29  ;;  %v9933_v47 = vpop.xlane.xlu2 %3467  ;;  %v9938_v14 = vpop.eup %6225 }
 0xb68   : > { %6231 = vpow2.f32 %v3674_v40  ;;  %v3568_v18 = vmul.f32 1.442695, %v3549_v58  ;;  %v3619_v7 = vmul.f32 1.442695, %v3600_v10  ;;  %v3769_v31 = vadd.f32 %v9930_v29, %v3752_v53  ;;  %12891 = vst [vmem:[#allocation107_spill] sm:$0xff] %v9938_v14 }
 0xb69   : > { %v3670_v34 = vmul.f32 1.442695, %v3651_v54  ;;  %v3547_v32 = vsub.f32 %v9658_v12, %v3530_v49  ;;  %v3598_v52 = vsub.f32 %v9759_v25, %v3530_v49  ;;  %v3721_v45 = vmul.f32 1.442695, %v3702_v46 }
 0xb6a   : > { %6233 = vpow2.f32 %v3568_v18  ;;  %v3649_v23 = vsub.f32 %v9834_v24, %v3530_v49  ;;  %v3537_v36 = vmax.f32 %v3520_v11, %v9933_v47  ;;  %v3700_v35 = vsub.f32 %v3447_v57, %v3530_v49 }
 0xb6b   : > { %6235 = vpow2.f32 %v3725_v60  ;;  %v3564_v53 = vmul.f32 1.442695, %v3547_v32  ;;  %v3615_v25 = vmul.f32 1.442695, %v3598_v52  ;;  %v9952_v24 = vadd.f32 %v9938_v14, %v3769_v31 }
 0xb6c   : > { %v9942_v40 = vpop.eup %6227  ;;  %6237 = vpow2.f32 %v3619_v7  ;;  %v3554_v10 = vsub.f32 %v9686_v39, %v3537_v36  ;;  %v3605_v60 = vsub.f32 %v9767_v21, %v3537_v36  ;;  %v3516_v57 = vmax.f32 %v3499_v38, %v9840_v37 }
 0xb6d   : > { %12892 = vst [vmem:[#allocation55_spill] sm:$0xff] %v9942_v40  ;;  %v9946_v58 = vpop.eup %6229  ;;  %6239 = vpow2.f32 %v3670_v34  ;;  %v3666_v52 = vmul.f32 1.442695, %v3649_v23  ;;  %v3717_v18 = vmul.f32 1.442695, %v3700_v35  ;;  %v3656_v7 = vsub.f32 %v9854_v15, %v3537_v36 }
 0xb6e   : > { %12893 = vst [vmem:[#allocation121_spill] sm:$0xff] %v9946_v58  ;;  %v3755_v54 = vadd.f32 %v9946_v58, %v9942_v40  ;;  %v9957_v46 = vpop.eup %6231  ;;  %6241 = vpow2.f32 %v3721_v45  ;;  %v3456_v11 = vpop.xlane.xlu0 %3455  ;;  %v3508_v21 = vmax.f32 %v9682_v0, %v9783_v50  ;;  %v3578_v34 = vmul.f32 1.442695, %v3554_v10 }
 0xb6f   : > { %12894 = vst [vmem:[#allocation118_spill] sm:$0xff] %v9957_v46  ;;  %6243 = vpow2.f32 %v3564_v53  ;;  %v3533_v32 = vmax.f32 %v3516_v57, %v3456_v11  ;;  %v3629_v45 = vmul.f32 1.442695, %v3605_v60  ;;  %v3707_v23 = vsub.f32 %v9933_v47, %v3537_v36  ;;  %v3477_v47 = vpop.xlane.xlu2 %3476 }
 0xb70   : > { %v3772_v39 = vadd.f32 %v9957_v46, %v3755_v54  ;;  %v9964_v31 = vpop.eup %6233  ;;  %6245 = vpow2.f32 %v3615_v25  ;;  %v3680_v57 = vmul.f32 1.442695, %v3656_v7  ;;  %v3511_v12 = vmax.f32 %v9688_v3, %v9789_v19 }
 0xb71   : > { %v9968_v49 = vpop.eup %6235  ;;  %6247 = vrcp.f32 %v9952_v24  ;;  %v3550_v35 = vsub.f32 %v9666_v61, %v3533_v32  ;;  %v3601_v25 = vsub.f32 %v9765_v8, %v3533_v32  ;;  %v3652_v60 = vsub.f32 %v9840_v37, %v3533_v32 }
 0xb72   : > { %12895 = vst [vmem:[#allocation89_spill] sm:$0xff] %v9968_v49  ;;  %v9974_v53 = vpop.eup %6237  ;;  %v9977_v15 = vadd.f32 %v9968_v49, %v3772_v39  ;;  %6249 = vpow2.f32 %v3666_v52  ;;  %v12899_v52 = vmax.f32 %v9690_v43, %v9773_v2  ;;  %v3703_v8 = vsub.f32 %v3456_v11, %v3533_v32 }
 0xb73   : > { %12896 = vst [vmem:[#allocation122_spill] sm:$0xff] %v9974_v53  ;;  %v9981_v10 = vpop.eup %6239  ;;  %v3753_v54 = vadd.f32 %v9974_v53, %v9964_v31  ;;  %6251 = vpow2.f32 %v3717_v18  ;;  %v3570_v61 = vmul.f32 1.442695, %v3550_v35  ;;  %v3731_v37 = vmul.f32 1.442695, %v3707_v23 }
 0xb74   : > { %12897 = vst [vmem:[#allocation114_spill] sm:$0xff] %v9981_v10  ;;  %v9986_v36 = vpop.eup %6241  ;;  %v3523_v39 = vmax.f32 %v12899_v52, %v9860_v26  ;;  %6253 = vpow2.f32 %v3578_v34  ;;  %v12901_v16 = vmax.f32 %v9672_v44, %v9771_v5  ;;  %v3621_v34 = vmul.f32 1.442695, %v3601_v25 }
 0xb75   : > { %12898 = vst [vmem:[#allocation97_spill] sm:$0xff] %v9986_v36  ;;  %v9992_v38 = vpop.eup %6243  ;;  %v3770_v18 = vadd.f32 %v9981_v10, %v3753_v54  ;;  %6255 = vpow2.f32 %v3629_v45  ;;  %v3672_v23 = vmul.f32 1.442695, %v3652_v60  ;;  %v3723_v10 = vmul.f32 1.442695, %v3703_v8 }
 0xb76   : > { %v9997_v7 = vpop.eup %6245  ;;  %v3519_v46 = vmax.f32 %v12901_v16, %v9842_v63  ;;  %6257 = vrcp.f32 %v9977_v15  ;;  %v3540_v11 = vmax.f32 %v3523_v39, %v3477_v47  ;;  %v3465_v54 = vpop.xlane.xlu0 %3464 }
 0xb77   : > { %12900 = vst [vmem:[#allocation68_spill] sm:$0xff] %v9997_v7  ;;  %v10004_v32 = vpop.eup %6247  ;;  %v10007_v35 = vadd.f32 %v9986_v36, %v3770_v18  ;;  %v3751_v45 = vadd.f32 %v9997_v7, %v9992_v38  ;;  %6259 = vpow2.f32 %v3680_v57  ;;  %v12905_v57 = vmax.f32 %v9676_v22, %v9777_v33 }
 0xb78   : > { %v10011_v52 = vpop.eup %6249  ;;  %6261 = vpow2.f32 %v3570_v61  ;;  %v3557_v16 = vsub.f32 %v9690_v43, %v3540_v11  ;;  %v3608_v25 = vsub.f32 %v9773_v2, %v3540_v11  ;;  %v3659_v18 = vsub.f32 %v9860_v26, %v3540_v11 }
 0xb79   : > { %12902 = vst [vmem:[#allocation95_spill] sm:$0xff] %v10011_v52  ;;  %v10015_v39 = vpop.eup %6251  ;;  %v3768_v29 = vadd.f32 %v10011_v52, %v3751_v45  ;;  %6263 = vpow2.f32 %v3731_v37  ;;  %v3536_v49 = vmax.f32 %v3519_v46, %v3465_v54  ;;  %v10025_v60 = vmax.f32 %v12905_v57, %v9848_v20  ;;  %v3462_v52 = vpop.xlane.xlu1 %3461 }
 0xb7a   : > { %12903 = vst [vmem:[#allocation96_spill] sm:$0xff] %v10015_v39  ;;  %v10019_v36 = vpop.eup %6253  ;;  %v10028_v43 = vmax.f32 %v3508_v21, %v9856_v28  ;;  %6265 = vpow2.f32 %v3621_v34  ;;  %v3710_v2 = vsub.f32 %v3477_v47, %v3540_v11  ;;  %v12907_v26 = vmax.f32 %v9684_v42, %v9757_v41 }
 0xb7b   : > { %12904 = vst [vmem:[#allocation106_spill] sm:$0xff] %v10019_v36  ;;  %v10030_v61 = vpop.eup %6255  ;;  %6267 = vrcp.f32 %v10007_v35  ;;  %v10038_v8 = vadd.f32 %v10015_v39, %v3768_v29  ;;  %v3584_v37 = vmul.f32 1.442695, %v3557_v16  ;;  %v3635_v47 = vmul.f32 1.442695, %v3608_v25 }
 0xb7c   : > { %12906 = vst [vmem:[#allocation113_spill] sm:$0xff] %v10030_v61  ;;  %v3518_v46 = vmax.f32 %v12907_v26, %v9852_v30  ;;  %v10040_v45 = vpop.eup %6257  ;;  %v3758_v21 = vadd.f32 %v10030_v61, %v10019_v36  ;;  %6269 = vpow2.f32 %v3672_v23  ;;  %v3553_v34 = vsub.f32 %v9672_v44, %v3536_v49 }
 0xb7d   : > { %v10045_v11 = vpop.eup %6259  ;;  %v3820_v57 = vmul.f32 %v10004_v32, %v9952_v24  ;;  %6271 = vpow2.f32 %v3723_v10  ;;  %v3686_v26 = vmul.f32 1.442695, %v3659_v18  ;;  %v3604_v29 = vsub.f32 %v9771_v5, %v3536_v49 }
 0xb7e   : > { %12908 = vst [vmem:[#allocation112_spill] sm:$0xff] %v10045_v11  ;;  %v10050_v16 = vpop.eup %6261  ;;  %6273 = vrcp.f32 %v10038_v8  ;;  %v3775_v14 = vadd.f32 %v10045_v11, %v3758_v21  ;;  %v3737_v23 = vmul.f32 1.442695, %v3710_v2  ;;  %v3655_v25 = vsub.f32 %v9842_v63, %v3536_v49 }
 0xb7f   : > { %v10055_v44 = vpop.eup %6263  ;;  %v10058_v39 = vmax.f32 %v3511_v12, %v9862_v48  ;;  %6275 = vpow2.f32 %v3584_v37  ;;  %v3576_v24 = vmul.f32 1.442695, %v3553_v34  ;;  %v3706_v10 = vsub.f32 %v3465_v54, %v3536_v49 }
 0xb80   : > { %12909 = vst [vmem:[#allocation99_spill] sm:$0xff] %v10055_v44  ;;  %v10060_v18 = vpop.eup %6265  ;;  %v3823_v5 = vmul.f32 %v10040_v45, %v9977_v15  ;;  %6277 = vpow2.f32 %v3635_v47  ;;  %v3627_v61 = vmul.f32 1.442695, %v3604_v29  ;;  %v3535_v58 = vmax.f32 %v3518_v46, %v3462_v52 }
 0xb81   : > { %12910 = vst [vmem:[#allocation109_spill] sm:$0xff] %v10060_v18  ;;  %v10064_v21 = vpop.eup %6267  ;;  %v3837_v2 = vsub.f32 2.0, %v3820_v57  ;;  %v10067_v63 = vadd.f32 %v10055_v44, %v3775_v14  ;;  %v3754_v12 = vadd.f32 %v10060_v18, %v10050_v16  ;;  %6279 = vpow2.f32 %v3686_v26  ;;  %v3474_v44 = vpop.xlane.xlu0 %3473 }
 0xb82   : > { %v10071_v37 = vpop.eup %6269  ;;  %6281 = vpow2.f32 %v3737_v23  ;;  %v3678_v49 = vmul.f32 1.442695, %v3655_v25  ;;  %v3552_v54 = vsub.f32 %v9684_v42, %v3535_v58  ;;  %v3603_v15 = vsub.f32 %v9757_v41, %v3535_v58  ;;  %v3486_v23 = vpop.xlane.xlu2 %3485 }
 0xb83   : > { %12911 = vst [vmem:[#allocation91_spill] sm:$0xff] %v10071_v37  ;;  %v10075_v47 = vpop.eup %6271  ;;  %v3771_v46 = vadd.f32 %v10071_v37, %v3754_v12  ;;  %6283 = vpow2.f32 %v3576_v24  ;;  %v3729_v34 = vmul.f32 1.442695, %v3706_v10  ;;  %v3654_v14 = vsub.f32 %v9852_v30, %v3535_v58 }
 0xb84   : > { %12912 = vst [vmem:[#allocation105_spill] sm:$0xff] %v10075_v47  ;;  %v10079_v57 = vpop.eup %6273  ;;  %v3840_v29 = vsub.f32 2.0, %v3823_v5  ;;  %6285 = vpow2.f32 %v3627_v61  ;;  %v3574_v26 = vmul.f32 1.442695, %v3552_v54  ;;  %v3705_v11 = vsub.f32 %v3462_v52, %v3535_v58  ;;  %v12918_v61 = vld [vmem:[#allocation92_spill] sm:$0xff]  ;;  %v12921_v54 = vld [vmem:[#allocation81_spill] sm:$0xff] }
 0xb85   : > { %v10081_v25 = vpop.eup %6275  ;;  %v12914_v42 = vmax.f32 %v9695_v56, %v9779_v51  ;;  %v10088_v12 = vmul.f32 %v10004_v32, %v3837_v2  ;;  %6287 = vrcp.f32 %v10067_v63  ;;  %v3625_v30 = vmul.f32 1.442695, %v3603_v15 }
 0xb86   : > { %12913 = vst [vmem:[#allocation74_spill] sm:$0xff] %v10081_v25  ;;  %v10091_v24 = vpop.eup %6277  ;;  %v12917_v58 = vmax.f32 %v9692_v17, %v9763_v6  ;;  %v12919_v10 = vmax.f32 %v9697_v59, %v9769_v1  ;;  %v10106_v32 = vadd.f32 %v10075_v47, %v3771_v46  ;;  %6289 = vpow2.f32 %v3678_v49 }
 0xb87   : > { %v3526_v41 = vmax.f32 %v12914_v42, %v9864_v27  ;;  %12915 = vst [vmem:[#allocation100_spill] sm:$0xff] %v10088_v12  ;;  %v10108_v2 = vpop.eup %6279  ;;  %v12922_v15 = vmax.f32 %v9701_v62, %v9775_v9  ;;  %6291 = vpow2.f32 %v3729_v34  ;;  %v12924_v46 = vmax.f32 %v9699_v55, %v9785_v4 }
 0xb88   : > { %12916 = vst [vmem:[#allocation34_spill] sm:$0xff] %v10091_v24  ;;  %v10097_v52 = vmax.f32 %v12917_v58, %v9858_v13  ;;  %v10103_v5 = vmax.f32 %v12919_v10, %v12918_v61  ;;  %v3676_v58 = vmul.f32 1.442695, %v3654_v14  ;;  %v10116_v18 = vpop.eup %6281  ;;  %v12923_v10 = vld [vmem:[#allocation119_spill] sm:$0xff]  ;;  %v10123_v49 = vmul.f32 %v10040_v45, %v3840_v29 }
 0xb89   : > { %12920 = vst [vmem:[#allocation59_spill] sm:$0xff] %v10108_v2  ;;  %v10114_v42 = vmax.f32 %v12922_v15, %v12921_v54  ;;  %v3543_v37 = vmax.f32 %v3526_v41, %v3486_v23  ;;  %v3529_v53 = vmax.f32 %v12924_v46, %v12923_v10  ;;  %6293 = vpow2.f32 %v3574_v26  ;;  %v10125_v47 = vpop.eup %6283  ;;  %v12925_v41 = vld [vmem:[#allocation69_spill] sm:$0xff] }
 0xb8a   : > { %v3727_v7 = vmul.f32 1.442695, %v3705_v11  ;;  %6295 = vpow2.f32 %v3625_v30  ;;  %v3871_v15 = vmul.f32 %v12925_v41, %v10088_v12  ;;  %v10131_v36 = vpop.eup %6285  ;;  %v10135_v46 = vmul.f32 %v10064_v21, %v10007_v35 }
 0xb8b   : > { %v3560_v34 = vsub.f32 %v9695_v56, %v3543_v37  ;;  %v3611_v14 = vsub.f32 %v9779_v51, %v3543_v37  ;;  %12926 = vst [vmem:[#allocation102_spill] sm:$0xff] %v10131_v36  ;;  %6297 = vrcp.f32 %v10106_v32  ;;  %v3662_v45 = vsub.f32 %v9864_v27, %v3543_v37  ;;  %v10140_v29 = vpop.eup %6287 }
 0xb8c   : > { %v3539_v11 = vmax.f32 %v10025_v60, %v3474_v44  ;;  %v3761_v51 = vadd.f32 %v10091_v24, %v10081_v25  ;;  %v3757_v56 = vadd.f32 %v10131_v36, %v10125_v47  ;;  %6299 = vpow2.f32 %v3676_v58  ;;  %v10146_v30 = vpop.eup %6289  ;;  %v12928_v24 = vld [vmem:[#allocation86_spill] sm:$0xff] }
 0xb8d   : > { %v3590_v26 = vmul.f32 1.442695, %v3560_v34  ;;  %12927 = vst [vmem:[#allocation88_spill] sm:$0xff] %v10146_v30  ;;  %6301 = vpow2.f32 %v3727_v7  ;;  %v3641_v35 = vmul.f32 1.442695, %v3611_v14  ;;  %v3713_v12 = vsub.f32 %v3486_v23, %v3543_v37  ;;  %v10148_v40 = vpop.eup %6291 }
 0xb8e   : > { %v3692_v41 = vmul.f32 1.442695, %v3662_v45  ;;  %v10152_v27 = vmul.f32 %v10079_v57, %v10038_v8  ;;  %v3774_v60 = vadd.f32 %v10146_v30, %v3757_v56  ;;  %v3888_v25 = vmul.f32 %v3871_v15, %v12928_v24  ;;  %v3471_v45 = vpop.xlane.xlu1 %3470 }
 0xb8f   : > { %6303 = vpow2.f32 %v3590_v26  ;;  %v10156_v36 = vpop.eup %6293  ;;  %v3838_v58 = vsub.f32 2.0, %v10135_v46  ;;  %v3556_v7 = vsub.f32 %v9676_v22, %v3539_v11  ;;  %v3607_v37 = vsub.f32 %v9777_v33, %v3539_v11  ;;  %v10173_v26 = vpop.xlane.xlu2 %3494 }
 0xb90   : > { %6305 = vpow2.f32 %v3641_v35  ;;  %v10161_v23 = vpop.eup %6295  ;;  %v3778_v34 = vadd.f32 %v10108_v2, %v3761_v51  ;;  %v10165_v8 = vadd.f32 %v10148_v40, %v3774_v60  ;;  %3923 = vrot.lane.b32.xlu0 %v3888_v25, %s6639_s24  ;;  %v3658_v14 = vsub.f32 %v9848_v20, %v3539_v11 }
 0xb91   : > { %12929 = vst [vmem:[#allocation101_spill] sm:$0xff] %v10161_v23  ;;  %v3709_v15 = vsub.f32 %v3474_v44, %v3539_v11  ;;  %v10169_v56 = vpop.eup %6297  ;;  %v3756_v22 = vadd.f32 %v10161_v23, %v10156_v36  ;;  %6307 = vpow2.f32 %v3692_v41  ;;  %v3743_v33 = vmul.f32 1.442695, %v3713_v12 }
 0xb92   : > { %v3582_v46 = vmul.f32 1.442695, %v3556_v7  ;;  %v10175_v51 = vpop.eup %6299  ;;  %v3836_v35 = vsub.f32 2.0, %v10152_v27  ;;  %6309 = vrcp.f32 %v10165_v8  ;;  %v3633_v25 = vmul.f32 1.442695, %v3607_v37 }
 0xb93   : > { %v3684_v20 = vmul.f32 1.442695, %v3658_v14  ;;  %v10179_v44 = vpop.eup %6301  ;;  %v10183_v11 = vmul.f32 %v10140_v29, %v10067_v63  ;;  %v3773_v41 = vadd.f32 %v10175_v51, %v3756_v22  ;;  %v3538_v12 = vmax.f32 %v10097_v52, %v3471_v45 }
 0xb94   : > { %6311 = vpow2.f32 %v3582_v46  ;;  %v10190_v7 = vadd.f32 %v10116_v18, %v3778_v34  ;;  %v3735_v27 = vmul.f32 1.442695, %v3709_v15  ;;  %v10193_v37 = vmax.f32 %v3529_v53, %v10173_v26 }
 0xb95   : > { %v10187_v60 = vpop.eup %6303  ;;  %6313 = vpow2.f32 %v3633_v25  ;;  %v3790_v63 = vadd.f32 %v10179_v44, %v3773_v41  ;;  %v3555_v22 = vsub.f32 %v9692_v17, %v3538_v12  ;;  %v3606_v46 = vsub.f32 %v9763_v6, %v3538_v12 }
 0xb96   : > { %v10195_v14 = vpop.eup %6305  ;;  %6315 = vpow2.f32 %v3743_v33  ;;  %v10202_v52 = vmul.f32 %v10169_v56, %v10106_v32  ;;  %v3657_v53 = vsub.f32 %v9858_v13, %v3538_v12  ;;  %v3708_v33 = vsub.f32 %v3471_v45, %v3538_v12  ;;  %v3483_v45 = vpop.xlane.xlu0 %3482 }
 0xb97   : > { %12930 = vst [vmem:[#allocation93_spill] sm:$0xff] %v10195_v14  ;;  %v3764_v34 = vadd.f32 %v10195_v14, %v10187_v60  ;;  %6317 = vpow2.f32 %v3684_v20  ;;  %v10207_v15 = vpop.eup %6307  ;;  %v3580_v25 = vmul.f32 1.442695, %v3555_v22  ;;  %v3631_v41 = vmul.f32 1.442695, %v3606_v46 }
 0xb98   : > { %6319 = vrcp.f32 %v3790_v63  ;;  %v10209_v30 = vpop.eup %6309  ;;  %v3682_v6 = vmul.f32 1.442695, %v3657_v53  ;;  %v3563_v32 = vsub.f32 %v9699_v55, %v10193_v37  ;;  %v10217_v20 = vmul.f32 %v10064_v21, %v3838_v58  ;;  %v10234_v53 = vpop.xlane.xlu1 %3479 }
 0xb99   : > { %v3781_v17 = vadd.f32 %v10207_v15, %v3764_v34  ;;  %6321 = vpow2.f32 %v3735_v27  ;;  %v3733_v13 = vmul.f32 1.442695, %v3708_v33  ;;  %v3614_v22 = vsub.f32 %v9785_v4, %v10193_v37 }
 0xb9a   : > { %v10214_v2 = vpop.eup %6311  ;;  %6323 = vpow2.f32 %v3580_v25  ;;  %v10224_v46 = vmul.f32 %v10079_v57, %v3836_v35  ;;  %v3596_v27 = vmul.f32 1.442695, %v3563_v32  ;;  %v3665_v55 = vsub.f32 %v12923_v10, %v10193_v37 }
 0xb9b   : > { %v10221_v12 = vpop.eup %6313  ;;  %6325 = vpow2.f32 %v3631_v41  ;;  %v3647_v58 = vmul.f32 1.442695, %v3614_v22  ;;  %v3839_v57 = vsub.f32 2.0, %v10202_v52  ;;  %v3542_v10 = vmax.f32 %v10028_v43, %v3483_v45 }
 0xb9c   : > { %12931 = vst [vmem:[#allocation116_spill] sm:$0xff] %v10221_v12  ;;  %v10228_v34 = vpop.eup %6315  ;;  %6327 = vrcp.f32 %v10190_v7  ;;  %v3760_v4 = vadd.f32 %v10221_v12, %v10214_v2  ;;  %v3825_v33 = vmul.f32 %v10209_v30, %v10165_v8  ;;  %v3872_v22 = vmul.f32 %v9964_v31, %v10217_v20 }
 0xb9d   : > { %v10236_v25 = vpop.eup %6317  ;;  %v10240_v35 = vadd.f32 %v10228_v34, %v3781_v17  ;;  %6329 = vpow2.f32 %v3682_v6  ;;  %v3698_v52 = vmul.f32 1.442695, %v3665_v55  ;;  %v3559_v17 = vsub.f32 %v9682_v0, %v3542_v10 }
 0xb9e   : > { %v10243_v41 = vpop.eup %6319  ;;  %v3777_v32 = vadd.f32 %v10236_v25, %v3760_v4  ;;  %6331 = vpow2.f32 %v3733_v13  ;;  %v3541_v43 = vmax.f32 %v10103_v5, %v10234_v53  ;;  %v3610_v8 = vsub.f32 %v9783_v50, %v3542_v10 }
 0xb9f   : > { %v10250_v21 = vpop.eup %6321  ;;  %6333 = vpow2.f32 %v3596_v27  ;;  %v3661_v13 = vsub.f32 %v9856_v28, %v3542_v10  ;;  %v3824_v31 = vmul.f32 %v10243_v41, %v3790_v63  ;;  %v3588_v27 = vmul.f32 1.442695, %v3559_v17 }
 0xba0   : > { %v10255_v6 = vpop.eup %6323  ;;  %v3794_v14 = vadd.f32 %v10250_v21, %v3777_v32  ;;  %6335 = vpow2.f32 %v3647_v58  ;;  %v3712_v0 = vsub.f32 %v3483_v45, %v3542_v10  ;;  %v3639_v32 = vmul.f32 1.442695, %v3610_v8 }
 0xba1   : > { %v10260_v4 = vpop.eup %6325  ;;  %6337 = vrcp.f32 %v10240_v35  ;;  %v3690_v58 = vmul.f32 1.442695, %v3661_v13  ;;  %v3716_v50 = vsub.f32 %v10173_v26, %v10193_v37  ;;  %v3558_v63 = vsub.f32 %v9697_v59, %v3541_v43 }
 0xba2   : > { %12932 = vst [vmem:[#allocation92_spill] sm:$0xff] %v10260_v4  ;;  %v10264_v55 = vpop.eup %6327  ;;  %6339 = vrcp.f32 %v3794_v14  ;;  %v3759_v5 = vadd.f32 %v10260_v4, %v10255_v6  ;;  %v3741_v28 = vmul.f32 1.442695, %v3712_v0  ;;  %v3842_v45 = vsub.f32 2.0, %v3825_v33  ;;  %v3492_v0 = vpop.xlane.xlu0 %3491 }
 0xba3   : > { %v10268_v12 = vpop.eup %6329  ;;  %6341 = vpow2.f32 %v3698_v52  ;;  %v3609_v17 = vsub.f32 %v9769_v1, %v3541_v43  ;;  %v3586_v8 = vmul.f32 1.442695, %v3558_v63  ;;  %v3660_v52 = vsub.f32 %v12918_v61, %v3541_v43  ;;  %v10291_v61 = vpop.xlane.xlu1 %3488 }
 0xba4   : > { %v10273_v23 = vpop.eup %6331  ;;  %v3776_v10 = vadd.f32 %v10268_v12, %v3759_v5  ;;  %6343 = vpow2.f32 %v3588_v27  ;;  %v3711_v13 = vsub.f32 %v10234_v53, %v3541_v43  ;;  %v3841_v37 = vsub.f32 2.0, %v3824_v31  ;;  %v12934_v31 = vld [vmem:[#allocation87_spill] sm:$0xff] }
 0xba5   : > { %v10277_v4 = vpop.eup %6333  ;;  %6345 = vpow2.f32 %v3639_v32  ;;  %v3637_v33 = vmul.f32 1.442695, %v3609_v17  ;;  %v10287_v1 = vmul.f32 %v10169_v56, %v3839_v57  ;;  %v3749_v27 = vmul.f32 1.442695, %v3716_v50 }
 0xba6   : > { %v10281_v26 = vpop.eup %6335  ;;  %v3793_v59 = vadd.f32 %v10273_v23, %v3776_v10  ;;  %6347 = vpow2.f32 %v3690_v58  ;;  %v3688_v43 = vmul.f32 1.442695, %v3660_v52  ;;  %v3889_v58 = vmul.f32 %v3872_v22, %v12934_v31  ;;  %v12935_v22 = vld [vmem:[#allocation83_spill] sm:$0xff] }
 0xba7   : > { %12933 = vst [vmem:[#allocation81_spill] sm:$0xff] %v10281_v26  ;;  %v10284_v5 = vpop.eup %6337  ;;  %v3767_v32 = vadd.f32 %v10281_v26, %v10277_v4  ;;  %6349 = vpow2.f32 %v3741_v28  ;;  %v3870_v63 = vmul.f32 %v9992_v38, %v10224_v46  ;;  %v10301_v56 = vmul.f32 %v10209_v30, %v3842_v45 }
 0xba8   : > { %v10293_v53 = vpop.eup %6339  ;;  %6351 = vrcp.f32 %v3793_v59  ;;  %v3739_v57 = vmul.f32 1.442695, %v3711_v13  ;;  %v3545_v50 = vmax.f32 %v10058_v39, %v3492_v0  ;;  %v10307_v17 = vmul.f32 %v10243_v41, %v3841_v37  ;;  %3925 = vrot.lane.b32.xlu2 %v3889_v58, %s6639_s24 }
 0xba9   : > { %v10298_v10 = vpop.eup %6341  ;;  %6353 = vpow2.f32 %v3586_v8  ;;  %v3887_v52 = vmul.f32 %v3870_v63, %v12935_v22  ;;  %v3544_v38 = vmax.f32 %v10114_v42, %v10291_v61  ;;  %v10316_v30 = vmul.f32 %v10293_v53, %v3794_v14 }
 0xbaa   : > { %v10304_v28 = vpop.eup %6343  ;;  %6355 = vpow2.f32 %v3637_v33  ;;  %v3784_v39 = vadd.f32 %v10298_v10, %v3767_v32  ;;  %v3562_v45 = vsub.f32 %v9688_v3, %v3545_v50  ;;  %v3613_v42 = vsub.f32 %v9789_v19, %v3545_v50 }
 0xbab   : > { %v10313_v26 = vpop.eup %6345  ;;  %6357 = vpow2.f32 %v3749_v27  ;;  %3921 = vrot.lane.b32.xlu1 %v3887_v52, %s6639_s24  ;;  %v3664_v13 = vsub.f32 %v9862_v48, %v3545_v50  ;;  %v3715_v33 = vsub.f32 %v3492_v0, %v3545_v50  ;;  %v3873_v3 = vmul.f32 %v10050_v16, %v10287_v1 }
 0xbac   : > { %12936 = vst [vmem:[#allocation119_spill] sm:$0xff] %v10313_v26  ;;  %v10320_v41 = vpop.eup %6347  ;;  %v3763_v8 = vadd.f32 %v10313_v26, %v10304_v28  ;;  %6359 = vpow2.f32 %v3688_v43  ;;  %v3594_v14 = vmul.f32 1.442695, %v3562_v45  ;;  %v3645_v58 = vmul.f32 1.442695, %v3613_v42 }
 0xbad   : > { %v10327_v37 = vpop.eup %6349  ;;  %6361 = vpow2.f32 %v3739_v57  ;;  %v3696_v63 = vmul.f32 1.442695, %v3664_v13  ;;  %v3561_v43 = vsub.f32 %v9701_v62, %v3544_v38  ;;  %v3747_v48 = vmul.f32 1.442695, %v3715_v33 }
 0xbae   : > { %v6352_v27 = vpop.eup %6351  ;;  %v3780_v32 = vadd.f32 %v10320_v41, %v3763_v8  ;;  %6363 = vpow2.f32 %v3594_v14  ;;  %v3612_v26 = vsub.f32 %v9775_v9, %v3544_v38  ;;  %v3663_v50 = vsub.f32 %v12921_v54, %v3544_v38  ;;  %v12938_v14 = vld [vmem:[#allocation90_spill] sm:$0xff] }
 0xbaf   : > { %v10333_v52 = vpop.eup %6353  ;;  %v3827_v19 = vmul.f32 %v6352_v27, %v3793_v59  ;;  %6365 = vpow2.f32 %v3645_v58  ;;  %v3592_v16 = vmul.f32 1.442695, %v3561_v43  ;;  %v3714_v13 = vsub.f32 %v10291_v61, %v3544_v38 }
 0xbb0   : > { %v10336_v57 = vpop.eup %6355  ;;  %v3797_v0 = vadd.f32 %v10327_v37, %v3780_v32  ;;  %6367 = vpow2.f32 %v3696_v63  ;;  %v3643_v59 = vmul.f32 1.442695, %v3612_v26  ;;  %v3694_v9 = vmul.f32 1.442695, %v3663_v50  ;;  %v12941_v26 = vld [vmem:[#allocation55_spill] sm:$0xff] }
 0xbb1   : > { %12937 = vst [vmem:[#allocation69_spill] sm:$0xff] %v10336_v57  ;;  %v10340_v45 = vpop.eup %6357  ;;  %v3844_v8 = vsub.f32 2.0, %v3827_v19  ;;  %v3762_v62 = vadd.f32 %v10336_v57, %v10333_v52  ;;  %v3890_v33 = vmul.f32 %v3873_v3, %v12938_v14  ;;  %v12939_v54 = vsub.f32 2.0, %v10183_v11 }
 0xbb2   : > { %v10344_v42 = vpop.eup %6359  ;;  %6369 = vrcp.f32 %v3797_v0  ;;  %v3874_v63 = vmul.f32 %v12941_v26, %v10123_v49  ;;  %v3829_v19 = vmul.f32 %v10264_v55, %v10190_v7  ;;  %v3845_v61 = vsub.f32 2.0, %v10316_v30 }
 0xbb3   : > { %v10348_v32 = vpop.eup %6361  ;;  %v10353_v58 = vmul.f32 %v10140_v29, %v12939_v54  ;;  %v3779_v43 = vadd.f32 %v10344_v42, %v3762_v62  ;;  %6371 = vpow2.f32 %v3747_v48  ;;  %3927 = vrot.lane.b32.xlu0 %v3890_v33, %s6639_s24  ;;  %v3876_v11 = vmul.f32 %v10125_v47, %v10301_v56  ;;  %v12942_v48 = vld [vmem:[#allocation94_spill] sm:$0xff] }
 0xbb4   : > { %6373 = vpow2.f32 %v3592_v16  ;;  %v10364_v38 = vpop.eup %6363  ;;  %v3745_v3 = vmul.f32 1.442695, %v3714_v13  ;;  %v3891_v50 = vmul.f32 %v3874_v63, %v12942_v48  ;;  %v10370_v54 = vmul.f32 %v6352_v27, %v3844_v8  ;;  %v12945_v27 = vld [vmem:[#allocation103_spill] sm:$0xff]  ;;  %v12947_v63 = vld [vmem:[#allocation106_spill] sm:$0xff] }
 0xbb5   : > { %12940 = vst [vmem:[#allocation123_spill] sm:$0xff] %v10353_v58  ;;  %v3796_v29 = vadd.f32 %v10348_v32, %v3779_v43  ;;  %6375 = vpow2.f32 %v3643_v59  ;;  %v10368_v62 = vpop.eup %6365  ;;  %v3801_v7 = vadd.f32 %v10340_v45, %v3784_v39  ;;  %v3875_v30 = vmul.f32 %v10156_v36, %v10307_v17  ;;  %v12946_v39 = vld [vmem:[#allocation98_spill] sm:$0xff] }
 0xbb6   : > { %12943 = vst [vmem:[#allocation55_spill] sm:$0xff] %v10368_v62  ;;  %6377 = vpow2.f32 %v3694_v9  ;;  %v10375_v16 = vpop.eup %6367  ;;  %v3766_v47 = vadd.f32 %v10368_v62, %v10364_v38  ;;  %3929 = vrot.lane.b32.xlu1 %v3891_v50, %s6639_s24  ;;  %v3846_v13 = vsub.f32 2.0, %v3829_v19  ;;  %v10381_v33 = vmul.f32 %v10293_v53, %v3845_v61 }
 0xbb7   : > { %12944 = vst [vmem:[#allocation124_spill] sm:$0xff] %v10375_v16  ;;  %6379 = vrcp.f32 %v3796_v29  ;;  %v3893_v8 = vmul.f32 %v3876_v11, %v12945_v27  ;;  %v3892_v9 = vmul.f32 %v3875_v30, %v12946_v39  ;;  %v3877_v62 = vmul.f32 %v12947_v63, %v10353_v58  ;;  %v12950_v27 = vld [vmem:[#allocation104_spill] sm:$0xff] }
 0xbb8   : > { %v6370_v59 = vpop.eup %6369  ;;  %v3783_v26 = vadd.f32 %v10375_v16, %v3766_v47  ;;  %6381 = vpow2.f32 %v3745_v3  ;;  %v3878_v53 = vmul.f32 %v10255_v6, %v10370_v54  ;;  %v3879_v50 = vmul.f32 %v10214_v2, %v10381_v33  ;;  %v12951_v39 = vld [vmem:[#allocation60_spill] sm:$0xff] }
 0xbb9   : > { %v10385_v43 = vpop.eup %6371  ;;  %v3831_v36 = vmul.f32 %v6370_v59, %v3797_v0  ;;  %6383 = vrcp.f32 %v3801_v7  ;;  %3931 = vrot.lane.b32.xlu2 %v3892_v9, %s6639_s24  ;;  %v10406_v47 = vmul.f32 %v10264_v55, %v3846_v13  ;;  %v3832_v6 = vmul.f32 %v10284_v5, %v10240_v35  ;;  %v12949_v9 = vld [vmem:[#allocation50_spill] sm:$0xff] }
 0xbba   : > { %v10390_v57 = vpop.eup %6373  ;;  %v3800_v61 = vadd.f32 %v10385_v43, %v3783_v26  ;;  %v3894_v26 = vmul.f32 %v3877_v62, %v12949_v9  ;;  %v3896_v35 = vmul.f32 %v3879_v50, %v12951_v39  ;;  %v12952_v62 = vld [vmem:[#allocation74_spill] sm:$0xff] }
 0xbbb   : > { %v10395_v19 = vpop.eup %6375  ;;  %v3848_v0 = vsub.f32 2.0, %v3831_v36  ;;  %3933 = vrot.lane.b32.xlu0 %v3893_v8, %s6639_s24  ;;  %v3849_v16 = vsub.f32 2.0, %v3832_v6  ;;  %v12953_v6 = vld [vmem:[#allocation111_spill] sm:$0xff] }
 0xbbc   : > { %12948 = vst [vmem:[#allocation106_spill] sm:$0xff] %v10395_v19  ;;  %v10398_v11 = vpop.eup %6377  ;;  %v3765_v3 = vadd.f32 %v10395_v19, %v10390_v57  ;;  %6385 = vrcp.f32 %v3800_v61  ;;  %v3895_v19 = vmul.f32 %v3878_v53, %v12950_v27 }
 0xbbd   : > { %v6380_v30 = vpop.eup %6379  ;;  %v10416_v8 = vmul.f32 %v6370_v59, %v3848_v0  ;;  %v10431_v50 = vmul.f32 %v10284_v5, %v3849_v16  ;;  %v10446_v5 = vmul.f32 %v10148_v40, %v10301_v56 }
 0xbbe   : > { %v3830_v63 = vmul.f32 %v6380_v30, %v3796_v29  ;;  %v3782_v36 = vadd.f32 %v10398_v11, %v3765_v3  ;;  %v10413_v58 = vpop.eup %6381  ;;  %3935 = vrot.lane.b32.xlu1 %v3894_v26, %s6639_s24  ;;  %v3880_v29 = vmul.f32 %v12952_v62, %v10406_v47 }
 0xbbf   : > { %v6384_v2 = vpop.eup %6383  ;;  %v3882_v59 = vmul.f32 %v10304_v28, %v10416_v8  ;;  %v10442_v28 = vmul.f32 %v10179_v44, %v10307_v17  ;;  %v10458_v44 = vmul.f32 %v10116_v18, %v10406_v47  ;;  %v10476_v18 = vmul.f32 %v10250_v21, %v10381_v33 }
 0xbc0   : > { %v3847_v55 = vsub.f32 2.0, %v3830_v63  ;;  %v3799_v13 = vadd.f32 %v10413_v58, %v3782_v36  ;;  %v3835_v3 = vmul.f32 %v6384_v2, %v3801_v7  ;;  %v12954_v36 = vld [vmem:[#allocation43_spill] sm:$0xff]  ;;  %v10492_v21 = vmul.f32 %v10175_v51, %v10307_v17 }
 0xbc1   : > { %3937 = vrot.lane.b32.xlu2 %v3895_v19, %s6639_s24  ;;  %v12955_v19 = vld [vmem:[#allocation105_spill] sm:$0xff]  ;;  %v10512_v51 = vmul.f32 %v10327_v37, %v10416_v8 }
 0xbc2   : > { %v10422_v9 = vmul.f32 %v6380_v30, %v3847_v55  ;;  %6387 = vrcp.f32 %v3799_v13  ;;  %v6386_v53 = vpop.eup %6385  ;;  %v3897_v30 = vmul.f32 %v3880_v29, %v12953_v6  ;;  %v10437_v7 = vmul.f32 %v12955_v19, %v10287_v1 }
 0xbc3   : > { %v3834_v26 = vmul.f32 %v6386_v53, %v3800_v61  ;;  %3939 = vrot.lane.b32.xlu0 %v3896_v35, %s6639_s24  ;;  %v3852_v61 = vsub.f32 2.0, %v3835_v3  ;;  %v12956_v35 = vld [vmem:[#allocation52_spill] sm:$0xff] }
 0xbc4   : > { %v3881_v0 = vmul.f32 %v10333_v52, %v10422_v9  ;;  %v3899_v62 = vmul.f32 %v3882_v59, %v12956_v35 }
 0xbc5   : > { %v3851_v63 = vsub.f32 2.0, %v3834_v26  ;;  %v3883_v26 = vmul.f32 %v10187_v60, %v10431_v50  ;;  %v10454_v3 = vmul.f32 %v6384_v2, %v3852_v61  ;;  %v12957_v60 = vld [vmem:[#allocation61_spill] sm:$0xff]  ;;  %v10472_v2 = vmul.f32 %v10273_v23, %v10370_v54  ;;  %v12959_v23 = vld [vmem:[#allocation108_spill] sm:$0xff]  ;;  %v12960_v61 = vld [vmem:[#allocation115_spill] sm:$0xff] }
 0xbc6   : > { %v3898_v55 = vmul.f32 %v3881_v0, %v12954_v36  ;;  %3941 = vrot.lane.b32.xlu1 %v3897_v30, %s6639_s24  ;;  %v12958_v30 = vld [vmem:[#allocation110_spill] sm:$0xff] }
 0xbc7   : > { %v10448_v16 = vmul.f32 %v6386_v53, %v3851_v63  ;;  %v3900_v59 = vmul.f32 %v3883_v26, %v12957_v60  ;;  %v12962_v26 = vld [vmem:[#allocation100_spill] sm:$0xff] }
 0xbc8   : > { %v6388_v52 = vpop.eup %6387 }
 0xbc9   : > { %v3833_v29 = vmul.f32 %v6388_v52, %v3799_v13  ;;  %3943 = vrot.lane.b32.xlu2 %v3898_v55, %s6639_s24  ;;  %v3885_v40 = vmul.f32 %v10364_v38, %v10448_v16  ;;  %v10465_v13 = vmul.f32 %v10228_v34, %v10431_v50  ;;  %v10483_v34 = vmul.f32 %v10340_v45, %v10454_v3 }
 0xbca   : > { %v3886_v55 = vmul.f32 %v10277_v4, %v10454_v3  ;;  %v10501_v45 = vmul.f32 %v10268_v12, %v10370_v54  ;;  %v10518_v12 = vmul.f32 %v10298_v10, %v10454_v3  ;;  %v10535_v10 = vmul.f32 %v10320_v41, %v10416_v8  ;;  %v12968_v41 = vld [vmem:[#allocation121_spill] sm:$0xff] }
 0xbcb   : > { %v3850_v0 = vsub.f32 2.0, %v3833_v29  ;;  %3945 = vrot.lane.b32.xlu0 %v3899_v62, %s6639_s24  ;;  %v3902_v63 = vmul.f32 %v3885_v40, %v12958_v30  ;;  %v10508_v29 = vmul.f32 %v10348_v32, %v10422_v9  ;;  %v10523_v40 = vmul.f32 %v10236_v25, %v10381_v33  ;;  %v12964_v32 = vld [vmem:[#allocation122_spill] sm:$0xff] }
 0xbcc   : > { %v3903_v4 = vmul.f32 %v3886_v55, %v12960_v61  ;;  %12966 = vst [vmem:[#allocation105_spill] sm:$0xff] %v10535_v10  ;;  %v12967_v55 = vld [vmem:[#allocation109_spill] sm:$0xff] }
 0xbcd   : > { %v10467_v53 = vmul.f32 %v6388_v52, %v3850_v0  ;;  %v12961_v52 = vld [vmem:[#allocation68_spill] sm:$0xff] }
 0xbce   : > { %3947 = vrot.lane.b32.xlu1 %v3900_v59, %s6639_s24  ;;  %v3989_v62 = vmul.f32 %v12961_v52, %v10224_v46  ;;  %v3991_v59 = vmul.f32 %v12964_v32, %v10217_v20  ;;  %v3993_v52 = vmul.f32 %v12968_v41, %v10123_v49 }
 0xbcf   : > { %v3884_v38 = vmul.f32 %v10390_v57, %v10467_v53  ;;  %v10497_v57 = vmul.f32 %v10207_v15, %v10431_v50  ;;  %v12963_v15 = vld [vmem:[#allocation120_spill] sm:$0xff] }
 0xbd0   : > { %v3990_v0 = vmul.f32 %v12963_v15, %v12962_v26  ;;  %v4008_v25 = vmul.f32 %v3991_v59, %v12934_v31  ;;  %v4010_v32 = vmul.f32 %v3993_v52, %v12942_v48  ;;  %v12971_v59 = vld [vmem:[#allocation124_spill] sm:$0xff] }
 0xbd1   : > { %v3901_v19 = vmul.f32 %v3884_v38, %v12959_v23  ;;  %v4006_v38 = vmul.f32 %v3989_v62, %v12935_v22  ;;  %v12969_v62 = vld [vmem:[#allocation101_spill] sm:$0xff] }
 0xbd2   : > { %v4007_v37 = vmul.f32 %v3990_v0, %v12928_v24  ;;  %v3994_v15 = vmul.f32 %v12969_v62, %v10307_v17  ;;  %v12974_v17 = vld [vmem:[#allocation102_spill] sm:$0xff]  ;;  %v12978_v62 = vld [vmem:[#allocation103_spill] sm:$0xff] }
 0xbd3   : > { %3949 = vrot.lane.b32.xlu2 %v3901_v19, %s6639_s24  ;;  %3951 = vrot.lane.b32.xlu0 %v3902_v63, %s6639_s24  ;;  %v10531_v63 = vmul.f32 %v10344_v42, %v10422_v9  ;;  %v3992_v19 = vmul.f32 %v12967_v55, %v10287_v1  ;;  %v10548_v42 = vmul.f32 %v10385_v43, %v10448_v16  ;;  %v12975_v55 = vld [vmem:[#allocation123_spill] sm:$0xff] }
 0xbd4   : > { %v10563_v43 = vmul.f32 %v12971_v59, %v10448_v16 }
 0xbd5   : > { %12965 = vst [vmem:[#allocation74_spill] sm:$0xff] %v10531_v63  ;;  %v4009_v0 = vmul.f32 %v3992_v19, %v12938_v14  ;;  %v12976_v19 = vld [vmem:[#allocation113_spill] sm:$0xff] }
 0xbd6   : > { %3953 = vrot.lane.b32.xlu1 %v3903_v4, %s6639_s24  ;;  %v10544_v4 = vmul.f32 %v10413_v58, %v10467_v53  ;;  %v10559_v58 = vmul.f32 %v10398_v11, %v10467_v53  ;;  %12972 = vst [vmem:[#allocation100_spill] sm:$0xff] %v10563_v43  ;;  %v3996_v41 = vmul.f32 %v12976_v19, %v12975_v55  ;;  %v12977_v11 = vld [vmem:[#allocation92_spill] sm:$0xff]  ;;  %v12979_v43 = vld [vmem:[#allocation50_spill] sm:$0xff] }
 0xbd7   : > { %v3997_v52 = vmul.f32 %v12977_v11, %v10370_v54  ;;  %v12982_v54 = vld [vmem:[#allocation69_spill] sm:$0xff] }
 0xbd8   : > { %12970 = vst [vmem:[#allocation68_spill] sm:$0xff] %v10559_v58  ;;  %v4013_v58 = vmul.f32 %v3996_v41, %v12979_v43 }
 0xbdb   : > { %4040 = vrot.lane.b32.xlu2 %v4006_v38, %s6641_s26  ;;  %4042 = vrot.lane.b32.xlu0 %v4007_v37, %s6641_s26  ;;  %v12973_v38 = vld [vmem:[#allocation98_spill] sm:$0xff] }
 0xbdc   : > { %v4011_v37 = vmul.f32 %v3994_v15, %v12973_v38  ;;  %v4014_v15 = vmul.f32 %v3997_v52, %v12950_v27  ;;  %v12984_v52 = vld [vmem:[#allocation93_spill] sm:$0xff] }
 0xbde   : > { %4044 = vrot.lane.b32.xlu1 %v4008_v25, %s6641_s26  ;;  %v3995_v25 = vmul.f32 %v12974_v17, %v10301_v56  ;;  %v12981_v17 = vld [vmem:[#allocation34_spill] sm:$0xff] }
 0xbdf   : > { %v3999_v19 = vmul.f32 %v12981_v17, %v10406_v47 }
 0xbe0   : > { %v4012_v59 = vmul.f32 %v3995_v25, %v12978_v62 }
 0xbe1   : > { %v4016_v41 = vmul.f32 %v3999_v19, %v12953_v6 }
 0xbe3   : > { %4046 = vrot.lane.b32.xlu2 %v4009_v0, %s6641_s26  ;;  %4048 = vrot.lane.b32.xlu0 %v4010_v32, %s6641_s26  ;;  %v12980_v0 = vld [vmem:[#allocation116_spill] sm:$0xff] }
 0xbe4   : > { %v3998_v32 = vmul.f32 %v12980_v0, %v10381_v33  ;;  %v12983_v33 = vld [vmem:[#allocation119_spill] sm:$0xff] }
 0xbe5   : > { %v4001_v11 = vmul.f32 %v12983_v33, %v10416_v8  ;;  %v12986_v8 = vld [vmem:[#allocation55_spill] sm:$0xff] }
 0xbe6   : > { %4050 = vrot.lane.b32.xlu1 %v4011_v37, %s6641_s26  ;;  %v4000_v37 = vmul.f32 %v12982_v54, %v10422_v9  ;;  %v4015_v25 = vmul.f32 %v3998_v32, %v12951_v39  ;;  %v12985_v9 = vld [vmem:[#allocation106_spill] sm:$0xff]  ;;  %v4004_v19 = vmul.f32 %v12986_v8, %v10448_v16  ;;  %v12989_v16 = vld [vmem:[#allocation107_spill] sm:$0xff]  ;;  %v4181_v8 = vmul.f32 %v10442_v28, %v12973_v38 }
 0xbe7   : > { %v4018_v0 = vmul.f32 %v4001_v11, %v12956_v35  ;;  %v4160_v33 = vmul.f32 %v12989_v16, %v12962_v26 }
 0xbeb   : > { %4052 = vrot.lane.b32.xlu2 %v4012_v59, %s6641_s26  ;;  %4054 = vrot.lane.b32.xlu0 %v4013_v58, %s6641_s26  ;;  %v4017_v58 = vmul.f32 %v4000_v37, %v12954_v36  ;;  %v4002_v59 = vmul.f32 %v12984_v52, %v10431_v50  ;;  %v12987_v50 = vld [vmem:[#allocation81_spill] sm:$0xff]  ;;  %v4177_v52 = vmul.f32 %v4160_v33, %v12928_v24 }
 0xbec   : > { %v4005_v54 = vmul.f32 %v12987_v50, %v10454_v3  ;;  %v12990_v3 = vld [vmem:[#allocation97_spill] sm:$0xff]  ;;  %v4182_v50 = vmul.f32 %v10446_v5, %v12978_v62 }
 0xbed   : > { %v4019_v32 = vmul.f32 %v4002_v59, %v12957_v60  ;;  %v4161_v11 = vmul.f32 %v12990_v3, %v10217_v20 }
 0xbee   : > { %4056 = vrot.lane.b32.xlu1 %v4014_v15, %s6641_s26  ;;  %v4003_v15 = vmul.f32 %v12985_v9, %v10467_v53  ;;  %v12988_v53 = vld [vmem:[#allocation96_spill] sm:$0xff] }
 0xbef   : > { %v4159_v37 = vmul.f32 %v12988_v53, %v10224_v46  ;;  %v4178_v59 = vmul.f32 %v4161_v11, %v12934_v31  ;;  %v4191_v11 = vmul.f32 %v10548_v42, %v12958_v30  ;;  %v12995_v42 = vld [vmem:[#allocation21_spill] sm:$0xff] }
 0xbf0   : > { %v4020_v17 = vmul.f32 %v4003_v15, %v12959_v23  ;;  %v4179_v15 = vmul.f32 %v10437_v7, %v12938_v14  ;;  %v12992_v7 = vld [vmem:[#allocation99_spill] sm:$0xff] }
 0xbf3   : > { %4058 = vrot.lane.b32.xlu2 %v4015_v25, %s6641_s26  ;;  %4060 = vrot.lane.b32.xlu0 %v4016_v41, %s6641_s26  ;;  %v4021_v25 = vmul.f32 %v4004_v19, %v12958_v30  ;;  %v4022_v41 = vmul.f32 %v4005_v54, %v12960_v61  ;;  %v4166_v54 = vmul.f32 %v12992_v7, %v12975_v55  ;;  %v12999_v7 = vld [vmem:[#allocation26_spill] sm:$0xff] }
 0xbf5   : > { %v4183_v53 = vmul.f32 %v4166_v54, %v12979_v43 }
 0xbf6   : > { %4062 = vrot.lane.b32.xlu1 %v4017_v58, %s6641_s26  ;;  %v4176_v58 = vmul.f32 %v4159_v37, %v12935_v22  ;;  %v4184_v37 = vmul.f32 %v10472_v2, %v12950_v27  ;;  %v4187_v2 = vmul.f32 %v10508_v29, %v12954_v36  ;;  %v4190_v29 = vmul.f32 %v10544_v4, %v12959_v23  ;;  %v12994_v4 = vld [vmem:[#allocation27_spill] sm:$0xff] }
 0xbfb   : > { %4064 = vrot.lane.b32.xlu2 %v4018_v0, %s6641_s26  ;;  %4066 = vrot.lane.b32.xlu0 %v4019_v32, %s6641_s26  ;;  %v12991_v0 = vld [vmem:[#allocation89_spill] sm:$0xff] }
 0xbfc   : > { %v4163_v32 = vmul.f32 %v12991_v0, %v10123_v49 }
 0xbfe   : > { %4068 = vrot.lane.b32.xlu1 %v4020_v17, %s6641_s26  ;;  %v4180_v17 = vmul.f32 %v4163_v32, %v12942_v48 }
 0xc02   : > { %v10624_v9 = vpop.permute.xlu2 %3925  ;;  %v3924_v5 = vpop.permute.xlu0 %3923 }
 0xc03   : > { %4070 = vrot.lane.b32.xlu2 %v4021_v25, %s6641_s26  ;;  %4072 = vrot.lane.b32.xlu0 %v4022_v41, %s6641_s26  ;;  %v4185_v25 = vmul.f32 %v10476_v18, %v12951_v39  ;;  %v4188_v18 = vmul.f32 %v10512_v51, %v12956_v35 }
 0xc06   : > { %4210 = vrot.lane.b32.xlu1 %v4176_v58, %s6640_s25  ;;  %v4186_v58 = vmul.f32 %v10458_v44, %v12953_v6  ;;  %v4189_v44 = vmul.f32 %v10465_v13, %v12957_v60  ;;  %v4192_v13 = vmul.f32 %v10483_v34, %v12960_v61 }
 0xc0b   : > { %4212 = vrot.lane.b32.xlu2 %v4177_v52, %s6640_s25  ;;  %4214 = vrot.lane.b32.xlu0 %v4178_v59, %s6640_s25 }
 0xc0e   : > { %4216 = vrot.lane.b32.xlu1 %v4179_v15, %s6640_s25 }
 0xc13   : > { %4218 = vrot.lane.b32.xlu2 %v4180_v17, %s6640_s25  ;;  %4220 = vrot.lane.b32.xlu0 %v4181_v8, %s6640_s25  ;;  %v10637_v19 = vpop.permute.xlu2 %3931  ;;  %v12996_v17 = vld [vmem:[#allocation37_spill] sm:$0xff]  ;;  %v12997_v8 = vld [vmem:[#allocation32_spill] sm:$0xff] }
 0xc16   : > { %4222 = vrot.lane.b32.xlu1 %v4182_v50, %s6640_s25 }
 0xc1b   : > { %4224 = vrot.lane.b32.xlu2 %v4183_v53, %s6640_s25  ;;  %4226 = vrot.lane.b32.xlu0 %v4184_v37, %s6640_s25  ;;  %v10649_v28 = vpop.permute.xlu2 %3937  ;;  %v13000_v53 = vld [vmem:[#allocation44_spill] sm:$0xff]  ;;  %v13001_v37 = vld [vmem:[#allocation42_spill] sm:$0xff] }
 0xc1d   : > { %v10654_v41 = vpop.permute.xlu1 %3921 }
 0xc1e   : > { %4228 = vrot.lane.b32.xlu1 %v4185_v25, %s6640_s25 }
 0xc23   : > { %4230 = vrot.lane.b32.xlu2 %v4186_v58, %s6640_s25  ;;  %4232 = vrot.lane.b32.xlu0 %v4187_v2, %s6640_s25  ;;  %v10662_v16 = vpop.permute.xlu2 %3943  ;;  %v13003_v2 = vld [vmem:[#allocation38_spill] sm:$0xff] }
 0xc25   : > { %v10666_v33 = vpop.permute.xlu0 %3927 }
 0xc26   : > { %4234 = vrot.lane.b32.xlu1 %v4188_v18, %s6640_s25 }
 0xc28   : > { %v3930_v3 = vpop.permute.xlu1 %3929 }
 0xc2b   : > { %4236 = vrot.lane.b32.xlu2 %v4189_v44, %s6640_s25  ;;  %4238 = vrot.lane.b32.xlu0 %v4190_v29, %s6640_s25  ;;  %v13004_v44 = vld [vmem:[#allocation51_spill] sm:$0xff]  ;;  %v13005_v29 = vld [vmem:[#allocation49_spill] sm:$0xff] }
 0xc2d   : > { %v10677_v52 = vpop.permute.xlu2 %3949  ;;  %v10679_v51 = vpop.permute.xlu0 %3933 }
 0xc2e   : > { %12993 = vst [vmem:[#allocation120_spill] sm:$0xff] %v10677_v52  ;;  %4240 = vrot.lane.b32.xlu1 %v4191_v11, %s6640_s25  ;;  %v13015_v52 = vld [vmem:[#allocation23_spill] sm:$0xff] }
 0xc30   : > { %v3936_v59 = vpop.permute.xlu1 %3935 }
 0xc33   : > { %4242 = vrot.lane.b32.xlu2 %v4192_v13, %s6640_s25  ;;  %4330 = vrot.lane.b32.xlu0 %v12994_v4, %s6641_s26  ;;  %v13006_v4 = vld [vmem:[#allocation46_spill] sm:$0xff] }
 0xc35   : > { %v10687_v15 = vpop.permute.xlu2 %4040  ;;  %v10689_v0 = vpop.permute.xlu0 %3939 }
 0xc36   : > { %4332 = vrot.lane.b32.xlu1 %v12995_v42, %s6641_s26 }
 0xc38   : > { %v10693_v32 = vpop.permute.xlu1 %3941 }
 0xc3b   : > { %4334 = vrot.lane.b32.xlu2 %v12996_v17, %s6641_s26  ;;  %4336 = vrot.lane.b32.xlu0 %v12997_v8, %s6641_s26  ;;  %v13007_v17 = vld [vmem:[#allocation62_spill] sm:$0xff] }
 0xc3c   : > { %v13008_v8 = vld [vmem:[#allocation58_spill] sm:$0xff] }
 0xc3d   : > { %v10699_v34 = vpop.permute.xlu2 %4046  ;;  %v10701_v50 = vpop.permute.xlu0 %3945 }
 0xc3e   : > { %12998 = vst [vmem:[#allocation122_spill] sm:$0xff] %v10701_v50  ;;  %4338 = vrot.lane.b32.xlu1 %v12999_v7, %s6641_s26 }
 0xc40   : > { %v10705_v54 = vpop.permute.xlu1 %3947 }
 0xc43   : > { %4340 = vrot.lane.b32.xlu2 %v13000_v53, %s6641_s26  ;;  %4342 = vrot.lane.b32.xlu0 %v13001_v37, %s6641_s26  ;;  %v13010_v37 = vld [vmem:[#allocation54_spill] sm:$0xff] }
 0xc45   : > { %v10711_v25 = vpop.permute.xlu2 %4052  ;;  %v10713_v58 = vpop.permute.xlu0 %3951 }
 0xc46   : > { %13002 = vst [vmem:[#allocation109_spill] sm:$0xff] %v10713_v58  ;;  %4344 = vrot.lane.b32.xlu1 %v13003_v2, %s6641_s26 }
 0xc48   : > { %v10717_v18 = vpop.permute.xlu1 %3953 }
 0xc4b   : > { %4346 = vrot.lane.b32.xlu2 %v13004_v44, %s6641_s26  ;;  %4348 = vrot.lane.b32.xlu0 %v13005_v29, %s6641_s26  ;;  %v13011_v44 = vld [vmem:[#allocation35_spill] sm:$0xff]  ;;  %v13012_v29 = vld [vmem:[#allocation30_spill] sm:$0xff] }
 0xc4d   : > { %v10723_v11 = vpop.permute.xlu2 %4058  ;;  %v4043_v13 = vpop.permute.xlu0 %4042 }
 0xc4e   : > { %4350 = vrot.lane.b32.xlu1 %v13006_v4, %s6641_s26 }
 0xc50   : > { %v4045_v42 = vpop.permute.xlu1 %4044 }
 0xc53   : > { %4352 = vrot.lane.b32.xlu2 %v13007_v17, %s6641_s26  ;;  %4354 = vrot.lane.b32.xlu0 %v13008_v8, %s6641_s26  ;;  %v3973_v17 = vadd.f32 %v3924_v5, %v12928_v24  ;;  %v13014_v8 = vld [vmem:[#allocation117_spill] sm:$0xff]  ;;  %v13016_v5 = vld [vmem:[#allocation118_spill] sm:$0xff] }
 0xc54   : > { %v4109_v30 = vmul.f32 %v13014_v8, %v12962_v26  ;;  %v4112_v50 = vmul.f32 %v13016_v5, %v10123_v49 }
 0xc55   : > { %v10731_v7 = vpop.permute.xlu2 %4064  ;;  %v4049_v53 = vpop.permute.xlu0 %4048 }
 0xc56   : > { %13009 = vst [vmem:[#allocation121_spill] sm:$0xff] %v10731_v7  ;;  %4356 = vrot.lane.b32.xlu1 %v13010_v37, %s6641_s26  ;;  %v4092_v37 = vadd.f32 %v4043_v13, %v3973_v17  ;;  %v4129_v13 = vmul.f32 %v4112_v50, %v12942_v48 }
 0xc58   : > { %v10735_v2 = vpop.permute.xlu1 %4050 }
 0xc5b   : > { %4358 = vrot.lane.b32.xlu2 %v13011_v44, %s6641_s26  ;;  %4360 = vrot.lane.b32.xlu0 %v13012_v29, %s6641_s26  ;;  %v4126_v44 = vmul.f32 %v4109_v30, %v12928_v24  ;;  %v3976_v29 = vadd.f32 %v3930_v3, %v12942_v48  ;;  %v3979_v3 = vadd.f32 %v3936_v59, %v12979_v43 }
 0xc5d   : > { %v10741_v4 = vpop.permute.xlu2 %4070  ;;  %v4055_v58 = vpop.permute.xlu0 %4054  ;;  %v4143_v10 = vadd.f32 %v4126_v44, %v4092_v37  ;;  %v4095_v35 = vadd.f32 %v4049_v53, %v3976_v29  ;;  %v3972_v29 = vadd.f32 %v10654_v41, %v12935_v22  ;;  %v13019_v41 = vld [vmem:[#allocation59_spill] sm:$0xff] }
 0xc5e   : > { %13013 = vst [vmem:[#allocation101_spill] sm:$0xff] %v10741_v4  ;;  %4362 = vrot.lane.b32.xlu1 %v13015_v52, %s6641_s26  ;;  %v4098_v53 = vadd.f32 %v4055_v58, %v3979_v3  ;;  %v4118_v3 = vmul.f32 %v13019_v41, %v10406_v47 }
 0xc5f   : > { %v4146_v30 = vadd.f32 %v4129_v13, %v4095_v35  ;;  %v13018_v35 = vld [vmem:[#allocation95_spill] sm:$0xff]  ;;  %v4091_v59 = vadd.f32 %v10687_v15, %v3972_v29  ;;  %v13020_v15 = vld [vmem:[#allocation114_spill] sm:$0xff] }
 0xc60   : > { %v10748_v23 = vpop.permute.xlu1 %4056  ;;  %v4135_v47 = vmul.f32 %v4118_v3, %v12953_v6 }
 0xc65   : > { %v4213_v7 = vpop.permute.xlu2 %4212  ;;  %v4061_v4 = vpop.permute.xlu0 %4060 }
 0xc66   : > { %v4262_v63 = vadd.f32 %v4213_v7, %v4143_v10  ;;  %v13017_v7 = vld [vmem:[#allocation112_spill] sm:$0xff] }
 0xc67   : > { %v4115_v49 = vmul.f32 %v13017_v7, %v12975_v55  ;;  %v3982_v55 = vadd.f32 %v10693_v32, %v12953_v6  ;;  %v13021_v32 = vld [vmem:[#allocation91_spill] sm:$0xff] }
 0xc68   : > { %v4279_v26 = vmul.f32 0.5, %v4262_v63  ;;  %v10754_v8 = vpop.permute.xlu1 %4062 }
 0xc69   : > { %v4132_v5 = vmul.f32 %v4115_v49, %v12979_v43  ;;  %v4101_v7 = vadd.f32 %v4061_v4, %v3982_v55 }
 0xc6a   : > { %v4296_v52 = vpack.c.bf16 %v4279_v26, %v4279_v26  ;;  %v4108_v26 = vmul.f32 %v13018_v35, %v10224_v46  ;;  %v3974_v46 = vadd.f32 %v10624_v9, %v12934_v31 }
 0xc6c   : > { %4314 = vst.msk [vmem:[%s8287_s30 + $0x4] sm:$0xf] %vm4312_vm4, %v4296_v52  ;;  %v4149_v52 = vadd.f32 %v4132_v5, %v4098_v53  ;;  %v3975_v5 = vadd.f32 %v10666_v33, %v12938_v14 }
 0xc6d   : > { %v4219_v17 = vpop.permute.xlu2 %4218  ;;  %v4067_v37 = vpop.permute.xlu0 %4066 }
 0xc6e   : > { %v4265_v10 = vadd.f32 %v4219_v17, %v4146_v30  ;;  %v4125_v17 = vmul.f32 %v4108_v26, %v12935_v22 }
 0xc70   : > { %v4282_v63 = vmul.f32 0.5, %v4265_v10  ;;  %v10762_v44 = vpop.permute.xlu1 %4068  ;;  %v4110_v10 = vmul.f32 %v13020_v15, %v10217_v20  ;;  %v4142_v53 = vadd.f32 %v4125_v17, %v4091_v59  ;;  %v4094_v20 = vadd.f32 %v10699_v34, %v3975_v5 }
 0xc71   : > { %v3977_v17 = vadd.f32 %v10637_v19, %v12973_v38 }
 0xc72   : > { %v4299_v50 = vpack.c.bf16 %v4282_v63, %v4282_v63  ;;  %v4093_v63 = vadd.f32 %v4045_v42, %v3974_v46  ;;  %v4127_v9 = vmul.f32 %v4110_v10, %v12934_v31  ;;  %v4152_v42 = vadd.f32 %v4135_v47, %v4101_v7  ;;  %v13022_v7 = vld [vmem:[#allocation88_spill] sm:$0xff] }
 0xc73   : > { %v4096_v15 = vadd.f32 %v10735_v2, %v3977_v17 }
 0xc74   : > { %4317 = vst.msk [vmem:[%s8287_s30 + $0x10] sm:$0xf] %vm4312_vm4, %v4299_v50  ;;  %v4111_v50 = vmul.f32 %v13021_v32, %v10287_v1  ;;  %v4144_v59 = vadd.f32 %v4127_v9, %v4093_v63  ;;  %v3985_v1 = vadd.f32 %v10705_v54, %v12957_v60  ;;  %v4130_v32 = vmul.f32 %v10492_v21, %v12973_v38 }
 0xc75   : > { %v4225_v13 = vpop.permute.xlu2 %4224  ;;  %v4073_v58 = vpop.permute.xlu0 %4072  ;;  %v3980_v21 = vadd.f32 %v10649_v28, %v12950_v27  ;;  %v4141_v28 = vmul.f32 %v10518_v12, %v12960_v61  ;;  %v4134_v12 = vmul.f32 %v10523_v40, %v12951_v39 }
 0xc76   : > { %v4268_v30 = vadd.f32 %v4225_v13, %v4149_v52  ;;  %v4104_v34 = vadd.f32 %v4067_v37, %v3985_v1  ;;  %v4138_v37 = vmul.f32 %v10497_v57, %v12957_v60  ;;  %v3981_v1 = vadd.f32 %v10689_v0, %v12951_v39 }
 0xc78   : > { %v4285_v49 = vmul.f32 0.5, %v4268_v30  ;;  %v4211_v29 = vpop.permute.xlu1 %4210  ;;  %v4128_v30 = vmul.f32 %v4111_v50, %v12938_v14  ;;  %v4155_v5 = vadd.f32 %v4138_v37, %v4104_v34 }
 0xc79   : > { %v4261_v26 = vadd.f32 %v4211_v29, %v4142_v53  ;;  %v3978_v53 = vadd.f32 %v10679_v51, %v12978_v62 }
 0xc7a   : > { %v4302_v35 = vpack.c.bf16 %v4285_v49, %v4285_v49  ;;  %v4145_v46 = vadd.f32 %v4128_v30, %v4094_v20  ;;  %v4114_v49 = vmul.f32 %v13022_v7, %v10301_v56  ;;  %v4147_v56 = vadd.f32 %v4130_v32, %v4096_v15  ;;  %v13025_v32 = vld [vmem:[#allocation74_spill] sm:$0xff] }
 0xc7b   : > { %v4278_v4 = vmul.f32 0.5, %v4261_v26  ;;  %v4097_v2 = vadd.f32 %v10711_v25, %v3978_v53  ;;  %v4100_v30 = vadd.f32 %v10723_v11, %v3981_v1  ;;  %v13023_v53 = vld [vmem:[#allocation52_spill] sm:$0xff]  ;;  %v13031_v1 = vld [vmem:[#allocation109_spill] sm:$0xff] }
 0xc7c   : > { %4320 = vst.msk [vmem:[%s8287_s30 + $0x1c] sm:$0xf] %vm4312_vm4, %v4302_v35  ;;  %v3988_v35 = vadd.f32 %v10717_v18, %v12960_v61  ;;  %v4131_v9 = vmul.f32 %v4114_v49, %v12978_v62 }
 0xc7d   : > { %v4231_v52 = vpop.permute.xlu2 %4230  ;;  %v4295_v13 = vpack.c.bf16 %v4278_v4, %v4278_v4  ;;  %v4215_v33 = vpop.permute.xlu0 %4214 }
 0xc7e   : > { %v4271_v55 = vadd.f32 %v4231_v52, %v4152_v42  ;;  %v4263_v41 = vadd.f32 %v4215_v33, %v4144_v59  ;;  %v4107_v20 = vadd.f32 %v4073_v58, %v3988_v35  ;;  %v4148_v42 = vadd.f32 %v4131_v9, %v4097_v2  ;;  %v13026_v2 = vld [vmem:[#allocation121_spill] sm:$0xff]  ;;  %v13028_v9 = vld [vmem:[#allocation108_spill] sm:$0xff] }
 0xc7f   : > { %4313 = vst.msk [vmem:[%s8287_s30] sm:$0xf] %vm4312_vm4, %v4295_v13  ;;  %v4099_v59 = vadd.f32 %v10748_v23, %v3980_v21  ;;  %v4133_v58 = vmul.f32 %v10501_v45, %v12950_v27  ;;  %v3983_v45 = vadd.f32 %v10662_v16, %v12954_v36  ;;  %v4136_v16 = vmul.f32 %v13025_v32, %v12954_v36  ;;  %v13029_v21 = vld [vmem:[#allocation120_spill] sm:$0xff] }
 0xc80   : > { %v4288_v3 = vmul.f32 0.5, %v4271_v55  ;;  %v4280_v10 = vmul.f32 0.5, %v4263_v41  ;;  %v4217_v54 = vpop.permute.xlu1 %4216  ;;  %v4158_v17 = vadd.f32 %v4141_v28, %v4107_v20 }
 0xc81   : > { %v4264_v19 = vadd.f32 %v4217_v54, %v4145_v46  ;;  %v4150_v41 = vadd.f32 %v4133_v58, %v4099_v59  ;;  %v4102_v54 = vadd.f32 %v10754_v8, %v3983_v45 }
 0xc82   : > { %v4305_v63 = vpack.c.bf16 %v4288_v3, %v4288_v3  ;;  %v4297_v29 = vpack.c.bf16 %v4280_v10, %v4280_v10  ;;  %v4151_v10 = vadd.f32 %v4134_v12, %v4100_v30  ;;  %v13033_v30 = vld [vmem:[#allocation101_spill] sm:$0xff] }
 0xc83   : > { %v4281_v50 = vmul.f32 0.5, %v4264_v19  ;;  %v4153_v8 = vadd.f32 %v4136_v16, %v4102_v54 }
 0xc84   : > { %4323 = vst.msk [vmem:[%s8287_s30 + $0x28] sm:$0xf] %vm4312_vm4, %v4305_v63  ;;  %v13024_v63 = vld [vmem:[#allocation122_spill] sm:$0xff] }
 0xc85   : > { %4315 = vst.msk [vmem:[%s8287_s30 + $0x8] sm:$0xf] %vm4312_vm4, %v4297_v29  ;;  %v4237_v51 = vpop.permute.xlu2 %4236  ;;  %v4298_v26 = vpack.c.bf16 %v4281_v50, %v4281_v50  ;;  %v4221_v57 = vpop.permute.xlu0 %4220  ;;  %v3984_v19 = vadd.f32 %v13024_v63, %v13023_v53 }
 0xc86   : > { %v4274_v47 = vadd.f32 %v4237_v51, %v4155_v5  ;;  %v4266_v25 = vadd.f32 %v4221_v57, %v4147_v56 }
 0xc87   : > { %4316 = vst.msk [vmem:[%s8287_s30 + $0xc] sm:$0xf] %vm4312_vm4, %v4298_v26  ;;  %v4103_v50 = vadd.f32 %v13026_v2, %v3984_v19  ;;  %v13027_v26 = vld [vmem:[#allocation105_spill] sm:$0xff] }
 0xc88   : > { %v4291_v4 = vmul.f32 0.5, %v4274_v47  ;;  %v4283_v52 = vmul.f32 0.5, %v4266_v25  ;;  %v4223_v18 = vpop.permute.xlu1 %4222  ;;  %v4137_v57 = vmul.f32 %v13027_v26, %v13023_v53  ;;  %v3986_v25 = vadd.f32 %v13029_v21, %v13028_v9 }
 0xc89   : > { %v4267_v33 = vadd.f32 %v4223_v18, %v4148_v42  ;;  %v13030_v18 = vld [vmem:[#allocation110_spill] sm:$0xff] }
 0xc8a   : > { %v4308_v13 = vpack.c.bf16 %v4291_v4, %v4291_v4  ;;  %v4300_v55 = vpack.c.bf16 %v4283_v52, %v4283_v52  ;;  %v4154_v4 = vadd.f32 %v4137_v57, %v4103_v50  ;;  %v4105_v42 = vadd.f32 %v10762_v44, %v3986_v25 }
 0xc8b   : > { %v4284_v23 = vmul.f32 0.5, %v4267_v33 }
 0xc8c   : > { %4326 = vst.msk [vmem:[%s8287_s30 + $0x34] sm:$0xf] %vm4312_vm4, %v4308_v13  ;;  %v3987_v13 = vadd.f32 %v13031_v1, %v13030_v18 }
 0xc8d   : > { %4318 = vst.msk [vmem:[%s8287_s30 + $0x14] sm:$0xf] %vm4312_vm4, %v4300_v55  ;;  %v4243_v0 = vpop.permute.xlu2 %4242  ;;  %v4301_v34 = vpack.c.bf16 %v4284_v23, %v4284_v23  ;;  %v4227_v3 = vpop.permute.xlu0 %4226  ;;  %v13032_v55 = vld [vmem:[#allocation68_spill] sm:$0xff] }
 0xc8e   : > { %v4277_v46 = vadd.f32 %v4243_v0, %v4158_v17  ;;  %v4269_v11 = vadd.f32 %v4227_v3, %v4150_v41  ;;  %v4139_v58 = vmul.f32 %v13032_v55, %v13028_v9  ;;  %v4106_v23 = vadd.f32 %v13033_v30, %v3987_v13  ;;  %v13034_v3 = vld [vmem:[#allocation100_spill] sm:$0xff] }
 0xc8f   : > { %4319 = vst.msk [vmem:[%s8287_s30 + $0x18] sm:$0xf] %vm4312_vm4, %v4301_v34 }
 0xc90   : > { %v4294_v15 = vmul.f32 0.5, %v4277_v46  ;;  %v4286_v7 = vmul.f32 0.5, %v4269_v11  ;;  %v4229_v49 = vpop.permute.xlu1 %4228  ;;  %v4156_v41 = vadd.f32 %v4139_v58, %v4105_v42  ;;  %v4140_v46 = vmul.f32 %v13034_v3, %v13030_v18  ;;  %v13035_v58 = vld [vmem:[#allocation33_spill] sm:$0xff]  ;;  %v13041_v3 = vld [vmem:[#allocation39_spill] sm:$0xff] }
 0xc91   : > { %v4270_v29 = vadd.f32 %v4229_v49, %v4151_v10 }
 0xc92   : > { %v4311_v37 = vpack.c.bf16 %v4294_v15, %v4294_v15  ;;  %v4303_v40 = vpack.c.bf16 %v4286_v7, %v4286_v7  ;;  %v4157_v11 = vadd.f32 %v4140_v46, %v4106_v23  ;;  %v13042_v46 = vld [vmem:[#allocation28_spill] sm:$0xff] }
 0xc93   : > { %v4287_v5 = vmul.f32 0.5, %v4270_v29 }
 0xc94   : > { %4329 = vst.msk [vmem:[%s8287_s30 + $0x40] sm:$0xf] %vm4312_vm4, %v4311_v37 }
 0xc95   : > { %4321 = vst.msk [vmem:[%s8287_s30 + $0x20] sm:$0xf] %vm4312_vm4, %v4303_v40  ;;  %v4335_v56 = vpop.permute.xlu2 %4334  ;;  %v4304_v51 = vpack.c.bf16 %v4287_v5, %v4287_v5  ;;  %v4233_v35 = vpop.permute.xlu0 %4232 }
 0xc96   : > { %v4387_v47 = vsel %vm518_vm1, %v4335_v56, 0.0  ;;  %v4272_v20 = vadd.f32 %v4233_v35, %v4153_v8 }
 0xc97   : > { %4388 = vadd.xlane.f32.xlu1 %v4387_v47  ;;  %4322 = vst.msk [vmem:[%s8287_s30 + $0x24] sm:$0xf] %vm4312_vm4, %v4304_v51 }
 0xc98   : > { %v4289_v59 = vmul.f32 0.5, %v4272_v20  ;;  %v4235_v52 = vpop.permute.xlu1 %4234 }
 0xc99   : > { %v4273_v33 = vadd.f32 %v4235_v52, %v4154_v4 }
 0xc9a   : > { %v4306_v28 = vpack.c.bf16 %v4289_v59, %v4289_v59 }
 0xc9b   : > { %v4290_v17 = vmul.f32 0.5, %v4273_v33 }
 0xc9c   : > { %4324 = vst.msk [vmem:[%s8287_s30 + $0x2c] sm:$0xf] %vm4312_vm4, %v4306_v28 }
 0xc9d   : > { %v4341_v0 = vpop.permute.xlu2 %4340  ;;  %v4307_v44 = vpack.c.bf16 %v4290_v17, %v4290_v17  ;;  %v4239_v34 = vpop.permute.xlu0 %4238  ;;  %v13036_v17 = vld [vmem:[#allocation41_spill] sm:$0xff] }
 0xc9e   : > { %v4396_v12 = vsel %vm518_vm1, %v4341_v0, 0.0  ;;  %v4275_v45 = vadd.f32 %v4239_v34, %v4156_v41  ;;  %v13037_v41 = vld [vmem:[#allocation48_spill] sm:$0xff]  ;;  %v13038_v0 = vld [vmem:[#allocation31_spill] sm:$0xff]  ;;  %v13040_v34 = vld [vmem:[#allocation57_spill] sm:$0xff] }
 0xc9f   : > { %4397 = vadd.xlane.f32.xlu1 %v4396_v12  ;;  %4325 = vst.msk [vmem:[%s8287_s30 + $0x30] sm:$0xf] %vm4312_vm4, %v4307_v44  ;;  %v13039_v44 = vld [vmem:[#allocation22_spill] sm:$0xff]  ;;  %v13043_v12 = vld [vmem:[#allocation29_spill] sm:$0xff] }
 0xca0   : > { %v4292_v15 = vmul.f32 0.5, %v4275_v45  ;;  %v4241_v10 = vpop.permute.xlu1 %4240  ;;  %v13044_v45 = vld [vmem:[#allocation45_spill] sm:$0xff] }
 0xca1   : > { %v4276_v54 = vadd.f32 %v4241_v10, %v4157_v11  ;;  %v13045_v11 = vld [vmem:[#allocation40_spill] sm:$0xff]  ;;  %v13047_v10 = vld [vmem:[#allocation47_spill] sm:$0xff] }
 0xca2   : > { %v4309_v7 = vpack.c.bf16 %v4292_v15, %v4292_v15  ;;  %v13046_v15 = vld [vmem:[#allocation53_spill] sm:$0xff] }
 0xca3   : > { %v4293_v49 = vmul.f32 0.5, %v4276_v54  ;;  %v13048_v54 = vld [vmem:[#allocation63_spill] sm:$0xff] }
 0xca4   : > { %4327 = vst.msk [vmem:[%s8287_s30 + $0x38] sm:$0xf] %vm4312_vm4, %v4309_v7  ;;  %v13049_v7 = vld [vmem:[#allocation56_spill] sm:$0xff] }
 0xca5   : > { %v4347_v63 = vpop.permute.xlu2 %4346  ;;  %v4310_v19 = vpack.c.bf16 %v4293_v49, %v4293_v49  ;;  %v4331_v37 = vpop.permute.xlu0 %4330  ;;  %v13050_v49 = vld [vmem:[#allocation36_spill] sm:$0xff] }
 0xca6   : > { %v4405_v29 = vsel %vm518_vm1, %v4347_v63, 0.0  ;;  %v4381_v40 = vsel %vm518_vm1, %v4331_v37, 0.0  ;;  %v13051_v63 = vld [vmem:[#allocation25_spill] sm:$0xff] }
 0xca7   : > { %4406 = vadd.xlane.f32.xlu1 %v4405_v29  ;;  %4328 = vst.msk [vmem:[%s8287_s30 + $0x3c] sm:$0xf] %vm4312_vm4, %v4310_v19  ;;  %4382 = vadd.xlane.f32.xlu2 %v4381_v40 }
 0xca8   : > { %v4333_v32 = vpop.permute.xlu1 %4332 }
 0xca9   : > { %v4384_v16 = vsel %vm518_vm1, %v4333_v32, 0.0 }
 0xcaa   : > { %4385 = vadd.xlane.f32.xlu0 %v4384_v16 }
 0xcad   : > { %v4353_v2 = vpop.permute.xlu2 %4352  ;;  %v4337_v50 = vpop.permute.xlu0 %4336 }
 0xcae   : > { %v4414_v5 = vsel %vm518_vm1, %v4353_v2, 0.0  ;;  %v4390_v8 = vsel %vm518_vm1, %v4337_v50, 0.0 }
 0xcaf   : > { %4415 = vadd.xlane.f32.xlu1 %v4414_v5  ;;  %4391 = vadd.xlane.f32.xlu2 %v4390_v8 }
 0xcb0   : > { %v4339_v56 = vpop.permute.xlu1 %4338 }
 0xcb1   : > { %v4393_v51 = vsel %vm518_vm1, %v4339_v56, 0.0 }
 0xcb2   : > { %4394 = vadd.xlane.f32.xlu0 %v4393_v51 }
 0xcb5   : > { %v4359_v35 = vpop.permute.xlu2 %4358  ;;  %v4343_v26 = vpop.permute.xlu0 %4342 }
 0xcb6   : > { %v4423_v57 = vsel %vm518_vm1, %v4359_v35, 0.0  ;;  %v4399_v47 = vsel %vm518_vm1, %v4343_v26, 0.0 }
 0xcb7   : > { %4424 = vadd.xlane.f32.xlu1 %v4423_v57  ;;  %4400 = vadd.xlane.f32.xlu2 %v4399_v47 }
 0xcb8   : > { %v4345_v21 = vpop.permute.xlu1 %4344 }
 0xcb9   : > { %v4402_v25 = vsel %vm518_vm1, %v4345_v21, 0.0 }
 0xcba   : > { %4403 = vadd.xlane.f32.xlu0 %v4402_v25 }
 0xcbd   : > { %v4349_v20 = vpop.permute.xlu0 %4348 }
 0xcbe   : > { %v4408_v4 = vsel %vm518_vm1, %v4349_v20, 0.0 }
 0xcbf   : > { %4409 = vadd.xlane.f32.xlu2 %v4408_v4 }
 0xcc0   : > { %v4351_v42 = vpop.permute.xlu1 %4350 }
 0xcc1   : > { %v4411_v59 = vsel %vm518_vm1, %v4351_v42, 0.0 }
 0xcc2   : > { %4412 = vadd.xlane.f32.xlu0 %v4411_v59 }
 0xcc5   : > { %v4355_v52 = vpop.permute.xlu0 %4354 }
 0xcc6   : > { %v4417_v1 = vsel %vm518_vm1, %v4355_v52, 0.0 }
 0xcc7   : > { %4418 = vadd.xlane.f32.xlu2 %v4417_v1 }
 0xcc8   : > { %v4357_v13 = vpop.permute.xlu1 %4356 }
 0xcc9   : > { %v4420_v33 = vsel %vm518_vm1, %v4357_v13, 0.0 }
 0xcca   : > { %4421 = vadd.xlane.f32.xlu0 %v4420_v33 }
 0xccd   : > { %v4361_v28 = vpop.permute.xlu0 %4360 }
 0xcce   : > { %v4426_v55 = vsel %vm518_vm1, %v4361_v28, 0.0 }
 0xccf   : > { %4427 = vadd.xlane.f32.xlu2 %v4426_v55 }
 0xcd0   : > { %4432 = vrot.lane.b32.xlu1 %v13035_v58, %s6641_s26  ;;  %v4363_v30 = vpop.permute.xlu1 %4362 }
 0xcd1   : > { %v4429_v23 = vsel %vm518_vm1, %v4363_v30, 0.0 }
 0xcd2   : > { %4430 = vadd.xlane.f32.xlu0 %v4429_v23 }
 0xcd8   : > { %4442 = vrot.lane.b32.xlu1 %v13036_v17, %s6641_s26 }
 0xce0   : > { %4448 = vrot.lane.b32.xlu1 %v13037_v41, %s6641_s26 }
 0xce6   : > { %4436 = vrot.lane.b32.xlu0 %v13038_v0, %s6641_s26 }
 0xce7   : > { %4434 = vrot.lane.b32.xlu2 %v13039_v44, %s6641_s26 }
 0xce8   : > { %4454 = vrot.lane.b32.xlu1 %v13040_v34, %s6641_s26 }
 0xcee   : > { %4438 = vrot.lane.b32.xlu0 %v13041_v3, %s6641_s26 }
 0xcef   : > { %4440 = vrot.lane.b32.xlu2 %v13042_v46, %s6641_s26 }
 0xcf0   : > { %4460 = vrot.lane.b32.xlu1 %v13043_v12, %s6641_s26 }
 0xcf6   : > { %4444 = vrot.lane.b32.xlu0 %v13044_v45, %s6641_s26 }
 0xcf7   : > { %4446 = vrot.lane.b32.xlu2 %v13045_v11, %s6641_s26 }
 0xcfe   : > { %4450 = vrot.lane.b32.xlu0 %v13046_v15, %s6641_s26 }
 0xcff   : > { %4452 = vrot.lane.b32.xlu2 %v13047_v10, %s6641_s26 }
 0xd06   : > { %4456 = vrot.lane.b32.xlu0 %v13048_v54, %s6641_s26 }
 0xd07   : > { %4458 = vrot.lane.b32.xlu2 %v13049_v7, %s6641_s26 }
 0xd0a   : > { %v10919_v19 = vpop.xlane.xlu1 %4388 }
 0xd0e   : > { %4462 = vrot.lane.b32.xlu0 %v13050_v49, %s6641_s26 }
 0xd0f   : > { %4464 = vrot.lane.b32.xlu2 %v13051_v63, %s6641_s26 }
 0xd12   : > { %v10923_v29 = vpop.xlane.xlu1 %4397 }
 0xd1a   : > { %v10921_v37 = vpop.xlane.xlu2 %4382  ;;  %v10929_v16 = vpop.xlane.xlu1 %4406 }
 0xd1d   : > { %v10925_v40 = vpop.xlane.xlu0 %4385 }
 0xd22   : > { %v10927_v32 = vpop.xlane.xlu2 %4391  ;;  %v10935_v5 = vpop.xlane.xlu1 %4415 }
 0xd25   : > { %v10931_v2 = vpop.xlane.xlu0 %4394 }
 0xd2a   : > { %v10933_v50 = vpop.xlane.xlu2 %4400  ;;  %v10941_v51 = vpop.xlane.xlu1 %4424 }
 0xd2d   : > { %v10937_v8 = vpop.xlane.xlu0 %4403 }
 0xd32   : > { %v10939_v56 = vpop.xlane.xlu2 %4409 }
 0xd35   : > { %v10945_v26 = vpop.xlane.xlu0 %4412 }
 0xd3a   : > { %v10943_v35 = vpop.xlane.xlu2 %4418 }
 0xd3d   : > { %v10950_v25 = vpop.xlane.xlu0 %4421 }
 0xd42   : > { %v4433_v57 = vpop.permute.xlu1 %4432  ;;  %v10947_v47 = vpop.xlane.xlu2 %4427 }
 0xd43   : > { %v4483_v21 = vsel %vm518_vm1, %v4433_v57, 0.0 }
 0xd44   : > { %4484 = vadd.xlane.f32.xlu1 %v4483_v21 }
 0xd45   : > { %v10953_v59 = vpop.xlane.xlu0 %4430 }
 0xd4a   : > { %v4435_v20 = vpop.permute.xlu2 %4434  ;;  %v4443_v4 = vpop.permute.xlu1 %4442 }
 0xd4b   : > { %v4486_v42 = vsel %vm518_vm1, %v4435_v20, 0.0  ;;  %v4498_v52 = vsel %vm518_vm1, %v4443_v4, 0.0  ;;  %v13052_v20 = vld [vmem:[#allocation64_spill] sm:$0xff] }
 0xd4c   : > { %4487 = vadd.xlane.f32.xlu0 %v4486_v42 }
 0xd52   : > { %v4449_v1 = vpop.permute.xlu1 %4448  ;;  %v4441_v13 = vpop.permute.xlu2 %4440 }
 0xd53   : > { %v4507_v55 = vsel %vm518_vm1, %v4449_v1, 0.0  ;;  %v4495_v17 = vsel %vm518_vm1, %v4441_v13, 0.0  ;;  %v13054_v1 = vld [vmem:[#allocation67_spill] sm:$0xff]  ;;  %v13055_v13 = vld [vmem:[#allocation70_spill] sm:$0xff] }
 0xd54   : > { %4499 = vadd.xlane.f32.xlu0 %v4498_v52  ;;  %v13053_v52 = vld [vmem:[#allocation65_spill] sm:$0xff] }
 0xd58   : > { %v4437_v33 = vpop.permute.xlu0 %4436 }
 0xd59   : > { %v4489_v28 = vsel %vm518_vm1, %v4437_v33, 0.0  ;;  %v13056_v33 = vld [vmem:[#allocation66_spill] sm:$0xff] }
 0xd5a   : > { %4490 = vadd.xlane.f32.xlu2 %v4489_v28  ;;  %v4455_v58 = vpop.permute.xlu1 %4454  ;;  %v4447_v30 = vpop.permute.xlu2 %4446  ;;  %v13057_v28 = vld [vmem:[#allocation72_spill] sm:$0xff] }
 0xd5b   : > { %v4516_v0 = vsel %vm518_vm1, %v4455_v58, 0.0  ;;  %v4504_v3 = vsel %vm518_vm1, %v4447_v30, 0.0  ;;  %v13059_v58 = vld [vmem:[#allocation71_spill] sm:$0xff]  ;;  %v13060_v30 = vld [vmem:[#allocation73_spill] sm:$0xff] }
 0xd5c   : > { %4508 = vadd.xlane.f32.xlu0 %v4507_v55  ;;  %v13058_v55 = vld [vmem:[#allocation75_spill] sm:$0xff] }
 0xd60   : > { %v4439_v23 = vpop.permute.xlu0 %4438 }
 0xd61   : > { %v4492_v41 = vsel %vm518_vm1, %v4439_v23, 0.0  ;;  %v13061_v23 = vld [vmem:[#allocation77_spill] sm:$0xff] }
 0xd62   : > { %4496 = vadd.xlane.f32.xlu2 %v4495_v17  ;;  %4493 = vadd.xlane.f32.xlu1 %v4492_v41  ;;  %v4461_v44 = vpop.permute.xlu1 %4460  ;;  %v4453_v12 = vpop.permute.xlu2 %4452  ;;  %v13062_v17 = vld [vmem:[#allocation82_spill] sm:$0xff]  ;;  %v13063_v41 = vld [vmem:[#allocation76_spill] sm:$0xff] }
 0xd63   : > { %v4525_v45 = vsel %vm518_vm1, %v4461_v44, 0.0  ;;  %v4513_v15 = vsel %vm518_vm1, %v4453_v12, 0.0  ;;  %v13065_v44 = vld [vmem:[#allocation78_spill] sm:$0xff]  ;;  %v13068_v12 = vld [vmem:[#allocation80_spill] sm:$0xff] }
 0xd64   : > { %4517 = vadd.xlane.f32.xlu0 %v4516_v0  ;;  %v13064_v0 = vld [vmem:[#allocation84_spill] sm:$0xff] }
 0xd68   : > { %v4445_v34 = vpop.permute.xlu0 %4444 }
 0xd69   : > { %v4501_v46 = vsel %vm518_vm1, %v4445_v34, 0.0  ;;  %v13066_v34 = vld [vmem:[#allocation85_spill] sm:$0xff] }
 0xd6a   : > { %4505 = vadd.xlane.f32.xlu2 %v4504_v3  ;;  %4502 = vadd.xlane.f32.xlu1 %v4501_v46  ;;  %v4459_v54 = vpop.permute.xlu2 %4458  ;;  %v13067_v3 = vld [vmem:[#allocation79_spill] sm:$0xff] }
 0xd6b   : > { %v4522_v49 = vsel %vm518_vm1, %v4459_v54, 0.0 }
 0xd6c   : > { %4526 = vadd.xlane.f32.xlu0 %v4525_v45 }
 0xd70   : > { %v4451_v11 = vpop.permute.xlu0 %4450 }
 0xd71   : > { %v4510_v10 = vsel %vm518_vm1, %v4451_v11, 0.0 }
 0xd72   : > { %4514 = vadd.xlane.f32.xlu2 %v4513_v15  ;;  %4511 = vadd.xlane.f32.xlu1 %v4510_v10  ;;  %v4465_v57 = vpop.permute.xlu2 %4464 }
 0xd73   : > { %v4531_v4 = vsel %vm518_vm1, %v4465_v57, 0.0 }
 0xd78   : > { %v4457_v7 = vpop.permute.xlu0 %4456 }
 0xd79   : > { %v4519_v63 = vsel %vm518_vm1, %v4457_v7, 0.0 }
 0xd7a   : > { %4523 = vadd.xlane.f32.xlu2 %v4522_v49  ;;  %4520 = vadd.xlane.f32.xlu1 %v4519_v63 }
 0xd80   : > { %v4463_v21 = vpop.permute.xlu0 %4462  ;;  %4534 = vrot.lane.b32.xlu0 %v13052_v20, %s6641_s26 }
 0xd81   : > { %v4528_v42 = vsel %vm518_vm1, %v4463_v21, 0.0 }
 0xd82   : > { %4532 = vadd.xlane.f32.xlu2 %v4531_v4  ;;  %4529 = vadd.xlane.f32.xlu1 %v4528_v42 }
 0xd88   : > { %4540 = vrot.lane.b32.xlu0 %v13053_v52, %s6641_s26 }
 0xd90   : > { %4544 = vrot.lane.b32.xlu0 %v13054_v1, %s6641_s26 }
 0xd98   : > { %4550 = vrot.lane.b32.xlu0 %v13055_v13, %s6641_s26 }
 0xd9a   : > { %4538 = vrot.lane.b32.xlu2 %v13056_v33, %s6641_s26 }
 0xd9b   : > { %4536 = vrot.lane.b32.xlu1 %v13057_v28, %s6641_s26 }
 0xda0   : > { %4556 = vrot.lane.b32.xlu0 %v13058_v55, %s6641_s26 }
 0xda2   : > { %4546 = vrot.lane.b32.xlu2 %v13059_v58, %s6641_s26 }
 0xda3   : > { %4542 = vrot.lane.b32.xlu1 %v13060_v30, %s6641_s26 }
 0xda8   : > { %4562 = vrot.lane.b32.xlu0 %v13061_v23, %s6641_s26 }
 0xdaa   : > { %4552 = vrot.lane.b32.xlu2 %v13062_v17, %s6641_s26 }
 0xdab   : > { %4548 = vrot.lane.b32.xlu1 %v13063_v41, %s6641_s26 }
 0xdb2   : > { %4558 = vrot.lane.b32.xlu2 %v13064_v0, %s6641_s26 }
 0xdb3   : > { %4554 = vrot.lane.b32.xlu1 %v13065_v44, %s6641_s26 }
 0xdb7   : > { %v11010_v15 = vpop.xlane.xlu1 %4484 }
 0xdba   : > { %4564 = vrot.lane.b32.xlu2 %v13066_v34, %s6641_s26 }
 0xdbb   : > { %4560 = vrot.lane.b32.xlu1 %v13067_v3, %s6641_s26 }
 0xdbf   : > { %v11002_v46 = vpop.xlane.xlu0 %4487 }
 0xdc3   : > { %4566 = vrot.lane.b32.xlu1 %v13068_v12, %s6641_s26 }
 0xdc7   : > { %v11006_v45 = vpop.xlane.xlu0 %4499 }
 0xdcd   : > { %v11008_v11 = vpop.xlane.xlu2 %4490 }
 0xdcf   : > { %v11014_v54 = vpop.xlane.xlu0 %4508 }
 0xdd5   : > { %v11012_v10 = vpop.xlane.xlu2 %4496  ;;  %v11016_v7 = vpop.xlane.xlu1 %4493 }
 0xdd7   : > { %v11020_v63 = vpop.xlane.xlu0 %4517 }
 0xddd   : > { %v11018_v49 = vpop.xlane.xlu2 %4505  ;;  %v11024_v21 = vpop.xlane.xlu1 %4502 }
 0xddf   : > { %v11026_v20 = vpop.xlane.xlu0 %4526 }
 0xde5   : > { %v11022_v57 = vpop.xlane.xlu2 %4514  ;;  %v11030_v42 = vpop.xlane.xlu1 %4511 }
 0xded   : > { %v11028_v4 = vpop.xlane.xlu2 %4523  ;;  %v11035_v28 = vpop.xlane.xlu1 %4520 }
 0xdf2   : > { %v4535_v52 = vpop.permute.xlu0 %4534 }
 0xdf3   : > { %v4585_v1 = vsel %vm518_vm1, %v4535_v52, 0.0 }
 0xdf4   : > { %4586 = vadd.xlane.f32.xlu0 %v4585_v1 }
 0xdf5   : > { %v11033_v13 = vpop.xlane.xlu2 %4532  ;;  %v11040_v41 = vpop.xlane.xlu1 %4529 }
 0xdfa   : > { %v4541_v33 = vpop.permute.xlu0 %4540 }
 0xdfb   : > { %v4594_v55 = vsel %vm518_vm1, %v4541_v33, 0.0 }
 0xdfc   : > { %4595 = vadd.xlane.f32.xlu0 %v4594_v55 }
 0xdfd   : > { %v4539_v58 = vpop.permute.xlu2 %4538 }
 0xdfe   : > { %v4591_v30 = vsel %vm518_vm1, %v4539_v58, 0.0 }
 0xdff   : > { %4592 = vadd.xlane.f32.xlu1 %v4591_v30 }
 0xe02   : > { %v4545_v23 = vpop.permute.xlu0 %4544 }
 0xe03   : > { %v4600_v17 = vsel %vm518_vm1, %v4545_v23, 0.0 }
 0xe05   : > { %v4547_v0 = vpop.permute.xlu2 %4546 }
 0xe06   : > { %v4603_v44 = vsel %vm518_vm1, %v4547_v0, 0.0 }
 0xe07   : > { %4604 = vadd.xlane.f32.xlu0 %v4603_v44  ;;  %4601 = vadd.xlane.f32.xlu1 %v4600_v17 }
 0xe0a   : > { %v4551_v34 = vpop.permute.xlu0 %4550 }
 0xe0b   : > { %v4609_v3 = vsel %vm518_vm1, %v4551_v34, 0.0 }
 0xe0d   : > { %v4553_v12 = vpop.permute.xlu2 %4552  ;;  %v4537_v52 = vpop.permute.xlu1 %4536 }
 0xe0e   : > { %v4612_v1 = vsel %vm518_vm1, %v4553_v12, 0.0  ;;  %v4588_v33 = vsel %vm518_vm1, %v4537_v52, 0.0 }
 0xe0f   : > { %4613 = vadd.xlane.f32.xlu0 %v4612_v1  ;;  %4610 = vadd.xlane.f32.xlu1 %v4609_v3 }
 0xe10   : > { %4589 = vadd.xlane.f32.xlu2 %v4588_v33 }
 0xe12   : > { %v4557_v55 = vpop.permute.xlu0 %4556 }
 0xe13   : > { %v4618_v58 = vsel %vm518_vm1, %v4557_v55, 0.0 }
 0xe15   : > { %v4559_v30 = vpop.permute.xlu2 %4558  ;;  %v4543_v23 = vpop.permute.xlu1 %4542 }
 0xe16   : > { %v4621_v0 = vsel %vm518_vm1, %v4559_v30, 0.0  ;;  %v4597_v17 = vsel %vm518_vm1, %v4543_v23, 0.0  ;;  %v13069_v23 = vld [vmem:[#allocation9_spill] sm:$0xff] }
 0xe17   : > { %4622 = vadd.xlane.f32.xlu0 %v4621_v0  ;;  %4619 = vadd.xlane.f32.xlu1 %v4618_v58 }
 0xe18   : > { %4598 = vadd.xlane.f32.xlu2 %v4597_v17 }
 0xe1a   : > { %v4563_v44 = vpop.permute.xlu0 %4562 }
 0xe1b   : > { %v4627_v34 = vsel %vm518_vm1, %v4563_v44, 0.0  ;;  %v13070_v44 = vld [vmem:[#allocation5_spill] sm:$0xff] }
 0xe1d   : > { %v4565_v12 = vpop.permute.xlu2 %4564  ;;  %v4549_v52 = vpop.permute.xlu1 %4548 }
 0xe1e   : > { %v4630_v3 = vsel %vm518_vm1, %v4565_v12, 0.0  ;;  %v4606_v1 = vsel %vm518_vm1, %v4549_v52, 0.0  ;;  %v13072_v12 = vld [vmem:[#allocation7_spill] sm:$0xff] }
 0xe1f   : > { %4631 = vadd.xlane.f32.xlu0 %v4630_v3  ;;  %4628 = vadd.xlane.f32.xlu1 %v4627_v34  ;;  %v13071_v34 = vld [vmem:[#allocation8_spill] sm:$0xff]  ;;  %v13073_v52 = vld [vmem:[#allocation15_spill] sm:$0xff]  ;;  %v13074_v3 = vld [vmem:[#allocation13_spill] sm:$0xff] }
 0xe20   : > { %4607 = vadd.xlane.f32.xlu2 %v4606_v1  ;;  %v13075_v1 = vld [vmem:[#allocation18_spill] sm:$0xff] }
 0xe25   : > { %v4555_v33 = vpop.permute.xlu1 %4554 }
 0xe26   : > { %v4615_v55 = vsel %vm518_vm1, %v4555_v33, 0.0  ;;  %v13076_v33 = vld [vmem:[#allocation6_spill] sm:$0xff] }
 0xe28   : > { %4616 = vadd.xlane.f32.xlu2 %v4615_v55  ;;  %v13077_v55 = vld [vmem:[#allocation17_spill] sm:$0xff] }
 0xe2d   : > { %v4561_v30 = vpop.permute.xlu1 %4560 }
 0xe2e   : > { %v4624_v58 = vsel %vm518_vm1, %v4561_v30, 0.0  ;;  %v13078_v30 = vld [vmem:[#allocation24_spill] sm:$0xff] }
 0xe30   : > { %4625 = vadd.xlane.f32.xlu2 %v4624_v58  ;;  %v13079_v58 = vld [vmem:[#allocation11_spill] sm:$0xff] }
 0xe33   : > { %4638 = vrot.lane.b32.xlu0 %v13069_v23, %s6641_s26  ;;  %v13080_v23 = vld [vmem:[#allocation20_spill] sm:$0xff] }
 0xe35   : > { %v4567_v0 = vpop.permute.xlu1 %4566 }
 0xe36   : > { %v4633_v17 = vsel %vm518_vm1, %v4567_v0, 0.0  ;;  %v13081_v0 = vld [vmem:[#allocation14_spill] sm:$0xff] }
 0xe38   : > { %4634 = vadd.xlane.f32.xlu2 %v4633_v17  ;;  %4636 = vrot.lane.b32.xlu1 %v13070_v44, %s6641_s26  ;;  %v13082_v17 = vld [vmem:[#allocation16_spill] sm:$0xff] }
 0xe39   : > { %v13083_v44 = vld [vmem:[#allocation12_spill] sm:$0xff] }
 0xe3b   : > { %4642 = vrot.lane.b32.xlu0 %v13071_v34, %s6641_s26  ;;  %v13084_v34 = vld [vmem:[#allocation19_spill] sm:$0xff] }
 0xe40   : > { %4644 = vrot.lane.b32.xlu1 %v13072_v12, %s6641_s26 }
 0xe43   : > { %4648 = vrot.lane.b32.xlu0 %v13073_v52, %s6641_s26  ;;  %v13085_v52 = vld [vmem:[#allocation10_spill] sm:$0xff] }
 0xe48   : > { %4650 = vrot.lane.b32.xlu1 %v13074_v3, %s6641_s26 }
 0xe4b   : > { %4654 = vrot.lane.b32.xlu0 %v13075_v1, %s6641_s26 }
 0xe50   : > { %4640 = vrot.lane.b32.xlu2 %v13076_v33, %s6641_s26  ;;  %4656 = vrot.lane.b32.xlu1 %v13077_v55, %s6641_s26 }
 0xe53   : > { %4660 = vrot.lane.b32.xlu0 %v13078_v30, %s6641_s26 }
 0xe58   : > { %4646 = vrot.lane.b32.xlu2 %v13079_v58, %s6641_s26  ;;  %4662 = vrot.lane.b32.xlu1 %v13080_v23, %s6641_s26 }
 0xe5b   : > { %4666 = vrot.lane.b32.xlu0 %v13081_v0, %s6641_s26 }
 0xe60   : > { %4652 = vrot.lane.b32.xlu2 %v13082_v17, %s6641_s26  ;;  %4668 = vrot.lane.b32.xlu1 %v13083_v44, %s6641_s26 }
 0xe67   : > { %v11087_v12 = vpop.xlane.xlu0 %4586 }
 0xe68   : > { %4658 = vrot.lane.b32.xlu2 %v13084_v34, %s6641_s26 }
 0xe6f   : > { %v11091_v3 = vpop.xlane.xlu0 %4595 }
 0xe70   : > { %4664 = vrot.lane.b32.xlu2 %v13085_v52, %s6641_s26 }
 0xe72   : > { %v11093_v1 = vpop.xlane.xlu1 %4592 }
 0xe7a   : > { %v11095_v33 = vpop.xlane.xlu0 %4604  ;;  %v11099_v30 = vpop.xlane.xlu1 %4601 }
 0xe82   : > { %v11101_v58 = vpop.xlane.xlu0 %4613  ;;  %v11105_v0 = vpop.xlane.xlu1 %4610 }
 0xe83   : > { %v11097_v55 = vpop.xlane.xlu2 %4589 }
 0xe8a   : > { %v11107_v17 = vpop.xlane.xlu0 %4622  ;;  %v11111_v34 = vpop.xlane.xlu1 %4619 }
 0xe8b   : > { %v11103_v23 = vpop.xlane.xlu2 %4598 }
 0xe92   : > { %v11115_v18 = vpop.xlane.xlu0 %4631  ;;  %v11117_v53 = vpop.xlane.xlu1 %4628 }
 0xe93   : > { %v11109_v44 = vpop.xlane.xlu2 %4607  ;;  %13086 = vst [vmem:[#allocation124_spill] sm:$0xff] %v11115_v18 }
 0xe94   : > { %13087 = vst [vmem:[#allocation102_spill] sm:$0xff] %v11117_v53 }
 0xe9b   : > { %v11113_v52 = vpop.xlane.xlu2 %4616 }
 0xea3   : > { %v11119_v61 = vpop.xlane.xlu2 %4625 }
 0xea5   : > { %v4639_v9 = vpop.permute.xlu0 %4638 }
 0xea6   : > { %v4690_v39 = vsel %vm518_vm1, %v4639_v9, 0.0 }
 0xea7   : > { %4691 = vadd.xlane.f32.xlu0 %v4690_v39 }
 0xeaa   : > { %v4637_v60 = vpop.permute.xlu1 %4636 }
 0xeab   : > { %v11122_v36 = vpop.xlane.xlu2 %4634  ;;  %v4687_v62 = vsel %vm518_vm1, %v4637_v60, 0.0 }
 0xeac   : > { %13088 = vst [vmem:[#allocation123_spill] sm:$0xff] %v11122_v36  ;;  %4688 = vadd.xlane.f32.xlu2 %v4687_v62 }
 0xead   : > { %v4643_v6 = vpop.permute.xlu0 %4642 }
 0xeae   : > { %v4696_v14 = vsel %vm518_vm1, %v4643_v6, 0.0 }
 0xeb2   : > { %v4645_v27 = vpop.permute.xlu1 %4644 }
 0xeb3   : > { %v4641_v43 = vpop.permute.xlu2 %4640  ;;  %v4699_v38 = vsel %vm518_vm1, %v4645_v27, 0.0 }
 0xeb4   : > { %v4693_v31 = vsel %vm518_vm1, %v4641_v43, 0.0  ;;  %4697 = vadd.xlane.f32.xlu2 %v4696_v14  ;;  %4700 = vadd.xlane.f32.xlu0 %v4699_v38 }
 0xeb5   : > { %4694 = vadd.xlane.f32.xlu1 %v4693_v31  ;;  %v4649_v9 = vpop.permute.xlu0 %4648 }
 0xeb6   : > { %v4705_v48 = vsel %vm518_vm1, %v4649_v9, 0.0 }
 0xeba   : > { %v4651_v39 = vpop.permute.xlu1 %4650 }
 0xebb   : > { %v4647_v22 = vpop.permute.xlu2 %4646  ;;  %v4708_v60 = vsel %vm518_vm1, %v4651_v39, 0.0 }
 0xebc   : > { %v4702_v62 = vsel %vm518_vm1, %v4647_v22, 0.0  ;;  %4706 = vadd.xlane.f32.xlu2 %v4705_v48  ;;  %4709 = vadd.xlane.f32.xlu0 %v4708_v60 }
 0xebd   : > { %4703 = vadd.xlane.f32.xlu1 %v4702_v62  ;;  %v4655_v6 = vpop.permute.xlu0 %4654 }
 0xebe   : > { %v4714_v27 = vsel %vm518_vm1, %v4655_v6, 0.0 }
 0xec2   : > { %v4657_v36 = vpop.permute.xlu1 %4656 }
 0xec3   : > { %v4653_v43 = vpop.permute.xlu2 %4652  ;;  %v4717_v14 = vsel %vm518_vm1, %v4657_v36, 0.0 }
 0xec4   : > { %v4711_v31 = vsel %vm518_vm1, %v4653_v43, 0.0  ;;  %4715 = vadd.xlane.f32.xlu2 %v4714_v27  ;;  %4718 = vadd.xlane.f32.xlu0 %v4717_v14 }
 0xec5   : > { %4712 = vadd.xlane.f32.xlu1 %v4711_v31  ;;  %v4661_v38 = vpop.permute.xlu0 %4660  ;;  %v4739_v31 = vmax.f32 %v10925_v40, %v11002_v46 }
 0xec6   : > { %v4723_v39 = vsel %vm518_vm1, %v4661_v38, 0.0 }
 0xec7   : > { %v4756_v38 = vmax.f32 %v4739_v31, %v11097_v55 }
 0xeca   : > { %v4663_v9 = vpop.permute.xlu1 %4662 }
 0xecb   : > { %v4659_v22 = vpop.permute.xlu2 %4658  ;;  %v4726_v48 = vsel %vm518_vm1, %v4663_v9, 0.0 }
 0xecc   : > { %v4720_v60 = vsel %vm518_vm1, %v4659_v22, 0.0  ;;  %4724 = vadd.xlane.f32.xlu2 %v4723_v39  ;;  %4727 = vadd.xlane.f32.xlu0 %v4726_v48  ;;  %v4738_v22 = vmax.f32 %v10921_v37, %v11010_v15 }
 0xecd   : > { %4721 = vadd.xlane.f32.xlu1 %v4720_v60  ;;  %v4667_v62 = vpop.permute.xlu0 %4666 }
 0xece   : > { %v4732_v36 = vsel %vm518_vm1, %v4667_v62, 0.0 }
 0xed2   : > { %v4669_v6 = vpop.permute.xlu1 %4668 }
 0xed3   : > { %v4665_v43 = vpop.permute.xlu2 %4664  ;;  %v4735_v27 = vsel %vm518_vm1, %v4669_v6, 0.0 }
 0xed4   : > { %v4729_v14 = vsel %vm518_vm1, %v4665_v43, 0.0  ;;  %4733 = vadd.xlane.f32.xlu2 %v4732_v36  ;;  %4736 = vadd.xlane.f32.xlu0 %v4735_v27  ;;  %v4755_v36 = vmax.f32 %v4738_v22, %v11087_v12  ;;  %v4742_v22 = vmax.f32 %v10931_v2, %v11012_v10 }
 0xed5   : > { %4730 = vadd.xlane.f32.xlu1 %v4729_v14 }
 0xf1a   : > { %v4692_v9 = vpop.xlane.xlu0 %4691 }
 0xf1b   : > { %v4773_v39 = vmax.f32 %v4756_v38, %v4692_v9 }
 0xf1d   : > { %v4790_v48 = vsub.f32 %v10925_v40, %v4773_v39  ;;  %v4841_v60 = vsub.f32 %v11002_v46, %v4773_v39  ;;  %v4892_v62 = vsub.f32 %v11097_v55, %v4773_v39  ;;  %v4943_v6 = vsub.f32 %v4692_v9, %v4773_v39 }
 0xf1e   : > { %v4741_v55 = vmax.f32 %v10927_v32, %v11016_v7 }
 0xf1f   : > { %v4808_v43 = vmul.f32 1.442695, %v4790_v48  ;;  %v4859_v27 = vmul.f32 1.442695, %v4841_v60  ;;  %v4689_v14 = vpop.xlane.xlu2 %4688  ;;  %v4910_v53 = vmul.f32 1.442695, %v4892_v62 }
 0xf20   : > { %v4772_v18 = vmax.f32 %v4755_v36, %v4689_v14  ;;  %v4961_v31 = vmul.f32 1.442695, %v4943_v6  ;;  %v4758_v60 = vmax.f32 %v4741_v55, %v11091_v3  ;;  %v4740_v55 = vmax.f32 %v10919_v19, %v11008_v11 }
 0xf21   : > { %6389 = vpow2.f32 %v4808_v43 }
 0xf22   : > { %6391 = vpow2.f32 %v4859_v27  ;;  %v4789_v38 = vsub.f32 %v10921_v37, %v4772_v18  ;;  %v4840_v24 = vsub.f32 %v11010_v15, %v4772_v18  ;;  %v4891_v40 = vsub.f32 %v11087_v12, %v4772_v18 }
 0xf23   : > { %v4942_v46 = vsub.f32 %v4689_v14, %v4772_v18  ;;  %6393 = vpow2.f32 %v4910_v53  ;;  %v4759_v15 = vmax.f32 %v4742_v22, %v11103_v23 }
 0xf24   : > { %v4806_v9 = vmul.f32 1.442695, %v4789_v38  ;;  %v4857_v39 = vmul.f32 1.442695, %v4840_v24  ;;  %6395 = vpow2.f32 %v4961_v31  ;;  %v4908_v48 = vmul.f32 1.442695, %v4891_v40 }
 0xf25   : > { %v4959_v18 = vmul.f32 1.442695, %v4942_v46 }
 0xf26   : > { %6397 = vpow2.f32 %v4806_v9 }
 0xf27   : > { %v11157_v37 = vpop.eup %6389  ;;  %6399 = vpow2.f32 %v4857_v39  ;;  %v4698_v12 = vpop.xlane.xlu2 %4697 }
 0xf28   : > { %v11160_v62 = vpop.eup %6391  ;;  %v4775_v53 = vmax.f32 %v4758_v60, %v4698_v12  ;;  %v4701_v6 = vpop.xlane.xlu0 %4700  ;;  %6401 = vpow2.f32 %v4908_v48 }
 0xf29   : > { %13089 = vst [vmem:[#allocation113_spill] sm:$0xff] %v11160_v62  ;;  %v4994_v36 = vadd.f32 %v11160_v62, %v11157_v37  ;;  %v4776_v43 = vmax.f32 %v4759_v15, %v4701_v6  ;;  %v11166_v27 = vpop.eup %6393  ;;  %6403 = vpow2.f32 %v4959_v18  ;;  %v4757_v15 = vmax.f32 %v4740_v55, %v11093_v1 }
 0xf2a   : > { %13090 = vst [vmem:[#allocation92_spill] sm:$0xff] %v11166_v27  ;;  %v4792_v14 = vsub.f32 %v10927_v32, %v4775_v53  ;;  %v4843_v31 = vsub.f32 %v11016_v7, %v4775_v53  ;;  %v4894_v38 = vsub.f32 %v11091_v3, %v4775_v53  ;;  %v4945_v40 = vsub.f32 %v4698_v12, %v4775_v53  ;;  %v11171_v46 = vpop.eup %6395 }
 0xf2b   : > { %13091 = vst [vmem:[#allocation116_spill] sm:$0xff] %v11171_v46  ;;  %v5011_v9 = vadd.f32 %v11166_v27, %v4994_v36  ;;  %v4793_v39 = vsub.f32 %v10931_v2, %v4776_v43  ;;  %v4844_v3 = vsub.f32 %v11012_v10, %v4776_v43  ;;  %v4895_v18 = vsub.f32 %v11103_v23, %v4776_v43  ;;  %v4695_v2 = vpop.xlane.xlu1 %4694 }
 0xf2c   : > { %v11177_v22 = vpop.eup %6397  ;;  %v4812_v48 = vmul.f32 1.442695, %v4792_v14  ;;  %v4863_v7 = vmul.f32 1.442695, %v4843_v31  ;;  %v4914_v53 = vmul.f32 1.442695, %v4894_v38  ;;  %v4744_v36 = vmax.f32 %v10933_v50, %v11024_v21 }
 0xf2d   : > { %v11182_v60 = vpop.eup %6399  ;;  %v11186_v12 = vadd.f32 %v11171_v46, %v5011_v9  ;;  %v4965_v31 = vmul.f32 1.442695, %v4945_v40  ;;  %v4814_v55 = vmul.f32 1.442695, %v4793_v39  ;;  %v4946_v32 = vsub.f32 %v4701_v6, %v4776_v43 }
 0xf2e   : > { %13092 = vst [vmem:[#allocation34_spill] sm:$0xff] %v11182_v60  ;;  %v4993_v14 = vadd.f32 %v11182_v60, %v11177_v22  ;;  %6405 = vpow2.f32 %v4812_v48  ;;  %v11193_v10 = vpop.eup %6401  ;;  %v4774_v9 = vmax.f32 %v4757_v15, %v4695_v2  ;;  %v4761_v38 = vmax.f32 %v4744_v36, %v11095_v33 }
 0xf2f   : > { %13093 = vst [vmem:[#allocation69_spill] sm:$0xff] %v11193_v10  ;;  %6407 = vrcp.f32 %v11186_v12  ;;  %v4865_v24 = vmul.f32 1.442695, %v4844_v3  ;;  %v11198_v46 = vpop.eup %6403  ;;  %v4916_v27 = vmul.f32 1.442695, %v4895_v18  ;;  %v4707_v62 = vpop.xlane.xlu2 %4706  ;;  %v4745_v39 = vmax.f32 %v10937_v8, %v11018_v49 }
 0xf30   : > { %v5010_v23 = vadd.f32 %v11193_v10, %v4993_v14  ;;  %6409 = vpow2.f32 %v4863_v7  ;;  %13094 = vst [vmem:[#allocation119_spill] sm:$0xff] %v11198_v46  ;;  %v4791_v48 = vsub.f32 %v10919_v19, %v4774_v9  ;;  %v4842_v40 = vsub.f32 %v11008_v11, %v4774_v9 }
 0xf31   : > { %6411 = vpow2.f32 %v4914_v53  ;;  %v4893_v6 = vsub.f32 %v11093_v1, %v4774_v9  ;;  %v4778_v43 = vmax.f32 %v4761_v38, %v4707_v62  ;;  %v4967_v7 = vmul.f32 1.442695, %v4946_v32 }
 0xf32   : > { %v11203_v60 = vadd.f32 %v11198_v46, %v5010_v23  ;;  %6413 = vpow2.f32 %v4965_v31  ;;  %v4944_v3 = vsub.f32 %v4695_v2, %v4774_v9  ;;  %v4810_v11 = vmul.f32 1.442695, %v4791_v48  ;;  %v4710_v9 = vpop.xlane.xlu0 %4709 }
 0xf33   : > { %6415 = vpow2.f32 %v4814_v55  ;;  %v4795_v53 = vsub.f32 %v10933_v50, %v4778_v43  ;;  %v4762_v36 = vmax.f32 %v4745_v39, %v11109_v44  ;;  %v4861_v32 = vmul.f32 1.442695, %v4842_v40  ;;  %v4704_v39 = vpop.xlane.xlu1 %4703 }
 0xf34   : > { %v11208_v15 = vpop.eup %6405  ;;  %6417 = vrcp.f32 %v11203_v60  ;;  %v4912_v14 = vmul.f32 1.442695, %v4893_v6  ;;  %v4846_v31 = vsub.f32 %v11024_v21, %v4778_v43  ;;  %v4897_v55 = vsub.f32 %v11095_v33, %v4778_v43 }
 0xf35   : > { %v11214_v18 = vpop.eup %6407  ;;  %6419 = vpow2.f32 %v4865_v24  ;;  %v4963_v24 = vmul.f32 1.442695, %v4944_v3  ;;  %v4948_v40 = vsub.f32 %v4707_v62, %v4778_v43  ;;  %v4779_v6 = vmax.f32 %v4762_v36, %v4710_v9 }
 0xf36   : > { %v11219_v2 = vpop.eup %6409  ;;  %6421 = vpow2.f32 %v4916_v27  ;;  %v4818_v27 = vmul.f32 1.442695, %v4795_v53  ;;  %v4747_v33 = vmax.f32 %v10939_v56, %v11030_v42  ;;  %v4920_v3 = vmul.f32 1.442695, %v4897_v55 }
 0xf37   : > { %13095 = vst [vmem:[#allocation93_spill] sm:$0xff] %v11219_v2  ;;  %v11223_v38 = vpop.eup %6411  ;;  %v4996_v23 = vadd.f32 %v11219_v2, %v11208_v15  ;;  %6423 = vpow2.f32 %v4967_v7  ;;  %v4869_v7 = vmul.f32 1.442695, %v4846_v31  ;;  %v4847_v53 = vsub.f32 %v11018_v49, %v4779_v6 }
 0xf38   : > { %13096 = vst [vmem:[#allocation106_spill] sm:$0xff] %v11223_v38  ;;  %v11229_v48 = vpop.eup %6413  ;;  %6425 = vpow2.f32 %v4810_v11  ;;  %v4796_v11 = vsub.f32 %v10937_v8, %v4779_v6  ;;  %v4898_v36 = vsub.f32 %v11109_v44, %v4779_v6  ;;  %v4971_v31 = vmul.f32 1.442695, %v4948_v40 }
 0xf39   : > { %13097 = vst [vmem:[#allocation55_spill] sm:$0xff] %v11229_v48  ;;  %v11231_v21 = vpop.eup %6415  ;;  %v5013_v1 = vadd.f32 %v11223_v38, %v4996_v23  ;;  %6427 = vpow2.f32 %v4861_v32  ;;  %v13100_v32 = vmax.f32 %v10923_v29, %v11006_v45  ;;  %v4949_v55 = vsub.f32 %v4710_v9, %v4779_v6 }
 0xf3a   : > { %v11238_v19 = vpop.eup %6417  ;;  %6429 = vpow2.f32 %v4912_v14  ;;  %v4820_v44 = vmul.f32 1.442695, %v4796_v11  ;;  %v4764_v40 = vmax.f32 %v4747_v33, %v11101_v58  ;;  %v4871_v46 = vmul.f32 1.442695, %v4847_v53 }
 0xf3b   : > { %v11241_v62 = vpop.eup %6419  ;;  %v11244_v43 = vadd.f32 %v11229_v48, %v5013_v1  ;;  %6431 = vpow2.f32 %v4963_v24  ;;  %v4760_v14 = vmax.f32 %v13100_v32, %v11099_v30  ;;  %v4922_v49 = vmul.f32 1.442695, %v4898_v36 }
 0xf3c   : > { %13098 = vst [vmem:[#allocation81_spill] sm:$0xff] %v11241_v62  ;;  %v11248_v23 = vpop.eup %6421  ;;  %v4997_v8 = vadd.f32 %v11241_v62, %v11231_v21  ;;  %6433 = vpow2.f32 %v4818_v27 }
 0xf3d   : > { %13099 = vst [vmem:[#allocation96_spill] sm:$0xff] %v11248_v23  ;;  %v11256_v1 = vpop.eup %6423  ;;  %6435 = vrcp.f32 %v11244_v43  ;;  %v4777_v48 = vmax.f32 %v4760_v14, %v4704_v39 }
 0xf3e   : > { %13101 = vst [vmem:[#allocation107_spill] sm:$0xff] %v11256_v1  ;;  %v11261_v24 = vpop.eup %6425  ;;  %v5014_v32 = vadd.f32 %v11248_v23, %v4997_v8  ;;  %6437 = vpow2.f32 %v4869_v7  ;;  %v4716_v7 = vpop.xlane.xlu2 %4715  ;;  %v4973_v8 = vmul.f32 1.442695, %v4949_v55 }
 0xf3f   : > { %v11266_v27 = vpop.eup %6427  ;;  %6439 = vpow2.f32 %v4920_v3  ;;  %v4794_v11 = vsub.f32 %v10923_v29, %v4777_v48  ;;  %v4845_v33 = vsub.f32 %v11006_v45, %v4777_v48  ;;  %v4896_v3 = vsub.f32 %v11099_v30, %v4777_v48 }
 0xf40   : > { %13102 = vst [vmem:[#allocation97_spill] sm:$0xff] %v11266_v27  ;;  %v11269_v38 = vpop.eup %6429  ;;  %v11272_v9 = vadd.f32 %v11256_v1, %v5014_v32  ;;  %v4995_v6 = vadd.f32 %v11266_v27, %v11261_v24  ;;  %6441 = vpow2.f32 %v4971_v31  ;;  %v4947_v32 = vsub.f32 %v4704_v39, %v4777_v48  ;;  %v4719_v39 = vpop.xlane.xlu0 %4718 }
 0xf41   : > { %13103 = vst [vmem:[#allocation89_spill] sm:$0xff] %v11269_v38  ;;  %v11277_v14 = vpop.eup %6431  ;;  %6443 = vpow2.f32 %v4820_v44  ;;  %v4781_v50 = vmax.f32 %v4764_v40, %v4716_v7  ;;  %v5062_v29 = vmul.f32 %v11214_v18, %v11186_v12  ;;  %v4816_v44 = vmul.f32 1.442695, %v4794_v11 }
 0xf42   : > { %13104 = vst [vmem:[#allocation99_spill] sm:$0xff] %v11277_v14  ;;  %v11281_v53 = vpop.eup %6433  ;;  %6445 = vrcp.f32 %v11272_v9  ;;  %v5012_v36 = vadd.f32 %v11269_v38, %v4995_v6  ;;  %v4867_v55 = vmul.f32 1.442695, %v4845_v33  ;;  %v4918_v30 = vmul.f32 1.442695, %v4896_v3  ;;  %v11312_v3 = vpop.xlane.xlu1 %4712 }
 0xf43   : > { %v11285_v31 = vpop.eup %6435  ;;  %6447 = vpow2.f32 %v4871_v46  ;;  %v4798_v23 = vsub.f32 %v10939_v56, %v4781_v50  ;;  %v4849_v12 = vsub.f32 %v11030_v42, %v4781_v50  ;;  %v4900_v46 = vsub.f32 %v11101_v58, %v4781_v50 }
 0xf44   : > { %v11289_v1 = vpop.eup %6437  ;;  %v11292_v45 = vadd.f32 %v11277_v14, %v5012_v36  ;;  %6449 = vpow2.f32 %v4922_v49  ;;  %v13108_v49 = vmax.f32 %v10929_v16, %v11014_v54  ;;  %v13109_v56 = vmax.f32 %v10945_v26, %v11022_v57 }
 0xf45   : > { %13105 = vst [vmem:[#allocation27_spill] sm:$0xff] %v11289_v1  ;;  %v11295_v6 = vpop.eup %6439  ;;  %v4999_v48 = vadd.f32 %v11289_v1, %v11281_v53  ;;  %6451 = vpow2.f32 %v4973_v8  ;;  %v4969_v8 = vmul.f32 1.442695, %v4947_v32  ;;  %v5079_v58 = vsub.f32 2.0, %v5062_v29 }
 0xf46   : > { %13106 = vst [vmem:[#allocation21_spill] sm:$0xff] %v11295_v6  ;;  %v11301_v40 = vpop.eup %6441  ;;  %v4763_v11 = vmax.f32 %v13108_v49, %v11105_v0  ;;  %v4765_v33 = vmax.f32 %v13109_v56, %v11113_v52  ;;  %6453 = vrcp.f32 %v11292_v45  ;;  %v4951_v14 = vsub.f32 %v4716_v7, %v4781_v50 }
 0xf47   : > { %13107 = vst [vmem:[#allocation37_spill] sm:$0xff] %v11301_v40  ;;  %v11314_v42 = vpop.eup %6443  ;;  %v5016_v36 = vadd.f32 %v11295_v6, %v4999_v48  ;;  %6455 = vpow2.f32 %v4816_v44  ;;  %v4824_v49 = vmul.f32 1.442695, %v4798_v23  ;;  %v4875_v10 = vmul.f32 1.442695, %v4849_v12 }
 0xf48   : > { %v11317_v38 = vpop.eup %6445  ;;  %6457 = vpow2.f32 %v4867_v55  ;;  %v4782_v62 = vmax.f32 %v4765_v33, %v4719_v39  ;;  %v4926_v32 = vmul.f32 1.442695, %v4900_v46  ;;  %v4780_v2 = vmax.f32 %v4763_v11, %v11312_v3 }
 0xf49   : > { %v11319_v1 = vpop.eup %6447  ;;  %v11322_v56 = vadd.f32 %v11301_v40, %v5016_v36  ;;  %6459 = vpow2.f32 %v4918_v30  ;;  %v4753_v55 = vmax.f32 %v10947_v47, %v11040_v41  ;;  %v4977_v30 = vmul.f32 1.442695, %v4951_v14 }
 0xf4a   : > { %13110 = vst [vmem:[#allocation32_spill] sm:$0xff] %v11319_v1  ;;  %v11325_v29 = vpop.eup %6449  ;;  %v5000_v50 = vadd.f32 %v11319_v1, %v11314_v42  ;;  %6461 = vpow2.f32 %v4969_v8  ;;  %v4799_v7 = vsub.f32 %v10945_v26, %v4782_v62  ;;  %v4850_v23 = vsub.f32 %v11022_v57, %v4782_v62 }
 0xf4b   : > { %13111 = vst [vmem:[#allocation26_spill] sm:$0xff] %v11325_v29  ;;  %v11331_v44 = vpop.eup %6451  ;;  %6463 = vrcp.f32 %v11322_v56  ;;  %v4901_v48 = vsub.f32 %v11113_v52, %v4782_v62  ;;  %v13113_v46 = vmax.f32 %v10943_v35, %v11035_v28  ;;  %v4952_v57 = vsub.f32 %v4719_v39, %v4782_v62 }
 0xf4c   : > { %13112 = vst [vmem:[#allocation44_spill] sm:$0xff] %v11331_v44  ;;  %v11337_v12 = vpop.eup %6453  ;;  %v5017_v26 = vadd.f32 %v11325_v29, %v5000_v50  ;;  %6465 = vpow2.f32 %v4824_v49  ;;  %v13114_v8 = vmax.f32 %v10935_v5, %v11020_v63  ;;  %v11353_v52 = vmul.f32 %v11214_v18, %v5079_v58 }
 0xf4d   : > { %v4767_v11 = vmax.f32 %v13113_v46, %v11107_v17  ;;  %v11344_v33 = vpop.eup %6455  ;;  %6467 = vpow2.f32 %v4875_v10  ;;  %v4826_v36 = vmul.f32 1.442695, %v4799_v7  ;;  %v4877_v62 = vmul.f32 1.442695, %v4850_v23  ;;  %v4725_v23 = vpop.xlane.xlu2 %4724 }
 0xf4e   : > { %v11350_v14 = vmax.f32 %v13114_v8, %v11111_v34  ;;  %13115 = vst [vmem:[#allocation42_spill] sm:$0xff] %v11353_v52  ;;  %v11355_v40 = vpop.eup %6457  ;;  %v11358_v46 = vadd.f32 %v11331_v44, %v5017_v26  ;;  %6469 = vpow2.f32 %v4926_v32  ;;  %v4797_v39 = vsub.f32 %v10929_v16, %v4780_v2  ;;  %v11380_v44 = vpop.xlane.xlu0 %4727 }
 0xf4f   : > { %13116 = vst [vmem:[#allocation38_spill] sm:$0xff] %v11355_v40  ;;  %v11361_v49 = vpop.eup %6459  ;;  %v4998_v50 = vadd.f32 %v11355_v40, %v11344_v33  ;;  %6471 = vpow2.f32 %v4977_v30  ;;  %v4928_v8 = vmul.f32 1.442695, %v4901_v48  ;;  %v4848_v18 = vsub.f32 %v11014_v54, %v4780_v2 }
 0xf50   : > { %v11366_v10 = vpop.eup %6461  ;;  %6473 = vrcp.f32 %v11358_v46  ;;  %v4979_v58 = vmul.f32 1.442695, %v4952_v57  ;;  %v4899_v7 = vsub.f32 %v11105_v0, %v4780_v2  ;;  %v4950_v32 = vsub.f32 %v11312_v3, %v4780_v2 }
 0xf51   : > { %13117 = vst [vmem:[#allocation51_spill] sm:$0xff] %v11366_v10  ;;  %v11371_v16 = vpop.eup %6463  ;;  %v13118_v26 = vmax.f32 %v10950_v25, %v11028_v4  ;;  %v5061_v54 = vmul.f32 %v11238_v19, %v11203_v60  ;;  %v5015_v48 = vadd.f32 %v11361_v49, %v4998_v50  ;;  %6475 = vpow2.f32 %v4826_v36 }
 0xf52   : > { %v11382_v57 = vpop.eup %6465  ;;  %6477 = vpow2.f32 %v4877_v62  ;;  %v4822_v0 = vmul.f32 1.442695, %v4797_v39  ;;  %v4873_v2 = vmul.f32 1.442695, %v4848_v18  ;;  %v4924_v3 = vmul.f32 1.442695, %v4899_v7 }
 0xf53   : > { %v4768_v30 = vmax.f32 %v13118_v26, %v11119_v61  ;;  %v11384_v29 = vpop.eup %6467  ;;  %v11387_v6 = vadd.f32 %v11366_v10, %v5015_v48  ;;  %6479 = vpow2.f32 %v4928_v8  ;;  %v5113_v60 = vmul.f32 %v11157_v37, %v11353_v52  ;;  %v13121_v7 = vld [vmem:[#allocation86_spill] sm:$0xff]  ;;  %v13122_v10 = vld [vmem:[#allocation124_spill] sm:$0xff] }
 0xf54   : > { %13119 = vst [vmem:[#allocation49_spill] sm:$0xff] %v11384_v29  ;;  %v4784_v26 = vmax.f32 %v4767_v11, %v4725_v23  ;;  %v11391_v50 = vpop.eup %6469  ;;  %v5002_v36 = vadd.f32 %v11384_v29, %v11382_v57  ;;  %6481 = vpow2.f32 %v4979_v58  ;;  %v4975_v62 = vmul.f32 1.442695, %v4950_v32  ;;  %v13123_v29 = vld [vmem:[#allocation102_spill] sm:$0xff] }
 0xf55   : > { %v4785_v39 = vmax.f32 %v4768_v30, %v11380_v44  ;;  %v11396_v18 = vpop.eup %6471  ;;  %6483 = vrcp.f32 %v11387_v6  ;;  %v5130_v48 = vmul.f32 %v5113_v60, %v13121_v7  ;;  %v11405_v1 = vmax.f32 %v4753_v55, %v13122_v10 }
 0xf56   : > { %13120 = vst [vmem:[#allocation46_spill] sm:$0xff] %v11396_v18  ;;  %v4801_v8 = vsub.f32 %v10943_v35, %v4784_v26  ;;  %v4852_v37 = vsub.f32 %v11035_v28, %v4784_v26  ;;  %v11402_v11 = vpop.eup %6473  ;;  %v5019_v58 = vadd.f32 %v11391_v50, %v5002_v36  ;;  %6485 = vpow2.f32 %v4822_v0 }
 0xf57   : > { %v4903_v32 = vsub.f32 %v11107_v17, %v4784_v26  ;;  %v11409_v30 = vpop.eup %6475  ;;  %v13124_v60 = vmax.f32 %v10941_v51, %v11026_v20  ;;  %v5078_v35 = vsub.f32 2.0, %v5061_v54  ;;  %6487 = vpow2.f32 %v4873_v2  ;;  %5165 = vrot.lane.b32.xlu2 %v5130_v48, %s6640_s25 }
 0xf58   : > { %v4830_v28 = vmul.f32 1.442695, %v4801_v8  ;;  %v11418_v55 = vpop.eup %6477  ;;  %v11421_v36 = vadd.f32 %v11396_v18, %v5019_v58  ;;  %6489 = vpow2.f32 %v4924_v3  ;;  %v4881_v17 = vmul.f32 1.442695, %v4852_v37  ;;  %v4722_v37 = vpop.xlane.xlu1 %4721 }
 0xf59   : > { %v11415_v7 = vmax.f32 %v13124_v60, %v13123_v29  ;;  %13125 = vst [vmem:[#allocation62_spill] sm:$0xff] %v11418_v55  ;;  %v4954_v0 = vsub.f32 %v4725_v23, %v4784_v26  ;;  %v11423_v40 = vpop.eup %6479  ;;  %v5003_v52 = vadd.f32 %v11418_v55, %v11409_v30  ;;  %6491 = vpow2.f32 %v4975_v62  ;;  %v13127_v26 = vld [vmem:[#allocation123_spill] sm:$0xff] }
 0xf5a   : > { %13126 = vst [vmem:[#allocation58_spill] sm:$0xff] %v11423_v40  ;;  %v4932_v60 = vmul.f32 1.442695, %v4903_v32  ;;  %v4802_v54 = vsub.f32 %v10950_v25, %v4785_v39  ;;  %v11428_v2 = vpop.eup %6481  ;;  %6493 = vrcp.f32 %v11421_v36  ;;  %v4853_v8 = vsub.f32 %v11028_v4, %v4785_v39 }
 0xf5b   : > { %v4983_v48 = vmul.f32 1.442695, %v4954_v0  ;;  %v4904_v3 = vsub.f32 %v11119_v61, %v4785_v39  ;;  %v11433_v23 = vpop.eup %6483  ;;  %v13128_v58 = vmax.f32 %v10953_v59, %v11033_v13  ;;  %v11440_v32 = vmul.f32 %v11238_v19, %v5078_v35 }
 0xf5c   : > { %v5064_v25 = vmul.f32 %v11285_v31, %v11244_v43  ;;  %6495 = vpow2.f32 %v4830_v28  ;;  %v11444_v0 = vpop.eup %6485  ;;  %v5065_v61 = vmul.f32 %v11317_v38, %v11272_v9  ;;  %v5063_v4 = vmul.f32 %v11337_v12, %v11292_v45 }
 0xf5d   : > { %v4771_v62 = vmax.f32 %v13128_v58, %v13127_v26  ;;  %13129 = vst [vmem:[#allocation54_spill] sm:$0xff] %v11440_v32  ;;  %6497 = vpow2.f32 %v4881_v17  ;;  %v4832_v18 = vmul.f32 1.442695, %v4802_v54  ;;  %v11450_v55 = vpop.eup %6487  ;;  %v4883_v58 = vmul.f32 1.442695, %v4853_v8 }
 0xf5e   : > { %13130 = vst [vmem:[#allocation35_spill] sm:$0xff] %v11450_v55  ;;  %6499 = vpow2.f32 %v4932_v60  ;;  %v4955_v19 = vsub.f32 %v11380_v44, %v4785_v39  ;;  %v4783_v35 = vmax.f32 %v11350_v14, %v4722_v37  ;;  %v11454_v43 = vpop.eup %6489  ;;  %v5020_v28 = vadd.f32 %v11423_v40, %v5003_v52 }
 0xf5f   : > { %13131 = vst [vmem:[#allocation30_spill] sm:$0xff] %v11454_v43  ;;  %v5001_v9 = vadd.f32 %v11450_v55, %v11444_v0  ;;  %6501 = vpow2.f32 %v4983_v48  ;;  %v4934_v27 = vmul.f32 1.442695, %v4904_v3  ;;  %v11459_v45 = vpop.eup %6491  ;;  %v5112_v44 = vmul.f32 %v11177_v22, %v11440_v32 }
 0xf60   : > { %v4985_v17 = vmul.f32 1.442695, %v4955_v19  ;;  %v4800_v54 = vsub.f32 %v10935_v5, %v4783_v35  ;;  %v4851_v60 = vsub.f32 %v11020_v63, %v4783_v35  ;;  %v11465_v14 = vpop.eup %6493  ;;  %v5068_v52 = vmul.f32 %v11402_v11, %v11358_v46  ;;  %v11473_v63 = vpop.xlane.xlu2 %4733 }
 0xf61   : > { %v5018_v39 = vadd.f32 %v11454_v43, %v5001_v9  ;;  %6503 = vpow2.f32 %v4832_v18  ;;  %v4902_v48 = vsub.f32 %v11111_v34, %v4783_v35  ;;  %v5081_v3 = vsub.f32 2.0, %v5064_v25  ;;  %v13133_v25 = vld [vmem:[#allocation83_spill] sm:$0xff] }
 0xf62   : > { %v11471_v8 = vpop.eup %6495  ;;  %v5082_v19 = vsub.f32 2.0, %v5065_v61  ;;  %6505 = vpow2.f32 %v4883_v58  ;;  %v4828_v5 = vmul.f32 1.442695, %v4800_v54  ;;  %v4879_v32 = vmul.f32 1.442695, %v4851_v60  ;;  %v4737_v58 = vpop.xlane.xlu0 %4736 }
 0xf63   : > { %v11475_v55 = vpop.eup %6497  ;;  %v5035_v22 = vadd.f32 %v11459_v45, %v5018_v39  ;;  %6507 = vpow2.f32 %v4934_v27  ;;  %v4953_v46 = vsub.f32 %v4722_v37, %v4783_v35  ;;  %v5080_v18 = vsub.f32 2.0, %v5063_v4 }
 0xf64   : > { %13132 = vst [vmem:[#allocation117_spill] sm:$0xff] %v11475_v55  ;;  %v11478_v40 = vpop.eup %6499  ;;  %v11481_v34 = vadd.f32 %v11428_v2, %v5020_v28  ;;  %6509 = vpow2.f32 %v4985_v17  ;;  %v5129_v61 = vmul.f32 %v5112_v44, %v13133_v25  ;;  %v5085_v54 = vsub.f32 2.0, %v5068_v52  ;;  %v11513_v52 = vpop.xlane.xlu1 %4730 }
 0xf65   : > { %v11484_v9 = vpop.eup %6501  ;;  %6511 = vrcp.f32 %v5035_v22  ;;  %v4930_v43 = vmul.f32 1.442695, %v4902_v48  ;;  %v11488_v27 = vmax.f32 %v11405_v1, %v11473_v63  ;;  %v11491_v37 = vmul.f32 %v11285_v31, %v5081_v3 }
 0xf66   : > { %v5066_v4 = vmul.f32 %v11433_v23, %v11387_v6  ;;  %6513 = vpow2.f32 %v4828_v5  ;;  %v4981_v35 = vmul.f32 1.442695, %v4953_v46  ;;  %5163 = vrot.lane.b32.xlu1 %v5129_v61, %s6640_s25  ;;  %v4788_v60 = vmax.f32 %v4771_v62, %v4737_v58 }
 0xf67   : > { %v11496_v28 = vpop.eup %6503  ;;  %6515 = vpow2.f32 %v4879_v32  ;;  %v4804_v17 = vsub.f32 %v10947_v47, %v11488_v27  ;;  %v4855_v1 = vsub.f32 %v11040_v41, %v11488_v27  ;;  %v11505_v31 = vmul.f32 %v11317_v38, %v5082_v19 }
 0xf68   : > { %v11502_v44 = vpop.eup %6505  ;;  %v11508_v6 = vmul.f32 %v11337_v12, %v5080_v18  ;;  %6517 = vrcp.f32 %v11481_v34  ;;  %v4906_v32 = vsub.f32 %v13122_v10, %v11488_v27  ;;  %v11518_v41 = vmul.f32 %v11402_v11, %v5085_v54 }
 0xf69   : > { %13134 = vst [vmem:[#allocation23_spill] sm:$0xff] %v11502_v44  ;;  %v11515_v47 = vpop.eup %6507  ;;  %v5006_v62 = vadd.f32 %v11502_v44, %v11496_v28  ;;  %6519 = vpow2.f32 %v4930_v43  ;;  %v4836_v38 = vmul.f32 1.442695, %v4804_v17  ;;  %v5083_v12 = vsub.f32 2.0, %v5066_v4 }
 0xf6a   : > { %v11522_v39 = vpop.eup %6509  ;;  %6521 = vpow2.f32 %v4981_v35  ;;  %v4887_v48 = vmul.f32 1.442695, %v4855_v1  ;;  %v4938_v3 = vmul.f32 1.442695, %v4906_v32  ;;  %v4805_v5 = vsub.f32 %v10953_v59, %v4788_v60 }
 0xf6b   : > { %v6512_v19 = vpop.eup %6511  ;;  %v5023_v10 = vadd.f32 %v11515_v47, %v5006_v62  ;;  %6523 = vpow2.f32 %v4836_v38  ;;  %v4786_v11 = vmax.f32 %v11415_v7, %v11513_v52  ;;  %v5005_v43 = vadd.f32 %v11475_v55, %v11471_v8 }
 0xf6c   : > { %v11528_v46 = vpop.eup %6513  ;;  %6525 = vpow2.f32 %v4887_v48  ;;  %v4856_v18 = vsub.f32 %v11033_v13, %v4788_v60  ;;  %v4907_v61 = vsub.f32 %v13127_v26, %v4788_v60  ;;  %v4957_v59 = vsub.f32 %v11473_v63, %v11488_v27 }
 0xf6d   : > { %v11534_v54 = vpop.eup %6515  ;;  %v11537_v4 = vadd.f32 %v11522_v39, %v5023_v10  ;;  %v4838_v35 = vmul.f32 1.442695, %v4805_v5  ;;  %v4958_v7 = vsub.f32 %v4737_v58, %v4788_v60  ;;  %v5069_v1 = vmul.f32 %v6512_v19, %v5035_v22 }
 0xf6e   : > { %v11541_v17 = vpop.eup %6517  ;;  %v5004_v32 = vadd.f32 %v11534_v54, %v11528_v46  ;;  %6527 = vpow2.f32 %v4938_v3  ;;  %v4889_v13 = vmul.f32 1.442695, %v4856_v18  ;;  %v4940_v26 = vmul.f32 1.442695, %v4907_v61 }
 0xf6f   : > { %v11545_v62 = vpop.eup %6519  ;;  %6529 = vrcp.f32 %v11537_v4  ;;  %v4991_v38 = vmul.f32 1.442695, %v4958_v7  ;;  %v4803_v48 = vsub.f32 %v10941_v51, %v4786_v11  ;;  %v11552_v63 = vmul.f32 %v11433_v23, %v5083_v12 }
 0xf70   : > { %v11549_v10 = vpop.eup %6521  ;;  %v5021_v22 = vadd.f32 %v11545_v62, %v5004_v32  ;;  %6531 = vpow2.f32 %v4838_v35  ;;  %v4854_v58 = vsub.f32 %v11026_v20, %v4786_v11  ;;  %v5022_v60 = vadd.f32 %v11478_v40, %v5005_v43 }
 0xf71   : > { %v11556_v27 = vpop.eup %6523  ;;  %6533 = vpow2.f32 %v4889_v13  ;;  %v4834_v3 = vmul.f32 1.442695, %v4803_v48  ;;  %v4905_v5 = vsub.f32 %v13123_v29, %v4786_v11  ;;  %v4956_v12 = vsub.f32 %v11513_v52, %v4786_v11 }
 0xf72   : > { %v11560_v18 = vpop.eup %6525  ;;  %v5038_v51 = vadd.f32 %v11549_v10, %v5021_v22  ;;  %6535 = vpow2.f32 %v4940_v26  ;;  %v4885_v23 = vmul.f32 1.442695, %v4854_v58  ;;  %v5071_v61 = vmul.f32 %v11541_v17, %v11481_v34  ;;  %v13136_v26 = vld [vmem:[#allocation94_spill] sm:$0xff] }
 0xf73   : > { %13135 = vst [vmem:[#allocation118_spill] sm:$0xff] %v11560_v18  ;;  %v5086_v20 = vsub.f32 2.0, %v5069_v1  ;;  %v4989_v35 = vmul.f32 1.442695, %v4957_v59  ;;  %6537 = vpow2.f32 %v4991_v38  ;;  %v4936_v43 = vmul.f32 1.442695, %v4905_v5 }
 0xf74   : > { %v11566_v7 = vpop.eup %6527  ;;  %6539 = vrcp.f32 %v5038_v51  ;;  %v5116_v29 = vmul.f32 %v11231_v21, %v11505_v31  ;;  %v5114_v32 = vmul.f32 %v11261_v24, %v11508_v6  ;;  %v5067_v52 = vmul.f32 %v11371_v16, %v11322_v56  ;;  %v13137_v38 = vld [vmem:[#allocation87_spill] sm:$0xff] }
 0xf75   : > { %v11572_v13 = vpop.eup %6529  ;;  %v5039_v34 = vadd.f32 %v11484_v9, %v5022_v60  ;;  %v5008_v11 = vadd.f32 %v11560_v18, %v11556_v27  ;;  %6541 = vpow2.f32 %v4834_v3  ;;  %v4987_v1 = vmul.f32 1.442695, %v4956_v12 }
 0xf76   : > { %v11579_v59 = vpop.eup %6531  ;;  %6543 = vpow2.f32 %v4885_v23  ;;  %v5133_v21 = vmul.f32 %v5116_v29, %v13136_v26  ;;  %v5131_v48 = vmul.f32 %v5114_v32, %v13137_v38  ;;  %v5088_v22 = vsub.f32 2.0, %v5071_v61 }
 0xf77   : > { %v11583_v24 = vpop.eup %6533  ;;  %v11585_v58 = vmul.f32 %v6512_v19, %v5086_v20  ;;  %6545 = vpow2.f32 %v4989_v35  ;;  %v5119_v3 = vmul.f32 %v11314_v42, %v11518_v41  ;;  %v5117_v5 = vmul.f32 %v11344_v33, %v11552_v63 }
 0xf78   : > { %13138 = vst [vmem:[#allocation112_spill] sm:$0xff] %v11583_v24  ;;  %v11587_v56 = vpop.eup %6535  ;;  %v5009_v60 = vadd.f32 %v11583_v24, %v11579_v59  ;;  %6547 = vpow2.f32 %v4936_v43  ;;  %5171 = vrot.lane.b32.xlu1 %v5133_v21, %s6640_s25  ;;  %5167 = vrot.lane.b32.xlu0 %v5131_v48, %s6640_s25  ;;  %v5084_v19 = vsub.f32 2.0, %v5067_v52  ;;  %v5025_v12 = vadd.f32 %v11566_v7, %v5008_v11  ;;  %v13139_v43 = vld [vmem:[#allocation98_spill] sm:$0xff] }
 0xf79   : > { %v11597_v23 = vpop.eup %6537  ;;  %6549 = vrcp.f32 %v5039_v34  ;;  %v5115_v35 = vmul.f32 %v11208_v15, %v11491_v37  ;;  %v5134_v29 = vmul.f32 %v5117_v5, %v13139_v43  ;;  %v11607_v42 = vmul.f32 %v11541_v17, %v5088_v22  ;;  %v13141_v48 = vld [vmem:[#allocation50_spill] sm:$0xff] }
 0xf7a   : > { %v6540_v61 = vpop.eup %6539  ;;  %v5026_v20 = vadd.f32 %v11587_v56, %v5009_v60  ;;  %6551 = vpow2.f32 %v4987_v1  ;;  %v5074_v52 = vmul.f32 %v11572_v13, %v11537_v4  ;;  %v5136_v1 = vmul.f32 %v5119_v3, %v13141_v48 }
 0xf7b   : > { %v11604_v32 = vpop.eup %6541  ;;  %v5072_v33 = vmul.f32 %v6540_v61, %v5038_v51  ;;  %5173 = vrot.lane.b32.xlu2 %v5134_v29, %s6640_s25  ;;  %v5120_v15 = vmul.f32 %v11444_v0, %v11585_v58  ;;  %v11621_v17 = vmul.f32 %v11371_v16, %v5084_v19  ;;  %v5070_v4 = vmul.f32 %v11465_v14, %v11421_v36 }
 0xf7c   : > { %v11609_v21 = vpop.eup %6543  ;;  %v5043_v11 = vadd.f32 %v11597_v23, %v5026_v20  ;;  %v13142_v20 = vld [vmem:[#allocation90_spill] sm:$0xff]  ;;  %v5091_v16 = vsub.f32 2.0, %v5074_v52  ;;  %v5122_v36 = vmul.f32 %v11409_v30, %v11607_v42 }
 0xf7d   : > { %13140 = vst [vmem:[#allocation95_spill] sm:$0xff] %v11609_v21  ;;  %v11618_v60 = vpop.eup %6545  ;;  %v5089_v51 = vsub.f32 2.0, %v5072_v33  ;;  %v5007_v22 = vadd.f32 %v11609_v21, %v11604_v32  ;;  %v5132_v29 = vmul.f32 %v5115_v35, %v13142_v20  ;;  %v13143_v33 = vld [vmem:[#allocation104_spill] sm:$0xff]  ;;  %v5087_v35 = vsub.f32 2.0, %v5070_v4  ;;  %v13145_v4 = vld [vmem:[#allocation103_spill] sm:$0xff] }
 0xf7e   : > { %v11625_v5 = vpop.eup %6547  ;;  %v5042_v3 = vadd.f32 %v11618_v60, %v5025_v12  ;;  %6553 = vrcp.f32 %v5043_v11  ;;  %v5137_v12 = vmul.f32 %v5120_v15, %v13143_v33  ;;  %v11645_v52 = vmul.f32 %v11572_v13, %v5091_v16  ;;  %v13146_v16 = vld [vmem:[#allocation43_spill] sm:$0xff] }
 0xf7f   : > { %v6550_v0 = vpop.eup %6549  ;;  %v5024_v24 = vadd.f32 %v11625_v5, %v5007_v22  ;;  %v11634_v19 = vmul.f32 %v6540_v61, %v5089_v51  ;;  %v5118_v22 = vmul.f32 %v11281_v53, %v11621_v17 }
 0xf80   : > { %v11632_v44 = vpop.eup %6551  ;;  %5177 = vrot.lane.b32.xlu1 %v5136_v1, %s6640_s25  ;;  %5169 = vrot.lane.b32.xlu0 %v5132_v29, %s6640_s25  ;;  %6555 = vrcp.f32 %v5042_v3  ;;  %v5073_v21 = vmul.f32 %v6550_v0, %v5039_v34  ;;  %v13144_v1 = vld [vmem:[#allocation111_spill] sm:$0xff]  ;;  %v5125_v13 = vmul.f32 %v11496_v28, %v11645_v52  ;;  %v11670_v28 = vmul.f32 %v11361_v49, %v11552_v63 }
 0xf81   : > { %v5041_v18 = vadd.f32 %v11632_v44, %v5024_v24  ;;  %v5139_v51 = vmul.f32 %v5122_v36, %v13144_v1  ;;  %v5123_v30 = vmul.f32 %v11528_v46, %v11634_v19  ;;  %v11652_v24 = vmul.f32 %v11465_v14, %v5087_v35 }
 0xf82   : > { %v5135_v29 = vmul.f32 %v5118_v22, %v13145_v4  ;;  %v5090_v53 = vsub.f32 2.0, %v5073_v21 }
 0xf83   : > { %6557 = vrcp.f32 %v5041_v18  ;;  %5179 = vrot.lane.b32.xlu2 %v5137_v12, %s6640_s25  ;;  %v5140_v36 = vmul.f32 %v5123_v30, %v13146_v16  ;;  %v5121_v14 = vmul.f32 %v11382_v57, %v11652_v24  ;;  %v13148_v57 = vld [vmem:[#allocation60_spill] sm:$0xff] }
 0xf84   : > { %v6554_v61 = vpop.eup %6553 }
 0xf85   : > { %v5077_v15 = vmul.f32 %v6554_v61, %v5043_v11  ;;  %v11662_v11 = vmul.f32 %v6550_v0, %v5090_v53  ;;  %v5138_v0 = vmul.f32 %v5121_v14, %v13148_v57 }
 0xf86   : > { %v6556_v34 = vpop.eup %6555 }
 0xf87   : > { %v5094_v55 = vsub.f32 2.0, %v5077_v15  ;;  %v5076_v35 = vmul.f32 %v6556_v34, %v5042_v3  ;;  %v13147_v15 = vld [vmem:[#allocation61_spill] sm:$0xff]  ;;  %v11689_v49 = vmul.f32 %v11478_v40, %v11662_v11 }
 0xf88   : > { %5183 = vrot.lane.b32.xlu1 %v5139_v51, %s6640_s25  ;;  %5175 = vrot.lane.b32.xlu0 %v5135_v29, %s6640_s25  ;;  %v5142_v51 = vmul.f32 %v5125_v13, %v13147_v15 }
 0xf89   : > { %v6558_v12 = vpop.eup %6557  ;;  %v11664_v21 = vmul.f32 %v6554_v61, %v5094_v55  ;;  %v13149_v55 = vld [vmem:[#allocation30_spill] sm:$0xff]  ;;  %v5093_v53 = vsub.f32 2.0, %v5076_v35  ;;  %v13152_v35 = vld [vmem:[#allocation115_spill] sm:$0xff] }
 0xf8a   : > { %v5075_v46 = vmul.f32 %v6558_v12, %v5041_v18  ;;  %v11674_v18 = vmul.f32 %v11391_v50, %v11652_v24  ;;  %v11681_v3 = vmul.f32 %v13149_v55, %v11585_v58  ;;  %v13150_v61 = vld [vmem:[#allocation58_spill] sm:$0xff]  ;;  %v11693_v50 = vmul.f32 %v11545_v62, %v11634_v19 }
 0xf8b   : > { %5185 = vrot.lane.b32.xlu2 %v5140_v36, %s6640_s25  ;;  %v11685_v29 = vmul.f32 %v13150_v61, %v11607_v42  ;;  %v5128_v13 = vmul.f32 %v11579_v59, %v11664_v21  ;;  %v5110_v14 = vmul.f32 %v6556_v34, %v5093_v53  ;;  %v11706_v62 = vmul.f32 %v11515_v47, %v11645_v52  ;;  %v13155_v55 = vld [vmem:[#allocation34_spill] sm:$0xff]  ;;  %v13156_v53 = vld [vmem:[#allocation97_spill] sm:$0xff] }
 0xf8c   : > { %v5092_v22 = vsub.f32 2.0, %v5075_v46  ;;  %v13151_v46 = vld [vmem:[#allocation108_spill] sm:$0xff]  ;;  %v11712_v59 = vmul.f32 %v11428_v2, %v11607_v42  ;;  %v11726_v34 = vmul.f32 %v11587_v56, %v11664_v21  ;;  %v11732_v2 = vmul.f32 %v11522_v39, %v11645_v52 }
 0xf8d   : > { %v11718_v61 = vmul.f32 %v11566_v7, %v5110_v14  ;;  %v5233_v7 = vmul.f32 %v13156_v53, %v11508_v6  ;;  %v11744_v56 = vmul.f32 %v11484_v9, %v11662_v11  ;;  %v11762_v9 = vmul.f32 %v11618_v60, %v5110_v14  ;;  %v13166_v60 = vld [vmem:[#allocation27_spill] sm:$0xff] }
 0xf8e   : > { %v11676_v30 = vmul.f32 %v6558_v12, %v5092_v22  ;;  %v5124_v12 = vmul.f32 %v11471_v8, %v11662_v11  ;;  %v5145_v22 = vmul.f32 %v5128_v13, %v13152_v35  ;;  %v5127_v13 = vmul.f32 %v11556_v27, %v5110_v14 }
 0xf8f   : > { %v5250_v39 = vmul.f32 %v5233_v7, %v13137_v38  ;;  %13160 = vst [vmem:[#allocation114_spill] sm:$0xff] %v11762_v9  ;;  %v13164_v7 = vld [vmem:[#allocation38_spill] sm:$0xff] }
 0xf90   : > { %5189 = vrot.lane.b32.xlu1 %v5142_v51, %s6640_s25  ;;  %5181 = vrot.lane.b32.xlu0 %v5138_v0, %s6640_s25  ;;  %v5126_v36 = vmul.f32 %v11604_v32, %v11676_v30  ;;  %v13153_v51 = vld [vmem:[#allocation52_spill] sm:$0xff]  ;;  %v13154_v0 = vld [vmem:[#allocation54_spill] sm:$0xff]  ;;  %v11722_v47 = vmul.f32 %v11625_v5, %v11676_v30 }
 0xf91   : > { %v5141_v32 = vmul.f32 %v5124_v12, %v13153_v51  ;;  %v5231_v8 = vmul.f32 %v13155_v55, %v13154_v0  ;;  %v11748_v12 = vmul.f32 %v11549_v10, %v11634_v19  ;;  %v11766_v10 = vmul.f32 %v11632_v44, %v11676_v30  ;;  %v13162_v55 = vld [vmem:[#allocation42_spill] sm:$0xff]  ;;  %v13167_v44 = vld [vmem:[#allocation81_spill] sm:$0xff] }
 0xf92   : > { %v5143_v40 = vmul.f32 %v5126_v36, %v13151_v46  ;;  %v11740_v36 = vmul.f32 %v11459_v45, %v11585_v58  ;;  %v11759_v45 = vmul.f32 %v11597_v23, %v11664_v21 }
 0xf93   : > { %v5248_v5 = vmul.f32 %v5231_v8, %v13133_v25  ;;  %13157 = vst [vmem:[#allocation59_spill] sm:$0xff] %v11748_v12  ;;  %v13163_v8 = vld [vmem:[#allocation113_spill] sm:$0xff] }
 0xf94   : > { %5191 = vrot.lane.b32.xlu2 %v5143_v40, %s6640_s25  ;;  %v13158_v40 = vld [vmem:[#allocation110_spill] sm:$0xff]  ;;  %13161 = vst [vmem:[#allocation91_spill] sm:$0xff] %v11766_v10  ;;  %v5232_v53 = vmul.f32 %v13163_v8, %v13162_v55  ;;  %v5235_v8 = vmul.f32 %v13167_v44, %v11505_v31 }
 0xf95   : > { %v5144_v27 = vmul.f32 %v5127_v13, %v13158_v40  ;;  %v5236_v13 = vmul.f32 %v13164_v7, %v11552_v63  ;;  %v13168_v7 = vld [vmem:[#allocation35_spill] sm:$0xff] }
 0xf96   : > { %v5239_v10 = vmul.f32 %v13168_v7, %v11585_v58  ;;  %v5242_v58 = vmul.f32 %v11534_v54, %v11634_v19  ;;  %v13173_v54 = vld [vmem:[#allocation95_spill] sm:$0xff] }
 0xf97   : > { %v5245_v19 = vmul.f32 %v13173_v54, %v11676_v30 }
 0xf98   : > { %5195 = vrot.lane.b32.xlu1 %v5145_v22, %s6640_s25  ;;  %5187 = vrot.lane.b32.xlu0 %v5141_v32, %s6640_s25  ;;  %v13159_v22 = vld [vmem:[#allocation93_spill] sm:$0xff] }
 0xf99   : > { %v5234_v32 = vmul.f32 %v13159_v22, %v11491_v37  ;;  %v5237_v22 = vmul.f32 %v13166_v60, %v11621_v17 }
 0xf9c   : > { %5282 = vrot.lane.b32.xlu2 %v5248_v5, %s6639_s24  ;;  %v5251_v5 = vmul.f32 %v5234_v32, %v13142_v20  ;;  %v5254_v32 = vmul.f32 %v5237_v22, %v13145_v4 }
 0xfa0   : > { %5286 = vrot.lane.b32.xlu1 %v5250_v39, %s6639_s24  ;;  %5193 = vrot.lane.b32.xlu0 %v5144_v27, %s6640_s25  ;;  %v13165_v39 = vld [vmem:[#allocation86_spill] sm:$0xff]  ;;  %v5253_v27 = vmul.f32 %v5236_v13, %v13139_v43  ;;  %v5256_v13 = vmul.f32 %v5239_v10, %v13143_v33  ;;  %v5259_v10 = vmul.f32 %v5242_v58, %v13146_v16  ;;  %v13176_v58 = vld [vmem:[#allocation69_spill] sm:$0xff]  ;;  %s5819_s25 = smul.u32 68, %s6629_s12  ;;  %s5587_s12 = sshll.u32 %s8287_s30, 4  ;;  %s5588_s12 = int_to_ptr.vmem [resolvable:$true] %s5587_s12 }
 0xfa1   : > { %v5249_v23 = vmul.f32 %v5232_v53, %v13165_v39  ;;  %v5252_v53 = vmul.f32 %v5235_v8, %v13136_v26  ;;  %v13171_v8 = vld [vmem:[#allocation117_spill] sm:$0xff]  ;;  %v5350_v30 = vmul.f32 %v13176_v58, %v13154_v0 }
 0xfa2   : > { %v5243_v7 = vmul.f32 %v13171_v8, %v11662_v11  ;;  %s5586_s4 = scalar_lea.hbm %s12077_s2, %s5819_s25 }
 0xfa3   : > { %s5589_s5 = sshll.u32 %s5586_s4, 4  ;;  %s5590_s5 = int_to_ptr.hbm [resolvable:$true] %s5589_s5 }
 0xfa4   : > { %5288 = vrot.lane.b32.xlu2 %v5251_v5, %s6639_s24  ;;  %v13169_v5 = vld [vmem:[#allocation49_spill] sm:$0xff]  ;;  %s6573_s7 = sshra.s32 %s5590_s5, 4  ;;  %s6574_s7 = int_to_ptr.hbm [resolvable:$true] %s6573_s7 }
 0xfa5   : > { %v5240_v60 = vmul.f32 %v13169_v5, %v11652_v24  ;;  %s6575_s8 = scalar_lea.hbm %s6574_s7, 68  ;;  %p6580_p1 = scmp.lt.s32.totalorder %s6574_s7, %s12077_s2 }
 0xfa6   : > { %p6576_p12 = scmp.ne.s32.totalorder %s6574_s7, %s6575_s8  ;;  %p6581_p2 = scmp.lt.s32.totalorder %s6579_s18, %s6575_s8 }
 0xfa7   : > { %v5257_v22 = vmul.f32 %v5240_v60, %v13148_v57  ;;  %v5262_v60 = vmul.f32 %v5245_v19, %v13151_v46 }
 0xfa8   : > { %5284 = vrot.lane.b32.xlu0 %v5249_v23, %s6639_s24  ;;  %5292 = vrot.lane.b32.xlu1 %v5253_v27, %s6639_s24  ;;  %v13170_v23 = vld [vmem:[#allocation32_spill] sm:$0xff]  ;;  %p6577_p13 = pnand %p6576_p12, %p6698_p4  ;;  %p6582_p3 = por %p6581_p2, %p6580_p1 }
 0xfa9   : > { %v5238_v27 = vmul.f32 %v13170_v23, %v11518_v41  ;;  %v13174_v23 = vld [vmem:[#allocation118_spill] sm:$0xff] }
 0xfaa   : > { %v5246_v11 = vmul.f32 %v13174_v23, %v5110_v14  ;;  %v13177_v14 = vld [vmem:[#allocation92_spill] sm:$0xff]  ;;  %p6578_p0 = pneg %p6577_p13 }
 0xfab   : > { %v5255_v44 = vmul.f32 %v5238_v27, %v13141_v48  ;;  %v13175_v27 = vld [vmem:[#allocation23_spill] sm:$0xff]  ;;  %v5351_v8 = vmul.f32 %v13177_v14, %v13162_v55 }
 0xfac   : > { %5294 = vrot.lane.b32.xlu2 %v5254_v32, %s6639_s24  ;;  %v13172_v32 = vld [vmem:[#allocation62_spill] sm:$0xff]  ;;  %p6583_p5 = pnand %p6582_p3, %p6578_p0 }
 0xfad   : > { %v5368_v54 = vmul.f32 %v5351_v8, %v13165_v39 }
 0xfb0   : > { %5290 = vrot.lane.b32.xlu0 %v5252_v53, %s6639_s24  ;;  %5298 = vrot.lane.b32.xlu1 %v5256_v13, %s6639_s24  ;;  %v5241_v53 = vmul.f32 %v13172_v32, %v11607_v42  ;;  %v5260_v13 = vmul.f32 %v5243_v7, %v13153_v51  ;;  %v5244_v42 = vmul.f32 %v13175_v27, %v11645_v52  ;;  %v13178_v52 = vld [vmem:[#allocation112_spill] sm:$0xff]  ;;  %v13179_v32 = vld [vmem:[#allocation106_spill] sm:$0xff]  ;;  %v13182_v27 = vld [vmem:[#allocation21_spill] sm:$0xff] }
 0xfb1   : > { %v5247_v7 = vmul.f32 %v13178_v52, %v11664_v21  ;;  %v11833_v19 = vpop.permute.xlu2 %5165  ;;  %v13181_v21 = vld [vmem:[#allocation89_spill] sm:$0xff]  ;;  %v5372_v52 = vmul.f32 %v11670_v28, %v13139_v43  ;;  %v5379_v28 = vmul.f32 %v11689_v49, %v13153_v51  ;;  %v5382_v49 = vmul.f32 %v11718_v61, %v13158_v40 }
 0xfb2   : > { %v5258_v5 = vmul.f32 %v5241_v53, %v13144_v1  ;;  %v5353_v53 = vmul.f32 %v13179_v32, %v11491_v37 }
 0xfb4   : > { %5300 = vrot.lane.b32.xlu2 %v5257_v22, %s6639_s24  ;;  %v5263_v22 = vmul.f32 %v5246_v11, %v13158_v40  ;;  %v5352_v11 = vmul.f32 %v13181_v21, %v11508_v6 }
 0xfb8   : > { %5296 = vrot.lane.b32.xlu0 %v5255_v44, %s6639_s24  ;;  %5304 = vrot.lane.b32.xlu1 %v5259_v10, %s6639_s24  ;;  %v5261_v44 = vmul.f32 %v5244_v42, %v13147_v15  ;;  %v5367_v10 = vmul.f32 %v5350_v30, %v13133_v25  ;;  %v5356_v42 = vmul.f32 %v13182_v27, %v11621_v17 }
 0xfb9   : > { %v5369_v30 = vmul.f32 %v5352_v11, %v13137_v38  ;;  %v5383_v27 = vmul.f32 %v11726_v34, %v13152_v35 }
 0xfbc   : > { %5306 = vrot.lane.b32.xlu2 %v5260_v13, %s6639_s24  ;;  %v5264_v13 = vmul.f32 %v5247_v7, %v13152_v35  ;;  %v5376_v7 = vmul.f32 %v11674_v18, %v13148_v57 }
 0xfc0   : > { %5302 = vrot.lane.b32.xlu0 %v5258_v5, %s6639_s24  ;;  %5310 = vrot.lane.b32.xlu1 %v5262_v60, %s6639_s24  ;;  %v5370_v5 = vmul.f32 %v5353_v53, %v13142_v20  ;;  %v13180_v60 = vld [vmem:[#allocation96_spill] sm:$0xff] }
 0xfc1   : > { %v5354_v23 = vmul.f32 %v13180_v60, %v11505_v31 }
 0xfc3   : > { %v5371_v58 = vmul.f32 %v5354_v23, %v13136_v26 }
 0xfc4   : > { %5312 = vrot.lane.b32.xlu2 %v5263_v22, %s6639_s24  ;;  %v5373_v22 = vmul.f32 %v5356_v42, %v13145_v4 }
 0xfc8   : > { %5308 = vrot.lane.b32.xlu0 %v5261_v44, %s6639_s24  ;;  %5401 = vrot.lane.b32.xlu1 %v5367_v10, %s6641_s26  ;;  %v13183_v10 = vld [vmem:[#allocation26_spill] sm:$0xff] }
 0xfc9   : > { %v5357_v14 = vmul.f32 %v13183_v10, %v11518_v41 }
 0xfcb   : > { %v5374_v8 = vmul.f32 %v5357_v14, %v13141_v48 }
 0xfcc   : > { %5403 = vrot.lane.b32.xlu2 %v5368_v54, %s6641_s26  ;;  %v5377_v54 = vmul.f32 %v11685_v29, %v13144_v1  ;;  %v5380_v29 = vmul.f32 %v11706_v62, %v13147_v15 }
 0xfd0   : > { %5314 = vrot.lane.b32.xlu0 %v5264_v13, %s6639_s24  ;;  %5407 = vrot.lane.b32.xlu1 %v5370_v5, %s6641_s26  ;;  %v5375_v13 = vmul.f32 %v11681_v3, %v13143_v33  ;;  %v5378_v3 = vmul.f32 %v11693_v50, %v13146_v16  ;;  %v5381_v50 = vmul.f32 %v11722_v47, %v13151_v46 }
 0xfd4   : > { %5409 = vrot.lane.b32.xlu2 %v5371_v58, %s6641_s26 }
 0xfd5   : > { %v11849_v44 = vpop.permute.xlu2 %5173 }
 0xfd8   : > { %5405 = vrot.lane.b32.xlu0 %v5369_v30, %s6641_s26  ;;  %5413 = vrot.lane.b32.xlu1 %v5373_v22, %s6641_s26  ;;  %v5164_v53 = vpop.permute.xlu1 %5163 }
 0xfd9   : > { %v5214_v62 = vadd.f32 %v5164_v53, %v13133_v25 }
 0xfdc   : > { %5415 = vrot.lane.b32.xlu2 %v5374_v8, %s6641_s26 }
 0xfdd   : > { %v11861_v32 = vpop.permute.xlu2 %5179 }
 0xfe0   : > { %5411 = vrot.lane.b32.xlu0 %v5372_v52, %s6641_s26  ;;  %5419 = vrot.lane.b32.xlu1 %v5376_v7, %s6641_s26 }
 0xfe4   : > { %5421 = vrot.lane.b32.xlu2 %v5377_v54, %s6641_s26 }
 0xfe5   : > { %v11872_v5 = vpop.permute.xlu2 %5185 }
 0xfe8   : > { %5417 = vrot.lane.b32.xlu0 %v5375_v13, %s6641_s26  ;;  %5425 = vrot.lane.b32.xlu1 %v5379_v28, %s6641_s26 }
 0xfea   : > { %v11876_v18 = vpop.permute.xlu0 %5167  ;;  %v5172_v60 = vpop.permute.xlu1 %5171 }
 0xfec   : > { %5427 = vrot.lane.b32.xlu2 %v5380_v29, %s6641_s26 }
 0xfee   : > { %v11885_v23 = vpop.permute.xlu2 %5191 }
 0xfef   : > { %13184 = vst [vmem:[#allocation88_spill] sm:$0xff] %v11885_v23 }
 0xff0   : > { %5423 = vrot.lane.b32.xlu0 %v5378_v3, %s6641_s26  ;;  %5431 = vrot.lane.b32.xlu1 %v5382_v49, %s6641_s26 }
 0xff2   : > { %v5170_v21 = vpop.permute.xlu0 %5169  ;;  %v5178_v11 = vpop.permute.xlu1 %5177 }
 0xff3   : > { %v5217_v22 = vadd.f32 %v5170_v21, %v13142_v20 }
 0xff4   : > { %5433 = vrot.lane.b32.xlu2 %v5383_v27, %s6641_s26 }
 0xff6   : > { %v5283_v42 = vpop.permute.xlu2 %5282 }
 0xff7   : > { %v11895_v61 = vadd.f32 %v5283_v42, %v5214_v62 }
 0xff8   : > { %5429 = vrot.lane.b32.xlu0 %v5381_v50, %s6641_s26 }
 0xffa   : > { %v5176_v58 = vpop.permute.xlu0 %5175  ;;  %v5184_v30 = vpop.permute.xlu1 %5183 }
 0xffb   : > { %v5220_v52 = vadd.f32 %v5176_v58, %v13145_v4 }
 0xffe   : > { %v5289_v10 = vpop.permute.xlu2 %5288 }
 0xfff   : > { %v11899_v14 = vadd.f32 %v5289_v10, %v5217_v22 }
0x1002   : > { %v5182_v34 = vpop.permute.xlu0 %5181  ;;  %v11901_v8 = vpop.permute.xlu1 %5189 }
0x1003   : > { %v5223_v13 = vadd.f32 %v5182_v34, %v13148_v57 }
0x1006   : > { %v5295_v7 = vpop.permute.xlu2 %5294 }
0x1007   : > { %v11904_v53 = vadd.f32 %v5295_v7, %v5220_v52  ;;  %v5215_v7 = vadd.f32 %v11833_v19, %v13165_v39 }
0x100a   : > { %v5188_v47 = vpop.permute.xlu0 %5187  ;;  %v11906_v54 = vpop.permute.xlu1 %5195 }
0x100b   : > { %v5226_v21 = vadd.f32 %v5188_v47, %v13153_v51 }
0x100e   : > { %v5301_v28 = vpop.permute.xlu2 %5300 }
0x100f   : > { %v11909_v29 = vadd.f32 %v5301_v28, %v5223_v13  ;;  %v13186_v13 = vld [vmem:[#allocation116_spill] sm:$0xff] }
0x1010   : > { %v5470_v47 = vmul.f32 %v13186_v13, %v13162_v55 }
0x1012   : > { %v5194_v3 = vpop.permute.xlu0 %5193  ;;  %v11911_v49 = vpop.permute.xlu1 %5286 }
0x1013   : > { %v5229_v58 = vadd.f32 %v5194_v3, %v13158_v40 }
0x1016   : > { %v5307_v27 = vpop.permute.xlu2 %5306 }
0x1017   : > { %v11914_v62 = vadd.f32 %v5307_v27, %v5226_v21  ;;  %v5487_v27 = vmul.f32 %v5470_v47, %v13165_v39  ;;  %v13188_v47 = vld [vmem:[#allocation44_spill] sm:$0xff] }
0x101a   : > { %v5285_v50 = vpop.permute.xlu0 %5284  ;;  %v11916_v42 = vpop.permute.xlu1 %5292 }
0x101b   : > { %v5334_v28 = vadd.f32 %v5285_v50, %v5215_v7 }
0x101e   : > { %v5313_v22 = vpop.permute.xlu2 %5312 }
0x101f   : > { %v11919_v10 = vadd.f32 %v5313_v22, %v5229_v58  ;;  %v5218_v58 = vadd.f32 %v5172_v60, %v13136_v26  ;;  %v5221_v60 = vadd.f32 %v5178_v11, %v13141_v48  ;;  %v5224_v11 = vadd.f32 %v5184_v30, %v13144_v1 }
0x1021   : > { %13185 = vst [vmem:[#allocation122_spill] sm:$0xff] %v11919_v10  ;;  %v13187_v10 = vld [vmem:[#allocation107_spill] sm:$0xff] }
0x1022   : > { %v5291_v34 = vpop.permute.xlu0 %5290  ;;  %v11921_v52 = vpop.permute.xlu1 %5298  ;;  %v5473_v40 = vmul.f32 %v13187_v10, %v11505_v31  ;;  %v5476_v31 = vmul.f32 %v13188_v47, %v11518_v41 }
0x1023   : > { %v5337_v19 = vadd.f32 %v5291_v34, %v5218_v58 }
0x1024   : > { %v5490_v39 = vmul.f32 %v5473_v40, %v13136_v26  ;;  %v13189_v40 = vld [vmem:[#allocation119_spill] sm:$0xff] }
0x1026   : > { %v5404_v21 = vpop.permute.xlu2 %5403 }
0x1027   : > { %v5453_v23 = vadd.f32 %v5404_v21, %v5334_v28  ;;  %v5469_v21 = vmul.f32 %v13189_v40, %v13154_v0  ;;  %v5496_v0 = vmul.f32 %v11712_v59, %v13144_v1 }
0x1029   : > { %v5504_v46 = vadd.f32 %v5487_v27, %v5453_v23  ;;  %v5486_v41 = vmul.f32 %v5469_v21, %v13133_v25  ;;  %v13192_v21 = vld [vmem:[#allocation37_spill] sm:$0xff] }
0x102a   : > { %v5297_v3 = vpop.permute.xlu0 %5296  ;;  %v11928_v9 = vpop.permute.xlu1 %5304 }
0x102b   : > { %v5521_v22 = vmul.f32 0.5, %v5504_v46  ;;  %v5340_v10 = vadd.f32 %v5297_v3, %v5221_v60 }
0x102d   : > { %v5538_v12 = vpack.c.bf16 %v5521_v22, %v5521_v22 }
0x102e   : > { %v5410_v55 = vpop.permute.xlu2 %5409 }
0x102f   : > { %5556 = vst.msk [vmem:[%s8287_s30 + $0x4] sm:$0xf] %vm5554_vm5, %v5538_v12  ;;  %v5456_v50 = vadd.f32 %v5410_v55, %v5337_v19  ;;  %v5493_v12 = vmul.f32 %v5476_v31, %v13141_v48 }
0x1031   : > { %v5507_v23 = vadd.f32 %v5490_v39, %v5456_v50 }
0x1032   : > { %v5303_v7 = vpop.permute.xlu0 %5302  ;;  %v11936_v13 = vpop.permute.xlu1 %5310 }
0x1033   : > { %v5524_v46 = vmul.f32 0.5, %v5507_v23  ;;  %v5343_v55 = vadd.f32 %v5303_v7, %v5224_v11 }
0x1035   : > { %v5541_v28 = vpack.c.bf16 %v5524_v46, %v5524_v46  ;;  %v13190_v46 = vld [vmem:[#allocation55_spill] sm:$0xff] }
0x1036   : > { %v5416_v34 = vpop.permute.xlu2 %5415  ;;  %v5472_v30 = vmul.f32 %v13190_v46, %v11491_v37  ;;  %v13191_v37 = vld [vmem:[#allocation99_spill] sm:$0xff]  ;;  %v5219_v46 = vadd.f32 %v11849_v44, %v13139_v43 }
0x1037   : > { %5559 = vst.msk [vmem:[%s8287_s30 + $0x10] sm:$0xf] %vm5554_vm5, %v5541_v28  ;;  %v5459_v26 = vadd.f32 %v5416_v34, %v5340_v10 }
0x1038   : > { %v5489_v28 = vmul.f32 %v5472_v30, %v13142_v20  ;;  %v5499_v20 = vmul.f32 %v11732_v2, %v13147_v15 }
0x1039   : > { %v5510_v27 = vadd.f32 %v5493_v12, %v5459_v26  ;;  %v5471_v26 = vmul.f32 %v13191_v37, %v11508_v6 }
0x103a   : > { %v5309_v58 = vpop.permute.xlu0 %5308  ;;  %v5402_v22 = vpop.permute.xlu1 %5401 }
0x103b   : > { %v5527_v19 = vmul.f32 0.5, %v5510_v27  ;;  %v5452_v3 = vadd.f32 %v5402_v22, %v11895_v61  ;;  %v5227_v61 = vadd.f32 %v11901_v8, %v13147_v15  ;;  %v5475_v27 = vmul.f32 %v13192_v21, %v11621_v17 }
0x103c   : > { %v5216_v8 = vadd.f32 %v11876_v18, %v13137_v38  ;;  %v5488_v6 = vmul.f32 %v5471_v26, %v13137_v38  ;;  %v5230_v18 = vadd.f32 %v11906_v54, %v13152_v35  ;;  %v13193_v38 = vld [vmem:[#allocation51_spill] sm:$0xff]  ;;  %v13194_v54 = vld [vmem:[#allocation46_spill] sm:$0xff] }
0x103d   : > { %v5544_v39 = vpack.c.bf16 %v5527_v19, %v5527_v19  ;;  %v5503_v50 = vadd.f32 %v5486_v41, %v5452_v3  ;;  %v5346_v1 = vadd.f32 %v5309_v58, %v5227_v61  ;;  %v5492_v3 = vmul.f32 %v5475_v27, %v13145_v4 }
0x103e   : > { %v5422_v23 = vpop.permute.xlu2 %5421  ;;  %v5335_v58 = vadd.f32 %v11911_v49, %v5216_v8  ;;  %v5502_v4 = vmul.f32 %v11759_v45, %v13152_v35 }
0x103f   : > { %5562 = vst.msk [vmem:[%s8287_s30 + $0x1c] sm:$0xf] %vm5554_vm5, %v5544_v39  ;;  %v5520_v48 = vmul.f32 0.5, %v5503_v50  ;;  %v5462_v60 = vadd.f32 %v5422_v23, %v5343_v55 }
0x1041   : > { %v5537_v47 = vpack.c.bf16 %v5520_v48, %v5520_v48  ;;  %v5513_v25 = vadd.f32 %v5496_v0, %v5462_v60  ;;  %v5474_v48 = vmul.f32 %v13193_v38, %v11552_v63  ;;  %v5478_v60 = vmul.f32 %v13194_v54, %v11652_v24 }
0x1042   : > { %v5315_v31 = vpop.permute.xlu0 %5314  ;;  %v5408_v10 = vpop.permute.xlu1 %5407 }
0x1043   : > { %5555 = vst.msk [vmem:[%s8287_s30] sm:$0xf] %vm5554_vm5, %v5537_v47  ;;  %v5530_v7 = vmul.f32 0.5, %v5513_v25  ;;  %v5455_v34 = vadd.f32 %v5408_v10, %v11899_v14  ;;  %v5349_v2 = vadd.f32 %v5315_v31, %v5230_v18  ;;  %v5338_v25 = vadd.f32 %v11916_v42, %v5219_v46 }
0x1044   : > { %v5491_v35 = vmul.f32 %v5474_v48, %v13139_v43  ;;  %v5222_v43 = vadd.f32 %v11861_v32, %v13143_v33  ;;  %v5498_v32 = vmul.f32 %v11744_v56, %v13153_v51  ;;  %v13195_v51 = vld [vmem:[#allocation59_spill] sm:$0xff] }
0x1045   : > { %v5547_v59 = vpack.c.bf16 %v5530_v7, %v5530_v7  ;;  %v5506_v12 = vadd.f32 %v5489_v28, %v5455_v34  ;;  %v5495_v7 = vmul.f32 %v5478_v60, %v13148_v57  ;;  %v5497_v56 = vmul.f32 %v13195_v51, %v13146_v16 }
0x1046   : > { %v5428_v40 = vpop.permute.xlu2 %5427  ;;  %v5341_v37 = vadd.f32 %v11921_v52, %v5222_v43 }
0x1047   : > { %5565 = vst.msk [vmem:[%s8287_s30 + $0x28] sm:$0xf] %vm5554_vm5, %v5547_v59  ;;  %v5523_v22 = vmul.f32 0.5, %v5506_v12  ;;  %v5465_v14 = vadd.f32 %v5428_v40, %v5346_v1 }
0x1049   : > { %v5540_v11 = vpack.c.bf16 %v5523_v22, %v5523_v22  ;;  %v5516_v19 = vadd.f32 %v5499_v20, %v5465_v14  ;;  %v5225_v20 = vadd.f32 %v11872_v5, %v13146_v16  ;;  %v13198_v5 = vld [vmem:[#allocation122_spill] sm:$0xff] }
0x104a   : > { %v5406_v41 = vpop.permute.xlu0 %5405  ;;  %v5414_v17 = vpop.permute.xlu1 %5413 }
0x104b   : > { %5558 = vst.msk [vmem:[%s8287_s30 + $0xc] sm:$0xf] %vm5554_vm5, %v5540_v11  ;;  %v5454_v55 = vadd.f32 %v5406_v41, %v5335_v58  ;;  %v5533_v39 = vmul.f32 0.5, %v5516_v19  ;;  %v5458_v15 = vadd.f32 %v5414_v17, %v11904_v53  ;;  %v5344_v11 = vadd.f32 %v11928_v9, %v5225_v20  ;;  %v13196_v41 = vld [vmem:[#allocation110_spill] sm:$0xff] }
0x104d   : > { %v5505_v49 = vadd.f32 %v5488_v6, %v5454_v55  ;;  %v5550_v50 = vpack.c.bf16 %v5533_v39, %v5533_v39  ;;  %v5509_v23 = vadd.f32 %v5492_v3, %v5458_v15  ;;  %v13197_v3 = vld [vmem:[#allocation114_spill] sm:$0xff]  ;;  %v13199_v39 = vld [vmem:[#allocation108_spill] sm:$0xff] }
0x104e   : > { %v5434_v0 = vpop.permute.xlu2 %5433  ;;  %v5501_v17 = vmul.f32 %v13197_v3, %v13196_v41  ;;  %v13200_v15 = vld [vmem:[#allocation88_spill] sm:$0xff] }
0x104f   : > { %v5522_v30 = vmul.f32 0.5, %v5505_v49  ;;  %5568 = vst.msk [vmem:[%s8287_s30 + $0x34] sm:$0xf] %vm5554_vm5, %v5550_v50  ;;  %v5526_v53 = vmul.f32 0.5, %v5509_v23  ;;  %v5468_v47 = vadd.f32 %v5434_v0, %v5349_v2  ;;  %v5228_v2 = vadd.f32 %v13200_v15, %v13199_v39 }
0x1051   : > { %v5539_v63 = vpack.c.bf16 %v5522_v30, %v5522_v30  ;;  %v5543_v31 = vpack.c.bf16 %v5526_v53, %v5526_v53  ;;  %v5519_v10 = vadd.f32 %v5502_v4, %v5468_v47  ;;  %v5347_v16 = vadd.f32 %v11936_v13, %v5228_v2  ;;  %v13201_v4 = vld [vmem:[#allocation91_spill] sm:$0xff] }
0x1052   : > { %v5412_v45 = vpop.permute.xlu0 %5411  ;;  %v5420_v61 = vpop.permute.xlu1 %5419  ;;  %v5500_v0 = vmul.f32 %v13201_v4, %v13199_v39 }
0x1053   : > { %5557 = vst.msk [vmem:[%s8287_s30 + $0x8] sm:$0xf] %vm5554_vm5, %v5539_v63  ;;  %v5457_v24 = vadd.f32 %v5412_v45, %v5338_v25  ;;  %v5536_v44 = vmul.f32 0.5, %v5519_v10  ;;  %v5461_v28 = vadd.f32 %v5420_v61, %v11909_v29  ;;  %v5494_v29 = vmul.f32 %v11740_v36, %v13143_v33 }
0x1054   : > { %5561 = vst.msk [vmem:[%s8287_s30 + $0x18] sm:$0xf] %vm5554_vm5, %v5543_v31 }
0x1055   : > { %v5508_v42 = vadd.f32 %v5491_v35, %v5457_v24  ;;  %v5553_v34 = vpack.c.bf16 %v5536_v44, %v5536_v44  ;;  %v5512_v1 = vadd.f32 %v5495_v7, %v5461_v28 }
0x1057   : > { %v5525_v59 = vmul.f32 0.5, %v5508_v42  ;;  %5571 = vst.msk [vmem:[%s8287_s30 + $0x40] sm:$0xf] %vm5554_vm5, %v5553_v34  ;;  %v5529_v12 = vmul.f32 0.5, %v5512_v1 }
0x1059   : > { %v5542_v26 = vpack.c.bf16 %v5525_v59, %v5525_v59  ;;  %v5546_v40 = vpack.c.bf16 %v5529_v12, %v5529_v12 }
0x105a   : > { %v5418_v57 = vpop.permute.xlu0 %5417  ;;  %v5426_v21 = vpop.permute.xlu1 %5425 }
0x105b   : > { %5560 = vst.msk [vmem:[%s8287_s30 + $0x14] sm:$0xf] %vm5554_vm5, %v5542_v26  ;;  %v5460_v27 = vadd.f32 %v5418_v57, %v5341_v37  ;;  %v5464_v8 = vadd.f32 %v5426_v21, %v11914_v62 }
0x105c   : > { %5564 = vst.msk [vmem:[%s8287_s30 + $0x24] sm:$0xf] %vm5554_vm5, %v5546_v40 }
0x105d   : > { %v5511_v52 = vadd.f32 %v5494_v29, %v5460_v27  ;;  %v5515_v22 = vadd.f32 %v5498_v32, %v5464_v8 }
0x105f   : > { %v5528_v14 = vmul.f32 0.5, %v5511_v52  ;;  %v5532_v58 = vmul.f32 0.5, %v5515_v22 }
0x1061   : > { %v5545_v33 = vpack.c.bf16 %v5528_v14, %v5528_v14  ;;  %v5549_v36 = vpack.c.bf16 %v5532_v58, %v5532_v58 }
0x1062   : > { %v5424_v19 = vpop.permute.xlu0 %5423  ;;  %v5432_v6 = vpop.permute.xlu1 %5431 }
0x1063   : > { %5563 = vst.msk [vmem:[%s8287_s30 + $0x20] sm:$0xf] %vm5554_vm5, %v5545_v33  ;;  %v5463_v62 = vadd.f32 %v5424_v19, %v5344_v11  ;;  %v5467_v18 = vadd.f32 %v5432_v6, %v13198_v5 }
0x1064   : > { %5567 = vst.msk [vmem:[%s8287_s30 + $0x30] sm:$0xf] %vm5554_vm5, %v5549_v36 }
0x1065   : > { %v5514_v9 = vadd.f32 %v5497_v56, %v5463_v62  ;;  %v5518_v55 = vadd.f32 %v5501_v17, %v5467_v18 }
0x1067   : > { %v5531_v49 = vmul.f32 0.5, %v5514_v9  ;;  %v5535_v50 = vmul.f32 0.5, %v5518_v55 }
0x1069   : > { %v5548_v23 = vpack.c.bf16 %v5531_v49, %v5531_v49  ;;  %v5552_v38 = vpack.c.bf16 %v5535_v50, %v5535_v50 }
0x106a   : > { %v5430_v48 = vpop.permute.xlu0 %5429 }
0x106b   : > { %5566 = vst.msk [vmem:[%s8287_s30 + $0x2c] sm:$0xf] %vm5554_vm5, %v5548_v23  ;;  %v5466_v54 = vadd.f32 %v5430_v48, %v5347_v16 }
0x106c   : > { %5570 = vst.msk [vmem:[%s8287_s30 + $0x3c] sm:$0xf] %vm5554_vm5, %v5552_v38 }
0x106d   : > { %v5517_v60 = vadd.f32 %v5500_v0, %v5466_v54 }
0x106f   : > { %v5534_v13 = vmul.f32 0.5, %v5517_v60 }
0x1071   : > { %v5551_v46 = vpack.c.bf16 %v5534_v13, %v5534_v13 }
0x1073   : > { %5569 = vst.msk [vmem:[%s8287_s30 + $0x38] sm:$0xf] %vm5554_vm5, %v5551_v46 }
0x1074   : > { %6586 = shalt.err (!%p6583_p5)
}
0x1075   : > { %s6642_s27 = smov 4  }
0x1076   : > { %5820 = dma.vmem_to_hbm [thread:$0]  (%p6698_p4), %s5588_s12, 1088, %s5590_s5, %s5573_s6, %s6639_s24, %s6639_s24, %s6642_s27  }
0x1077 PF: > { %p5826_p6 = scmp.ge.s32.totalorder %s6637_s14, 2  ;;  %s5604_s28 = sand.u32 1, %s6617_s9  }
0x1078   : > { %s5605_s29 = scalar_lea.sflag [#allocation3], %s5604_s28 }
0x1079   : > { %p5823_p7 = pnand %p5826_p6, %p6705_p8 }
0x107b   : > { %p5824_p9 = pneg %p5823_p7 }
0x107d   : > { %6612 = dma.done.wait (%p5824_p9), %s5605_s29, 1088  }
0x107e   : > { %6614 = vsyncadd (%p5824_p9), %s5605_s29, 4294966208  ;;  %s15_s14 = sadd.s32 1, %s6637_s14   ;;  %s13202_s9 = smov %s6621_s10 }
0x107f   : > { %p12_p10 = scmp.ge.s32.totalorder %s15_s14, 4   ;;  %s13203_s10 = smov %s6625_s11 }
0x1080   : > { %s13204_s11 = smov %s6711_s22  ;;  %s13205_s12 = smov %s6633_s13 }
0x1081   : > { %s13206_s13 = smov %s13208_s17  ;;  %14 = sbr.rel (!%p12_p10) target bundleno = 4 (0x4), region = 63 }
0x1086   :  { %5611 = vsyncpa [#allocation3], 1 }
0x1087   :  { %5613 = vsyncpa [#allocation3 + $0x1], 1 }

</bundles_post_ra>
